<compile_context>
chip_gen: v6e
topology: v6e:2x2x1
jax: 0.10.0
libtpu: 0.0.40
codegen_flags: <defaults>
</compile_context>

<pallas_src>
import functools

import jax
import jax.numpy as jnp
from jax.experimental import pallas as pl
from jax.experimental.pallas import tpu as pltpu


_EPS = 1e-5        # nn.InstanceNorm2d default eps
_ROW_CHUNK = 512   # rows per tap-accumulation chunk (keeps per-chunk f32 acc working set small)


def _round_up(x, m):
    return (x + m - 1) // m * m


def _ext_width(W):
    """Extended flattened row width.  Sublane-align (mult. of 8) only for larger maps,
    where aligned tap slices outweigh the wasted lanes/MXU columns."""
    Wp = W + 2
    if W >= 48:
        Wp = _round_up(Wp, 8)
    return Wp


# ---------------------------------------------------------------------------
# Fused conv3x3(stride 1) + InstanceNorm (+ReLU / +residual) kernels.
#
# Layout: the spatially padded input is flattened per-sample to
#   xp_flat[(h_p)*Wp + w_p, c]        shape ((H+3)*Wp, Cin)
# and the output lives on an extended (H, Wp) grid flattened the same way; the last
# Wp-W columns of each row are junk (wrap-around) and are cropped on the host.  Every
# 3x3 tap is then a contiguous row-slice, so the conv is 9 accumulating GEMMs.
# ---------------------------------------------------------------------------
def _conv3x3_in_core(xp_ref, w_ref, mask_ref, acc_ref, *, H, Wp, W):
    """Writes masked f32 conv output into acc_ref; returns per-channel (mean, inv_std)."""
    Hext = H * Wp
    Ct = w_ref.shape[-1]
    inv_cnt = 1.0 / float(H * W)

    ssum = jnp.zeros((1, Ct), jnp.float32)
    ssq = jnp.zeros((1, Ct), jnp.float32)

    # Row-chunked 9-tap accumulation: per-chunk acc stays hot instead of RMW-ing a
    # monolithic (Hext, Ct) f32 buffer 9 times; stats accumulated in the same pass.
    # TODO(synk): on v6e/v7x with Cin==128 the taps could be packed pairwise along K
    #             (K=256 GEMMs) to better fill the 256-wide MXU.
    for r0 in range(0, Hext, _ROW_CHUNK):
        rows = min(_ROW_CHUNK, Hext - r0)
        acc = None
        for t in range(9):
            kh, kw = divmod(t, 3)
            off = kh * Wp + kw + r0
            tap = xp_ref[0, off:off + rows, :]                       # (rows, Cin) bf16
            contrib = jnp.dot(tap, w_ref[t],
                              preferred_element_type=jnp.float32)    # MXU, f32 accum
            acc = contrib if acc is None else acc + contrib
        acc = acc * mask_ref[r0:r0 + rows, :]                        # zero junk columns
        ssum = ssum + jnp.sum(acc, axis=0, keepdims=True)
        ssq = ssq + jnp.sum(acc * acc, axis=0, keepdims=True)
        acc_ref[r0:r0 + rows, :] = acc

    mean = ssum * inv_cnt
    var = ssq * inv_cnt - mean * mean            # biased variance, matches PyTorch IN
    inv_std = jax.lax.rsqrt(var + _EPS)
    return mean, inv_std


def _conv_in_relu_kernel(xp_ref, w_ref, mask_ref, o_ref, acc_ref, *, H, Wp, W):
    mean, inv_std = _conv3x3_in_core(xp_ref, w_ref, mask_ref, acc_ref, H=H, Wp=Wp, W=W)
    y = (acc_ref[...] - mean) * inv_std
    o_ref[0] = jnp.maximum(y, 0.0).astype(o_ref.dtype)


def _conv_in_res_kernel(xp_ref, w_ref, mask_ref, res_ref, o_ref, acc_ref, *, H, Wp, W):
    mean, inv_std = _conv3x3_in_core(xp_ref, w_ref, mask_ref, acc_ref, H=H, Wp=Wp, W=W)
    y = (acc_ref[...] - mean) * inv_std + res_ref[0].astype(jnp.float32)
    o_ref[0] = y.astype(o_ref.dtype)


def _conv_block_call(kernel, xp_flat, w9, mask, residual, H, Wp, W, out_dtype):
    B, Lp, Cp = xp_flat.shape
    Hext = H * Wp
    Ct = 256 if Cp % 256 == 0 else 128           # Cout tile; 256 matches v6e/v7x MXU width
    n_ct = Cp // Ct

    in_specs = [
        pl.BlockSpec((1, Lp, Cp), lambda b, c: (b, 0, 0)),   # input: resident across Ct axis
        pl.BlockSpec((9, Cp, Ct), lambda b, c: (0, 0, c)),   # weights (small, bf16)
        pl.BlockSpec((Hext, 1), lambda b, c: (0, 0)),        # junk-column mask (tiny, resident)
    ]
    args = [xp_flat, w9, mask]
    if residual is not None:
        in_specs.append(pl.BlockSpec((1, Hext, Ct), lambda b, c: (b, 0, c)))
        args.append(residual)

    out_bytes = jnp.dtype(out_dtype).itemsize
    est = (2 * Lp * Cp * 2                       # bf16 input, double-buffered
           + 2 * 9 * Cp * Ct * 2                 # bf16 weights, double-buffered
           + 2 * Hext * Ct * out_bytes           # output, double-buffered
           + (2 * Hext * Ct * 2 if residual is not None else 0)   # bf16 residual
           + Hext * Ct * 4                       # f32 conv-result scratch
           + 2 * Hext * Ct * 4                   # normalize-pass temporaries
           + 4 * _ROW_CHUNK * Ct * 4             # per-chunk GEMM temporaries
           + (2 << 20))                          # Mosaic internal headroom
    try:
        phys = pltpu.get_tpu_info().vmem_capacity_bytes
    except Exception:
        phys = 64 << 20                          # conservative: v7x per-TC VMEM
    vmem_limit = int(min(max(est, 32 << 20), (phys * 3) // 4))

    return pl.pallas_call(
        kernel,
        out_shape=jax.ShapeDtypeStruct((B, Hext, Cp), out_dtype),
        grid_spec=pltpu.PrefetchScalarGridSpec(
            num_scalar_prefetch=0,
            grid=(B, n_ct),                      # Cout tile innermost: input stays resident
            in_specs=in_specs,
            out_specs=pl.BlockSpec((1, Hext, Ct), lambda b, c: (b, 0, c)),
            scratch_shapes=[pltpu.VMEM((Hext, Ct), jnp.float32)],
        ),
        compiler_params=pltpu.CompilerParams(
            dimension_semantics=("parallel", "parallel"),
            vmem_limit_bytes=vmem_limit),
    )(*args)


# ---------------------------------------------------------------------------
# Host-side data-movement glue (padding / layout), pure XLA.
# ---------------------------------------------------------------------------
_PAD_MODE = {"reflect": "reflect", "replicate": "edge", "zero": "constant"}


def _pad_flatten(x_nhwc, Wp, padding_type):
    """Pad by 1 (per padding_type), junk-extend to (H+3, Wp), flatten spatial dims."""
    if padding_type not in _PAD_MODE:
        raise NotImplementedError("padding [%s] is not implemented" % padding_type)
    B, H, W, C = x_nhwc.shape
    mode = _PAD_MODE[padding_type]
    if mode == "constant":
        xp = jnp.pad(x_nhwc, ((0, 0), (1, 1), (1, 1), (0, 0)))
    else:
        xp = jnp.pad(x_nhwc, ((0, 0), (1, 1), (1, 1), (0, 0)), mode=mode)
    # Extra zero row / cols only ever feed cropped junk output columns.
    xp = jnp.pad(xp, ((0, 0), (0, 1), (0, Wp - (W + 2)), (0, 0)))
    return xp.reshape(B, (H + 3) * Wp, C)


def _widen_flatten(x_nhwc, Wp):
    """Append Wp-W zero columns and flatten spatial dims (extended-layout residual)."""
    B, H, W, C = x_nhwc.shape
    xw = jnp.pad(x_nhwc, ((0, 0), (0, 0), (0, Wp - W), (0, 0)))
    return xw.reshape(B, H * Wp, C)


def _crop_ext(y_ext, H, Wp, W):
    B, _, C = y_ext.shape
    return y_ext.reshape(B, H, Wp, C)[:, :, :W, :]


# ---------------------------------------------------------------------------
# ResnetBlock forward.
# ---------------------------------------------------------------------------
def resnet_block_forward_nhwc(params, x_nhwc, *, padding_type="reflect", use_dropout=False):
    """NHWC core.  When chaining blocks in a generator, call this directly so the
    NCHW<->NHWC transposes happen once per network, not once per block."""
    del use_dropout                      # eval-mode nn.Dropout(0.5) is identity
    B, H, W, C = x_nhwc.shape
    Cp = _round_up(C, 128)               # lane-dense channels
    Wp = _ext_width(W)
    Hext = H * Wp

    x = x_nhwc
    if Cp != C:
        x = jnp.pad(x, ((0, 0), (0, 0), (0, 0), (0, Cp - C)))
    x_bf = x.astype(jnp.bfloat16)

    def prep_w(w):
        # torch (Cout, Cin, 3, 3) -> (9, Cin, Cout), channel-padded, bf16 for the MXU.
        wp = jnp.pad(w, ((0, Cp - C), (0, Cp - C), (0, 0), (0, 0)))
        return jnp.transpose(wp, (2, 3, 1, 0)).reshape(9, Cp, Cp).astype(jnp.bfloat16)

    # NOTE: conv biases (params["b1"], params["b2"]) are intentionally NOT consumed:
    # InstanceNorm2d(affine=False) subtracts the per-channel mean, so they cancel exactly.
    w1 = prep_w(params["w1"])
    w2 = prep_w(params["w2"])

    # Per-row validity mask of the junk-extended layout (tiny, VMEM-resident input).
    mask = (jnp.arange(Hext, dtype=jnp.int32) % Wp < W).astype(jnp.float32).reshape(Hext, 1)

    # Stage 1: conv3x3 + InstanceNorm + ReLU  -> bf16 (consumed in bf16 by stage 2 anyway).
    xp1 = _pad_flatten(x_bf, Wp, padding_type)
    y1_ext = _conv_block_call(
        functools.partial(_conv_in_relu_kernel, H=H, Wp=Wp, W=W),
        xp1, w1, mask, None, H, Wp, W, jnp.bfloat16)
    y1 = _crop_ext(y1_ext, H, Wp, W)

    # Stage 2: conv3x3 + InstanceNorm + residual add -> f32 block output.
    # TODO(synk): stage 1 could emit the (H+3)*Wp padded layout directly (in-kernel
    #             reflect/replicate border writes) and skip the crop + re-pad glue.
    xp2 = _pad_flatten(y1, Wp, padding_type)
    res = _widen_flatten(x_bf, Wp)
    y2_ext = _conv_block_call(
        functools.partial(_conv_in_res_kernel, H=H, Wp=Wp, W=W),
        xp2, w2, mask, res, H, Wp, W, jnp.float32)
    out = _crop_ext(y2_ext, H, Wp, W)

    if Cp != C:
        out = out[..., :C]
    return out


def resnet_block_forward(params, x_nchw, *, padding_type="reflect", use_dropout=False):
    x = jnp.transpose(x_nchw, (0, 2, 3, 1))
    out = resnet_block_forward_nhwc(params, x, padding_type=padding_type,
                                    use_dropout=use_dropout)
    return jnp.transpose(out, (0, 3, 1, 2))


def init_params(key, dim):
    k1, k2, k3, k4 = jax.random.split(key, 4)
    s = 1.0 / jnp.sqrt(jnp.float32(9 * dim))
    return {
        "w1": s * jax.random.normal(k1, (dim, dim, 3, 3), jnp.float32),
        "b1": 0.01 * jax.random.normal(k2, (dim,), jnp.float32),   # cancels under IN(affine=False)
        "w2": s * jax.random.normal(k3, (dim, dim, 3, 3), jnp.float32),
        "b2": 0.01 * jax.random.normal(k4, (dim,), jnp.float32),   # cancels under IN(affine=False)
    }


# Pure-JAX (f32, lax.conv) reference for a tolerance check against the Pallas path.
def _reference_forward(params, x_nchw, padding_type="reflect"):
    mode = _PAD_MODE[padding_type]

    def pad(z):
        cfg = ((0, 0), (0, 0), (1, 1), (1, 1))
        return jnp.pad(z, cfg) if mode == "constant" else jnp.pad(z, cfg, mode=mode)

    def conv(z, w, b):
        y = jax.lax.conv_general_dilated(z, w, (1, 1), "VALID",
                                         dimension_numbers=("NCHW", "OIHW", "NCHW"))
        return y + b.reshape(1, -1, 1, 1)

    def inorm(z):
        m = jnp.mean(z, axis=(2, 3), keepdims=True)
        v = jnp.mean((z - m) ** 2, axis=(2, 3), keepdims=True)
        return (z - m) * jax.lax.rsqrt(v + _EPS)

    h = jnp.maximum(inorm(conv(pad(x_nchw), params["w1"], params["b1"])), 0.0)
    h = inorm(conv(pad(h), params["w2"], params["b2"]))
    return x_nchw + h


if __name__ == "__main__":
    key = jax.random.PRNGKey(0)
    kp, kx = jax.random.split(key)

    B, dim, H, W = 2, 128, 16, 16                 # small, lane-dense demo shapes
    params = init_params(kp, dim)
    x = jax.random.normal(kx, (B, dim, H, W), jnp.float32)

    fwd = jax.jit(functools.partial(resnet_block_forward, padding_type="reflect"))
    out = fwd(params, x)
    jax.block_until_ready(out)

    ref = _reference_forward(params, x)
    err = float(jnp.max(jnp.abs(out - ref)))

    assert out.shape == (B, dim, H, W)
    assert bool(jnp.all(jnp.isfinite(out)))
    assert err < 0.25                             # bf16-level tolerance vs f32 reference
    print("KERNEL_OK")
</pallas_src>

<mosaic_0001>
module attributes {stable_mosaic.version = 11 : i64} {
  func.func @_conv_in_relu_kernel(%arg0: i32, %arg1: i32, %arg2: memref<1x342x128xbf16, #tpu.memory_space<vmem>>, %arg3: memref<9x128x128xbf16, #tpu.memory_space<vmem>>, %arg4: memref<288x1xf32, #tpu.memory_space<vmem>>, %arg5: memref<1x288x128xbf16, #tpu.memory_space<vmem>>, %arg6: memref<288x128xf32, #tpu.memory_space<vmem>>) attributes {dimension_semantics = [#tpu.dimension_semantics<parallel>, #tpu.dimension_semantics<parallel>], iteration_bounds = array<i64: 2, 1>, scalar_prefetch = 0 : i64, scratch_operands = 1 : i64, tpu.core_type = #tpu.core_type<tc>, window_params = [{transform_indices = @transform_0, window_bounds = array<i64: 1, 342, 128>}, {transform_indices = @transform_1, window_bounds = array<i64: 9, 128, 128>}, {pipeline_mode = #tpu.pipeline_mode<synchronous>, transform_indices = @transform_2, window_bounds = array<i64: 288, 1>}, {transform_indices = @transform_3, window_bounds = array<i64: 1, 288, 128>}]} {
    %cst = arith.constant 0.000000e+00 : f32
    %0 = vector.broadcast %cst : f32 to vector<1x128xf32>
    %cst_0 = arith.constant 0.000000e+00 : f32
    %1 = vector.broadcast %cst_0 : f32 to vector<1x128xf32>
    %c0 = arith.constant 0 : index
    %c0_1 = arith.constant 0 : index
    %c0_2 = arith.constant 0 : index
    %2 = vector.load %arg2[%c0, %c0_1, %c0_2] : memref<1x342x128xbf16, #tpu.memory_space<vmem>>, vector<1x288x128xbf16>
    %3 = vector.shape_cast %2 : vector<1x288x128xbf16> to vector<288x128xbf16>
    %c0_3 = arith.constant 0 : index
    %c0_4 = arith.constant 0 : index
    %c0_5 = arith.constant 0 : index
    %4 = vector.load %arg3[%c0_3, %c0_4, %c0_5] : memref<9x128x128xbf16, #tpu.memory_space<vmem>>, vector<1x128x128xbf16>
    %5 = vector.shape_cast %4 : vector<1x128x128xbf16> to vector<128x128xbf16>
    %cst_6 = arith.constant dense<0.000000e+00> : vector<288x128xf32>
    %6 = tpu.matmul %3, %5, %cst_6 {dimension_numbers = #tpu.dot_dimension_numbers<[1], [0], [0], [1], [0, 0, 1, 1], [], []>} : vector<288x128xbf16>, vector<128x128xbf16>, vector<288x128xf32> -> vector<288x128xf32>
    %c0_7 = arith.constant 0 : index
    %c1 = arith.constant 1 : index
    %c0_8 = arith.constant 0 : index
    %7 = vector.load %arg2[%c0_7, %c1, %c0_8] : memref<1x342x128xbf16, #tpu.memory_space<vmem>>, vector<1x288x128xbf16>
    %8 = vector.shape_cast %7 : vector<1x288x128xbf16> to vector<288x128xbf16>
    %c1_9 = arith.constant 1 : index
    %c0_10 = arith.constant 0 : index
    %c0_11 = arith.constant 0 : index
    %9 = vector.load %arg3[%c1_9, %c0_10, %c0_11] : memref<9x128x128xbf16, #tpu.memory_space<vmem>>, vector<1x128x128xbf16>
    %10 = vector.shape_cast %9 : vector<1x128x128xbf16> to vector<128x128xbf16>
    %cst_12 = arith.constant dense<0.000000e+00> : vector<288x128xf32>
    %11 = tpu.matmul %8, %10, %cst_12 {dimension_numbers = #tpu.dot_dimension_numbers<[1], [0], [0], [1], [0, 0, 1, 1], [], []>} : vector<288x128xbf16>, vector<128x128xbf16>, vector<288x128xf32> -> vector<288x128xf32>
    %12 = arith.addf %6, %11 : vector<288x128xf32>
    %c0_13 = arith.constant 0 : index
    %c2 = arith.constant 2 : index
    %c0_14 = arith.constant 0 : index
    %13 = vector.load %arg2[%c0_13, %c2, %c0_14] : memref<1x342x128xbf16, #tpu.memory_space<vmem>>, vector<1x288x128xbf16>
    %14 = vector.shape_cast %13 : vector<1x288x128xbf16> to vector<288x128xbf16>
    %c2_15 = arith.constant 2 : index
    %c0_16 = arith.constant 0 : index
    %c0_17 = arith.constant 0 : index
    %15 = vector.load %arg3[%c2_15, %c0_16, %c0_17] : memref<9x128x128xbf16, #tpu.memory_space<vmem>>, vector<1x128x128xbf16>
    %16 = vector.shape_cast %15 : vector<1x128x128xbf16> to vector<128x128xbf16>
    %cst_18 = arith.constant dense<0.000000e+00> : vector<288x128xf32>
    %17 = tpu.matmul %14, %16, %cst_18 {dimension_numbers = #tpu.dot_dimension_numbers<[1], [0], [0], [1], [0, 0, 1, 1], [], []>} : vector<288x128xbf16>, vector<128x128xbf16>, vector<288x128xf32> -> vector<288x128xf32>
    %18 = arith.addf %12, %17 : vector<288x128xf32>
    %c0_19 = arith.constant 0 : index
    %c18 = arith.constant 18 : index
    %c0_20 = arith.constant 0 : index
    %19 = vector.load %arg2[%c0_19, %c18, %c0_20] : memref<1x342x128xbf16, #tpu.memory_space<vmem>>, vector<1x288x128xbf16>
    %20 = vector.shape_cast %19 : vector<1x288x128xbf16> to vector<288x128xbf16>
    %c3 = arith.constant 3 : index
    %c0_21 = arith.constant 0 : index
    %c0_22 = arith.constant 0 : index
    %21 = vector.load %arg3[%c3, %c0_21, %c0_22] : memref<9x128x128xbf16, #tpu.memory_space<vmem>>, vector<1x128x128xbf16>
    %22 = vector.shape_cast %21 : vector<1x128x128xbf16> to vector<128x128xbf16>
    %cst_23 = arith.constant dense<0.000000e+00> : vector<288x128xf32>
    %23 = tpu.matmul %20, %22, %cst_23 {dimension_numbers = #tpu.dot_dimension_numbers<[1], [0], [0], [1], [0, 0, 1, 1], [], []>} : vector<288x128xbf16>, vector<128x128xbf16>, vector<288x128xf32> -> vector<288x128xf32>
    %24 = arith.addf %18, %23 : vector<288x128xf32>
    %c0_24 = arith.constant 0 : index
    %c19 = arith.constant 19 : index
    %c0_25 = arith.constant 0 : index
    %25 = vector.load %arg2[%c0_24, %c19, %c0_25] : memref<1x342x128xbf16, #tpu.memory_space<vmem>>, vector<1x288x128xbf16>
    %26 = vector.shape_cast %25 : vector<1x288x128xbf16> to vector<288x128xbf16>
    %c4 = arith.constant 4 : index
    %c0_26 = arith.constant 0 : index
    %c0_27 = arith.constant 0 : index
    %27 = vector.load %arg3[%c4, %c0_26, %c0_27] : memref<9x128x128xbf16, #tpu.memory_space<vmem>>, vector<1x128x128xbf16>
    %28 = vector.shape_cast %27 : vector<1x128x128xbf16> to vector<128x128xbf16>
    %cst_28 = arith.constant dense<0.000000e+00> : vector<288x128xf32>
    %29 = tpu.matmul %26, %28, %cst_28 {dimension_numbers = #tpu.dot_dimension_numbers<[1], [0], [0], [1], [0, 0, 1, 1], [], []>} : vector<288x128xbf16>, vector<128x128xbf16>, vector<288x128xf32> -> vector<288x128xf32>
    %30 = arith.addf %24, %29 : vector<288x128xf32>
    %c0_29 = arith.constant 0 : index
    %c20 = arith.constant 20 : index
    %c0_30 = arith.constant 0 : index
    %31 = vector.load %arg2[%c0_29, %c20, %c0_30] : memref<1x342x128xbf16, #tpu.memory_space<vmem>>, vector<1x288x128xbf16>
    %32 = vector.shape_cast %31 : vector<1x288x128xbf16> to vector<288x128xbf16>
    %c5 = arith.constant 5 : index
    %c0_31 = arith.constant 0 : index
    %c0_32 = arith.constant 0 : index
    %33 = vector.load %arg3[%c5, %c0_31, %c0_32] : memref<9x128x128xbf16, #tpu.memory_space<vmem>>, vector<1x128x128xbf16>
    %34 = vector.shape_cast %33 : vector<1x128x128xbf16> to vector<128x128xbf16>
    %cst_33 = arith.constant dense<0.000000e+00> : vector<288x128xf32>
    %35 = tpu.matmul %32, %34, %cst_33 {dimension_numbers = #tpu.dot_dimension_numbers<[1], [0], [0], [1], [0, 0, 1, 1], [], []>} : vector<288x128xbf16>, vector<128x128xbf16>, vector<288x128xf32> -> vector<288x128xf32>
    %36 = arith.addf %30, %35 : vector<288x128xf32>
    %c0_34 = arith.constant 0 : index
    %c36 = arith.constant 36 : index
    %c0_35 = arith.constant 0 : index
    %37 = vector.load %arg2[%c0_34, %c36, %c0_35] : memref<1x342x128xbf16, #tpu.memory_space<vmem>>, vector<1x288x128xbf16>
    %38 = vector.shape_cast %37 : vector<1x288x128xbf16> to vector<288x128xbf16>
    %c6 = arith.constant 6 : index
    %c0_36 = arith.constant 0 : index
    %c0_37 = arith.constant 0 : index
    %39 = vector.load %arg3[%c6, %c0_36, %c0_37] : memref<9x128x128xbf16, #tpu.memory_space<vmem>>, vector<1x128x128xbf16>
    %40 = vector.shape_cast %39 : vector<1x128x128xbf16> to vector<128x128xbf16>
    %cst_38 = arith.constant dense<0.000000e+00> : vector<288x128xf32>
    %41 = tpu.matmul %38, %40, %cst_38 {dimension_numbers = #tpu.dot_dimension_numbers<[1], [0], [0], [1], [0, 0, 1, 1], [], []>} : vector<288x128xbf16>, vector<128x128xbf16>, vector<288x128xf32> -> vector<288x128xf32>
    %42 = arith.addf %36, %41 : vector<288x128xf32>
    %c0_39 = arith.constant 0 : index
    %c37 = arith.constant 37 : index
    %c0_40 = arith.constant 0 : index
    %43 = vector.load %arg2[%c0_39, %c37, %c0_40] : memref<1x342x128xbf16, #tpu.memory_space<vmem>>, vector<1x288x128xbf16>
    %44 = vector.shape_cast %43 : vector<1x288x128xbf16> to vector<288x128xbf16>
    %c7 = arith.constant 7 : index
    %c0_41 = arith.constant 0 : index
    %c0_42 = arith.constant 0 : index
    %45 = vector.load %arg3[%c7, %c0_41, %c0_42] : memref<9x128x128xbf16, #tpu.memory_space<vmem>>, vector<1x128x128xbf16>
    %46 = vector.shape_cast %45 : vector<1x128x128xbf16> to vector<128x128xbf16>
    %cst_43 = arith.constant dense<0.000000e+00> : vector<288x128xf32>
    %47 = tpu.matmul %44, %46, %cst_43 {dimension_numbers = #tpu.dot_dimension_numbers<[1], [0], [0], [1], [0, 0, 1, 1], [], []>} : vector<288x128xbf16>, vector<128x128xbf16>, vector<288x128xf32> -> vector<288x128xf32>
    %48 = arith.addf %42, %47 : vector<288x128xf32>
    %c0_44 = arith.constant 0 : index
    %c38 = arith.constant 38 : index
    %c0_45 = arith.constant 0 : index
    %49 = vector.load %arg2[%c0_44, %c38, %c0_45] : memref<1x342x128xbf16, #tpu.memory_space<vmem>>, vector<1x288x128xbf16>
    %50 = vector.shape_cast %49 : vector<1x288x128xbf16> to vector<288x128xbf16>
    %c8 = arith.constant 8 : index
    %c0_46 = arith.constant 0 : index
    %c0_47 = arith.constant 0 : index
    %51 = vector.load %arg3[%c8, %c0_46, %c0_47] : memref<9x128x128xbf16, #tpu.memory_space<vmem>>, vector<1x128x128xbf16>
    %52 = vector.shape_cast %51 : vector<1x128x128xbf16> to vector<128x128xbf16>
    %cst_48 = arith.constant dense<0.000000e+00> : vector<288x128xf32>
    %53 = tpu.matmul %50, %52, %cst_48 {dimension_numbers = #tpu.dot_dimension_numbers<[1], [0], [0], [1], [0, 0, 1, 1], [], []>} : vector<288x128xbf16>, vector<128x128xbf16>, vector<288x128xf32> -> vector<288x128xf32>
    %54 = arith.addf %48, %53 : vector<288x128xf32>
    %c0_49 = arith.constant 0 : index
    %c0_50 = arith.constant 0 : index
    %55 = vector.load %arg4[%c0_49, %c0_50] : memref<288x1xf32, #tpu.memory_space<vmem>>, vector<288x1xf32>
    %56 = vector.broadcast %55 : vector<288x1xf32> to vector<288x128xf32>
    %57 = arith.mulf %54, %56 : vector<288x128xf32>
    %cst_51 = arith.constant dense<0.000000e+00> : vector<128xf32>
    %58 = vector.multi_reduction <add>, %57, %cst_51 [0] : vector<288x128xf32> to vector<128xf32>
    %59 = vector.shape_cast %58 : vector<128xf32> to vector<1x128xf32>
    %60 = arith.addf %0, %59 : vector<1x128xf32>
    %61 = arith.mulf %57, %57 : vector<288x128xf32>
    %cst_52 = arith.constant dense<0.000000e+00> : vector<128xf32>
    %62 = vector.multi_reduction <add>, %61, %cst_52 [0] : vector<288x128xf32> to vector<128xf32>
    %63 = vector.shape_cast %62 : vector<128xf32> to vector<1x128xf32>
    %64 = arith.addf %1, %63 : vector<1x128xf32>
    %c0_53 = arith.constant 0 : index
    %c0_54 = arith.constant 0 : index
    %65 = vector.load %arg6[%c0_53, %c0_54] : memref<288x128xf32, #tpu.memory_space<vmem>>, vector<288x128xf32>
    tpu.vector_store %arg6[%c0_53, %c0_54], %57 {strides = array<i32>} : memref<288x128xf32, #tpu.memory_space<vmem>>, vector<288x128xf32>,
    %cst_55 = arith.constant 3.906250e-03 : f32
    %66 = vector.broadcast %cst_55 : f32 to vector<1x128xf32>
    %67 = arith.mulf %60, %66 : vector<1x128xf32>
    %cst_56 = arith.constant 3.906250e-03 : f32
    %68 = vector.broadcast %cst_56 : f32 to vector<1x128xf32>
    %69 = arith.mulf %64, %68 : vector<1x128xf32>
    %70 = arith.mulf %67, %67 : vector<1x128xf32>
    %71 = arith.subf %69, %70 : vector<1x128xf32>
    %cst_57 = arith.constant 9.99999974E-6 : f32
    %72 = vector.broadcast %cst_57 : f32 to vector<1x128xf32>
    %73 = arith.addf %71, %72 : vector<1x128xf32>
    %74 = math.rsqrt %73 : vector<1x128xf32>
    %c0_58 = arith.constant 0 : index
    %c0_59 = arith.constant 0 : index
    %75 = vector.load %arg6[%c0_58, %c0_59] : memref<288x128xf32, #tpu.memory_space<vmem>>, vector<288x128xf32>
    %76 = vector.broadcast %67 : vector<1x128xf32> to vector<288x128xf32>
    %77 = arith.subf %75, %76 : vector<288x128xf32>
    %78 = vector.broadcast %74 : vector<1x128xf32> to vector<288x128xf32>
    %79 = arith.mulf %77, %78 : vector<288x128xf32>
    %cst_60 = arith.constant 0.000000e+00 : f32
    %80 = vector.broadcast %cst_60 : f32 to vector<288x128xf32>
    %81 = arith.maximumf %79, %80 : vector<288x128xf32>
    %82 = arith.truncf %81 : vector<288x128xf32> to vector<288x128xbf16>
    %c0_61 = arith.constant 0 : index
    %c0_62 = arith.constant 0 : index
    %c0_63 = arith.constant 0 : index
    %83 = vector.load %arg5[%c0_61, %c0_62, %c0_63] : memref<1x288x128xbf16, #tpu.memory_space<vmem>>, vector<1x288x128xbf16>
    %84 = vector.shape_cast %83 : vector<1x288x128xbf16> to vector<288x128xbf16>
    %85 = vector.shape_cast %82 : vector<288x128xbf16> to vector<1x288x128xbf16>
    tpu.vector_store %arg5[%c0_61, %c0_62, %c0_63], %85 {strides = array<i32>} : memref<1x288x128xbf16, #tpu.memory_space<vmem>>, vector<1x288x128xbf16>,
    return
  }
  func.func @transform_0(%arg0: i32, %arg1: i32) -> (i32, i32, i32) {
    %c0_i32 = arith.constant 0 : i32
    %c0_i32_0 = arith.constant 0 : i32
    %c0_i32_1 = arith.constant 0 : i32
    return %arg0, %c0_i32, %c0_i32_0 : i32, i32, i32
  }
  func.func @transform_1(%arg0: i32, %arg1: i32) -> (i32, i32, i32) {
    %c0_i32 = arith.constant 0 : i32
    %c0_i32_0 = arith.constant 0 : i32
    %c0_i32_1 = arith.constant 0 : i32
    return %c0_i32, %c0_i32_0, %arg1 : i32, i32, i32
  }
  func.func @transform_2(%arg0: i32, %arg1: i32) -> (i32, i32) {
    %c0_i32 = arith.constant 0 : i32
    %c0_i32_0 = arith.constant 0 : i32
    %c0_i32_1 = arith.constant 0 : i32
    return %c0_i32, %c0_i32_0 : i32, i32
  }
  func.func @transform_3(%arg0: i32, %arg1: i32) -> (i32, i32, i32) {
    %c0_i32 = arith.constant 0 : i32
    %c0_i32_0 = arith.constant 0 : i32
    return %arg0, %c0_i32, %arg1 : i32, i32, i32
  }
}

module attributes {stable_mosaic.version = 11 : i64} {
  func.func @_conv_in_res_kernel(%arg0: i32, %arg1: i32, %arg2: memref<1x342x128xbf16, #tpu.memory_space<vmem>>, %arg3: memref<9x128x128xbf16, #tpu.memory_space<vmem>>, %arg4: memref<288x1xf32, #tpu.memory_space<vmem>>, %arg5: memref<1x288x128xbf16, #tpu.memory_space<vmem>>, %arg6: memref<1x288x128xf32, #tpu.memory_space<vmem>>, %arg7: memref<288x128xf32, #tpu.memory_space<vmem>>) attributes {dimension_semantics = [#tpu.dimension_semantics<parallel>, #tpu.dimension_semantics<parallel>], iteration_bounds = array<i64: 2, 1>, scalar_prefetch = 0 : i64, scratch_operands = 1 : i64, tpu.core_type = #tpu.core_type<tc>, window_params = [{transform_indices = @transform_0, window_bounds = array<i64: 1, 342, 128>}, {transform_indices = @transform_1, window_bounds = array<i64: 9, 128, 128>}, {pipeline_mode = #tpu.pipeline_mode<synchronous>, transform_indices = @transform_2, window_bounds = array<i64: 288, 1>}, {transform_indices = @transform_3, window_bounds = array<i64: 1, 288, 128>}, {transform_indices = @transform_4, window_bounds = array<i64: 1, 288, 128>}]} {
    %cst = arith.constant 0.000000e+00 : f32
    %0 = vector.broadcast %cst : f32 to vector<1x128xf32>
    %cst_0 = arith.constant 0.000000e+00 : f32
    %1 = vector.broadcast %cst_0 : f32 to vector<1x128xf32>
    %c0 = arith.constant 0 : index
    %c0_1 = arith.constant 0 : index
    %c0_2 = arith.constant 0 : index
    %2 = vector.load %arg2[%c0, %c0_1, %c0_2] : memref<1x342x128xbf16, #tpu.memory_space<vmem>>, vector<1x288x128xbf16>
    %3 = vector.shape_cast %2 : vector<1x288x128xbf16> to vector<288x128xbf16>
    %c0_3 = arith.constant 0 : index
    %c0_4 = arith.constant 0 : index
    %c0_5 = arith.constant 0 : index
    %4 = vector.load %arg3[%c0_3, %c0_4, %c0_5] : memref<9x128x128xbf16, #tpu.memory_space<vmem>>, vector<1x128x128xbf16>
    %5 = vector.shape_cast %4 : vector<1x128x128xbf16> to vector<128x128xbf16>
    %cst_6 = arith.constant dense<0.000000e+00> : vector<288x128xf32>
    %6 = tpu.matmul %3, %5, %cst_6 {dimension_numbers = #tpu.dot_dimension_numbers<[1], [0], [0], [1], [0, 0, 1, 1], [], []>} : vector<288x128xbf16>, vector<128x128xbf16>, vector<288x128xf32> -> vector<288x128xf32>
    %c0_7 = arith.constant 0 : index
    %c1 = arith.constant 1 : index
    %c0_8 = arith.constant 0 : index
    %7 = vector.load %arg2[%c0_7, %c1, %c0_8] : memref<1x342x128xbf16, #tpu.memory_space<vmem>>, vector<1x288x128xbf16>
    %8 = vector.shape_cast %7 : vector<1x288x128xbf16> to vector<288x128xbf16>
    %c1_9 = arith.constant 1 : index
    %c0_10 = arith.constant 0 : index
    %c0_11 = arith.constant 0 : index
    %9 = vector.load %arg3[%c1_9, %c0_10, %c0_11] : memref<9x128x128xbf16, #tpu.memory_space<vmem>>, vector<1x128x128xbf16>
    %10 = vector.shape_cast %9 : vector<1x128x128xbf16> to vector<128x128xbf16>
    %cst_12 = arith.constant dense<0.000000e+00> : vector<288x128xf32>
    %11 = tpu.matmul %8, %10, %cst_12 {dimension_numbers = #tpu.dot_dimension_numbers<[1], [0], [0], [1], [0, 0, 1, 1], [], []>} : vector<288x128xbf16>, vector<128x128xbf16>, vector<288x128xf32> -> vector<288x128xf32>
    %12 = arith.addf %6, %11 : vector<288x128xf32>
    %c0_13 = arith.constant 0 : index
    %c2 = arith.constant 2 : index
    %c0_14 = arith.constant 0 : index
    %13 = vector.load %arg2[%c0_13, %c2, %c0_14] : memref<1x342x128xbf16, #tpu.memory_space<vmem>>, vector<1x288x128xbf16>
    %14 = vector.shape_cast %13 : vector<1x288x128xbf16> to vector<288x128xbf16>
    %c2_15 = arith.constant 2 : index
    %c0_16 = arith.constant 0 : index
    %c0_17 = arith.constant 0 : index
    %15 = vector.load %arg3[%c2_15, %c0_16, %c0_17] : memref<9x128x128xbf16, #tpu.memory_space<vmem>>, vector<1x128x128xbf16>
    %16 = vector.shape_cast %15 : vector<1x128x128xbf16> to vector<128x128xbf16>
    %cst_18 = arith.constant dense<0.000000e+00> : vector<288x128xf32>
    %17 = tpu.matmul %14, %16, %cst_18 {dimension_numbers = #tpu.dot_dimension_numbers<[1], [0], [0], [1], [0, 0, 1, 1], [], []>} : vector<288x128xbf16>, vector<128x128xbf16>, vector<288x128xf32> -> vector<288x128xf32>
    %18 = arith.addf %12, %17 : vector<288x128xf32>
    %c0_19 = arith.constant 0 : index
    %c18 = arith.constant 18 : index
    %c0_20 = arith.constant 0 : index
    %19 = vector.load %arg2[%c0_19, %c18, %c0_20] : memref<1x342x128xbf16, #tpu.memory_space<vmem>>, vector<1x288x128xbf16>
    %20 = vector.shape_cast %19 : vector<1x288x128xbf16> to vector<288x128xbf16>
    %c3 = arith.constant 3 : index
    %c0_21 = arith.constant 0 : index
    %c0_22 = arith.constant 0 : index
    %21 = vector.load %arg3[%c3, %c0_21, %c0_22] : memref<9x128x128xbf16, #tpu.memory_space<vmem>>, vector<1x128x128xbf16>
    %22 = vector.shape_cast %21 : vector<1x128x128xbf16> to vector<128x128xbf16>
    %cst_23 = arith.constant dense<0.000000e+00> : vector<288x128xf32>
    %23 = tpu.matmul %20, %22, %cst_23 {dimension_numbers = #tpu.dot_dimension_numbers<[1], [0], [0], [1], [0, 0, 1, 1], [], []>} : vector<288x128xbf16>, vector<128x128xbf16>, vector<288x128xf32> -> vector<288x128xf32>
    %24 = arith.addf %18, %23 : vector<288x128xf32>
    %c0_24 = arith.constant 0 : index
    %c19 = arith.constant 19 : index
    %c0_25 = arith.constant 0 : index
    %25 = vector.load %arg2[%c0_24, %c19, %c0_25] : memref<1x342x128xbf16, #tpu.memory_space<vmem>>, vector<1x288x128xbf16>
    %26 = vector.shape_cast %25 : vector<1x288x128xbf16> to vector<288x128xbf16>
    %c4 = arith.constant 4 : index
    %c0_26 = arith.constant 0 : index
    %c0_27 = arith.constant 0 : index
    %27 = vector.load %arg3[%c4, %c0_26, %c0_27] : memref<9x128x128xbf16, #tpu.memory_space<vmem>>, vector<1x128x128xbf16>
    %28 = vector.shape_cast %27 : vector<1x128x128xbf16> to vector<128x128xbf16>
    %cst_28 = arith.constant dense<0.000000e+00> : vector<288x128xf32>
    %29 = tpu.matmul %26, %28, %cst_28 {dimension_numbers = #tpu.dot_dimension_numbers<[1], [0], [0], [1], [0, 0, 1, 1], [], []>} : vector<288x128xbf16>, vector<128x128xbf16>, vector<288x128xf32> -> vector<288x128xf32>
    %30 = arith.addf %24, %29 : vector<288x128xf32>
    %c0_29 = arith.constant 0 : index
    %c20 = arith.constant 20 : index
    %c0_30 = arith.constant 0 : index
    %31 = vector.load %arg2[%c0_29, %c20, %c0_30] : memref<1x342x128xbf16, #tpu.memory_space<vmem>>, vector<1x288x128xbf16>
    %32 = vector.shape_cast %31 : vector<1x288x128xbf16> to vector<288x128xbf16>
    %c5 = arith.constant 5 : index
    %c0_31 = arith.constant 0 : index
    %c0_32 = arith.constant 0 : index
    %33 = vector.load %arg3[%c5, %c0_31, %c0_32] : memref<9x128x128xbf16, #tpu.memory_space<vmem>>, vector<1x128x128xbf16>
    %34 = vector.shape_cast %33 : vector<1x128x128xbf16> to vector<128x128xbf16>
    %cst_33 = arith.constant dense<0.000000e+00> : vector<288x128xf32>
    %35 = tpu.matmul %32, %34, %cst_33 {dimension_numbers = #tpu.dot_dimension_numbers<[1], [0], [0], [1], [0, 0, 1, 1], [], []>} : vector<288x128xbf16>, vector<128x128xbf16>, vector<288x128xf32> -> vector<288x128xf32>
    %36 = arith.addf %30, %35 : vector<288x128xf32>
    %c0_34 = arith.constant 0 : index
    %c36 = arith.constant 36 : index
    %c0_35 = arith.constant 0 : index
    %37 = vector.load %arg2[%c0_34, %c36, %c0_35] : memref<1x342x128xbf16, #tpu.memory_space<vmem>>, vector<1x288x128xbf16>
    %38 = vector.shape_cast %37 : vector<1x288x128xbf16> to vector<288x128xbf16>
    %c6 = arith.constant 6 : index
    %c0_36 = arith.constant 0 : index
    %c0_37 = arith.constant 0 : index
    %39 = vector.load %arg3[%c6, %c0_36, %c0_37] : memref<9x128x128xbf16, #tpu.memory_space<vmem>>, vector<1x128x128xbf16>
    %40 = vector.shape_cast %39 : vector<1x128x128xbf16> to vector<128x128xbf16>
    %cst_38 = arith.constant dense<0.000000e+00> : vector<288x128xf32>
    %41 = tpu.matmul %38, %40, %cst_38 {dimension_numbers = #tpu.dot_dimension_numbers<[1], [0], [0], [1], [0, 0, 1, 1], [], []>} : vector<288x128xbf16>, vector<128x128xbf16>, vector<288x128xf32> -> vector<288x128xf32>
    %42 = arith.addf %36, %41 : vector<288x128xf32>
    %c0_39 = arith.constant 0 : index
    %c37 = arith.constant 37 : index
    %c0_40 = arith.constant 0 : index
    %43 = vector.load %arg2[%c0_39, %c37, %c0_40] : memref<1x342x128xbf16, #tpu.memory_space<vmem>>, vector<1x288x128xbf16>
    %44 = vector.shape_cast %43 : vector<1x288x128xbf16> to vector<288x128xbf16>
    %c7 = arith.constant 7 : index
    %c0_41 = arith.constant 0 : index
    %c0_42 = arith.constant 0 : index
    %45 = vector.load %arg3[%c7, %c0_41, %c0_42] : memref<9x128x128xbf16, #tpu.memory_space<vmem>>, vector<1x128x128xbf16>
    %46 = vector.shape_cast %45 : vector<1x128x128xbf16> to vector<128x128xbf16>
    %cst_43 = arith.constant dense<0.000000e+00> : vector<288x128xf32>
    %47 = tpu.matmul %44, %46, %cst_43 {dimension_numbers = #tpu.dot_dimension_numbers<[1], [0], [0], [1], [0, 0, 1, 1], [], []>} : vector<288x128xbf16>, vector<128x128xbf16>, vector<288x128xf32> -> vector<288x128xf32>
    %48 = arith.addf %42, %47 : vector<288x128xf32>
    %c0_44 = arith.constant 0 : index
    %c38 = arith.constant 38 : index
    %c0_45 = arith.constant 0 : index
    %49 = vector.load %arg2[%c0_44, %c38, %c0_45] : memref<1x342x128xbf16, #tpu.memory_space<vmem>>, vector<1x288x128xbf16>
    %50 = vector.shape_cast %49 : vector<1x288x128xbf16> to vector<288x128xbf16>
    %c8 = arith.constant 8 : index
    %c0_46 = arith.constant 0 : index
    %c0_47 = arith.constant 0 : index
    %51 = vector.load %arg3[%c8, %c0_46, %c0_47] : memref<9x128x128xbf16, #tpu.memory_space<vmem>>, vector<1x128x128xbf16>
    %52 = vector.shape_cast %51 : vector<1x128x128xbf16> to vector<128x128xbf16>
    %cst_48 = arith.constant dense<0.000000e+00> : vector<288x128xf32>
    %53 = tpu.matmul %50, %52, %cst_48 {dimension_numbers = #tpu.dot_dimension_numbers<[1], [0], [0], [1], [0, 0, 1, 1], [], []>} : vector<288x128xbf16>, vector<128x128xbf16>, vector<288x128xf32> -> vector<288x128xf32>
    %54 = arith.addf %48, %53 : vector<288x128xf32>
    %c0_49 = arith.constant 0 : index
    %c0_50 = arith.constant 0 : index
    %55 = vector.load %arg4[%c0_49, %c0_50] : memref<288x1xf32, #tpu.memory_space<vmem>>, vector<288x1xf32>
    %56 = vector.broadcast %55 : vector<288x1xf32> to vector<288x128xf32>
    %57 = arith.mulf %54, %56 : vector<288x128xf32>
    %cst_51 = arith.constant dense<0.000000e+00> : vector<128xf32>
    %58 = vector.multi_reduction <add>, %57, %cst_51 [0] : vector<288x128xf32> to vector<128xf32>
    %59 = vector.shape_cast %58 : vector<128xf32> to vector<1x128xf32>
    %60 = arith.addf %0, %59 : vector<1x128xf32>
    %61 = arith.mulf %57, %57 : vector<288x128xf32>
    %cst_52 = arith.constant dense<0.000000e+00> : vector<128xf32>
    %62 = vector.multi_reduction <add>, %61, %cst_52 [0] : vector<288x128xf32> to vector<128xf32>
    %63 = vector.shape_cast %62 : vector<128xf32> to vector<1x128xf32>
    %64 = arith.addf %1, %63 : vector<1x128xf32>
    %c0_53 = arith.constant 0 : index
    %c0_54 = arith.constant 0 : index
    %65 = vector.load %arg7[%c0_53, %c0_54] : memref<288x128xf32, #tpu.memory_space<vmem>>, vector<288x128xf32>
    tpu.vector_store %arg7[%c0_53, %c0_54], %57 {strides = array<i32>} : memref<288x128xf32, #tpu.memory_space<vmem>>, vector<288x128xf32>,
    %cst_55 = arith.constant 3.906250e-03 : f32
    %66 = vector.broadcast %cst_55 : f32 to vector<1x128xf32>
    %67 = arith.mulf %60, %66 : vector<1x128xf32>
    %cst_56 = arith.constant 3.906250e-03 : f32
    %68 = vector.broadcast %cst_56 : f32 to vector<1x128xf32>
    %69 = arith.mulf %64, %68 : vector<1x128xf32>
    %70 = arith.mulf %67, %67 : vector<1x128xf32>
    %71 = arith.subf %69, %70 : vector<1x128xf32>
    %cst_57 = arith.constant 9.99999974E-6 : f32
    %72 = vector.broadcast %cst_57 : f32 to vector<1x128xf32>
    %73 = arith.addf %71, %72 : vector<1x128xf32>
    %74 = math.rsqrt %73 : vector<1x128xf32>
    %c0_58 = arith.constant 0 : index
    %c0_59 = arith.constant 0 : index
    %75 = vector.load %arg7[%c0_58, %c0_59] : memref<288x128xf32, #tpu.memory_space<vmem>>, vector<288x128xf32>
    %76 = vector.broadcast %67 : vector<1x128xf32> to vector<288x128xf32>
    %77 = arith.subf %75, %76 : vector<288x128xf32>
    %78 = vector.broadcast %74 : vector<1x128xf32> to vector<288x128xf32>
    %79 = arith.mulf %77, %78 : vector<288x128xf32>
    %c0_60 = arith.constant 0 : index
    %c0_61 = arith.constant 0 : index
    %c0_62 = arith.constant 0 : index
    %80 = vector.load %arg5[%c0_60, %c0_61, %c0_62] : memref<1x288x128xbf16, #tpu.memory_space<vmem>>, vector<1x288x128xbf16>
    %81 = vector.shape_cast %80 : vector<1x288x128xbf16> to vector<288x128xbf16>
    %82 = arith.extf %81 : vector<288x128xbf16> to vector<288x128xf32>
    %83 = arith.addf %79, %82 : vector<288x128xf32>
    %c0_63 = arith.constant 0 : index
    %c0_64 = arith.constant 0 : index
    %c0_65 = arith.constant 0 : index
    %84 = vector.load %arg6[%c0_63, %c0_64, %c0_65] : memref<1x288x128xf32, #tpu.memory_space<vmem>>, vector<1x288x128xf32>
    %85 = vector.shape_cast %84 : vector<1x288x128xf32> to vector<288x128xf32>
    %86 = vector.shape_cast %83 : vector<288x128xf32> to vector<1x288x128xf32>
    tpu.vector_store %arg6[%c0_63, %c0_64, %c0_65], %86 {strides = array<i32>} : memref<1x288x128xf32, #tpu.memory_space<vmem>>, vector<1x288x128xf32>,
    return
  }
  func.func @transform_0(%arg0: i32, %arg1: i32) -> (i32, i32, i32) {
    %c0_i32 = arith.constant 0 : i32
    %c0_i32_0 = arith.constant 0 : i32
    %c0_i32_1 = arith.constant 0 : i32
    return %arg0, %c0_i32, %c0_i32_0 : i32, i32, i32
  }
  func.func @transform_1(%arg0: i32, %arg1: i32) -> (i32, i32, i32) {
    %c0_i32 = arith.constant 0 : i32
    %c0_i32_0 = arith.constant 0 : i32
    %c0_i32_1 = arith.constant 0 : i32
    return %c0_i32, %c0_i32_0, %arg1 : i32, i32, i32
  }
  func.func @transform_2(%arg0: i32, %arg1: i32) -> (i32, i32) {
    %c0_i32 = arith.constant 0 : i32
    %c0_i32_0 = arith.constant 0 : i32
    %c0_i32_1 = arith.constant 0 : i32
    return %c0_i32, %c0_i32_0 : i32, i32
  }
  func.func @transform_3(%arg0: i32, %arg1: i32) -> (i32, i32, i32) {
    %c0_i32 = arith.constant 0 : i32
    %c0_i32_0 = arith.constant 0 : i32
    return %arg0, %c0_i32, %arg1 : i32, i32, i32
  }
  func.func @transform_4(%arg0: i32, %arg1: i32) -> (i32, i32, i32) {
    %c0_i32 = arith.constant 0 : i32
    %c0_i32_0 = arith.constant 0 : i32
    return %arg0, %c0_i32, %arg1 : i32, i32, i32
  }
}

</mosaic_0001>

<bundles_post_ra>
// kernel: resnet_block_forward.3
= control target key start
LH: loop header
LB: loop body
LE: loop exit
PB: predicated region body
PF: predicated region fallthrough
CT: control target
= control target key end

     0   :  { %s6020_s15 = smov 0   ;;  %s6022_s16 = smov 0   ;;  %s8180_s0 = inlined_call_operand.vmem [shape: bf16[2,342,128], index: 0, kind: input, shape index: {}]   ;;  %s8181_s1 = inlined_call_operand.vmem [shape: bf16[9,128,128], index: 1, kind: input, shape index: {}]   ;;  %s8182_s2 = inlined_call_operand.vmem [shape: f32[288,1], index: 2, kind: input, shape index: {}]   ;;  %s8183_s3 = inlined_call_operand.vmem [shape: bf16[2,288,128], index: 3, kind: input, shape index: {}]   ;;  %s8184_s4 = inlined_call_operand.vmem [shape: f32[2,288,128], index: 4, kind: output, shape index: {}]  }
   0x1   :  { %s6024_s17 = smov 0  }
   0x2 LB: > { %s26_s18 = sadd.s32 1, %s5988_s16  ;;  %p4729_p0 = scmp.ge.s32.totalorder %s5992_s17, 1  ;;  %s5992_s17 = sphi %s6024_s17, %s14_s17   ;;  %s5988_s16 = sphi %s6022_s16, %s8374_s16   ;;  %s5984_s15 = sphi %s6020_s15, %s8373_s15  }
   0x3   : > { %p28_p1 = scmp.ge.s32.totalorder %s26_s18, 2  ;;  %p200_p2 = scmp.lt.s32.totalorder %s5992_s17, 3 }
   0x5   : > { %s8376_s18 = smov (%p28_p1, %s26_s18), 0  ;;  %p201_p3 = pnand %p4729_p0, %p200_p2 }
   0x7   : > { %204 = sbr.rel (%p201_p3) target bundleno = 645 (0x285), region = 36 }
   0xc   : > { %v5834_v0 = vld [vmem:[%s8181_s1 + $0x78] sm:$0xff]   ;;  %p241_p4 = scmp.lt.s32.totalorder %s5984_s15, 1  ;;  %v5835_v1 = vld [vmem:[%s8181_s1 + $0x70] sm:$0xff]   ;;  %v5836_v2 = vld [vmem:[%s8181_s1 + $0x68] sm:$0xff]   ;;  %vm430_vm0 = vsmask.f32 7424 }
   0xd   : > { %5788 = vmatprep.subr.bf16.mxu1 %v5834_v0  ;;  %5320 = vmatprep.subr.bf16.mxu0 %v5834_v0  ;;  %v5837_v3 = vld [vmem:[%s8181_s1 + $0x60] sm:$0xff]   ;;  %v5838_v6 = vld [vmem:[%s8181_s1 + $0x58] sm:$0xff]   ;;  %v5839_v17 = vld [vmem:[%s8181_s1 + $0x50] sm:$0xff]   ;;  %vm1086_vm1 = vcmask 1046528   ;;  %vm2358_vm2 = vcmask 1045504   ;;  %vm3630_vm4 = vcmask 1044480  }
   0xe   : > { %s8378_s15 = smov (!%p241_p4, %s5984_s15), 1  ;;  %5796 = vmatpush3.bf16.msra.mxu1 %v5834_v0  ;;  %5321 = vmatpush3.bf16.msra.mxu0 %v5834_v0  ;;  %v5840_v26 = vld [vmem:[%s8181_s1 + $0x48] sm:$0xff]   ;;  %v5841_v32 = vld [vmem:[%s8181_s1 + $0x40] sm:$0xff]   ;;  %v5845_v41 = vld [vmem:[%s8181_s1 + $0x38] sm:$0xff]   ;;  %vm1887_vm3 = vsmask.f32 6400 }
   0xf   : > { %5789 = vmatprep.subr.bf16.mxu1 %v5835_v1  ;;  %5322 = vmatprep.subr.bf16.mxu0 %v5835_v1  ;;  %s5804_s25 = smul.u32 172, %s8378_s15  ;;  %v5850_v47 = vld [vmem:[%s8181_s1 + $0xb8] sm:$0xff]   ;;  %v5849_v52 = vld [vmem:[%s8181_s1 + $0x30] sm:$0xff]   ;;  %vm3159_vm5 = vsmask.f32 5376 }
  0x10   : > { %v5853_v62 = vld [vmem:[%s8181_s1 + $0xb0] sm:$0xff]   ;;  %s5806_s6 = smul.u32 288, %s8378_s15 }
  0x11   : > { %s6053_s28 = scalar_lea.vmem %s8180_s0, %s5804_s25 }
  0x12   : > { %5797 = vmatpush3.bf16.msra.mxu1 %v5835_v1  ;;  %5323 = vmatpush3.bf16.msra.mxu0 %v5835_v1  ;;  %v6059_v4 = vld [vmem:[%s6053_s28 + $0x40] sm:$0xff]   ;;  %v6062_v5 = vld [vmem:[%s6053_s28 + $0x48] sm:$0xff]   ;;  %v6091_v22 = vld [vmem:[%s6053_s28 + $0x50] sm:$0xff]   ;;  %s8049_s8 = scalar_lea.vmem %s8184_s4, %s5806_s6 }
  0x13   : > { %5790 = vmatprep.subr.bf16.mxu1 %v5836_v2  ;;  %5324 = vmatprep.subr.bf16.mxu0 %v5836_v2  ;;  %v495_v7 = vshll.u32 %v6059_v4, 16  ;;  %v499_v8 = vshrl.u32 %v6059_v4, 16  ;;  %v503_v9 = vshll.u32 %v6062_v5, 16  ;;  %v267_v10 = vld [vmem:[%s6053_s28] sm:$0xf]  ;;  %v6080_v15 = vld [vmem:[%s6053_s28 + $0x8] sm:$0xff]  }
  0x14   : > { %v6074_v13 = vld [vmem:[%s6053_s28 + $0x4] sm:$0xf]  ;;  %v439_v20 = vshll.u32 %v6080_v15, 16  ;;  %v6094_v25 = vld [vmem:[%s6053_s28 + $0x10] sm:$0xff]   ;;  %v511_v28 = vshll.u32 %v6091_v22, 16  ;;  %v6101_v29 = vld [vmem:[%s6053_s28 + $0x58] sm:$0xff]  }
  0x15   : > { %v6071_v11 = vrot.slane %v495_v7, 1  ;;  %v505_v12 = vrot.slane %v503_v9, 1  ;;  %v6077_v14 = vcombine.low %v267_v10, %v6074_v13  ;;  %v507_v30 = vshrl.u32 %v6062_v5, 16  ;;  %v6111_v35 = vld [vmem:[%s6053_s28 + $0x18] sm:$0xff]   ;;  %v6116_v39 = vld [vmem:[%s6053_s28 + $0x60] sm:$0xff]   ;;  %v6130_v50 = vld [vmem:[%s6053_s28 + $0x68] sm:$0xff]  }
  0x16   : > { %5798 = vmatpush3.bf16.msra.mxu1 %v5836_v2  ;;  %5325 = vmatpush3.bf16.msra.mxu0 %v5836_v2  ;;  %v441_v24 = vrot.slane %v439_v20, 1  ;;  %v443_v33 = vshrl.u32 %v6080_v15, 16  ;;  %v447_v34 = vshll.u32 %v6094_v25, 16  ;;  %v513_v36 = vrot.slane %v511_v28, 1  ;;  %v6124_v46 = vld [vmem:[%s6053_s28 + $0x20] sm:$0xff]   ;;  %v6142_v60 = vld [vmem:[%s6053_s28 + $0x28] sm:$0xff]  }
  0x17   : > { %5791 = vmatprep.subr.bf16.mxu1 %v5837_v3  ;;  %5326 = vmatprep.subr.bf16.mxu0 %v5837_v3  ;;  %v501_v16 = vor.u32 %v499_v8, %v6071_v11  ;;  %v432_v18 = vshrl.u32 %v6077_v14, 16  ;;  %v434_v19 = vshll.u32 %v6077_v14, 16  ;;  %v515_v37 = vshrl.u32 %v6091_v22, 16  ;;  %v6151_v1 = vld [vmem:[%s6053_s28 + $0x70] sm:$0xff]   ;;  %v5854_v2 = vld [vmem:[%s8181_s1 + $0x28] sm:$0xff]  }
  0x18   : > { %v519_v38 = vshll.u32 %v6101_v29, 16  ;;  %v509_v40 = vor.u32 %v507_v30, %v505_v12  ;;  %v451_v42 = vshrl.u32 %v6094_v25, 16  ;;  %v455_v43 = vshll.u32 %v6111_v35, 16 }
  0x19   : > { %v506_v21 = vsel %vm430_vm0, %v501_v16, %v505_v12  ;;  %v436_v23 = vrot.slane %v434_v19, 1  ;;  %v445_v44 = vor.u32 %v443_v33, %v441_v24  ;;  %v449_v45 = vrot.slane %v447_v34, 1  ;;  %v5857_v16 = vld [vmem:[%s8181_s1 + $0xa8] sm:$0xff]   ;;  %v6178_v33 = vld [vmem:[%s6053_s28 + $0x38] sm:$0xff]   ;;  %v5861_v34 = vld [vmem:[%s8181_s1 + $0xa0] sm:$0xff]  }
  0x1a   : > { %5799 = vmatpush3.bf16.msra.mxu1 %v5837_v3  ;;  %5327 = vmatpush3.bf16.msra.mxu0 %v5837_v3  ;;  %v517_v48 = vor.u32 %v515_v37, %v513_v36  ;;  %v521_v49 = vrot.slane %v519_v38, 1  ;;  %v514_v51 = vsel %vm430_vm0, %v509_v40, %v513_v36  ;;  %v523_v53 = vshrl.u32 %v6101_v29, 16  ;;  %v6187_v40 = vld [vmem:[%s6053_s28 + $0x80] sm:$0xff]  }
  0x1b   : > { %5792 = vmatprep.subr.bf16.mxu1 %v5838_v6  ;;  %5328 = vmatprep.subr.bf16.mxu0 %v5838_v6  ;;  %v437_v27 = vor.u32 %v436_v23, %v432_v18  ;;  %v453_v54 = vor.u32 %v451_v42, %v449_v45  ;;  %v457_v55 = vrot.slane %v455_v43, 1  ;;  %v450_v56 = vsel %vm430_vm0, %v445_v44, %v449_v45  ;;  %v6168_v23 = vld [vmem:[%s6053_s28 + $0x78] sm:$0xff]  }
  0x1c   : > { %5352 = vmatprep.mubr.bf16.mxu1 %v506_v21  ;;  %v527_v57 = vshll.u32 %v6116_v39, 16  ;;  %v459_v58 = vshrl.u32 %v6111_v35, 16  ;;  %v463_v59 = vshll.u32 %v6124_v46, 16  ;;  %v522_v61 = vsel %vm430_vm0, %v517_v48, %v521_v49 }
  0x1d   : > { %v442_v31 = vsel %vm430_vm0, %v437_v27, %v441_v24  ;;  %v531_v63 = vshrl.u32 %v6116_v39, 16  ;;  %v535_v0 = vshll.u32 %v6130_v50, 16  ;;  %v458_v3 = vsel %vm430_vm0, %v453_v54, %v457_v55  ;;  %v5859_v24 = vld [vmem:[%s8181_s1 + $0x20] sm:$0xff]  }
  0x1e   : > { %5800 = vmatpush3.bf16.msra.mxu1 %v5838_v6  ;;  %5329 = vmatpush3.bf16.msra.mxu0 %v5838_v6  ;;  %v467_v6 = vshrl.u32 %v6124_v46, 16  ;;  %v471_v7 = vshll.u32 %v6142_v60, 16  ;;  %v525_v8 = vor.u32 %v523_v53, %v521_v49  ;;  %v529_v9 = vrot.slane %v527_v57, 1  ;;  %v5868_v57 = vld [vmem:[%s8181_s1 + $0x10] sm:$0xff]  }
  0x1f   : > { %5793 = vmatprep.subr.bf16.mxu1 %v5839_v17  ;;  %5330 = vmatprep.subr.bf16.mxu0 %v5839_v17  ;;  %v461_v10 = vor.u32 %v459_v58, %v457_v55  ;;  %v465_v12 = vrot.slane %v463_v59, 1  ;;  %v537_v19 = vrot.slane %v535_v0, 1  ;;  %v539_v20 = vshrl.u32 %v6130_v50, 16  ;;  %v1065_v0 = vld [vmem:[%s6053_s28] sm:$0xe] }
  0x20   : > { %5336 = vmatprep.mubr.bf16.mxu0 %v442_v31  ;;  %v533_v18 = vor.u32 %v531_v63, %v529_v9  ;;  %v543_v21 = vshll.u32 %v6151_v1, 16  ;;  %v473_v27 = vrot.slane %v471_v7, 1  ;;  %v475_v28 = vshrl.u32 %v6142_v60, 16  ;;  %v5869_v7 = vld [vmem:[%s8181_s1 + $0x90] sm:$0xff]  }
  0x21   : > { %v530_v30 = vsel %vm430_vm0, %v525_v8, %v529_v9  ;;  %v466_v31 = vsel %vm430_vm0, %v461_v10, %v465_v12  ;;  %v547_v36 = vshrl.u32 %v6151_v1, 16  ;;  %v551_v38 = vshll.u32 %v6168_v23, 16  ;;  %v5874_v8 = vld [vmem:[%s6053_s28 + $0x90] ss:$0 sps:$4 sm:$0x11]  }
  0x22   : > { %5801 = vmatpush3.bf16.msra.mxu1 %v5839_v17  ;;  %5331 = vmatpush3.bf16.msra.mxu0 %v5839_v17  ;;  %v6163_v17 = vld [vmem:[%s6053_s28 + $0x30] sm:$0xff]   ;;  %v538_v37 = vsel %vm430_vm0, %v533_v18, %v537_v19  ;;  %v487_v42 = vshll.u32 %v6178_v33, 16  ;;  %v541_v44 = vor.u32 %v539_v20, %v537_v19  ;;  %v545_v45 = vrot.slane %v543_v21, 1  ;;  %v5871_v19 = vld [vmem:[%s8181_s1 + $0x88] sm:$0xff]  }
  0x23   : > { %5794 = vmatprep.subr.bf16.mxu1 %v5840_v26  ;;  %5332 = vmatprep.subr.bf16.mxu0 %v5840_v26  ;;  %v477_v48 = vor.u32 %v475_v28, %v473_v27  ;;  %v553_v54 = vrot.slane %v551_v38, 1  ;;  %v555_v55 = vshrl.u32 %v6168_v23, 16  ;;  %v5872_v20 = vld [vmem:[%s8181_s1 + $0x8] sm:$0xff]  }
  0x24   : > { %v549_v53 = vor.u32 %v547_v36, %v545_v45  ;;  %v489_v59 = vrot.slane %v487_v42, 1  ;;  %v5876_v36 = vld [vmem:[%s8181_s1] sm:$0xff]   ;;  %v5878_v42 = vld [vmem:[%s8181_s1 + $0xf8] sm:$0xff]  }
  0x26   : > { %5802 = vmatpush3.bf16.msra.mxu1 %v5840_v26  ;;  %5333 = vmatpush3.bf16.msra.mxu0 %v5840_v26  ;;  %v469_v26 = vor.u32 %v467_v6, %v465_v12  ;;  %v554_v6 = vsel %vm430_vm0, %v549_v53, %v553_v54  ;;  %v4800_v12 = vcombine.low %v1065_v0, %v6074_v13  ;;  %v5881_v53 = vld [vmem:[%s8181_s1 + $0x130] sm:$0xff]   ;;  %v1100_v0 = vrot.slane %v6178_v33, 1 }
  0x27   : > { %5795 = vmatprep.subr.bf16.mxu1 %v5841_v32  ;;  %5334 = vmatprep.subr.bf16.mxu0 %v5841_v32 }
  0x28   : > { %v474_v43 = vsel %vm430_vm0, %v469_v26, %v473_v27  ;;  %v1087_v13 = vrot.slane %v4800_v12, 1  ;;  %v1088_v26 = vrot.slane %v6080_v15, 1  ;;  %v5891_v12 = vld [vmem:[%s8181_s1 + $0x108] sm:$0xff]  }
  0x2a   : > { %5803 = vmatpush3.bf16.msra.mxu1 %v5841_v32  ;;  %5335 = vmatpush3.bf16.msra.mxu0 %v5841_v32  ;;  %v479_v32 = vshll.u32 %v6163_v17, 16 }
  0x2b   : > { %5372 = vmatprep.subr.bf16.mxu1 %v5845_v41  ;;  %5424 = vmatprep.subr.bf16.mxu0 %v5850_v47 }
  0x2c   : > { %v481_v49 = vrot.slane %v479_v32, 1 }
  0x2d   : > { %5353 = vmatmul.mubr.bf16.vlgmr.msra.gmra.mxu1 %v514_v51  ;;  %5337 = vmatmul.mubr.bf16.vlgmr.msra.gmra.mxu0 %v450_v56  ;;  %v5865_v51 = vld [vmem:[%s8181_s1 + $0x98] sm:$0xff]   ;;  %v559_v56 = vshll.u32 %v6187_v40, 16 }
  0x2e   : > { %5373 = vmatpush3.bf16.msra.mxu1 %v5845_v41  ;;  %5425 = vmatpush3.bf16.msra.mxu0 %v5850_v47  ;;  %v483_v41 = vshrl.u32 %v6163_v17, 16  ;;  %v5863_v47 = vld [vmem:[%s8181_s1 + $0x18] sm:$0xff]   ;;  %v482_v63 = vsel %vm430_vm0, %v477_v48, %v481_v49 }
  0x2f   : > { %5374 = vmatprep.subr.bf16.mxu1 %v5849_v52  ;;  %5356 = vmatprep.mubr.bf16.mxu1 %v522_v61  ;;  %v491_v61 = vshrl.u32 %v6178_v33, 16  ;;  %v561_v9 = vrot.slane %v559_v56, 1  ;;  %v5883_v56 = vld [vmem:[%s8181_s1 + $0x128] sm:$0xff]  }
  0x30   : > { %5426 = vmatprep.subr.bf16.mxu0 %v5853_v62  ;;  %5340 = vmatprep.mubr.bf16.mxu0 %v458_v3  ;;  %v485_v58 = vor.u32 %v483_v41, %v481_v49  ;;  %v1090_v41 = vrot.slane %v6094_v25, 1 }
  0x31   : > { %v493_v18 = vor.u32 %v491_v61, %v489_v59  ;;  %v5885_v61 = vld [vmem:[%s8181_s1 + $0x120] sm:$0xff]  }
  0x32   : > { %5375 = vmatpush3.bf16.msra.mxu1 %v5849_v52  ;;  %5427 = vmatpush3.bf16.msra.mxu0 %v5853_v62  ;;  %v6199_v52 = vld [vmem:[%s6053_s28 + $0x88] sm:$0xff]   ;;  %v546_v62 = vsel %vm430_vm0, %v541_v44, %v545_v45  ;;  %v490_v10 = vsel %vm430_vm0, %v485_v58, %v489_v59  ;;  %v1092_v45 = vrot.slane %v6111_v35, 1  ;;  %v1091_v49 = vsel %vm1086_vm1, %v1088_v26, %v1090_v41  ;;  %v5880_v59 = vld [vmem:[%s8181_s1 + $0xf0] sm:$0xff]  }
  0x33   : > { %5376 = vmatprep.subr.bf16.mxu1 %v5854_v2  ;;  %5428 = vmatprep.subr.bf16.mxu0 %v5857_v16  ;;  %v567_v3 = vshll.u32 %v6199_v52, 16  ;;  %v498_v28 = vsel %vm430_vm0, %v493_v18, %v6071_v11  ;;  %v1120_v44 = vrot.slane %v6199_v52, 1  ;;  %v1108_v18 = vrot.slane %v6101_v29, 1 }
  0x35   : > { %5357 = vmatmul.mubr.bf16.gmra.mxu1 %v530_v30  ;;  %5341 = vmatmul.mubr.bf16.gmra.mxu0 %v466_v31  ;;  %v571_v30 = vshrl.u32 %v6199_v52, 16  ;;  %v575_v31 = vshll.u32 %v5874_v8, 16 }
  0x36   : > { %5377 = vmatpush3.bf16.msra.mxu1 %v5854_v2  ;;  %5429 = vmatpush3.bf16.msra.mxu0 %v5857_v16  ;;  %v563_v2 = vshrl.u32 %v6187_v40, 16  ;;  %v557_v16 = vor.u32 %v555_v55, %v553_v54  ;;  %v1093_v54 = vsel %vm1086_vm1, %v1090_v41, %v1092_v45  ;;  %v1094_v55 = vrot.slane %v6124_v46, 1 }
  0x37   : > { %5360 = vmatprep.mubr.bf16.mxu1 %v538_v37  ;;  %5378 = vmatprep.subr.bf16.mxu1 %v5859_v24  ;;  %v1089_v37 = vsel %vm1086_vm1, %v1087_v13, %v1088_v26  ;;  %v577_v38 = vrot.slane %v575_v31, 1  ;;  %v1403_v13 = vld [vmem:[%s6053_s28 + $0x8] sm:$0xe]  ;;  %v1404_v26 = vld [vmem:[%s6053_s28 + $0xc] sm:$0xf]  ;;  %v1112_v31 = vrot.slane %v6130_v50, 1 }
  0x38   : > { %5430 = vmatprep.subr.bf16.mxu0 %v5861_v34  ;;  %5344 = vmatprep.mubr.bf16.mxu0 %v474_v43  ;;  %v565_v21 = vor.u32 %v563_v2, %v561_v9  ;;  %v562_v27 = vsel %vm430_vm0, %v557_v16, %v561_v9  ;;  %v5879_v43 = vld [vmem:[%s8181_s1 + $0x138] sm:$0xff]   ;;  %v1095_v58 = vsel %vm1086_vm1, %v1092_v45, %v1094_v55  ;;  %v1106_v16 = vrot.slane %v6091_v22, 1 }
  0x39   : > { %v5886_v9 = vld [vmem:[%s8181_s1 + $0xd8] sm:$0xff]   ;;  %v1116_v45 = vrot.slane %v6168_v23, 1 }
  0x3a   : > { %5379 = vmatpush3.bf16.msra.mxu1 %v5859_v24  ;;  %5431 = vmatpush3.bf16.msra.mxu0 %v5861_v34  ;;  %v569_v24 = vrot.slane %v567_v3, 1  ;;  %v5875_v34 = vld [vmem:[%s8181_s1 + $0x80] sm:$0xff]   ;;  %v5887_v3 = vld [vmem:[%s8181_s1 + $0x118] sm:$0xff]  }
  0x3b   : > { %5380 = vmatprep.subr.bf16.mxu1 %v5863_v47  ;;  %5432 = vmatprep.subr.bf16.mxu0 %v5865_v51 }
  0x3c   : > { %v570_v32 = vsel %vm430_vm0, %v565_v21, %v569_v24  ;;  %v573_v11 = vor.u32 %v571_v30, %v569_v24  ;;  %v5892_v21 = vld [vmem:[%s8181_s1 + $0xc0] sm:$0xff]   ;;  %v6323_v24 = vld [vmem:[%s8181_s1 + $0x1b8] sm:$0xff]  }
  0x3d   : > { %5361 = vmatmul.mubr.bf16.gmra.mxu1 %v546_v62  ;;  %5345 = vmatmul.mubr.bf16.gmra.mxu0 %v482_v63  ;;  %v1098_v62 = vrot.slane %v6163_v17, 1  ;;  %v5882_v63 = vld [vmem:[%s8181_s1 + $0xe8] sm:$0xff]   ;;  %v6334_v30 = vld [vmem:[%s6053_s28 + $0x18] sm:$0xff]  }
  0x3e   : > { %5381 = vmatpush3.bf16.msra.mxu1 %v5863_v47  ;;  %5433 = vmatpush3.bf16.msra.mxu0 %v5865_v51  ;;  %v1122_v47 = vrot.slane %v5874_v8, 1  ;;  %v578_v48 = vsel %vm430_vm0, %v573_v11, %v577_v38  ;;  %v1104_v8 = vrot.slane %v6062_v5, 1  ;;  %v1114_v38 = vrot.slane %v6151_v1, 1 }
  0x3f   : > { %5364 = vmatprep.mubr.bf16.mxu1 %v554_v6  ;;  %5382 = vmatprep.subr.bf16.mxu1 %v5868_v57  ;;  %v1101_v2 = vsel %vm1086_vm1, %v1098_v62, %v1100_v0  ;;  %v1102_v6 = vrot.slane %v6059_v4, 1 }
  0x40   : > { %5434 = vmatprep.subr.bf16.mxu0 %v5869_v7  ;;  %5348 = vmatprep.mubr.bf16.mxu0 %v490_v10  ;;  %v6252_v51 = vsel %vm1086_vm1, %v1120_v44, %v1122_v47  ;;  %v5888_v10 = vld [vmem:[%s8181_s1 + $0xd0] sm:$0xff]   ;;  %v1115_v47 = vsel %vm1086_vm1, %v1112_v31, %v1114_v38 }
  0x42   : > { %5383 = vmatpush3.bf16.msra.mxu1 %v5868_v57  ;;  %5435 = vmatpush3.bf16.msra.mxu0 %v5869_v7  ;;  %v1096_v57 = vrot.slane %v6142_v60, 1  ;;  %v5889_v7 = vld [vmem:[%s8181_s1 + $0x110] sm:$0xff]  }
  0x43   : > { %5436 = vmatprep.subr.bf16.mxu0 %v5871_v19  ;;  %5384 = vmatprep.subr.bf16.mxu1 %v5872_v20 }
  0x45   : > { %5365 = vmatmul.mubr.bf16.gmra.mxu1 %v562_v27  ;;  %5349 = vmatmul.mubr.bf16.gmra.mxu0 %v498_v28  ;;  %v6329_v27 = vld [vmem:[%s6053_s28 + $0x10] sm:$0xff]   ;;  %v1110_v28 = vrot.slane %v6116_v39, 1 }
  0x46   : > { %5437 = vmatpush3.bf16.msra.mxu0 %v5871_v19  ;;  %5368 = vmatprep.mubr.bf16.mxu1 %v570_v32  ;;  %v5890_v19 = vld [vmem:[%s8181_s1 + $0xc8] sm:$0xff]   ;;  %v2360_v32 = vrot.slane %v6329_v27, 2 }
  0x47   : > { %5385 = vmatpush3.bf16.msra.mxu1 %v5872_v20  ;;  %5438 = vmatprep.subr.bf16.mxu0 %v5875_v34  ;;  %v1109_v20 = vsel %vm1086_vm1, %v1106_v16, %v1108_v18 }
  0x48   : > { %5386 = vmatprep.subr.bf16.mxu1 %v5876_v36  ;;  %5440 = vmatprep.mubr.bf16.mxu0 %v1089_v37  ;;  %v1113_v37 = vsel %vm1086_vm1, %v1110_v28, %v1112_v31 }
  0x4a   : > { %5439 = vmatpush3.bf16.msra.mxu0 %v5875_v34  ;;  %v1111_v34 = vsel %vm1086_vm1, %v1108_v18, %v1110_v28 }
  0x4b   : > { %5387 = vmatpush3.bf16.msra.mxu1 %v5876_v36  ;;  %5528 = vmatprep.subr.bf16.mxu0 %v5879_v43  ;;  %v6346_v36 = vcombine.low %v1403_v13, %v1404_v26 }
  0x4c   : > { %5476 = vmatprep.subr.bf16.mxu1 %v5878_v42 }
  0x4d   : > { %5369 = vmatmul.mubr.bf16.gmra.mxu1 %v578_v48  ;;  %5441 = vmatmul.mubr.bf16.vlgmr.msra.gmra.mxu0 %v1091_v49  ;;  %v1889_v41 = vshrl.u32 %v6346_v36, 16  ;;  %v1900_v48 = vshll.u32 %v6329_v27, 16  ;;  %v1909_v49 = vshll.u32 %v6334_v30, 16 }
  0x4e   : > { %5388 = vmatprep.mubr.bf16.mxu1 %v6077_v14  ;;  %5529 = vmatpush3.bf16.msra.mxu0 %v5879_v43  ;;  %v1097_v14 = vsel %vm1086_vm1, %v1094_v55, %v1096_v57  ;;  %v1897_v43 = vshrl.u32 %v6329_v27, 16 }
  0x4f   : > { %5444 = vmatprep.mubr.bf16.mxu0 %v1093_v54  ;;  %5530 = vmatprep.subr.bf16.mxu0 %v5881_v53  ;;  %v1891_v54 = vrot.slane %v1889_v41, 1 }
  0x52   : > { %5531 = vmatpush3.bf16.msra.mxu0 %v5881_v53  ;;  %v1550_v53 = vrot.slane %v6346_v36, 1 }
  0x53   : > { %5532 = vmatprep.subr.bf16.mxu0 %v5883_v56 }
  0x55   : > { %5389 = vmatmul.mubr.bf16.vlgmr.msra.gmra.mxu1 %v6080_v15  ;;  %5445 = vmatmul.mubr.bf16.gmra.mxu0 %v1095_v58  ;;  %v1099_v15 = vsel %vm1086_vm1, %v1096_v57, %v1098_v62  ;;  %v1551_v57 = vrot.slane %v6329_v27, 1  ;;  %v1117_v58 = vsel %vm1086_vm1, %v1114_v38, %v1116_v45  ;;  %v6430_v38 = vld [vmem:[%s6053_s28 + $0x58] sm:$0xff]  }
  0x56   : > { %5477 = vmatpush3.bf16.msra.mxu1 %v5878_v42  ;;  %5392 = vmatprep.mubr.bf16.mxu1 %v6094_v25  ;;  %v5884_v25 = vld [vmem:[%s8181_s1 + $0xe0] sm:$0xff]   ;;  %v1892_v42 = vshll.u32 %v6346_v36, 16  ;;  %v5907_v36 = vld [vmem:[%s8181_s1 + $0x1a8] sm:$0xff]  }
  0x57   : > { %5478 = vmatprep.subr.bf16.mxu1 %v5880_v59  ;;  %5448 = vmatprep.mubr.bf16.mxu0 %v1097_v14  ;;  %v6369_v14 = vld [vmem:[%s6053_s28 + $0x20] sm:$0xff]  }
  0x58   : > { %5533 = vmatpush3.bf16.msra.mxu0 %v5883_v56  ;;  %v1894_v55 = vrot.slane %v1892_v42, 2  ;;  %v1899_v56 = vrot.slane %v1897_v43, 1 }
  0x59   : > { %5534 = vmatprep.subr.bf16.mxu0 %v5885_v61 }
  0x5a   : > { %5479 = vmatpush3.bf16.msra.mxu1 %v5880_v59  ;;  %v1902_v59 = vrot.slane %v1900_v48, 2  ;;  %v1895_v31 = vor.u32 %v1894_v55, %v1891_v54  ;;  %v6444_v54 = vld [vmem:[%s6053_s28 + $0x60] sm:$0xff]  }
  0x5b   : > { %5480 = vmatprep.subr.bf16.mxu1 %v5882_v63 }
  0x5c   : > { %5535 = vmatpush3.bf16.msra.mxu0 %v5885_v61  ;;  %v2337_v61 = vld [vmem:[%s6053_s28 + $0x8] sm:$0xc] }
  0x5d   : > { %5393 = vmatmul.mubr.bf16.gmra.mxu1 %v6111_v35  ;;  %5449 = vmatmul.mubr.bf16.gmra.mxu0 %v1099_v15  ;;  %v1103_v35 = vsel %vm1086_vm1, %v1100_v0, %v1102_v6  ;;  %v4893_v0 = vcombine.low %v2337_v61, %v1404_v26  ;;  %v1911_v15 = vrot.slane %v1909_v49, 2  ;;  %v6455_v61 = vld [vmem:[%s6053_s28 + $0x68] sm:$0xff]  }
  0x5e   : > { %5396 = vmatprep.mubr.bf16.mxu1 %v6124_v46  ;;  %5481 = vmatpush3.bf16.msra.mxu1 %v5882_v63  ;;  %v1105_v46 = vsel %vm1086_vm1, %v1102_v6, %v1104_v8  ;;  %v6374_v63 = vld [vmem:[%s6053_s28 + $0x28] sm:$0xff]   ;;  %v2364_v6 = vrot.slane %v6369_v14, 2 }
  0x5f   : > { %5452 = vmatprep.mubr.bf16.mxu0 %v1101_v2  ;;  %5482 = vmatprep.subr.bf16.mxu1 %v5884_v25  ;;  %v1915_v2 = vshrl.u32 %v6369_v14, 16  ;;  %v1924_v13 = vshrl.u32 %v6374_v63, 16 }
  0x60   : > { %5536 = vmatprep.subr.bf16.mxu0 %v5887_v3 }
  0x61   : > { %5537 = vmatpush3.bf16.msra.mxu0 %v5887_v3  ;;  %v6379_v3 = vld [vmem:[%s6053_s28 + $0x30] sm:$0xff]   ;;  %v1917_v18 = vrot.slane %v1915_v2, 1  ;;  %v1926_v43 = vrot.slane %v1924_v13, 1 }
  0x62   : > { %5483 = vmatpush3.bf16.msra.mxu1 %v5884_v25  ;;  %5538 = vmatprep.subr.bf16.mxu0 %v5889_v7  ;;  %v2359_v25 = vrot.slane %v4893_v0, 2  ;;  %v1936_v48 = vshll.u32 %v6379_v3, 16  ;;  %v2380_v0 = vrot.slane %v6444_v54, 2  ;;  %v6461_v2 = vld [vmem:[%s6053_s28 + $0x70] sm:$0xff]  }
  0x63   : > { %5484 = vmatprep.subr.bf16.mxu1 %v5886_v9 }
  0x65   : > { %5397 = vmatmul.mubr.bf16.gmra.mxu1 %v6142_v60  ;;  %5453 = vmatmul.mubr.bf16.gmra.mxu0 %v1103_v35  ;;  %v5893_v60 = vld [vmem:[%s8181_s1 + $0x100] sm:$0xff]   ;;  %v1918_v35 = vshll.u32 %v6369_v14, 16 }
  0x66   : > { %5400 = vmatprep.mubr.bf16.mxu1 %v6163_v17  ;;  %5456 = vmatprep.mubr.bf16.mxu0 %v1105_v46  ;;  %v1107_v17 = vsel %vm1086_vm1, %v1104_v8, %v1106_v16  ;;  %v6385_v8 = vld [vmem:[%s6053_s28 + $0x38] sm:$0xff]   ;;  %v6393_v46 = vld [vmem:[%s6053_s28 + $0x40] sm:$0xff]  }
  0x67   : > { %5485 = vmatpush3.bf16.msra.mxu1 %v5886_v9  ;;  %5539 = vmatpush3.bf16.msra.mxu0 %v5889_v7  ;;  %v1553_v7 = vrot.slane %v6334_v30, 1  ;;  %v6388_v9 = vsel %vm2358_vm2, %v2359_v25, %v2360_v32  ;;  %v1942_v55 = vshrl.u32 %v6385_v8, 16 }
  0x68   : > { %5486 = vmatprep.subr.bf16.mxu1 %v5888_v10  ;;  %5540 = vmatprep.subr.bf16.mxu0 %v5891_v12 }
  0x6b   : > { %5487 = vmatpush3.bf16.msra.mxu1 %v5888_v10  ;;  %5541 = vmatpush3.bf16.msra.mxu0 %v5891_v12 }
  0x6c   : > { %5488 = vmatprep.subr.bf16.mxu1 %v5890_v19  ;;  %5542 = vmatprep.subr.bf16.mxu0 %v5893_v60 }
  0x6d   : > { %5401 = vmatmul.mubr.bf16.gmra.mxu1 %v6178_v33  ;;  %5457 = vmatmul.mubr.bf16.gmra.mxu0 %v1107_v17  ;;  %v6341_v33 = vld [vmem:[%s8181_s1 + $0x178] sm:$0xff]   ;;  %v2370_v17 = vrot.slane %v6385_v8, 2 }
  0x6e   : > { %5404 = vmatprep.mubr.bf16.mxu1 %v6059_v4  ;;  %5460 = vmatprep.mubr.bf16.mxu0 %v1109_v20  ;;  %v2362_v4 = vrot.slane %v6334_v30, 2  ;;  %v6409_v20 = vld [vmem:[%s6053_s28 + $0x48] sm:$0xff]  }
  0x6f   : > { %5489 = vmatpush3.bf16.msra.mxu1 %v5890_v19  ;;  %5543 = vmatpush3.bf16.msra.mxu0 %v5893_v60  ;;  %v1555_v19 = vrot.slane %v6369_v14, 1  ;;  %v2368_v60 = vrot.slane %v6379_v3, 2 }
  0x70   : > { %5490 = vmatprep.subr.bf16.mxu1 %v5892_v21  ;;  %5632 = vmatprep.subr.bf16.mxu0 %v6323_v24  ;;  %v6350_v11 = vsel %vm2358_vm2, %v2360_v32, %v2362_v4  ;;  %v6396_v10 = vsel %vm2358_vm2, %v2362_v4, %v2364_v6  ;;  %v6421_v32 = vld [vmem:[%s6053_s28 + $0x50] sm:$0xff]  }
  0x71   : > { %v6418_v28 = vsel %vm2358_vm2, %v2368_v60, %v2370_v17  ;;  %v2376_v42 = vrot.slane %v6421_v32, 2 }
  0x73   : > { %5491 = vmatpush3.bf16.msra.mxu1 %v5892_v21  ;;  %v2372_v21 = vrot.slane %v6393_v46, 2 }
  0x74   : > { %5580 = vmatprep.subr.bf16.mxu1 %v6341_v33 }
  0x75   : > { %5405 = vmatmul.mubr.bf16.gmra.mxu1 %v6062_v5  ;;  %5461 = vmatmul.mubr.bf16.gmra.mxu0 %v1111_v34  ;;  %v1118_v5 = vrot.slane %v6187_v40, 1  ;;  %v6424_v4 = vsel %vm2358_vm2, %v2370_v17, %v2372_v21  ;;  %v1927_v34 = vshll.u32 %v6374_v63, 16 }
  0x76   : > { %5408 = vmatprep.mubr.bf16.mxu1 %v6091_v22  ;;  %5464 = vmatprep.mubr.bf16.mxu0 %v1113_v37  ;;  %v1906_v22 = vshrl.u32 %v6334_v30, 16  ;;  %v1557_v37 = vrot.slane %v6374_v63, 1 }
  0x77   : > { %v1121_v16 = vsel %vm1086_vm1, %v1118_v5, %v1120_v44  ;;  %v1920_v44 = vrot.slane %v1918_v35, 2  ;;  %v1929_v49 = vrot.slane %v1927_v34, 2  ;;  %v6472_v35 = vld [vmem:[%s6053_s28 + $0x78] sm:$0xff]   ;;  %v1960_v34 = vshrl.u32 %v6409_v20, 16 }
  0x78   : > { %v1908_v62 = vrot.slane %v1906_v22, 1  ;;  %v2378_v22 = vrot.slane %v6430_v38, 2 }
  0x79   : > { %v1921_v25 = vor.u32 %v1920_v44, %v1917_v18  ;;  %v2384_v18 = vrot.slane %v6461_v2, 2 }
  0x7d   : > { %5409 = vmatmul.mubr.bf16.gmra.mxu1 %v6101_v29  ;;  %5465 = vmatmul.mubr.bf16.gmra.mxu0 %v1115_v47  ;;  %v2366_v29 = vrot.slane %v6374_v63, 2 }
  0x7e   : > { %5412 = vmatprep.mubr.bf16.mxu1 %v6116_v39  ;;  %5468 = vmatprep.mubr.bf16.mxu0 %v1117_v58  ;;  %v1119_v39 = vsel %vm1086_vm1, %v1116_v45, %v1118_v5  ;;  %v1933_v45 = vshrl.u32 %v6379_v3, 16  ;;  %v6451_v58 = vsel %vm2358_vm2, %v2376_v42, %v2378_v22 }
  0x7f   : > { %v6399_v12 = vsel %vm2358_vm2, %v2364_v6, %v2366_v29  ;;  %v6415_v26 = vsel %vm2358_vm2, %v2366_v29, %v2368_v60  ;;  %v6464_v6 = vsel %vm2358_vm2, %v2378_v22, %v2380_v0  ;;  %v2382_v29 = vrot.slane %v6455_v61, 2  ;;  %v5901_v22 = vld [vmem:[%s8181_s1 + $0x170] sm:$0xff]  }
  0x80   : > { %v1552_v60 = vsel %vm1086_vm1, %v1550_v53, %v1551_v57  ;;  %v1930_v53 = vor.u32 %v1929_v49, %v1926_v43  ;;  %v1554_v49 = vsel %vm1086_vm1, %v1551_v57, %v1553_v7 }
  0x85   : > { %5413 = vmatmul.mubr.bf16.gmra.mxu1 %v6130_v50  ;;  %5469 = vmatmul.mubr.bf16.gmra.mxu0 %v1119_v39  ;;  %v1903_v50 = vor.u32 %v1902_v59, %v1899_v56  ;;  %v1945_v56 = vshll.u32 %v6385_v8, 16  ;;  %v1912_v59 = vor.u32 %v1911_v15, %v1908_v62  ;;  %v1935_v62 = vrot.slane %v1933_v45, 1 }
  0x86   : > { %5416 = vmatprep.mubr.bf16.mxu1 %v6151_v1  ;;  %5472 = vmatprep.mubr.bf16.mxu0 %v1121_v16  ;;  %v2374_v1 = vrot.slane %v6409_v20, 2  ;;  %v1938_v15 = vrot.slane %v1936_v48, 2  ;;  %v6475_v16 = vsel %vm2358_vm2, %v2380_v0, %v2382_v29  ;;  %v6502_v48 = vld [vmem:[%s6053_s28 + $0x88] sm:$0xff]   ;;  %v1556_v0 = vsel %vm1086_vm1, %v1553_v7, %v1555_v19 }
  0x87   : > { %v1904_v47 = vsel %vm1887_vm3, %v1895_v31, %v1903_v50  ;;  %v1913_v39 = vsel %vm1887_vm3, %v1903_v50, %v1912_v59  ;;  %v1922_v17 = vsel %vm1887_vm3, %v1912_v59, %v1921_v25  ;;  %v1947_v44 = vrot.slane %v1945_v56, 2 }
  0x88   : > { %v6433_v41 = vsel %vm2358_vm2, %v2372_v21, %v2374_v1  ;;  %v6440_v5 = vsel %vm2358_vm2, %v2374_v1, %v2376_v42  ;;  %v1944_v21 = vrot.slane %v1942_v55, 1  ;;  %v6485_v50 = vsel %vm2358_vm2, %v2382_v29, %v2384_v18  ;;  %v6495_v42 = vld [vmem:[%s6053_s28 + $0x80] sm:$0xff]  }
  0x89   : > { %v2386_v1 = vrot.slane %v6472_v35, 2  ;;  %v2388_v43 = vrot.slane %v6495_v42, 2  ;;  %v1931_v55 = vsel %vm1887_vm3, %v1921_v25, %v1930_v53  ;;  %v1972_v56 = vshll.u32 %v6421_v32, 16 }
  0x8a   : > { %v2390_v59 = vrot.slane %v6502_v48, 2  ;;  %v1948_v25 = vor.u32 %v1947_v44, %v1944_v21  ;;  %v8185_v29 = vrot.slane %v6393_v46, 1  ;;  %v1987_v21 = vshrl.u32 %v6444_v54, 16  ;;  %v6553_v44 = vld [vmem:[%s6053_s28 + $0x90] sm:$0xff]  }
  0x8b   : > { %v6498_v45 = vsel %vm2358_vm2, %v2384_v18, %v2386_v1  ;;  %v6525_v27 = vsel %vm2358_vm2, %v2386_v1, %v2388_v43  ;;  %v1981_v18 = vshll.u32 %v6430_v38, 16  ;;  %v2676_v1 = vld [vmem:[%s6053_s28 + $0x14] sm:$0xf] }
  0x8d   : > { %5417 = vmatmul.mubr.bf16.gmra.mxu1 %v6168_v23  ;;  %5473 = vmatmul.mubr.bf16.gmra.mxu0 %v6252_v51  ;;  %v1951_v23 = vshrl.u32 %v6393_v46, 16  ;;  %v1954_v51 = vshll.u32 %v6393_v46, 16 }
  0x8e   : > { %5420 = vmatprep.mubr.bf16.mxu1 %v6187_v40  ;;  %5544 = vmatprep.mubr.bf16.mxu0 %v1904_v47  ;;  %v5902_v40 = vld [vmem:[%s8181_s1 + $0x1b0] sm:$0xff]   ;;  %v1939_v47 = vor.u32 %v1938_v15, %v1935_v62  ;;  %v1974_v15 = vrot.slane %v1972_v56, 2  ;;  %v5909_v56 = vld [vmem:[%s8181_s1 + $0x160] sm:$0xff]  }
  0x8f   : > { %v1953_v13 = vrot.slane %v1951_v23, 1  ;;  %v1956_v31 = vrot.slane %v1954_v51, 2  ;;  %v1559_v23 = vrot.slane %v6379_v3, 1  ;;  %v1561_v51 = vrot.slane %v6385_v8, 1  ;;  %v5912_v8 = vld [vmem:[%s8181_s1 + $0x1a0] sm:$0xff]  }
  0x90   : > { %v1940_v57 = vsel %vm1887_vm3, %v1930_v53, %v1939_v47  ;;  %v1962_v3 = vrot.slane %v1960_v34, 1  ;;  %v1949_v14 = vsel %vm1887_vm3, %v1939_v47, %v1948_v25 }
  0x91   : > { %v6532_v30 = vor.u32 %v1956_v31, %v1953_v13  ;;  %v6556_v13 = vld [vmem:[%s6053_s28 + $0x98] ss:$0 sps:$4 sm:$0x33]   ;;  %v6565_v63 = vsel %vm1086_vm1, %v1561_v51, %v8185_v29  ;;  %v2675_v31 = vld [vmem:[%s6053_s28 + $0x10] sm:$0xc] }
  0x93   : > { %v1958_v53 = vsel %vm1887_vm3, %v1948_v25, %v6532_v30 }
  0x95   : > { %5421 = vmatmul.mubr.bf16.gmra.mxu1 %v6199_v52  ;;  %5545 = vmatmul.mubr.bf16.vlgmr.msra.gmra.mxu0 %v1913_v39  ;;  %v1963_v52 = vshll.u32 %v6409_v20, 16  ;;  %v1978_v39 = vshrl.u32 %v6430_v38, 16 }
  0x96   : > { %5492 = vmatprep.mubr.bf16.mxu1 %v1552_v60  ;;  %5633 = vmatpush3.bf16.msra.mxu0 %v6323_v24  ;;  %v1969_v24 = vshrl.u32 %v6421_v32, 16  ;;  %v1558_v60 = vsel %vm1086_vm1, %v1555_v19, %v1557_v37  ;;  %v6560_v19 = vsel %vm1086_vm1, %v1559_v23, %v1561_v51  ;;  %v6584_v51 = vld [vmem:[%s6053_s28 + $0x18] sm:$0xff]  }
  0x97   : > { %5548 = vmatprep.mubr.bf16.mxu0 %v1922_v17  ;;  %5634 = vmatprep.subr.bf16.mxu0 %v5902_v40  ;;  %v1965_v7 = vrot.slane %v1963_v52, 2  ;;  %v5905_v17 = vld [vmem:[%s8181_s1 + $0x168] sm:$0xff]   ;;  %v2392_v52 = vrot.slane %v6553_v44, 2 }
  0x98   : > { %v1971_v62 = vrot.slane %v1969_v24, 1  ;;  %v1980_v24 = vrot.slane %v1978_v39, 1 }
  0x99   : > { %v1966_v34 = vor.u32 %v1965_v7, %v1962_v3  ;;  %v1996_v3 = vshrl.u32 %v6455_v61, 16  ;;  %v1999_v7 = vshll.u32 %v6455_v61, 16 }
  0x9a   : > { %5635 = vmatpush3.bf16.msra.mxu0 %v5902_v40  ;;  %v6530_v40 = vsel %vm2358_vm2, %v2388_v43, %v2390_v59  ;;  %v1983_v43 = vrot.slane %v1981_v18, 2  ;;  %v3632_v18 = vrot.slane %v6584_v51, 3 }
  0x9b   : > { %5636 = vmatprep.subr.bf16.mxu0 %v5907_v36  ;;  %v1967_v47 = vsel %vm1887_vm3, %v6532_v30, %v1966_v34  ;;  %v2005_v30 = vshrl.u32 %v6461_v2, 16 }
  0x9d   : > { %5493 = vmatmul.mubr.bf16.vlgmr.msra.gmra.mxu1 %v1554_v49  ;;  %5549 = vmatmul.mubr.bf16.gmra.mxu0 %v1931_v55  ;;  %v2394_v49 = vrot.slane %v6556_v13, 2  ;;  %v3609_v55 = vld [vmem:[%s6053_s28 + $0x10] sm:$0x8] }
  0x9e   : > { %5581 = vmatpush3.bf16.msra.mxu1 %v6341_v33  ;;  %5496 = vmatprep.mubr.bf16.mxu1 %v1556_v0  ;;  %v1560_v33 = vsel %vm1086_vm1, %v1557_v37, %v1559_v23  ;;  %v1990_v37 = vshll.u32 %v6444_v54, 16  ;;  %v1989_v0 = vrot.slane %v1987_v21, 1  ;;  %v6581_v23 = vcombine.low %v2675_v31, %v2676_v1 }
  0x9f   : > { %5582 = vmatprep.subr.bf16.mxu1 %v5901_v22  ;;  %5552 = vmatprep.mubr.bf16.mxu0 %v1940_v57  ;;  %v4986_v57 = vcombine.low %v3609_v55, %v2676_v1  ;;  %v6598_v39 = vsel %vm2358_vm2, %v2392_v52, %v2394_v49  ;;  %v3169_v1 = vshrl.u32 %v6584_v51, 16 }
  0xa0   : > { %5637 = vmatpush3.bf16.msra.mxu0 %v5907_v36  ;;  %v6574_v36 = vor.u32 %v1974_v15, %v1971_v62  ;;  %v1992_v25 = vrot.slane %v1990_v37, 2  ;;  %v5916_v62 = vld [vmem:[%s8181_s1 + $0x198] sm:$0xff]   ;;  %v6595_v15 = vld [vmem:[%s6053_s28 + $0x20] sm:$0xff]   ;;  %8214 = vst [vmem:[#allocation4_spill] sm:$0xff] %v6598_v39  ;;  %v3164_v21 = vshll.u32 %v6581_v23, 16  ;;  %v5920_v37 = vld [vmem:[%s8181_s1 + $0x190] sm:$0xff]  }
  0xa1   : > { %5638 = vmatprep.subr.bf16.mxu0 %v5912_v8  ;;  %v3634_v31 = vrot.slane %v6595_v15, 3  ;;  %v3178_v49 = vshrl.u32 %v6595_v15, 16 }
  0xa2   : > { %5583 = vmatpush3.bf16.msra.mxu1 %v5901_v22  ;;  %v6587_v22 = vsel %vm2358_vm2, %v2390_v59, %v2392_v52  ;;  %v3631_v59 = vrot.slane %v4986_v57, 3  ;;  %v3166_v52 = vrot.slane %v3164_v21, 3  ;;  %v3171_v57 = vrot.slane %v3169_v1, 2 }
  0xa3   : > { %5584 = vmatprep.subr.bf16.mxu1 %v5905_v17  ;;  %8213 = vst [vmem:[#allocation3_spill] sm:$0xff] %v6587_v22  ;;  %v6617_v55 = vsel %vm3630_vm4, %v3632_v18, %v3634_v31  ;;  %v1984_v21 = vor.u32 %v1983_v43, %v1980_v24  ;;  %v1976_v1 = vsel %vm1887_vm3, %v1966_v34, %v6574_v36  ;;  %v6627_v22 = vld [vmem:[%s6053_s28 + $0x28] sm:$0xff]   ;;  %v5919_v24 = vld [vmem:[%s8181_s1 + $0x150] sm:$0xff]  }
  0xa4   : > { %5639 = vmatpush3.bf16.msra.mxu0 %v5912_v8  ;;  %v3161_v8 = vshrl.u32 %v6581_v23, 16  ;;  %8216 = vst [vmem:[#allocation6_spill] sm:$0xff] %v6617_v55  ;;  %v6639_v34 = vld [vmem:[%s6053_s28 + $0x30] sm:$0xff]  }
  0xa5   : > { %5497 = vmatmul.mubr.bf16.gmra.mxu1 %v1558_v60  ;;  %5553 = vmatmul.mubr.bf16.gmra.mxu0 %v1949_v14  ;;  %v3172_v60 = vshll.u32 %v6584_v51, 16  ;;  %v5914_v14 = vld [vmem:[%s8181_s1 + $0x158] sm:$0xff]   ;;  %v1985_v39 = vsel %vm1887_vm3, %v6574_v36, %v1984_v21 }
  0xa6   : > { %5500 = vmatprep.mubr.bf16.mxu1 %v1560_v33  ;;  %5585 = vmatpush3.bf16.msra.mxu1 %v5905_v17  ;;  %v6613_v33 = vsel %vm3630_vm4, %v3631_v59, %v3632_v18  ;;  %v3163_v17 = vrot.slane %v3161_v8, 2  ;;  %v3180_v8 = vrot.slane %v3178_v49, 2  ;;  %v3638_v49 = vrot.slane %v6639_v34, 3 }
  0xa7   : > { %5556 = vmatprep.mubr.bf16.mxu0 %v1958_v53  ;;  %5586 = vmatprep.subr.bf16.mxu1 %v5909_v56  ;;  %8215 = vst [vmem:[#allocation5_spill] sm:$0xff] %v6613_v33  ;;  %v3174_v29 = vrot.slane %v3172_v60, 3  ;;  %v3181_v53 = vshll.u32 %v6595_v15, 16  ;;  %v1998_v60 = vrot.slane %v1996_v3, 1  ;;  %v2001_v33 = vrot.slane %v1999_v7, 2 }
  0xa8   : > { %5640 = vmatprep.subr.bf16.mxu0 %v5916_v62  ;;  %v3167_v59 = vor.u32 %v3166_v52, %v3163_v17  ;;  %v3187_v7 = vshrl.u32 %v6627_v22, 16  ;;  %v3190_v17 = vshll.u32 %v6627_v22, 16 }
  0xa9   : > { %5641 = vmatpush3.bf16.msra.mxu0 %v5916_v62  ;;  %v3175_v18 = vor.u32 %v3174_v29, %v3171_v57  ;;  %v3183_v55 = vrot.slane %v3181_v53, 3  ;;  %v6629_v62 = vor.u32 %v1992_v25, %v1989_v0  ;;  %v5924_v29 = vld [vmem:[%s8181_s1 + $0x188] sm:$0xff]   ;;  %v2014_v0 = vshrl.u32 %v6472_v35, 16 }
  0xaa   : > { %5587 = vmatpush3.bf16.msra.mxu1 %v5909_v56  ;;  %5642 = vmatprep.subr.bf16.mxu0 %v5920_v37  ;;  %v2008_v56 = vshll.u32 %v6461_v2, 16  ;;  %v3636_v25 = vrot.slane %v6627_v22, 3  ;;  %v3189_v53 = vrot.slane %v3187_v7, 2  ;;  %v1569_v7 = vrot.slane %v6430_v38, 1 }
  0xab   : > { %5588 = vmatprep.subr.bf16.mxu1 %v5914_v14  ;;  %v6642_v43 = vsel %vm3159_vm5, %v3167_v59, %v3175_v18  ;;  %v3184_v3 = vor.u32 %v3183_v55, %v3180_v8  ;;  %v3196_v55 = vshrl.u32 %v6639_v34, 16  ;;  %v3192_v59 = vrot.slane %v3190_v17, 3 }
  0xac   : > { %v6657_v57 = vsel %vm3630_vm4, %v3634_v31, %v3636_v25  ;;  %v2010_v8 = vrot.slane %v2008_v56, 2  ;;  %v2017_v38 = vshll.u32 %v6472_v35, 16 }
  0xad   : > { %5501 = vmatmul.mubr.bf16.gmra.mxu1 %v6560_v19  ;;  %5557 = vmatmul.mubr.bf16.gmra.mxu0 %v1967_v47  ;;  %v6651_v52 = vsel %vm3159_vm5, %v3175_v18, %v3184_v3  ;;  %v3199_v19 = vshll.u32 %v6639_v34, 16  ;;  %v2007_v47 = vrot.slane %v2005_v30, 1  ;;  %8218 = vst [vmem:[#allocation8_spill] sm:$0xff] %v6657_v57  ;;  %v5929_v18 = vld [vmem:[%s8181_s1 + $0x180] sm:$0xff]   ;;  %v8221_v30 = vrot.slane %v6393_v46, 1 }
  0xae   : > { %5504 = vmatprep.mubr.bf16.mxu1 %v6565_v63  ;;  %5560 = vmatprep.mubr.bf16.mxu0 %v1976_v1  ;;  %8217 = vst [vmem:[#allocation7_spill] sm:$0xff] %v6651_v52  ;;  %v5923_v63 = vld [vmem:[%s8181_s1 + $0x148] sm:$0xff]   ;;  %v8220_v1 = vrot.slane %v6409_v20, 1  ;;  %v3193_v17 = vor.u32 %v3192_v59, %v3189_v53  ;;  %v8222_v52 = vrot.slane %v6421_v32, 1  ;;  %v1994_v46 = vsel %vm1887_vm3, %v1984_v21, %v6629_v62  ;;  %v6686_v53 = vld [vmem:[%s6053_s28 + $0x38] sm:$0xff]   ;;  %v5927_v21 = vld [vmem:[%s8181_s1 + $0x140] sm:$0xff]  }
  0xaf   : > { %5589 = vmatpush3.bf16.msra.mxu1 %v5914_v14  ;;  %5643 = vmatpush3.bf16.msra.mxu0 %v5920_v37  ;;  %v6666_v14 = vsel %vm3630_vm4, %v3636_v25, %v3638_v49  ;;  %v3198_v37 = vrot.slane %v3196_v55, 2  ;;  %v3201_v31 = vrot.slane %v3199_v19, 3  ;;  %v6691_v20 = vor.u32 %v2010_v8, %v2007_v47 }
  0xb0   : > { %5590 = vmatprep.subr.bf16.mxu1 %v5919_v24  ;;  %5644 = vmatprep.subr.bf16.mxu0 %v5924_v29  ;;  %8219 = vst [vmem:[#allocation9_spill] sm:$0xff] %v6666_v14  ;;  %v1566_v56 = vsel %vm1086_vm1, %v8221_v30, %v8220_v1  ;;  %v8223_v57 = vmov %v8220_v1  ;;  %v2002_v1 = vor.u32 %v2001_v33, %v1998_v60  ;;  %v6700_v33 = vld [vmem:[%s8181_s1 + $0x238] sm:$0xff]   ;;  %v6703_v60 = vld [vmem:[%s6053_s28 + $0x40] sm:$0xff]   ;;  %v3208_v47 = vshll.u32 %v6686_v53, 16  ;;  %v3949_v30 = vld [vmem:[%s8182_s2 + $0x10] sm:$0xff] }
  0xb1   : > { %v1568_v25 = vsel %vm1086_vm1, %v8223_v57, %v8222_v52  ;;  %v3202_v19 = vor.u32 %v3201_v31, %v3198_v37  ;;  %v6689_v36 = vsel %vm3159_vm5, %v3184_v3, %v3193_v17  ;;  %v2016_v52 = vrot.slane %v2014_v0, 1 }
  0xb2   : > { %8224 = vst [vmem:[#allocation10_spill] sm:$0xff] %v6689_v36  ;;  %v2023_v57 = vshrl.u32 %v6495_v42, 16  ;;  %v3640_v3 = vrot.slane %v6686_v53, 3  ;;  %v3205_v0 = vshrl.u32 %v6686_v53, 16  ;;  %v3642_v59 = vrot.slane %v6703_v60, 3 }
  0xb3   : > { %5591 = vmatpush3.bf16.msra.mxu1 %v5919_v24  ;;  %5645 = vmatpush3.bf16.msra.mxu0 %v5924_v29  ;;  %v6706_v24 = vsel %vm3159_vm5, %v3193_v17, %v3202_v19  ;;  %v2026_v29 = vshll.u32 %v6495_v42, 16  ;;  %v3214_v8 = vshrl.u32 %v6703_v60, 16  ;;  %v3217_v37 = vshll.u32 %v6703_v60, 16 }
  0xb4   : > { %5592 = vmatprep.subr.bf16.mxu1 %v5923_v63  ;;  %5646 = vmatprep.subr.bf16.mxu0 %v5929_v18  ;;  %8225 = vst [vmem:[#allocation11_spill] sm:$0xff] %v6706_v24  ;;  %v2019_v31 = vrot.slane %v2017_v38, 2  ;;  %v3207_v17 = vrot.slane %v3205_v0, 2  ;;  %v2025_v24 = vrot.slane %v2023_v57, 1  ;;  %v5994_v0 = vmov 0  }
  0xb5   : > { %5505 = vmatmul.mubr.bf16.gmra.mxu1 %v1566_v56  ;;  %5561 = vmatmul.mubr.bf16.gmra.mxu0 %v1985_v39  ;;  %v3947_v39 = vld [vmem:[%s8182_s2] sm:$0xff]  ;;  %v6722_v56 = vsel %vm3630_vm4, %v3638_v49, %v3640_v3  ;;  %v3216_v38 = vrot.slane %v3214_v8, 2  ;;  %v3219_v55 = vrot.slane %v3217_v37, 3  ;;  %v2028_v49 = vrot.slane %v2026_v29, 2 }
  0xb6   : > { %5508 = vmatprep.mubr.bf16.mxu1 %v1568_v25  ;;  %5564 = vmatprep.mubr.bf16.mxu0 %v1994_v46  ;;  %8226 = vst [vmem:[#allocation12_spill] sm:$0xff] %v6722_v56  ;;  %v3210_v25 = vrot.slane %v3208_v47, 3  ;;  %v2032_v46 = vshrl.u32 %v6502_v48, 16  ;;  %v8227_v56 = vrot.slane %v6421_v32, 1  ;;  %v2003_v14 = vsel %vm1887_vm3, %v6629_v62, %v2002_v1 }
  0xb7   : > { %5593 = vmatpush3.bf16.msra.mxu1 %v5923_v63  ;;  %5647 = vmatpush3.bf16.msra.mxu0 %v5929_v18  ;;  %v6728_v63 = vld [vmem:[%s8181_s1 + $0x1f8] sm:$0xff]   ;;  %v6732_v18 = vsel %vm3630_vm4, %v3640_v3, %v3642_v59  ;;  %v1573_v3 = vrot.slane %v6455_v61, 1  ;;  %v3220_v8 = vor.u32 %v3219_v55, %v3216_v38  ;;  %v8228_v57 = vrot.slane %v6444_v54, 1  ;;  %v6755_v55 = vld [vmem:[%s6053_s28 + $0x50] sm:$0xff]  }
  0xb8   : > { %5594 = vmatprep.subr.bf16.mxu1 %v5927_v21  ;;  %5736 = vmatprep.subr.bf16.mxu0 %v6700_v33  ;;  %v3211_v47 = vor.u32 %v3210_v25, %v3207_v17  ;;  %v1570_v36 = vsel %vm1086_vm1, %v8227_v56, %v1569_v7  ;;  %v2012_v37 = vsel %vm1887_vm3, %v2002_v1, %v6691_v20  ;;  %v1575_v32 = vrot.slane %v6461_v2, 1  ;;  %v6747_v56 = vld [vmem:[%s6053_s28 + $0x48] sm:$0xff]   ;;  %v3950_v1 = vld [vmem:[%s8182_s2 + $0x18] sm:$0xff] }
  0xb9   : > { %5832 = vset.pattern.permute.xlu0 %v5994_v0  ;;  %5833 = vset.pattern.permute.xlu1 %v5994_v0  ;;  %v1572_v29 = vsel %vm1086_vm1, %v1569_v7, %v8228_v57  ;;  %v2020_v62 = vor.u32 %v2019_v31, %v2016_v52  ;;  %v2034_v61 = vrot.slane %v2032_v46, 1  ;;  %v3948_v7 = vld [vmem:[%s8182_s2 + $0x8] sm:$0xff]  ;;  %v3644_v52 = vrot.slane %v6747_v56, 3  ;;  %v3951_v57 = vld [vmem:[%s8182_s2 + $0x20] sm:$0xff] }
  0xba   : > { %3985 = vperm.xlu0 %5832, %v3947_v39   ;;  %3995 = vperm.xlu1 %5833, %v3949_v30   ;;  %v6750_v17 = vsel %vm3159_vm5, %v3202_v19, %v3211_v47  ;;  %v2035_v39 = vshll.u32 %v6502_v48, 16  ;;  %v6766_v19 = vor.u32 %v2028_v49, %v2025_v24  ;;  %v3223_v31 = vshrl.u32 %v6747_v56, 16 }
  0xbb   : > { %5595 = vmatpush3.bf16.msra.mxu1 %v5927_v21  ;;  %v6764_v21 = vsel %vm3159_vm5, %v3211_v47, %v3220_v8  ;;  %v3226_v30 = vshll.u32 %v6747_v56, 16  ;;  %v2041_v25 = vshrl.u32 %v6553_v44, 16  ;;  %v3646_v46 = vrot.slane %v6755_v55, 3 }
  0xbc   : > { %5684 = vmatprep.subr.bf16.mxu1 %v6728_v63  ;;  %8229 = vst [vmem:[#allocation13_spill] sm:$0xff] %v6764_v21  ;;  %v3232_v38 = vshrl.u32 %v6755_v55, 16  ;;  %v3235_v0 = vshll.u32 %v6755_v55, 16  ;;  %v3225_v24 = vrot.slane %v3223_v31, 2  ;;  %v2037_v47 = vrot.slane %v2035_v39, 2 }
  0xbd   : > { %5509 = vmatmul.mubr.bf16.gmra.mxu1 %v1570_v36  ;;  %5565 = vmatmul.mubr.bf16.gmra.mxu0 %v2003_v14  ;;  %v2044_v14 = vshll.u32 %v6553_v44, 16  ;;  %v6777_v36 = vsel %vm3630_vm4, %v3642_v59, %v3644_v52  ;;  %v3228_v49 = vrot.slane %v3226_v30, 3  ;;  %v8232_v31 = vrot.slane %v6444_v54, 1 }
  0xbe   : > { %5512 = vmatprep.mubr.bf16.mxu1 %v1572_v29  ;;  %5568 = vmatprep.mubr.bf16.mxu0 %v2012_v37  ;;  %8230 = vst [vmem:[#allocation14_spill] sm:$0xff] %v6777_v36  ;;  %v3952_v29 = vld [vmem:[%s8182_s2 + $0x28] sm:$0xff]  ;;  %v6786_v37 = vsel %vm3630_vm4, %v3644_v52, %v3646_v46  ;;  %v2021_v39 = vsel %vm1887_vm3, %v6691_v20, %v2020_v62 }
  0xbf   : > { %3990 = vperm.xlu0 %5832, %v3948_v7   ;;  %4000 = vperm.xlu1 %5833, %v3950_v1   ;;  %8231 = vst [vmem:[#allocation15_spill] sm:$0xff] %v6786_v37  ;;  %v3234_v7 = vrot.slane %v3232_v38, 2  ;;  %v3237_v1 = vrot.slane %v3235_v0, 3  ;;  %v3229_v59 = vor.u32 %v3228_v49, %v3225_v24  ;;  %v1574_v30 = vsel %vm1086_vm1, %v8232_v31, %v1573_v3  ;;  %v6799_v0 = vld [vmem:[%s6053_s28 + $0x58] sm:$0xff]   ;;  %v6807_v31 = vld [vmem:[%s6053_s28 + $0x60] sm:$0xff]  }
  0xc0   : > { %v1576_v21 = vsel %vm1086_vm1, %v1573_v3, %v1575_v32  ;;  %v2030_v52 = vsel %vm1887_vm3, %v2020_v62, %v6766_v19  ;;  %v2043_v37 = vrot.slane %v2041_v25, 1  ;;  %v2046_v38 = vrot.slane %v2044_v14, 2  ;;  %v3953_v3 = vld [vmem:[%s8182_s2 + $0x30] sm:$0xff]  ;;  %v3954_v62 = vld [vmem:[%s8182_s2 + $0x38] sm:$0xff] }
  0xc1   : > { %v3238_v36 = vor.u32 %v3237_v1, %v3234_v7  ;;  %v6802_v54 = vsel %vm3159_vm5, %v3220_v8, %v3229_v59  ;;  %v1577_v24 = vrot.slane %v6472_v35, 1  ;;  %v2038_v20 = vor.u32 %v2037_v47, %v2034_v61 }
  0xc2   : > { %v2050_v35 = vshrl.u32 %v6556_v13, 16  ;;  %v3648_v8 = vrot.slane %v6799_v0, 3  ;;  %v3241_v61 = vshrl.u32 %v6799_v0, 16  ;;  %v3244_v14 = vshll.u32 %v6799_v0, 16 }
  0xc3   : > { %4005 = vperm.xlu0 %5832, %v3951_v57   ;;  %4010 = vperm.xlu1 %5833, %v3952_v29   ;;  %v6816_v25 = vsel %vm3159_vm5, %v3229_v59, %v3238_v36  ;;  %v2053_v47 = vshll.u32 %v6556_v13, 16  ;;  %v3650_v57 = vrot.slane %v6807_v31, 3  ;;  %v3250_v29 = vshrl.u32 %v6807_v31, 16  ;;  %v3956_v13 = vld [vmem:[%s8182_s2 + $0x48] sm:$0xff] }
  0xc4   : > { %8233 = vst [vmem:[#allocation16_spill] sm:$0xff] %v6816_v25  ;;  %v3253_v7 = vshll.u32 %v6807_v31, 16  ;;  %v2047_v1 = vor.u32 %v2046_v38, %v2043_v37  ;;  %v6827_v59 = vsel %vm3630_vm4, %v3646_v46, %v3648_v8  ;;  %v1578_v46 = vsel %vm1086_vm1, %v1575_v32, %v1577_v24 }
  0xc5   : > { %5513 = vmatmul.mubr.bf16.gmra.mxu1 %v1574_v30  ;;  %5569 = vmatmul.mubr.bf16.gmra.mxu0 %v2021_v39  ;;  %8234 = vst [vmem:[#allocation17_spill] sm:$0xff] %v6827_v59  ;;  %v3243_v30 = vrot.slane %v3241_v61, 2  ;;  %v3246_v39 = vrot.slane %v3244_v14, 3  ;;  %v3252_v37 = vrot.slane %v3250_v29, 2  ;;  %v2052_v61 = vrot.slane %v2050_v35, 1  ;;  %v6848_v29 = vld [vmem:[%s6053_s28 + $0x68] sm:$0xff]  }
  0xc6   : > { %5516 = vmatprep.mubr.bf16.mxu1 %v1576_v21  ;;  %5572 = vmatprep.mubr.bf16.mxu0 %v2030_v52  ;;  %v3955_v21 = vld [vmem:[%s8182_s2 + $0x40] sm:$0xff]  ;;  %v6836_v52 = vsel %vm3630_vm4, %v3648_v8, %v3650_v57  ;;  %v3255_v38 = vrot.slane %v3253_v7, 3  ;;  %v2055_v14 = vrot.slane %v2053_v47, 2  ;;  %v8235_v25 = vrot.slane %v6495_v42, 1  ;;  %v6856_v35 = vld [vmem:[%s6053_s28 + $0x70] sm:$0xff]  }
  0xc7   : > { %4015 = vperm.xlu0 %5832, %v3953_v3   ;;  %4020 = vperm.xlu1 %5833, %v3954_v62   ;;  %v3247_v3 = vor.u32 %v3246_v39, %v3243_v30  ;;  %v2039_v62 = vsel %vm1887_vm3, %v6766_v19, %v2038_v20  ;;  %v2048_v8 = vsel %vm1887_vm3, %v2038_v20, %v2047_v1  ;;  %v1581_v32 = vrot.slane %v6502_v48, 1  ;;  %v3957_v47 = vld [vmem:[%s8182_s2 + $0x50] sm:$0xff] }
  0xc8   : > { %v3256_v49 = vor.u32 %v3255_v38, %v3252_v37  ;;  %v1580_v59 = vsel %vm1086_vm1, %v1577_v24, %v8235_v25  ;;  %v1583_v19 = vrot.slane %v6553_v44, 1  ;;  %v3958_v24 = vld [vmem:[%s8182_s2 + $0x58] sm:$0xff]  ;;  %v3652_v48 = vrot.slane %v6848_v29, 3 }
  0xc9   : > { %v6851_v2 = vsel %vm3159_vm5, %v3238_v36, %v3247_v3  ;;  %v2823_v36 = vrot.slane %v6584_v51, 2  ;;  %v3259_v44 = vshrl.u32 %v6848_v29, 16  ;;  %v3262_v25 = vshll.u32 %v6848_v29, 16 }
  0xca   : > { %v6865_v20 = vsel %vm3159_vm5, %v3247_v3, %v3256_v49  ;;  %v2056_v7 = vor.u32 %v2055_v14, %v2052_v61  ;;  %v8186_v30 = vrot.slane %v6856_v35, 3  ;;  %v3268_v39 = vshrl.u32 %v6856_v35, 16 }
  0xcb   : > { %4025 = vperm.xlu0 %5832, %v3955_v21   ;;  %4030 = vperm.xlu1 %5833, %v3956_v13   ;;  %v3271_v21 = vshll.u32 %v6856_v35, 16  ;;  %v2822_v13 = vrot.slane %v6581_v23, 2  ;;  %v6876_v51 = vsel %vm3630_vm4, %v3650_v57, %v3652_v48  ;;  %v3261_v37 = vrot.slane %v3259_v44, 2 }
  0xcc   : > { %v3264_v38 = vrot.slane %v3262_v25, 3  ;;  %v6887_v3 = vsel %vm3630_vm4, %v3652_v48, %v8186_v30  ;;  %v3270_v23 = vrot.slane %v3268_v39, 2  ;;  %v8236_v57 = vrot.slane %v6495_v42, 1  ;;  %v3961_v42 = vld [vmem:[%s8182_s2 + $0x70] sm:$0xff] }
  0xcd   : > { %5517 = vmatmul.mubr.bf16.gmra.mxu1 %v1578_v46  ;;  %5573 = vmatmul.mubr.bf16.gmra.mxu0 %v2039_v62  ;;  %v3960_v46 = vld [vmem:[%s8182_s2 + $0x68] sm:$0xff]  ;;  %v3273_v62 = vrot.slane %v3271_v21, 3  ;;  %v1584_v44 = vsel %vm1086_vm1, %v1581_v32, %v1583_v19  ;;  %v2824_v25 = vsel %vm2358_vm2, %v2822_v13, %v2823_v36  ;;  %v2827_v39 = vrot.slane %v6627_v22, 2  ;;  %v3963_v21 = vld [vmem:[%s8182_s2 + $0x80] sm:$0xff] }
  0xce   : > { %5520 = vmatprep.mubr.bf16.mxu1 %v1580_v59  ;;  %5576 = vmatprep.mubr.bf16.mxu0 %v2048_v8  ;;  %v3959_v59 = vld [vmem:[%s8182_s2 + $0x60] sm:$0xff]  ;;  %v3265_v61 = vor.u32 %v3264_v38, %v3261_v37  ;;  %v1582_v14 = vsel %vm1086_vm1, %v8236_v57, %v1581_v32  ;;  %v2057_v8 = vsel %vm1887_vm3, %v2047_v1, %v2056_v7  ;;  %v3962_v1 = vld [vmem:[%s8182_s2 + $0x78] sm:$0xff]  ;;  %v3964_v13 = vld [vmem:[%s8182_s2 + $0x88] sm:$0xff] }
  0xcf   : > { %4035 = vperm.xlu0 %5832, %v3957_v47   ;;  %4040 = vperm.xlu1 %5833, %v3958_v24   ;;  %v5928_v47 = vld [vmem:[%s6053_s28 + $0x98] ss:$0 sps:$4 sm:$0x11]   ;;  %v6894_v24 = vor.u32 %v3273_v62, %v3270_v23  ;;  %v2831_v23 = vrot.slane %v6686_v53, 2  ;;  %v3967_v62 = vld [vmem:[%s8182_s2 + $0xa0] sm:$0xff]  ;;  %v3969_v57 = vld [vmem:[%s8182_s2 + $0xb0] sm:$0xff] }
  0xd0   : > { %v6899_v48 = vsel %vm3159_vm5, %v3256_v49, %v3265_v61  ;;  %v1585_v32 = vrot.slane %v5928_v47, 1  ;;  %v2825_v49 = vrot.slane %v6595_v15, 2  ;;  %v5939_v15 = vld [vmem:[%s8181_s1 + $0x230] sm:$0xff]   ;;  %v2835_v47 = vrot.slane %v6747_v56, 2  ;;  %v5953_v56 = vld [vmem:[%s8181_s1 + $0x218] sm:$0xff]  }
  0xd1   : > { %8237 = vst [vmem:[#allocation18_spill] sm:$0xff] %v6894_v24  ;;  %8238 = vst [vmem:[#allocation19_spill] sm:$0xff] %v6899_v48  ;;  %v6909_v7 = vsel %vm3159_vm5, %v3265_v61, %v6894_v24  ;;  %v5949_v61 = vld [vmem:[%s8181_s1 + $0x220] sm:$0xff]  }
  0xd2   : > { %8239 = vst [vmem:[#allocation20_spill] sm:$0xff] %v6909_v7  ;;  %v1586_v37 = vsel %vm1086_vm1, %v1583_v19, %v1585_v32  ;;  %v2826_v38 = vsel %vm2358_vm2, %v2823_v36, %v2825_v49  ;;  %v2828_v22 = vsel %vm2358_vm2, %v2825_v49, %v2827_v39  ;;  %v3966_v19 = vld [vmem:[%s8182_s2 + $0x98] sm:$0xff]  ;;  %v2829_v36 = vrot.slane %v6639_v34, 2  ;;  %v5957_v49 = vld [vmem:[%s8181_s1 + $0x210] sm:$0xff]  }
  0xd3   : > { %4045 = vperm.xlu0 %5832, %v3959_v59   ;;  %4050 = vperm.xlu1 %5833, %v3960_v46   ;;  %v3965_v59 = vld [vmem:[%s8182_s2 + $0x90] sm:$0xff]  ;;  %v5944_v46 = vld [vmem:[%s8181_s1 + $0x228] sm:$0xff]   ;;  %v2837_v32 = vrot.slane %v6755_v55, 2 }
  0xd4   : > { %v2830_v34 = vsel %vm2358_vm2, %v2827_v39, %v2829_v36  ;;  %v2832_v53 = vsel %vm2358_vm2, %v2829_v36, %v2831_v23  ;;  %v5961_v36 = vld [vmem:[%s8181_s1 + $0x208] sm:$0xff]  }
  0xd5   : > { %5521 = vmatmul.mubr.bf16.gmra.mxu1 %v1582_v14  ;;  %5577 = vmatmul.mubr.bf16.gmra.mxu0 %v2057_v8  ;;  %v2833_v14 = vrot.slane %v6703_v60, 2  ;;  %v3970_v8 = vld [vmem:[%s8182_s2 + $0xb8] sm:$0xff] }
  0xd6   : > { %5524 = vmatprep.mubr.bf16.mxu1 %v1584_v44  ;;  %5648 = vmatprep.mubr.bf16.mxu0 %v2824_v25 }
  0xd7   : > { %4055 = vperm.xlu0 %5832, %v3961_v42   ;;  %4060 = vperm.xlu1 %5833, %v3962_v1   ;;  %v2834_v60 = vsel %vm2358_vm2, %v2831_v23, %v2833_v14  ;;  %v2836_v44 = vsel %vm2358_vm2, %v2833_v14, %v2835_v47  ;;  %v3972_v1 = vld [vmem:[%s8182_s2 + $0xc8] sm:$0xff] }
  0xdb   : > { %4065 = vperm.xlu0 %5832, %v3963_v21   ;;  %4070 = vperm.xlu1 %5833, %v3964_v13   ;;  %v2839_v13 = vrot.slane %v6799_v0, 2 }
  0xdd   : > { %5525 = vmatmul.mubr.bf16.gmra.mxu1 %v1586_v37  ;;  %5649 = vmatmul.mubr.bf16.vlgmr.msra.gmra.mxu0 %v2826_v38  ;;  %v3974_v38 = vld [vmem:[%s8182_s2 + $0xd8] sm:$0xff] }
  0xde   : > { %5596 = vmatprep.mubr.bf16.mxu1 %v6388_v9  ;;  %5737 = vmatpush3.bf16.msra.mxu0 %v6700_v33  ;;  %v3968_v9 = vld [vmem:[%s8182_s2 + $0xa8] sm:$0xff]  ;;  %v5938_v33 = vld [vmem:[%s8181_s1 + $0x1f0] sm:$0xff]  }
  0xdf   : > { %5652 = vmatprep.mubr.bf16.mxu0 %v2828_v22  ;;  %5738 = vmatprep.subr.bf16.mxu0 %v5939_v15 }
  0xe0   : > { %4075 = vperm.xlu0 %5832, %v3965_v59   ;;  %4080 = vperm.xlu1 %5833, %v3966_v19   ;;  %v2840_v59 = vsel %vm2358_vm2, %v2837_v32, %v2839_v13  ;;  %v5956_v19 = vld [vmem:[%s8181_s1 + $0x1d0] sm:$0xff]  }
  0xe2   : > { %5739 = vmatpush3.bf16.msra.mxu0 %v5939_v15  ;;  %v2838_v15 = vsel %vm2358_vm2, %v2835_v47, %v2837_v32  ;;  %v7055_v47 = vld [vmem:[%s6053_s28 + $0x78] sm:$0xff]  }
  0xe3   : > { %5740 = vmatprep.subr.bf16.mxu0 %v5944_v46 }
  0xe4   : > { %4085 = vperm.xlu0 %5832, %v3967_v62   ;;  %4090 = vperm.xlu1 %5833, %v3968_v9   ;;  %v2841_v62 = vrot.slane %v6807_v31, 2  ;;  %v3975_v9 = vld [vmem:[%s8182_s2 + $0xe0] sm:$0xff] }
  0xe5   : > { %5597 = vmatmul.mubr.bf16.vlgmr.msra.gmra.mxu1 %v6350_v11  ;;  %5653 = vmatmul.mubr.bf16.gmra.mxu0 %v2830_v34  ;;  %v5942_v11 = vld [vmem:[%s8181_s1 + $0x1e8] sm:$0xff]   ;;  %v5965_v31 = vld [vmem:[%s8181_s1 + $0x200] sm:$0xff]  }
  0xe6   : > { %5685 = vmatpush3.bf16.msra.mxu1 %v6728_v63  ;;  %5600 = vmatprep.mubr.bf16.mxu1 %v6396_v10  ;;  %v3971_v10 = vld [vmem:[%s8182_s2 + $0xc0] sm:$0xff]  ;;  %v3976_v34 = vld [vmem:[%s8182_s2 + $0xe8] sm:$0xff] }
  0xe7   : > { %5686 = vmatprep.subr.bf16.mxu1 %v5938_v33  ;;  %5656 = vmatprep.mubr.bf16.mxu0 %v2832_v53  ;;  %v5946_v63 = vld [vmem:[%s8181_s1 + $0x1e0] sm:$0xff]  }
  0xe8   : > { %5741 = vmatpush3.bf16.msra.mxu0 %v5944_v46  ;;  %4095 = vperm.xlu0 %5832, %v3969_v57  }
  0xe9   : > { %5742 = vmatprep.subr.bf16.mxu0 %v5949_v61  ;;  %4100 = vperm.xlu1 %5833, %v3970_v8  }
  0xea   : > { %5687 = vmatpush3.bf16.msra.mxu1 %v5938_v33 }
  0xeb   : > { %5688 = vmatprep.subr.bf16.mxu1 %v5942_v11 }
  0xec   : > { %5743 = vmatpush3.bf16.msra.mxu0 %v5949_v61  ;;  %4105 = vperm.xlu0 %5832, %v3971_v10   ;;  %v5964_v10 = vld [vmem:[%s8181_s1 + $0x1c0] sm:$0xff]  }
  0xed   : > { %v6977_v25 = vpop.f32.mrf.mxu1  ;;  %5601 = vmatmul.mubr.bf16.gmra.mxu1 %v6399_v12  ;;  %v6980_v42 = vpop.f32.mrf.mxu0  ;;  %5657 = vmatmul.mubr.bf16.gmra.mxu0 %v2834_v60  ;;  %v3973_v12 = vld [vmem:[%s8182_s2 + $0xd0] sm:$0xff] }
  0xee   : > { %5604 = vmatprep.mubr.bf16.mxu1 %v6415_v26  ;;  %5689 = vmatpush3.bf16.msra.mxu1 %v5942_v11  ;;  %v5951_v26 = vld [vmem:[%s8181_s1 + $0x1d8] sm:$0xff]  }
  0xef   : > { %v6993_v39 = vpop.f32.mrf.mxu1  ;;  %v6995_v21 = vpop.f32.mrf.mxu0  ;;  %5660 = vmatprep.mubr.bf16.mxu0 %v2836_v44  ;;  %5690 = vmatprep.subr.bf16.mxu1 %v5946_v63  ;;  %v3977_v44 = vld [vmem:[%s8182_s2 + $0xf0] sm:$0xff] }
  0xf0   : > { %5744 = vmatprep.subr.bf16.mxu0 %v5953_v56  ;;  %4110 = vperm.xlu1 %5833, %v3972_v1   ;;  %v3978_v1 = vld [vmem:[%s8182_s2 + $0xf8] sm:$0xff] }
  0xf1   : > { %v7001_v55 = vpop.f32.mrf.mxu1  ;;  %v7003_v37 = vpop.f32.mrf.mxu0  ;;  %5745 = vmatpush3.bf16.msra.mxu0 %v5953_v56  ;;  %4115 = vperm.xlu0 %5832, %v3973_v12   ;;  %v2845_v56 = vrot.slane %v6856_v35, 2 }
  0xf2   : > { %5691 = vmatpush3.bf16.msra.mxu1 %v5946_v63  ;;  %5746 = vmatprep.subr.bf16.mxu0 %v5957_v49 }
  0xf3   : > { %v7009_v0 = vpop.f32.mrf.mxu1  ;;  %v7011_v22 = vpop.f32.mrf.mxu0  ;;  %5692 = vmatprep.subr.bf16.mxu1 %v5951_v26 }
  0xf4   : > { %4120 = vperm.xlu1 %5833, %v3974_v38   ;;  %v7087_v38 = vld [vmem:[%s6053_s28 + $0x80] sm:$0xff]  }
  0xf5   : > { %v7020_v46 = vpop.f32.mrf.mxu1  ;;  %5605 = vmatmul.mubr.bf16.gmra.mxu1 %v6418_v28  ;;  %v7023_v23 = vpop.f32.mrf.mxu0  ;;  %5661 = vmatmul.mubr.bf16.gmra.mxu0 %v2838_v15  ;;  %v2843_v28 = vrot.slane %v6848_v29, 2  ;;  %v2842_v29 = vsel %vm2358_vm2, %v2839_v13, %v2841_v62  ;;  %v3979_v13 = vld [vmem:[%s8182_s2 + $0x100] sm:$0xff] }
  0xf6   : > { %5608 = vmatprep.mubr.bf16.mxu1 %v6424_v4  ;;  %5664 = vmatprep.mubr.bf16.mxu0 %v2840_v59  ;;  %v5960_v4 = vld [vmem:[%s8181_s1 + $0x1c8] sm:$0xff]  }
  0xf7   : > { %v7033_v33 = vpop.f32.mrf.mxu1  ;;  %v7035_v53 = vpop.f32.mrf.mxu0  ;;  %5693 = vmatpush3.bf16.msra.mxu1 %v5951_v26  ;;  %5747 = vmatpush3.bf16.msra.mxu0 %v5957_v49  ;;  %v2844_v11 = vsel %vm2358_vm2, %v2841_v62, %v2843_v28  ;;  %v2847_v49 = vrot.slane %v7055_v47, 2  ;;  %v2846_v26 = vsel %vm2358_vm2, %v2843_v28, %v2845_v56  ;;  %v3980_v62 = vld [vmem:[%s8182_s2 + $0x108] sm:$0xff]  ;;  %v3981_v28 = vld [vmem:[%s8182_s2 + $0x110] sm:$0xff] }
  0xf8   : > { %5694 = vmatprep.subr.bf16.mxu1 %v5956_v19  ;;  %5748 = vmatprep.subr.bf16.mxu0 %v5961_v36 }
  0xf9   : > { %v7044_v61 = vpop.f32.mrf.mxu1  ;;  %v7046_v57 = vpop.f32.mrf.mxu0  ;;  %4125 = vperm.xlu0 %5832, %v3975_v9   ;;  %4130 = vperm.xlu1 %5833, %v3976_v34  }
  0xfb   : > { %v7049_v14 = vpop.f32.mrf.mxu1  ;;  %v7051_v8 = vpop.f32.mrf.mxu0  ;;  %5695 = vmatpush3.bf16.msra.mxu1 %v5956_v19  ;;  %5749 = vmatpush3.bf16.msra.mxu0 %v5961_v36  ;;  %v2848_v19 = vsel %vm2358_vm2, %v2845_v56, %v2847_v49  ;;  %v7095_v36 = vld [vmem:[%s6053_s28 + $0x88] sm:$0xff]   ;;  %v7124_v56 = vld [vmem:[%s6053_s28 + $0x90] sm:$0xff]  }
  0xfc   : > { %5696 = vmatprep.subr.bf16.mxu1 %v5960_v4  ;;  %5750 = vmatprep.subr.bf16.mxu0 %v5965_v31  ;;  %8240 = vst [vmem:[#allocation21_spill] sm:$0xff] %v7095_v36  ;;  %8243 = vst [vmem:[#allocation24_spill] sm:$0xff] %v7124_v56 }
  0xfd   : > { %v7060_v60 = vpop.f32.mrf.mxu1  ;;  %5609 = vmatmul.mubr.bf16.gmra.mxu1 %v6433_v41  ;;  %v7063_v63 = vpop.f32.mrf.mxu0  ;;  %5665 = vmatmul.mubr.bf16.gmra.mxu0 %v2842_v29 }
  0xfe   : > { %5612 = vmatprep.mubr.bf16.mxu1 %v6440_v5  ;;  %5668 = vmatprep.mubr.bf16.mxu0 %v2844_v11  ;;  %v3982_v11 = vld [vmem:[%s8182_s2 + $0x118] sm:$0xff] }
  0xff   : > { %v7073_v32 = vpop.f32.mrf.mxu1  ;;  %v7075_v41 = vpop.f32.mrf.mxu0  ;;  %5697 = vmatpush3.bf16.msra.mxu1 %v5960_v4  ;;  %5751 = vmatpush3.bf16.msra.mxu0 %v5965_v31  ;;  %v2849_v4 = vrot.slane %v7087_v38, 2 }
 0x100   : > { %5698 = vmatprep.subr.bf16.mxu1 %v5964_v10  ;;  %4135 = vperm.xlu0 %5832, %v3977_v44  }
 0x101   : > { %v7078_v5 = vpop.f32.mrf.mxu1  ;;  %v7080_v12 = vpop.f32.mrf.mxu0  ;;  %4140 = vperm.xlu1 %5833, %v3978_v1  }
 0x103   : > { %v7089_v15 = vpop.f32.mrf.mxu1  ;;  %v7091_v59 = vpop.f32.mrf.mxu0  ;;  %5699 = vmatpush3.bf16.msra.mxu1 %v5964_v10 }
 0x104   : > { %4145 = vperm.xlu0 %5832, %v3979_v13  }
 0x105   : > { %v7100_v9 = vpop.f32.mrf.mxu1  ;;  %5613 = vmatmul.mubr.bf16.gmra.mxu1 %v6451_v58  ;;  %v7103_v34 = vpop.f32.mrf.mxu0  ;;  %5669 = vmatmul.mubr.bf16.gmra.mxu0 %v2846_v26  ;;  %v2851_v58 = vrot.slane %v7095_v36, 2 }
 0x106   : > { %5616 = vmatprep.mubr.bf16.mxu1 %v6464_v6  ;;  %5672 = vmatprep.mubr.bf16.mxu0 %v2848_v19  ;;  %v2850_v6 = vsel %vm2358_vm2, %v2847_v49, %v2849_v4  ;;  %v7132_v19 = vld [vmem:[%s6053_s28 + $0x98] sm:$0xff]   ;;  %v2853_v49 = vrot.slane %v7124_v56, 2 }
 0x107   : > { %v7110_v31 = vpop.f32.mrf.mxu1  ;;  %v7112_v29 = vpop.f32.mrf.mxu0  ;;  %4150 = vperm.xlu1 %5833, %v3980_v62   ;;  %v2852_v26 = vsel %vm2358_vm2, %v2849_v4, %v2851_v58  ;;  %8245 = vst [vmem:[#allocation26_spill] sm:$0xff] %v7132_v19  ;;  %v2855_v4 = vrot.slane %v7132_v19, 2 }
 0x108   : > { %8241 = vst [vmem:[#allocation22_spill] sm:$0xff] %v7110_v31  ;;  %4155 = vperm.xlu0 %5832, %v3981_v28  }
 0x109   : > { %v7118_v10 = vpop.f32.mrf.mxu1  ;;  %v7120_v44 = vpop.f32.mrf.mxu0 }
 0x10a   : > { %8242 = vst [vmem:[#allocation23_spill] sm:$0xff] %v7118_v10 }
 0x10b   : > { %v7126_v1 = vpop.f32.mrf.mxu1  ;;  %v7128_v13 = vpop.f32.mrf.mxu0  ;;  %4160 = vperm.xlu1 %5833, %v3982_v11   ;;  %v2854_v11 = vsel %vm2358_vm2, %v2851_v58, %v2853_v49 }
 0x10c   : > { %8244 = vst [vmem:[#allocation25_spill] sm:$0xff] %v7126_v1 }
 0x10d   : > { %v7134_v62 = vpop.f32.mrf.mxu1  ;;  %5617 = vmatmul.mubr.bf16.gmra.mxu1 %v6475_v16  ;;  %v5442_v28 = vpop.f32.mrf.mxu0  ;;  %5673 = vmatmul.mubr.bf16.gmra.mxu0 %v2850_v6  ;;  %v2856_v6 = vsel %vm2358_vm2, %v2853_v49, %v2855_v4 }
 0x10e   : > { %8246 = vst [vmem:[#allocation27_spill] sm:$0xff] %v7134_v62  ;;  %5620 = vmatprep.mubr.bf16.mxu1 %v6485_v50  ;;  %5676 = vmatprep.mubr.bf16.mxu0 %v2852_v26  ;;  %v5963_v62 = vld [vmem:[%s6053_s28 + $0xa0] ss:$0 sps:$4 sm:$0x33]  }
 0x10f   : > { %v7139_v30 = vpop.f32.mrf.mxu1  ;;  %v1224_v7 = vpop.f32.mrf.mxu0 }
 0x110   : > { %8247 = vst [vmem:[#allocation28_spill] sm:$0xff] %v7139_v30 }
 0x111   : > { %v7142_v1 = vpop.f32.mrf.mxu1  ;;  %v5443_v24 = vpop.f32.mrf.mxu0 }
 0x112   : > { %8248 = vst [vmem:[#allocation29_spill] sm:$0xff] %v7142_v1  ;;  %v2857_v1 = vrot.slane %v5963_v62, 2 }
 0x113   : > { %v7146_v10 = vpop.f32.mrf.mxu1  ;;  %v1227_v16 = vpop.f32.mrf.mxu0 }
 0x114   : > { %8249 = vst [vmem:[#allocation30_spill] sm:$0xff] %v7146_v10 }
 0x115   : > { %v5390_v50 = vpop.f32.mrf.mxu1  ;;  %5621 = vmatmul.mubr.bf16.gmra.mxu1 %v6498_v45  ;;  %v5446_v26 = vpop.f32.mrf.mxu0  ;;  %5677 = vmatmul.mubr.bf16.gmra.mxu0 %v2854_v11  ;;  %v2858_v45 = vsel %vm2358_vm2, %v2855_v4, %v2857_v1 }
 0x116   : > { %v931_v30 = vadd.f32 %v5390_v50, %v6980_v42  ;;  %5624 = vmatprep.mubr.bf16.mxu1 %v6525_v27  ;;  %5680 = vmatprep.mubr.bf16.mxu0 %v2856_v6 }
 0x117   : > { %v922_v19 = vpop.f32.mrf.mxu1  ;;  %v1240_v56 = vpop.f32.mrf.mxu0 }
 0x118   : > { %v923_v58 = vadd.f32 %v922_v19, %v6995_v21  ;;  %v7153_v31 = vadd.f32 %v5442_v28, %v931_v30  ;;  %v8250_v19 = vld [vmem:[#allocation3_spill] sm:$0xff] }
 0x119   : > { %v5391_v10 = vpop.f32.mrf.mxu1  ;;  %v5447_v36 = vpop.f32.mrf.mxu0 }
 0x11a   : > { %v934_v49 = vadd.f32 %v5391_v10, %v7003_v37  ;;  %v7157_v48 = vadd.f32 %v1224_v7, %v923_v58  ;;  %v8251_v37 = vld [vmem:[#allocation5_spill] sm:$0xff] }
 0x11b   : > { %v925_v11 = vpop.f32.mrf.mxu1  ;;  %v1243_v42 = vpop.f32.mrf.mxu0 }
 0x11c   : > { %v926_v27 = vadd.f32 %v925_v11, %v7011_v22  ;;  %v7160_v6 = vadd.f32 %v5443_v24, %v934_v49  ;;  %v8252_v11 = vld [vmem:[#allocation4_spill] sm:$0xff] }
 0x11d   : > { %v5394_v62 = vpop.f32.mrf.mxu1  ;;  %5625 = vmatmul.mubr.bf16.gmra.mxu1 %v6530_v40  ;;  %v5450_v21 = vpop.f32.mrf.mxu0  ;;  %5681 = vmatmul.mubr.bf16.gmra.mxu0 %v2858_v45 }
 0x11e   : > { %v947_v30 = vadd.f32 %v5394_v62, %v7023_v23  ;;  %5628 = vmatprep.mubr.bf16.mxu1 %v8250_v19  ;;  %5752 = vmatprep.mubr.bf16.mxu0 %v8251_v37  ;;  %v7166_v10 = vadd.f32 %v1227_v16, %v926_v27  ;;  %v8253_v62 = vld [vmem:[#allocation6_spill] sm:$0xff] }
 0x11f   : > { %v938_v7 = vpop.f32.mrf.mxu1  ;;  %v1256_v1 = vpop.f32.mrf.mxu0 }
 0x120   : > { %v939_v28 = vadd.f32 %v938_v7, %v7035_v53  ;;  %v7169_v22 = vadd.f32 %v5446_v26, %v947_v30  ;;  %v8254_v26 = vld [vmem:[#allocation8_spill] sm:$0xff] }
 0x121   : > { %v5395_v24 = vpop.f32.mrf.mxu1  ;;  %v5451_v4 = vpop.f32.mrf.mxu0 }
 0x122   : > { %v950_v40 = vadd.f32 %v5395_v24, %v7046_v57  ;;  %v7172_v50 = vadd.f32 %v1240_v56, %v939_v28 }
 0x123   : > { %v941_v58 = vpop.f32.mrf.mxu1  ;;  %v1259_v23 = vpop.f32.mrf.mxu0 }
 0x124   : > { %v942_v49 = vadd.f32 %v941_v58, %v7051_v8  ;;  %v7175_v45 = vadd.f32 %v5447_v36, %v950_v40  ;;  %v8255_v58 = vld [vmem:[#allocation7_spill] sm:$0xff] }
 0x125   : > { %v5398_v16 = vpop.f32.mrf.mxu1  ;;  %5629 = vmatmul.mubr.bf16.gmra.mxu1 %v8252_v11  ;;  %v5454_v27 = vpop.f32.mrf.mxu0  ;;  %5753 = vmatmul.mubr.bf16.vlgmr.msra.gmra.mxu0 %v8253_v62  ;;  %v8258_v11 = vld [vmem:[#allocation12_spill] sm:$0xff] }
 0x126   : > { %v963_v53 = vadd.f32 %v5398_v16, %v7063_v63  ;;  %5700 = vmatprep.mubr.bf16.mxu1 %v6642_v43  ;;  %5756 = vmatprep.mubr.bf16.mxu0 %v8254_v26  ;;  %v7182_v57 = vadd.f32 %v1243_v42, %v942_v49  ;;  %v8256_v16 = vld [vmem:[#allocation9_spill] sm:$0xff] }
 0x127   : > { %v954_v56 = vpop.f32.mrf.mxu1  ;;  %v1272_v30 = vpop.f32.mrf.mxu0 }
 0x128   : > { %v955_v8 = vadd.f32 %v954_v56, %v7075_v41  ;;  %v7185_v36 = vadd.f32 %v5450_v21, %v963_v53  ;;  %v8257_v21 = vld [vmem:[#allocation10_spill] sm:$0xff] }
 0x129   : > { %v5399_v19 = vpop.f32.mrf.mxu1  ;;  %v5455_v37 = vpop.f32.mrf.mxu0 }
 0x12a   : > { %v966_v7 = vadd.f32 %v5399_v19, %v7080_v12  ;;  %v7188_v28 = vadd.f32 %v1256_v1, %v955_v8 }
 0x12b   : > { %v957_v24 = vpop.f32.mrf.mxu1  ;;  %v1275_v63 = vpop.f32.mrf.mxu0 }
 0x12c   : > { %v958_v43 = vadd.f32 %v957_v24, %v7091_v59  ;;  %v7191_v40 = vadd.f32 %v5451_v4, %v966_v7 }
 0x12d   : > { %v5402_v42 = vpop.f32.mrf.mxu1  ;;  %5701 = vmatmul.mubr.bf16.vlgmr.msra.gmra.mxu1 %v8255_v58  ;;  %v5458_v49 = vpop.f32.mrf.mxu0  ;;  %5757 = vmatmul.mubr.bf16.gmra.mxu0 %v8256_v16 }
 0x12e   : > { %v979_v41 = vadd.f32 %v5402_v42, %v7103_v34  ;;  %5704 = vmatprep.mubr.bf16.mxu1 %v8257_v21  ;;  %5760 = vmatprep.mubr.bf16.mxu0 %v8258_v11  ;;  %v7198_v12 = vadd.f32 %v1259_v23, %v958_v43  ;;  %v8259_v43 = vld [vmem:[#allocation11_spill] sm:$0xff] }
 0x12f   : > { %v970_v1 = vpop.f32.mrf.mxu1  ;;  %v1288_v62 = vpop.f32.mrf.mxu0 }
 0x130   : > { %v971_v59 = vadd.f32 %v970_v1, %v7112_v29  ;;  %v7201_v4 = vadd.f32 %v5454_v27, %v979_v41  ;;  %v8260_v27 = vld [vmem:[#allocation14_spill] sm:$0xff] }
 0x131   : > { %v5403_v53 = vpop.f32.mrf.mxu1  ;;  %v5459_v26 = vpop.f32.mrf.mxu0 }
 0x132   : > { %v982_v56 = vadd.f32 %v5403_v53, %v7120_v44  ;;  %v7204_v8 = vadd.f32 %v1272_v30, %v971_v59  ;;  %v8261_v59 = vld [vmem:[#allocation13_spill] sm:$0xff] }
 0x133   : > { %v973_v19 = vpop.f32.mrf.mxu1  ;;  %v1291_v34 = vpop.f32.mrf.mxu0 }
 0x134   : > { %v974_v7 = vadd.f32 %v973_v19, %v7128_v13  ;;  %v7207_v24 = vadd.f32 %v5455_v37, %v982_v56  ;;  %v8262_v56 = vld [vmem:[#allocation15_spill] sm:$0xff] }
 0x135   : > { %v5406_v23 = vpop.f32.mrf.mxu1  ;;  %5705 = vmatmul.mubr.bf16.gmra.mxu1 %v8259_v43  ;;  %v5462_v42 = vpop.f32.mrf.mxu0  ;;  %5761 = vmatmul.mubr.bf16.gmra.mxu0 %v6732_v18 }
 0x136   : > { %v995_v29 = vadd.f32 %v5406_v23, %v6977_v25  ;;  %5708 = vmatprep.mubr.bf16.mxu1 %v6750_v17  ;;  %5764 = vmatprep.mubr.bf16.mxu0 %v8260_v27  ;;  %v7214_v44 = vadd.f32 %v1275_v63, %v974_v7 }
 0x137   : > { %v986_v30 = vpop.f32.mrf.mxu1  ;;  %v1304_v58 = vpop.f32.mrf.mxu0 }
 0x138   : > { %v987_v13 = vadd.f32 %v986_v30, %v6993_v39  ;;  %v7217_v37 = vadd.f32 %v5458_v49, %v995_v29  ;;  %v8263_v49 = vld [vmem:[#allocation17_spill] sm:$0xff] }
 0x139   : > { %v5407_v16 = vpop.f32.mrf.mxu1  ;;  %v5463_v41 = vpop.f32.mrf.mxu0 }
 0x13a   : > { %v998_v21 = vadd.f32 %v5407_v16, %v7001_v55  ;;  %v7220_v11 = vadd.f32 %v1288_v62, %v987_v13  ;;  %v8264_v13 = vld [vmem:[#allocation16_spill] sm:$0xff] }
 0x13b   : > { %v989_v18 = vpop.f32.mrf.mxu1  ;;  %v1307_v25 = vpop.f32.mrf.mxu0 }
 0x13c   : > { %v990_v17 = vadd.f32 %v989_v18, %v7009_v0  ;;  %v7223_v1 = vadd.f32 %v5459_v26, %v998_v21  ;;  %v3280_v21 = vshll.u32 %v7055_v47, 16 }
 0x13d   : > { %v5410_v63 = vpop.f32.mrf.mxu1  ;;  %5709 = vmatmul.mubr.bf16.gmra.mxu1 %v8261_v59  ;;  %v5466_v53 = vpop.f32.mrf.mxu0  ;;  %5765 = vmatmul.mubr.bf16.gmra.mxu0 %v8262_v56  ;;  %v8265_v59 = vrot.slane %v6856_v35, 3  ;;  %v3286_v35 = vshrl.u32 %v7087_v38, 16 }
 0x13e   : > { %v1011_v39 = vadd.f32 %v5410_v63, %v7020_v46  ;;  %5712 = vmatprep.mubr.bf16.mxu1 %v6802_v54  ;;  %5768 = vmatprep.mubr.bf16.mxu0 %v8263_v49  ;;  %v7230_v55 = vadd.f32 %v1291_v34, %v990_v17  ;;  %v3282_v49 = vrot.slane %v3280_v21, 3 }
 0x13f   : > { %v1002_v62 = vpop.f32.mrf.mxu1  ;;  %v1320_v19 = vpop.f32.mrf.mxu0 }
 0x140   : > { %v1003_v0 = vadd.f32 %v1002_v62, %v7033_v33  ;;  %v7233_v26 = vadd.f32 %v5462_v42, %v1011_v39 }
 0x141   : > { %v5411_v7 = vpop.f32.mrf.mxu1  ;;  %v5467_v23 = vpop.f32.mrf.mxu0 }
 0x142   : > { %v1014_v43 = vadd.f32 %v5411_v7, %v7044_v61  ;;  %v7236_v29 = vadd.f32 %v1304_v58, %v1003_v0  ;;  %v8266_v0 = vld [vmem:[#allocation19_spill] sm:$0xff]  ;;  %v3289_v7 = vshll.u32 %v7087_v38, 16 }
 0x143   : > { %v1005_v27 = vpop.f32.mrf.mxu1  ;;  %v1323_v46 = vpop.f32.mrf.mxu0 }
 0x144   : > { %v1006_v54 = vadd.f32 %v1005_v27, %v7049_v14  ;;  %v7239_v30 = vadd.f32 %v5463_v41, %v1014_v43  ;;  %v3656_v14 = vrot.slane %v7055_v47, 3  ;;  %v3277_v41 = vshrl.u32 %v7055_v47, 16 }
 0x145   : > { %v5414_v34 = vpop.f32.mrf.mxu1  ;;  %5713 = vmatmul.mubr.bf16.gmra.mxu1 %v8264_v13  ;;  %v5470_v16 = vpop.f32.mrf.mxu0  ;;  %5769 = vmatmul.mubr.bf16.gmra.mxu0 %v6836_v52  ;;  %v8268_v13 = vld [vmem:[#allocation22_spill] sm:$0xff] }
 0x146   : > { %v1027_v33 = vadd.f32 %v5414_v34, %v7060_v60  ;;  %5716 = vmatprep.mubr.bf16.mxu1 %v6851_v2  ;;  %5772 = vmatprep.mubr.bf16.mxu0 %v6876_v51  ;;  %v7246_v61 = vadd.f32 %v1307_v25, %v1006_v54  ;;  %v3657_v56 = vsel %vm3630_vm4, %v8265_v59, %v3656_v14  ;;  %v3279_v39 = vrot.slane %v3277_v41, 2 }
 0x147   : > { %v1018_v42 = vpop.f32.mrf.mxu1  ;;  %v1336_v58 = vpop.f32.mrf.mxu0 }
 0x148   : > { %v1019_v18 = vadd.f32 %v1018_v42, %v7073_v32  ;;  %v7252_v17 = vadd.f32 %v5466_v53, %v1027_v33  ;;  %v3283_v27 = vor.u32 %v3282_v49, %v3279_v39 }
 0x149   : > { %v5415_v52 = vpop.f32.mrf.mxu1  ;;  %v5471_v60 = vpop.f32.mrf.mxu0 }
 0x14a   : > { %v1030_v2 = vadd.f32 %v5415_v52, %v7078_v5  ;;  %v7255_v63 = vadd.f32 %v1320_v19, %v1019_v18  ;;  %v3658_v5 = vrot.slane %v7087_v38, 3  ;;  %v8269_v38 = vld [vmem:[#allocation23_spill] sm:$0xff]  ;;  %v3288_v18 = vrot.slane %v3286_v35, 2 }
 0x14b   : > { %v1021_v51 = vpop.f32.mrf.mxu1  ;;  %v1339_v25 = vpop.f32.mrf.mxu0  ;;  %v3291_v52 = vrot.slane %v3289_v7, 3 }
 0x14c   : > { %v1022_v47 = vadd.f32 %v1021_v51, %v7089_v15  ;;  %v7261_v62 = vadd.f32 %v5467_v23, %v1030_v2  ;;  %v3659_v21 = vsel %vm3630_vm4, %v3656_v14, %v3658_v5 }
 0x14d   : > { %v5418_v32 = vpop.f32.mrf.mxu1  ;;  %5717 = vmatmul.mubr.bf16.gmra.mxu1 %v6865_v20  ;;  %v5474_v53 = vpop.f32.mrf.mxu0  ;;  %5773 = vmatmul.mubr.bf16.gmra.mxu0 %v6887_v3  ;;  %v8267_v20 = vld [vmem:[#allocation21_spill] sm:$0xff] }
 0x14e   : > { %v1043_v19 = vadd.f32 %v5418_v32, %v7100_v9  ;;  %5720 = vmatprep.mubr.bf16.mxu1 %v8266_v0  ;;  %5776 = vmatprep.mubr.bf16.mxu0 %v3657_v56  ;;  %v7270_v15 = vadd.f32 %v1323_v46, %v1022_v47  ;;  %v3660_v54 = vrot.slane %v8267_v20, 3  ;;  %v3295_v3 = vshrl.u32 %v8267_v20, 16  ;;  %v8270_v56 = vld [vmem:[#allocation18_spill] sm:$0xff]  ;;  %v8271_v32 = vld [vmem:[#allocation25_spill] sm:$0xff] }
 0x14f   : > { %v1034_v23 = vpop.f32.mrf.mxu1  ;;  %v1352_v43 = vpop.f32.mrf.mxu0  ;;  %v3298_v34 = vshll.u32 %v8267_v20, 16  ;;  %v3284_v39 = vsel %vm3159_vm5, %v8270_v56, %v3283_v27 }
 0x150   : > { %v1035_v9 = vadd.f32 %v1034_v23, %v8268_v13  ;;  %v7276_v33 = vadd.f32 %v5470_v16, %v1043_v19  ;;  %v3661_v49 = vsel %vm3630_vm4, %v3658_v5, %v3660_v54  ;;  %v3297_v47 = vrot.slane %v3295_v3, 2  ;;  %v8273_v23 = vld [vmem:[#allocation20_spill] sm:$0xff]  ;;  %v8275_v13 = vld [vmem:[#allocation27_spill] sm:$0xff] }
 0x151   : > { %v5419_v42 = vpop.f32.mrf.mxu1  ;;  %v5475_v41 = vpop.f32.mrf.mxu0  ;;  %v3300_v16 = vrot.slane %v3298_v34, 3 }
 0x152   : > { %v1046_v46 = vadd.f32 %v5419_v42, %v8269_v38  ;;  %v7280_v2 = vadd.f32 %v1336_v58, %v1035_v9  ;;  %v8274_v58 = vld [vmem:[#allocation24_spill] sm:$0xff]  ;;  %v3292_v42 = vor.u32 %v3291_v52, %v3288_v18 }
 0x153   : > { %v1037_v51 = vpop.f32.mrf.mxu1  ;;  %v1355_v59 = vpop.f32.mrf.mxu0  ;;  %v3304_v7 = vshrl.u32 %v8274_v58, 16  ;;  %v3307_v20 = vshll.u32 %v8274_v58, 16  ;;  %v3662_v5 = vrot.slane %v8274_v58, 3  ;;  %v3301_v38 = vor.u32 %v3300_v16, %v3297_v47  ;;  %v5967_v58 = vld [vmem:[%s6053_s28 + $0xa0] ss:$0 sps:$4 sm:$0x77]  }
 0x154   : > { %v1038_v19 = vadd.f32 %v1037_v51, %v8271_v32  ;;  %v7286_v0 = vadd.f32 %v5471_v60, %v1046_v46  ;;  %v8277_v46 = vld [vmem:[#allocation26_spill] sm:$0xff]  ;;  %v8278_v32 = vld [vmem:[#allocation28_spill] sm:$0xff]  ;;  %s5805_s28 = smul.u32 144, %s8378_s15 }
 0x155   : > { %v5422_v14 = vpop.f32.mrf.mxu1  ;;  %5721 = vmatmul.mubr.bf16.gmra.mxu1 %v8273_v23  ;;  %v5546_v35 = vpop.f32.mrf.mxu0  ;;  %5777 = vmatmul.mubr.bf16.gmra.mxu0 %v3659_v21  ;;  %v3664_v51 = vrot.slane %v8277_v46, 3  ;;  %v3313_v21 = vshrl.u32 %v8277_v46, 16  ;;  %v3316_v56 = vshll.u32 %v8277_v46, 16  ;;  %v3663_v47 = vsel %vm3630_vm4, %v3660_v54, %v3662_v5 }
 0x156   : > { %8272 = vst [vmem:[#allocation3_spill] sm:$0xff] %v7286_v0  ;;  %v1059_v9 = vadd.f32 %v5422_v14, %v8275_v13  ;;  %5724 = vmatprep.mubr.bf16.mxu1 %v3284_v39  ;;  %5780 = vmatprep.mubr.bf16.mxu0 %v3661_v49  ;;  %v7293_v3 = vadd.f32 %v1339_v25, %v1038_v19  ;;  %v3306_v39 = vrot.slane %v3304_v7, 2  ;;  %v3309_v49 = vrot.slane %v3307_v20, 3  ;;  %v8280_v25 = vld [vmem:[#allocation29_spill] sm:$0xff]  ;;  %s7829_s5 = scalar_lea.vmem %s8183_s3, %s5805_s28 }
 0x157   : > { %v1050_v60 = vpop.f32.mrf.mxu1  ;;  %v2158_v34 = vpop.f32.mrf.mxu0  ;;  %v3293_v13 = vsel %vm3159_vm5, %v3283_v27, %v3292_v42  ;;  %v3302_v46 = vsel %vm3159_vm5, %v3292_v42, %v3301_v38  ;;  %v3666_v54 = vrot.slane %v5967_v58, 3  ;;  %v3325_v42 = vshll.u32 %v5967_v58, 16 }
 0x158   : > { %8276 = vst [vmem:[#allocation5_spill] sm:$0xff] %v7293_v3  ;;  %v1051_v23 = vadd.f32 %v1050_v60, %v8278_v32  ;;  %v7299_v14 = vadd.f32 %v5474_v53, %v1059_v9  ;;  %v3665_v53 = vsel %vm3630_vm4, %v3662_v5, %v3664_v51  ;;  %v3315_v9 = vrot.slane %v3313_v21, 2  ;;  %v8281_v32 = vld [vmem:[#allocation30_spill] sm:$0xff] }
 0x159   : > { %v5423_v18 = vpop.f32.mrf.mxu1  ;;  %v5547_v52 = vpop.f32.mrf.mxu0  ;;  %v3318_v60 = vrot.slane %v3316_v56, 3  ;;  %v3310_v27 = vor.u32 %v3309_v49, %v3306_v39  ;;  %v3667_v49 = vsel %vm3630_vm4, %v3664_v51, %v3666_v54 }
 0x15a   : > { %8279 = vst [vmem:[#allocation4_spill] sm:$0xff] %v7299_v14  ;;  %v1062_v19 = vadd.f32 %v5423_v18, %v8280_v25  ;;  %v7305_v16 = vadd.f32 %v1352_v43, %v1051_v23  ;;  %v3322_v23 = vshrl.u32 %v5967_v58, 16 }
 0x15b   : > { %v1053_v3 = vpop.f32.mrf.mxu1  ;;  %v2161_v0 = vpop.f32.mrf.mxu0  ;;  %v3319_v56 = vor.u32 %v3318_v60, %v3315_v9 }
 0x15c   : > { %v1054_v7 = vadd.f32 %v1053_v3, %v8281_v32  ;;  %v7310_v20 = vadd.f32 %v5475_v41, %v1062_v19 }
 0x15d   : > { %v5494_v14 = vpop.f32.mrf.mxu1  ;;  %5725 = vmatmul.mubr.bf16.gmra.mxu1 %v3293_v13  ;;  %v5550_v18 = vpop.f32.mrf.mxu0  ;;  %5781 = vmatmul.mubr.bf16.gmra.mxu0 %v3663_v47  ;;  %v3311_v13 = vsel %vm3159_vm5, %v3301_v38, %v3310_v27  ;;  %v3327_v47 = vrot.slane %v3325_v42, 3 }
 0x15e   : > { %v1832_v43 = vadd.f32 %v5494_v14, %v7153_v31  ;;  %5728 = vmatprep.mubr.bf16.mxu1 %v3302_v46  ;;  %5784 = vmatprep.mubr.bf16.mxu0 %v3665_v53  ;;  %v7313_v25 = vadd.f32 %v1355_v59, %v1054_v7  ;;  %v3324_v14 = vrot.slane %v3322_v23, 2  ;;  %v3320_v53 = vsel %vm3159_vm5, %v3310_v27, %v3319_v56 }
 0x15f   : > { %v1687_v5 = vpop.f32.mrf.mxu1  ;;  %v2174_v21 = vpop.f32.mrf.mxu0 }
 0x160   : > { %v1830_v41 = vadd.f32 %v1687_v5, %v7157_v48  ;;  %v7316_v3 = vadd.f32 %v5546_v35, %v1832_v43 }
 0x161   : > { %v5495_v19 = vpop.f32.mrf.mxu1  ;;  %v5551_v39 = vpop.f32.mrf.mxu0 }
 0x162   : > { %v1833_v31 = vadd.f32 %v5495_v19, %v7160_v6  ;;  %v7321_v58 = vadd.f32 %v2158_v34, %v1830_v41  ;;  %v3328_v6 = vor.u32 %v3327_v47, %v3324_v14 }
 0x163   : > { %v1690_v59 = vpop.f32.mrf.mxu1  ;;  %v2177_v46 = vpop.f32.mrf.mxu0 }
 0x164   : > { %v1831_v48 = vadd.f32 %v1690_v59, %v7166_v10  ;;  %v7325_v35 = vadd.f32 %v5547_v52, %v1833_v31  ;;  %v3329_v43 = vsel %vm3159_vm5, %v3319_v56, %v3328_v6 }
 0x165   : > { %v5498_v9 = vpop.f32.mrf.mxu1  ;;  %5729 = vmatmul.mubr.bf16.gmra.mxu1 %v3311_v13  ;;  %v5554_v38 = vpop.f32.mrf.mxu0  ;;  %5785 = vmatmul.mubr.bf16.gmra.mxu0 %v3667_v49 }
 0x166   : > { %v1836_v51 = vadd.f32 %v5498_v9, %v7169_v22  ;;  %5732 = vmatprep.mubr.bf16.mxu1 %v3320_v53  ;;  %v7328_v60 = vadd.f32 %v2161_v0, %v1831_v48 }
 0x167   : > { %v1703_v34 = vpop.f32.mrf.mxu1  ;;  %v2190_v32 = vpop.f32.mrf.mxu0 }
 0x168   : > { %v1834_v7 = vadd.f32 %v1703_v34, %v7172_v50  ;;  %v7331_v54 = vadd.f32 %v5550_v18, %v1836_v51 }
 0x169   : > { %v5499_v27 = vpop.f32.mrf.mxu1  ;;  %v5555_v10 = vpop.f32.mrf.mxu0 }
 0x16a   : > { %v1837_v52 = vadd.f32 %v5499_v27, %v7175_v45  ;;  %v7335_v23 = vadd.f32 %v2174_v21, %v1834_v7 }
 0x16b   : > { %v1706_v42 = vpop.f32.mrf.mxu1  ;;  %v2193_v22 = vpop.f32.mrf.mxu0 }
 0x16c   : > { %v1835_v5 = vadd.f32 %v1706_v42, %v7182_v57  ;;  %v7338_v0 = vadd.f32 %v5551_v39, %v1837_v52 }
 0x16d   : > { %v5502_v41 = vpop.f32.mrf.mxu1  ;;  %5733 = vmatmul.mubr.bf16.gmra.mxu1 %v3329_v43  ;;  %v5558_v19 = vpop.f32.mrf.mxu0 }
 0x16e   : > { %v1840_v50 = vadd.f32 %v5502_v41, %v7185_v36  ;;  %v7341_v18 = vadd.f32 %v2177_v46, %v1835_v5 }
 0x16f   : > { %v1719_v13 = vpop.f32.mrf.mxu1  ;;  %v2206_v49 = vpop.f32.mrf.mxu0 }
 0x170   : > { %v1838_v45 = vadd.f32 %v1719_v13, %v7188_v28  ;;  %v7344_v56 = vadd.f32 %v5554_v38, %v1840_v50 }
 0x171   : > { %v5503_v21 = vpop.f32.mrf.mxu1  ;;  %v5559_v31 = vpop.f32.mrf.mxu0 }
 0x172   : > { %v1841_v14 = vadd.f32 %v5503_v21, %v7191_v40  ;;  %v7347_v57 = vadd.f32 %v2190_v32, %v1838_v45 }
 0x173   : > { %v1722_v39 = vpop.f32.mrf.mxu1  ;;  %v2209_v47 = vpop.f32.mrf.mxu0 }
 0x174   : > { %v1839_v59 = vadd.f32 %v1722_v39, %v7198_v12  ;;  %v7350_v53 = vadd.f32 %v5555_v10, %v1841_v14 }
 0x175   : > { %v5506_v36 = vpop.f32.mrf.mxu1  ;;  %v5562_v46 = vpop.f32.mrf.mxu0 }
 0x176   : > { %v1844_v48 = vadd.f32 %v5506_v36, %v7201_v4  ;;  %v7353_v9 = vadd.f32 %v2193_v22, %v1839_v59 }
 0x177   : > { %v1735_v28 = vpop.f32.mrf.mxu1  ;;  %v2222_v38 = vpop.f32.mrf.mxu0 }
 0x178   : > { %v1842_v51 = vadd.f32 %v1735_v28, %v7204_v8  ;;  %v7356_v6 = vadd.f32 %v5558_v19, %v1844_v48 }
 0x179   : > { %v5507_v40 = vpop.f32.mrf.mxu1  ;;  %v5563_v34 = vpop.f32.mrf.mxu0 }
 0x17a   : > { %v1845_v32 = vadd.f32 %v5507_v40, %v7207_v24  ;;  %v7359_v7 = vadd.f32 %v2206_v49, %v1842_v51 }
 0x17b   : > { %v1738_v12 = vpop.f32.mrf.mxu1  ;;  %v2225_v27 = vpop.f32.mrf.mxu0 }
 0x17c   : > { %v1843_v10 = vadd.f32 %v1738_v12, %v7214_v44  ;;  %v7362_v52 = vadd.f32 %v5559_v31, %v1845_v32 }
 0x17d   : > { %v5510_v4 = vpop.f32.mrf.mxu1  ;;  %v5566_v43 = vpop.f32.mrf.mxu0 }
 0x17e   : > { %v1848_v42 = vadd.f32 %v5510_v4, %v7217_v37  ;;  %v7365_v22 = vadd.f32 %v2209_v47, %v1843_v10 }
 0x17f   : > { %v1751_v8 = vpop.f32.mrf.mxu1  ;;  %v2238_v5 = vpop.f32.mrf.mxu0 }
 0x180   : > { %v1846_v41 = vadd.f32 %v1751_v8, %v7220_v11  ;;  %v7368_v19 = vadd.f32 %v5562_v46, %v1848_v42 }
 0x181   : > { %v5511_v24 = vpop.f32.mrf.mxu1  ;;  %v5567_v50 = vpop.f32.mrf.mxu0 }
 0x182   : > { %v1849_v13 = vadd.f32 %v5511_v24, %v7223_v1  ;;  %v7371_v49 = vadd.f32 %v2222_v38, %v1846_v41 }
 0x183   : > { %v1754_v44 = vpop.f32.mrf.mxu1  ;;  %v2241_v45 = vpop.f32.mrf.mxu0 }
 0x184   : > { %v1847_v21 = vadd.f32 %v1754_v44, %v7230_v55  ;;  %v7374_v31 = vadd.f32 %v5563_v34, %v1849_v13 }
 0x185   : > { %v5514_v37 = vpop.f32.mrf.mxu1  ;;  %v5570_v14 = vpop.f32.mrf.mxu0 }
 0x186   : > { %v1852_v39 = vadd.f32 %v5514_v37, %v7233_v26  ;;  %v7377_v47 = vadd.f32 %v2225_v27, %v1847_v21 }
 0x187   : > { %v1767_v11 = vpop.f32.mrf.mxu1  ;;  %v2254_v59 = vpop.f32.mrf.mxu0 }
 0x188   : > { %v1850_v36 = vadd.f32 %v1767_v11, %v7236_v29  ;;  %v7380_v46 = vadd.f32 %v5566_v43, %v1852_v39  ;;  %v8282_v11 = vld [vmem:[#allocation3_spill] sm:$0xff] }
 0x189   : > { %v5515_v1 = vpop.f32.mrf.mxu1  ;;  %v5571_v48 = vpop.f32.mrf.mxu0 }
 0x18a   : > { %v1853_v28 = vadd.f32 %v5515_v1, %v7239_v30  ;;  %v7383_v38 = vadd.f32 %v2238_v5, %v1850_v36 }
 0x18b   : > { %v1770_v55 = vpop.f32.mrf.mxu1  ;;  %v2257_v51 = vpop.f32.mrf.mxu0 }
 0x18c   : > { %v1851_v40 = vadd.f32 %v1770_v55, %v7246_v61  ;;  %v7386_v34 = vadd.f32 %v5567_v50, %v1853_v28 }
 0x18d   : > { %v5518_v26 = vpop.f32.mrf.mxu1  ;;  %v5574_v32 = vpop.f32.mrf.mxu0 }
 0x18e   : > { %v1856_v12 = vadd.f32 %v5518_v26, %v7252_v17  ;;  %v7389_v27 = vadd.f32 %v2241_v45, %v1851_v40  ;;  %v8284_v40 = vld [vmem:[#allocation4_spill] sm:$0xff] }
 0x18f   : > { %v1783_v29 = vpop.f32.mrf.mxu1  ;;  %v2270_v10 = vpop.f32.mrf.mxu0 }
 0x190   : > { %v1854_v4 = vadd.f32 %v1783_v29, %v7255_v63  ;;  %v7392_v43 = vadd.f32 %v5570_v14, %v1856_v12 }
 0x191   : > { %v5519_v30 = vpop.f32.mrf.mxu1  ;;  %v5575_v42 = vpop.f32.mrf.mxu0 }
 0x192   : > { %v1857_v8 = vadd.f32 %v5519_v30, %v7261_v62  ;;  %v7395_v5 = vadd.f32 %v2254_v59, %v1854_v4 }
 0x193   : > { %v1786_v61 = vpop.f32.mrf.mxu1  ;;  %v2273_v41 = vpop.f32.mrf.mxu0 }
 0x194   : > { %v1855_v24 = vadd.f32 %v1786_v61, %v7270_v15  ;;  %v7398_v50 = vadd.f32 %v5571_v48, %v1857_v8  ;;  %v8283_v48 = vld [vmem:[#allocation5_spill] sm:$0xff] }
 0x195   : > { %v5522_v17 = vpop.f32.mrf.mxu1  ;;  %v5578_v13 = vpop.f32.mrf.mxu0 }
 0x196   : > { %v1860_v44 = vadd.f32 %v5522_v17, %v7276_v33  ;;  %v7401_v45 = vadd.f32 %v2257_v51, %v1855_v24 }
 0x197   : > { %v1799_v63 = vpop.f32.mrf.mxu1  ;;  %v2286_v21 = vpop.f32.mrf.mxu0 }
 0x198   : > { %v1858_v37 = vadd.f32 %v1799_v63, %v7280_v2  ;;  %v7404_v14 = vadd.f32 %v5574_v32, %v1860_v44 }
 0x199   : > { %v5523_v62 = vpop.f32.mrf.mxu1  ;;  %v5579_v39 = vpop.f32.mrf.mxu0 }
 0x19a   : > { %v1861_v59 = vadd.f32 %v5523_v62, %v8282_v11  ;;  %v7407_v36 = vadd.f32 %v2270_v10, %v1858_v37 }
 0x19b   : > { %v1802_v15 = vpop.f32.mrf.mxu1  ;;  %v2289_v1 = vpop.f32.mrf.mxu0 }
 0x19c   : > { %v1859_v28 = vadd.f32 %v1802_v15, %v8283_v48  ;;  %v7410_v55 = vadd.f32 %v5575_v42, %v1861_v59 }
 0x19d   : > { %v5526_v33 = vpop.f32.mrf.mxu1  ;;  %v5650_v51 = vpop.f32.mrf.mxu0 }
 0x19e   : > { %v1864_v26 = vadd.f32 %v5526_v33, %v8284_v40  ;;  %v7413_v12 = vadd.f32 %v2273_v41, %v1859_v28 }
 0x19f   : > { %v1815_v2 = vpop.f32.mrf.mxu1  ;;  %v2959_v32 = vpop.f32.mrf.mxu0 }
 0x1a0   : > { %v1862_v29 = vadd.f32 %v1815_v2, %v7305_v16  ;;  %v7416_v4 = vadd.f32 %v5578_v13, %v1864_v26 }
 0x1a1   : > { %v5527_v10 = vpop.f32.mrf.mxu1  ;;  %v5651_v30 = vpop.f32.mrf.mxu0 }
 0x1a2   : > { %v1865_v8 = vadd.f32 %v5527_v10, %v7310_v20  ;;  %v7419_v61 = vadd.f32 %v2286_v21, %v1862_v29 }
 0x1a3   : > { %v1818_v42 = vpop.f32.mrf.mxu1  ;;  %v2962_v24 = vpop.f32.mrf.mxu0 }
 0x1a4   : > { %v1863_v17 = vadd.f32 %v1818_v42, %v7313_v25  ;;  %v7422_v44 = vadd.f32 %v5579_v39, %v1865_v8 }
 0x1a5   : > { %v5598_v41 = vpop.f32.mrf.mxu1  ;;  %v5654_v63 = vpop.f32.mrf.mxu0 }
 0x1a6   : > { %v2641_v37 = vadd.f32 %v5598_v41, %v7316_v3  ;;  %v7425_v62 = vadd.f32 %v2289_v1, %v1863_v17 }
 0x1a7   : > { %v2496_v16 = vpop.f32.mrf.mxu1  ;;  %v2975_v13 = vpop.f32.mrf.mxu0 }
 0x1a8   : > { %v2639_v11 = vadd.f32 %v2496_v16, %v7321_v58  ;;  %v7428_v59 = vadd.f32 %v5650_v51, %v2641_v37 }
 0x1a9   : > { %v5599_v20 = vpop.f32.mrf.mxu1  ;;  %v5655_v21 = vpop.f32.mrf.mxu0 }
 0x1aa   : > { %v2642_v15 = vadd.f32 %v5599_v20, %v7325_v35  ;;  %v7431_v48 = vadd.f32 %v2959_v32, %v2639_v11 }
 0x1ab   : > { %v2499_v25 = vpop.f32.mrf.mxu1  ;;  %v2978_v39 = vpop.f32.mrf.mxu0 }
 0x1ac   : > { %v2640_v28 = vadd.f32 %v2499_v25, %v7328_v60  ;;  %v7434_v33 = vadd.f32 %v5651_v30, %v2642_v15 }
 0x1ad   : > { %v5602_v3 = vpop.f32.mrf.mxu1  ;;  %v5658_v1 = vpop.f32.mrf.mxu0 }
 0x1ae   : > { %v2645_v40 = vadd.f32 %v5602_v3, %v7331_v54  ;;  %v7437_v26 = vadd.f32 %v2962_v24, %v2640_v28 }
 0x1af   : > { %v2512_v58 = vpop.f32.mrf.mxu1  ;;  %v2991_v51 = vpop.f32.mrf.mxu0 }
 0x1b0   : > { %v2643_v2 = vadd.f32 %v2512_v58, %v7335_v23  ;;  %v7440_v29 = vadd.f32 %v5654_v63, %v2645_v40 }
 0x1b1   : > { %v5603_v35 = vpop.f32.mrf.mxu1  ;;  %v5659_v32 = vpop.f32.mrf.mxu0 }
 0x1b2   : > { %v2646_v10 = vadd.f32 %v5603_v35, %v7338_v0  ;;  %v7443_v8 = vadd.f32 %v2975_v13, %v2643_v2 }
 0x1b3   : > { %v2515_v60 = vpop.f32.mrf.mxu1  ;;  %v2994_v30 = vpop.f32.mrf.mxu0 }
 0x1b4   : > { %v2644_v42 = vadd.f32 %v2515_v60, %v7341_v18  ;;  %v7446_v17 = vadd.f32 %v5655_v21, %v2646_v10 }
 0x1b5   : > { %v5606_v54 = vpop.f32.mrf.mxu1  ;;  %v5662_v24 = vpop.f32.mrf.mxu0 }
 0x1b6   : > { %v2649_v41 = vadd.f32 %v5606_v54, %v7344_v56  ;;  %v7449_v37 = vadd.f32 %v2978_v39, %v2644_v42 }
 0x1b7   : > { %v2528_v23 = vpop.f32.mrf.mxu1  ;;  %v3007_v63 = vpop.f32.mrf.mxu0 }
 0x1b8   : > { %v2647_v16 = vadd.f32 %v2528_v23, %v7347_v57  ;;  %v7452_v11 = vadd.f32 %v5658_v1, %v2649_v41 }
 0x1b9   : > { %v5607_v0 = vpop.f32.mrf.mxu1  ;;  %v5663_v13 = vpop.f32.mrf.mxu0 }
 0x1ba   : > { %v2650_v20 = vadd.f32 %v5607_v0, %v7350_v53  ;;  %v7455_v15 = vadd.f32 %v2991_v51, %v2647_v16 }
 0x1bb   : > { %v2531_v18 = vpop.f32.mrf.mxu1  ;;  %v3010_v21 = vpop.f32.mrf.mxu0 }
 0x1bc   : > { %v2648_v25 = vadd.f32 %v2531_v18, %v7353_v9  ;;  %v7458_v28 = vadd.f32 %v5659_v32, %v2650_v20 }
 0x1bd   : > { %v5610_v56 = vpop.f32.mrf.mxu1  ;;  %v5666_v39 = vpop.f32.mrf.mxu0 }
 0x1be   : > { %v2653_v3 = vadd.f32 %v5610_v56, %v7356_v6  ;;  %v7461_v40 = vadd.f32 %v2994_v30, %v2648_v25 }
 0x1bf   : > { %v2544_v57 = vpop.f32.mrf.mxu1  ;;  %v3023_v1 = vpop.f32.mrf.mxu0 }
 0x1c0   : > { %v2651_v58 = vadd.f32 %v2544_v57, %v7359_v7  ;;  %v7464_v2 = vadd.f32 %v5662_v24, %v2653_v3 }
 0x1c1   : > { %v5611_v53 = vpop.f32.mrf.mxu1  ;;  %v5667_v51 = vpop.f32.mrf.mxu0 }
 0x1c2   : > { %v2654_v35 = vadd.f32 %v5611_v53, %v7362_v52  ;;  %v7467_v10 = vadd.f32 %v3007_v63, %v2651_v58  ;;  %v7490_v53 = vpop.permute.xlu0 %3985 }
 0x1c3   : > { %v2547_v9 = vpop.f32.mrf.mxu1  ;;  %v3026_v32 = vpop.f32.mrf.mxu0 }
 0x1c4   : > { %v2652_v60 = vadd.f32 %v2547_v9, %v7365_v22  ;;  %v7470_v42 = vadd.f32 %v5663_v13, %v2654_v35 }
 0x1c5   : > { %v5614_v6 = vpop.f32.mrf.mxu1  ;;  %v5670_v30 = vpop.f32.mrf.mxu0 }
 0x1c6   : > { %v2657_v54 = vadd.f32 %v5614_v6, %v7368_v19  ;;  %v7473_v41 = vadd.f32 %v3010_v21, %v2652_v60  ;;  %v7495_v60 = vpop.permute.xlu1 %3995 }
 0x1c7   : > { %v2560_v7 = vpop.f32.mrf.mxu1  ;;  %v3039_v24 = vpop.f32.mrf.mxu0 }
 0x1c8   : > { %v2655_v23 = vadd.f32 %v2560_v7, %v7371_v49  ;;  %v7476_v16 = vadd.f32 %v5666_v39, %v2657_v54 }
 0x1c9   : > { %v5615_v52 = vpop.f32.mrf.mxu1  ;;  %v5671_v63 = vpop.f32.mrf.mxu0 }
 0x1ca   : > { %v2658_v0 = vadd.f32 %v5615_v52, %v7374_v31  ;;  %v7479_v20 = vadd.f32 %v3023_v1, %v2655_v23  ;;  %v7503_v52 = vpop.permute.xlu0 %3990 }
 0x1cb   : > { %v2563_v22 = vpop.f32.mrf.mxu1  ;;  %v3042_v13 = vpop.f32.mrf.mxu0 }
 0x1cc   : > { %v2656_v18 = vadd.f32 %v2563_v22, %v7377_v47  ;;  %v7482_v25 = vadd.f32 %v5667_v51, %v2658_v0 }
 0x1cd   : > { %v5618_v19 = vpop.f32.mrf.mxu1  ;;  %v5674_v21 = vpop.f32.mrf.mxu0 }
 0x1ce   : > { %v2661_v56 = vadd.f32 %v5618_v19, %v7380_v46  ;;  %v7485_v3 = vadd.f32 %v3026_v32, %v2656_v18  ;;  %v7508_v18 = vpop.permute.xlu1 %4000 }
 0x1cf   : > { %v2576_v49 = vpop.f32.mrf.mxu1  ;;  %v3055_v39 = vpop.f32.mrf.mxu0 }
 0x1d0   : > { %v2659_v57 = vadd.f32 %v2576_v49, %v7383_v38  ;;  %v7488_v58 = vadd.f32 %v5670_v30, %v2661_v56 }
 0x1d1   : > { %v5619_v31 = vpop.f32.mrf.mxu1  ;;  %v5675_v1 = vpop.f32.mrf.mxu0 }
 0x1d2   : > { %v2662_v47 = vadd.f32 %v5619_v31, %v7386_v34  ;;  %v7493_v51 = vadd.f32 %v3039_v24, %v2659_v57  ;;  %v7516_v31 = vpop.permute.xlu0 %4005 }
 0x1d3   : > { %v2579_v35 = vpop.f32.mrf.mxu1  ;;  %v3058_v9 = vpop.f32.mrf.mxu0 }
 0x1d4   : > { %v2660_v46 = vadd.f32 %v2579_v35, %v7389_v27  ;;  %v7498_v32 = vadd.f32 %v5671_v63, %v2662_v47 }
 0x1d5   : > { %v5622_v6 = vpop.f32.mrf.mxu1  ;;  %v5678_v38 = vpop.f32.mrf.mxu0 }
 0x1d6   : > { %v2665_v30 = vadd.f32 %v5622_v6, %v7392_v43  ;;  %v7501_v54 = vadd.f32 %v3042_v13, %v2660_v46  ;;  %v7521_v46 = vpop.permute.xlu1 %4010 }
 0x1d7   : > { %v2592_v7 = vpop.f32.mrf.mxu1  ;;  %v3071_v23 = vpop.f32.mrf.mxu0 }
 0x1d8   : > { %v2663_v34 = vadd.f32 %v2592_v7, %v7395_v5  ;;  %v7506_v24 = vadd.f32 %v5674_v21, %v2665_v30 }
 0x1d9   : > { %v5623_v0 = vpop.f32.mrf.mxu1  ;;  %v5679_v22 = vpop.f32.mrf.mxu0 }
 0x1da   : > { %v2666_v27 = vadd.f32 %v5623_v0, %v7398_v50  ;;  %v7511_v63 = vadd.f32 %v3055_v39, %v2663_v34  ;;  %v7529_v0 = vpop.permute.xlu0 %4015 }
 0x1db   : > { %v2595_v19 = vpop.f32.mrf.mxu1  ;;  %v3074_v43 = vpop.f32.mrf.mxu0 }
 0x1dc   : > { %v2664_v13 = vadd.f32 %v2595_v19, %v7401_v45  ;;  %v7514_v56 = vadd.f32 %v5675_v1, %v2666_v27 }
 0x1dd   : > { %v5626_v49 = vpop.f32.mrf.mxu1  ;;  %v5682_v57 = vpop.f32.mrf.mxu0 }
 0x1de   : > { %v2669_v5 = vadd.f32 %v5626_v49, %v7404_v14  ;;  %v7519_v21 = vadd.f32 %v3058_v9, %v2664_v13  ;;  %v7534_v13 = vpop.permute.xlu1 %4020 }
 0x1df   : > { %v2608_v47 = vpop.f32.mrf.mxu1  ;;  %v3087_v35 = vpop.f32.mrf.mxu0 }
 0x1e0   : > { %v2667_v50 = vadd.f32 %v2608_v47, %v7407_v36  ;;  %v7524_v39 = vadd.f32 %v5678_v38, %v2669_v5 }
 0x1e1   : > { %v5627_v6 = vpop.f32.mrf.mxu1  ;;  %v5683_v45 = vpop.f32.mrf.mxu0 }
 0x1e2   : > { %v2670_v1 = vadd.f32 %v5627_v6, %v7410_v55  ;;  %v7527_v30 = vadd.f32 %v3071_v23, %v2667_v50  ;;  %v7542_v6 = vpop.permute.xlu0 %4025 }
 0x1e3   : > { %v2611_v7 = vpop.f32.mrf.mxu1  ;;  %v3090_v34 = vpop.f32.mrf.mxu0 }
 0x1e4   : > { %v2668_v14 = vadd.f32 %v2611_v7, %v7413_v12  ;;  %v7532_v9 = vadd.f32 %v5679_v22, %v2670_v1 }
 0x1e5   : > { %v5630_v27 = vpop.f32.mrf.mxu1  ;;  %v5754_v19 = vpop.f32.mrf.mxu0 }
 0x1e6   : > { %8285 = vst [vmem:[#allocation6_spill] sm:$0xff] %v7532_v9  ;;  %v2673_v36 = vadd.f32 %v5630_v27, %v7416_v4  ;;  %v7537_v38 = vadd.f32 %v3074_v43, %v2668_v14  ;;  %v7547_v9 = vpop.permute.xlu1 %4030 }
 0x1e7   : > { %v2624_v49 = vpop.f32.mrf.mxu1  ;;  %v3768_v55 = vpop.f32.mrf.mxu0 }
 0x1e8   : > { %8286 = vst [vmem:[#allocation8_spill] sm:$0xff] %v7537_v38  ;;  %v2671_v23 = vadd.f32 %v2624_v49, %v7419_v61  ;;  %v7540_v5 = vadd.f32 %v5682_v57, %v2673_v36  ;;  %v7554_v49 = vpop.permute.xlu0 %4035 }
 0x1e9   : > { %v5631_v47 = vpop.f32.mrf.mxu1  ;;  %v5755_v50 = vpop.f32.mrf.mxu0 }
 0x1ea   : > { %8287 = vst [vmem:[#allocation7_spill] sm:$0xff] %v7540_v5  ;;  %v2674_v12 = vadd.f32 %v5631_v47, %v7422_v44  ;;  %v7545_v22 = vadd.f32 %v3087_v35, %v2671_v23  ;;  %v7558_v5 = vpop.permute.xlu1 %4040 }
 0x1eb   : > { %v2627_v1 = vpop.f32.mrf.mxu1  ;;  %v3771_v7 = vpop.f32.mrf.mxu0 }
 0x1ec   : > { %8288 = vst [vmem:[#allocation9_spill] sm:$0xff] %v7545_v22  ;;  %v2672_v4 = vadd.f32 %v2627_v1, %v7425_v62  ;;  %v7550_v43 = vadd.f32 %v5683_v45, %v2674_v12 }
 0x1ed   : > { %v5702_v14 = vpop.f32.mrf.mxu1  ;;  %v5758_v61 = vpop.f32.mrf.mxu0 }
 0x1ee   : > { %8289 = vst [vmem:[#allocation10_spill] sm:$0xff] %v7550_v43  ;;  %v7552_v57 = vadd.f32 %v3090_v34, %v2672_v4  ;;  %v3575_v44 = vadd.f32 %v5702_v14, %v7428_v59  ;;  %v7565_v59 = vpop.permute.xlu0 %4045 }
 0x1ef   : > { %v3430_v27 = vpop.f32.mrf.mxu1  ;;  %v3784_v36 = vpop.f32.mrf.mxu0 }
 0x1f0   : > { %8290 = vst [vmem:[#allocation12_spill] sm:$0xff] %v7552_v57  ;;  %v3573_v35 = vadd.f32 %v3430_v27, %v7431_v48  ;;  %v3913_v1 = vadd.f32 %v5754_v19, %v3575_v44 }
 0x1f1   : > { %v5703_v23 = vpop.f32.mrf.mxu1  ;;  %v5759_v47 = vpop.f32.mrf.mxu0 }
 0x1f2   : > { %v3911_v22 = vadd.f32 %v3768_v55, %v3573_v35  ;;  %v3576_v62 = vadd.f32 %v5703_v23, %v7434_v33  ;;  %v7568_v35 = vpop.permute.xlu1 %4050  ;;  %v7571_v33 = vmul.f32 %v7495_v60, %v3913_v1 }
 0x1f3   : > { %v3433_v45 = vpop.f32.mrf.mxu1  ;;  %v3787_v12 = vpop.f32.mrf.mxu0 }
 0x1f4   : > { %v3574_v34 = vadd.f32 %v3433_v45, %v7437_v26  ;;  %v7563_v4 = vmul.f32 %v7490_v53, %v3911_v22  ;;  %v3914_v48 = vadd.f32 %v5755_v50, %v3576_v62  ;;  %8291 = vst [vmem:[#allocation11_spill] sm:$0xff] %v7571_v33  ;;  %v4243_v62 = vmul.f32 %v7571_v33, %v7571_v33 }
 0x1f5   : > { %v5706_v57 = vpop.f32.mrf.mxu1  ;;  %v5762_v43 = vpop.f32.mrf.mxu0 }
 0x1f6   : > { %v3912_v14 = vadd.f32 %v3771_v7, %v3574_v34  ;;  %v3579_v27 = vadd.f32 %v5706_v57, %v7440_v29  ;;  %v4241_v19 = vmul.f32 %v7563_v4, %v7563_v4  ;;  %v7580_v7 = vmul.f32 %v7508_v18, %v3914_v48 }
 0x1f7   : > { %v3446_v38 = vpop.f32.mrf.mxu1  ;;  %v3800_v55 = vpop.f32.mrf.mxu0 }
 0x1f8   : > { %v7574_v26 = vmul.f32 %v7503_v52, %v3912_v14  ;;  %v3577_v53 = vadd.f32 %v3446_v38, %v7443_v8  ;;  %v3917_v44 = vadd.f32 %v5758_v61, %v3579_v27  ;;  %v7587_v38 = vpop.permute.xlu0 %4055  ;;  %v7596_v61 = vpop.permute.xlu1 %4060 }
 0x1f9   : > { %v5707_v22 = vpop.f32.mrf.mxu1  ;;  %v5763_v50 = vpop.f32.mrf.mxu0 }
 0x1fa   : > { %v4199_v29 = vadd.f32 %v7574_v26, %v7563_v4  ;;  %v4242_v60 = vmul.f32 %v7574_v26, %v7574_v26  ;;  %v3915_v57 = vadd.f32 %v3784_v36, %v3577_v53  ;;  %v3580_v52 = vadd.f32 %v5707_v22, %v7446_v17 }
 0x1fb   : > { %v3449_v23 = vpop.f32.mrf.mxu1  ;;  %v3803_v8 = vpop.f32.mrf.mxu0  ;;  %v4244_v17 = vmul.f32 %v7580_v7, %v7580_v7  ;;  %v7602_v53 = vmul.f32 %v7529_v0, %v3917_v44 }
 0x1fc   : > { %v4200_v18 = vadd.f32 %v4199_v29, %v7571_v33  ;;  %v4277_v45 = vadd.f32 %v4242_v60, %v4241_v19  ;;  %v7593_v1 = vmul.f32 %v7516_v31, %v3915_v57  ;;  %v3578_v34 = vadd.f32 %v3449_v23, %v7449_v37  ;;  %v7612_v44 = vpop.permute.xlu0 %4065 }
 0x1fd   : > { %v5710_v48 = vpop.f32.mrf.mxu1  ;;  %v5766_v36 = vpop.f32.mrf.mxu0  ;;  %v3918_v22 = vadd.f32 %v5759_v47, %v3580_v52 }
 0x1fe   : > { %v4278_v14 = vadd.f32 %v4277_v45, %v4243_v62  ;;  %v4201_v27 = vadd.f32 %v4200_v18, %v7580_v7  ;;  %v3916_v19 = vadd.f32 %v3787_v12, %v3578_v34  ;;  %v4245_v37 = vmul.f32 %v7593_v1, %v7593_v1 }
 0x1ff   : > { %v3462_v29 = vpop.f32.mrf.mxu1  ;;  %v3816_v31 = vpop.f32.mrf.mxu0  ;;  %v3583_v62 = vadd.f32 %v5710_v48, %v7452_v11  ;;  %v7615_v52 = vmul.f32 %v7534_v13, %v3918_v22  ;;  %v4247_v11 = vmul.f32 %v7602_v53, %v7602_v53 }
 0x200   : > { %v4202_v60 = vadd.f32 %v4201_v27, %v7593_v1  ;;  %v4279_v57 = vadd.f32 %v4278_v14, %v4244_v17  ;;  %v3581_v23 = vadd.f32 %v3462_v29, %v7455_v15  ;;  %v7609_v33 = vmul.f32 %v7521_v46, %v3916_v19  ;;  %v7621_v14 = vpop.permute.xlu1 %4070 }
 0x201   : > { %v5711_v18 = vpop.f32.mrf.mxu1  ;;  %v5767_v0 = vpop.f32.mrf.mxu0  ;;  %v3921_v27 = vadd.f32 %v5762_v43, %v3583_v62 }
 0x202   : > { %v4280_v47 = vadd.f32 %v4279_v57, %v4245_v37  ;;  %v3919_v12 = vadd.f32 %v3800_v55, %v3581_v23  ;;  %v4203_v45 = vadd.f32 %v4202_v60, %v7609_v33  ;;  %v4246_v34 = vmul.f32 %v7609_v33, %v7609_v33 }
 0x203   : > { %v3584_v15 = vadd.f32 %v5711_v18, %v7458_v28  ;;  %v3465_v46 = vpop.f32.mrf.mxu1  ;;  %v3819_v17 = vpop.f32.mrf.mxu0  ;;  %v4248_v60 = vmul.f32 %v7615_v52, %v7615_v52 }
 0x204   : > { %v3582_v48 = vadd.f32 %v3465_v46, %v7461_v40  ;;  %v4204_v55 = vadd.f32 %v4203_v45, %v7602_v53  ;;  %v4281_v13 = vadd.f32 %v4280_v47, %v4246_v34  ;;  %v7628_v22 = vmul.f32 %v7542_v6, %v3919_v12  ;;  %v7635_v46 = vpop.permute.xlu0 %4075 }
 0x205   : > { %v5714_v19 = vpop.f32.mrf.mxu1  ;;  %v7630_v29 = vpop.f32.mrf.mxu0  ;;  %v3922_v23 = vadd.f32 %v5763_v50, %v3584_v15 }
 0x206   : > { %v3920_v28 = vadd.f32 %v3803_v8, %v3582_v48  ;;  %v4282_v37 = vadd.f32 %v4281_v13, %v4247_v11  ;;  %v4205_v57 = vadd.f32 %v4204_v55, %v7615_v52  ;;  %v3587_v6 = vadd.f32 %v5714_v19, %v7464_v2  ;;  %v7648_v15 = vpop.permute.xlu1 %4080 }
 0x207   : > { %v3478_v18 = vpop.f32.mrf.mxu1  ;;  %v3832_v40 = vpop.f32.mrf.mxu0  ;;  %v7643_v8 = vmul.f32 %v7554_v49, %v3921_v27  ;;  %v4249_v12 = vmul.f32 %v7628_v22, %v7628_v22 }
 0x208   : > { %v7638_v43 = vmul.f32 %v7547_v9, %v3920_v28  ;;  %v3585_v62 = vadd.f32 %v3478_v18, %v7467_v10  ;;  %v4206_v47 = vadd.f32 %v4205_v57, %v7628_v22  ;;  %v4283_v50 = vadd.f32 %v4282_v37, %v4248_v60 }
 0x209   : > { %v5715_v45 = vpop.f32.mrf.mxu1  ;;  %v5771_v34 = vpop.f32.mrf.mxu0  ;;  %v7653_v10 = vmul.f32 %v7558_v5, %v3922_v23  ;;  %v3925_v27 = vadd.f32 %v5766_v36, %v3587_v6  ;;  %v4251_v28 = vmul.f32 %v7643_v8, %v7643_v8 }
 0x20a   : > { %v4250_v9 = vmul.f32 %v7638_v43, %v7638_v43  ;;  %v3923_v11 = vadd.f32 %v3816_v31, %v3585_v62  ;;  %v4284_v2 = vadd.f32 %v4283_v50, %v4249_v12  ;;  %v4207_v49 = vadd.f32 %v4206_v47, %v7638_v43  ;;  %v7666_v23 = vpop.permute.xlu0 %4085  ;;  %v7671_v12 = vpop.permute.xlu1 %4090 }
 0x20b   : > { %v3588_v48 = vadd.f32 %v5715_v45, %v7470_v42  ;;  %v3481_v55 = vpop.f32.mrf.mxu1  ;;  %v3835_v13 = vpop.f32.mrf.mxu0  ;;  %v4252_v36 = vmul.f32 %v7653_v10, %v7653_v10 }
 0x20c   : > { %v3586_v19 = vadd.f32 %v3481_v55, %v7473_v41  ;;  %v4208_v60 = vadd.f32 %v4207_v49, %v7643_v8  ;;  %v4285_v37 = vadd.f32 %v4284_v2, %v4250_v9  ;;  %v7662_v31 = vmul.f32 %v7565_v59, %v3923_v11 }
 0x20d   : > { %v5718_v5 = vpop.f32.mrf.mxu1  ;;  %v7664_v57 = vpop.f32.mrf.mxu0  ;;  %v3926_v6 = vadd.f32 %v5767_v0, %v3588_v48  ;;  %v7674_v59 = vmul.f32 %v7587_v38, %v3925_v27 }
 0x20e   : > { %v3924_v42 = vadd.f32 %v3819_v17, %v3586_v19  ;;  %v4286_v18 = vadd.f32 %v4285_v37, %v4251_v28  ;;  %v4209_v41 = vadd.f32 %v4208_v60, %v7653_v10  ;;  %v4253_v9 = vmul.f32 %v7662_v31, %v7662_v31  ;;  %v4096_v60 = vpop.permute.xlu0 %4095 }
 0x20f   : > { %v3494_v62 = vpop.f32.mrf.mxu1  ;;  %v3848_v47 = vpop.f32.mrf.mxu0  ;;  %v3591_v0 = vadd.f32 %v5718_v5, %v7476_v16  ;;  %v4255_v16 = vmul.f32 %v7674_v59, %v7674_v59 }
 0x210   : > { %v7677_v50 = vmul.f32 %v7568_v35, %v3924_v42  ;;  %v3589_v45 = vadd.f32 %v3494_v62, %v7479_v20  ;;  %v4210_v17 = vadd.f32 %v4209_v41, %v7662_v31  ;;  %v4287_v11 = vadd.f32 %v4286_v18, %v4252_v36 }
 0x211   : > { %v5719_v2 = vpop.f32.mrf.mxu1  ;;  %v5775_v49 = vpop.f32.mrf.mxu0  ;;  %v7687_v35 = vmul.f32 %v7596_v61, %v3926_v6 }
 0x212   : > { %v4254_v48 = vmul.f32 %v7677_v50, %v7677_v50  ;;  %v3927_v38 = vadd.f32 %v3832_v40, %v3589_v45  ;;  %v4288_v55 = vadd.f32 %v4287_v11, %v4253_v9  ;;  %v4211_v20 = vadd.f32 %v4210_v17, %v7677_v50 }
 0x213   : > { %v3592_v27 = vadd.f32 %v5719_v2, %v7482_v25  ;;  %v3497_v19 = vpop.f32.mrf.mxu1  ;;  %v3851_v28 = vpop.f32.mrf.mxu0  ;;  %v3929_v40 = vadd.f32 %v7630_v29, %v3591_v0  ;;  %v4256_v6 = vmul.f32 %v7687_v35, %v7687_v35 }
 0x214   : > { %v3590_v37 = vadd.f32 %v3497_v19, %v7485_v3  ;;  %v4212_v5 = vadd.f32 %v4211_v20, %v7674_v59  ;;  %v4289_v42 = vadd.f32 %v4288_v55, %v4254_v48  ;;  %v7697_v61 = vmul.f32 %v7612_v44, %v3927_v38  ;;  %v4101_v25 = vpop.permute.xlu1 %4100  ;;  %v4106_v55 = vpop.permute.xlu0 %4105 }
 0x215   : > { %v5722_v36 = vpop.f32.mrf.mxu1  ;;  %v7699_v18 = vpop.f32.mrf.mxu0  ;;  %v3930_v3 = vadd.f32 %v5771_v34, %v3592_v27  ;;  %v7710_v0 = vmul.f32 %v7635_v46, %v3929_v40 }
 0x216   : > { %v3928_v41 = vadd.f32 %v3835_v13, %v3590_v37  ;;  %v4290_v62 = vadd.f32 %v4289_v42, %v4255_v16  ;;  %v4213_v45 = vadd.f32 %v4212_v5, %v7687_v35  ;;  %v3595_v44 = vadd.f32 %v5722_v36, %v7488_v58 }
 0x217   : > { %v3510_v17 = vpop.f32.mrf.mxu1  ;;  %v3864_v9 = vpop.f32.mrf.mxu0  ;;  %v4257_v2 = vmul.f32 %v7697_v61, %v7697_v61  ;;  %v7718_v58 = vmul.f32 %v7648_v15, %v3930_v3  ;;  %v4259_v40 = vmul.f32 %v7710_v0, %v7710_v0 }
 0x218   : > { %v7705_v11 = vmul.f32 %v7621_v14, %v3928_v41  ;;  %v3593_v29 = vadd.f32 %v3510_v17, %v7493_v51  ;;  %v4214_v13 = vadd.f32 %v4213_v45, %v7697_v61  ;;  %v4291_v48 = vadd.f32 %v4290_v62, %v4256_v6  ;;  %v4111_v37 = vpop.permute.xlu1 %4110 }
 0x219   : > { %v5723_v38 = vpop.f32.mrf.mxu1  ;;  %v5779_v34 = vpop.f32.mrf.mxu0  ;;  %v3933_v5 = vadd.f32 %v7664_v57, %v3595_v44 }
 0x21a   : > { %v4258_v14 = vmul.f32 %v7705_v11, %v7705_v11  ;;  %v3931_v20 = vadd.f32 %v3848_v47, %v3593_v29  ;;  %v4292_v27 = vadd.f32 %v4291_v48, %v4257_v2  ;;  %v4215_v51 = vadd.f32 %v4214_v13, %v7705_v11  ;;  %v4116_v44 = vpop.permute.xlu0 %4115 }
 0x21b   : > { %v3596_v46 = vadd.f32 %v5723_v38, %v7498_v32  ;;  %v3513_v19 = vpop.f32.mrf.mxu1  ;;  %v3867_v16 = vpop.f32.mrf.mxu0  ;;  %v4260_v32 = vmul.f32 %v7718_v58, %v7718_v58  ;;  %v7733_v29 = vmul.f32 %v4096_v60, %v3933_v5 }
 0x21c   : > { %v3594_v42 = vadd.f32 %v3513_v19, %v7501_v54  ;;  %v4216_v47 = vadd.f32 %v4215_v51, %v7710_v0  ;;  %v4293_v36 = vadd.f32 %v4292_v27, %v4258_v14  ;;  %v7728_v15 = vmul.f32 %v7666_v23, %v3931_v20  ;;  %v4121_v20 = vpop.permute.xlu1 %4120 }
 0x21d   : > { %v5726_v41 = vpop.f32.mrf.mxu1  ;;  %v5782_v6 = vpop.f32.mrf.mxu0  ;;  %v3934_v3 = vadd.f32 %v5775_v49, %v3596_v46  ;;  %v4263_v5 = vmul.f32 %v7733_v29, %v7733_v29 }
 0x21e   : > { %v3932_v62 = vadd.f32 %v3851_v28, %v3594_v42  ;;  %v4294_v45 = vadd.f32 %v4293_v36, %v4259_v40  ;;  %v4217_v57 = vadd.f32 %v4216_v47, %v7718_v58  ;;  %v4261_v28 = vmul.f32 %v7728_v15, %v7728_v15 }
 0x21f   : > { %v3526_v54 = vpop.f32.mrf.mxu1  ;;  %v3880_v17 = vpop.f32.mrf.mxu0  ;;  %v3599_v38 = vadd.f32 %v5726_v41, %v7506_v24 }
 0x220   : > { %v7736_v13 = vmul.f32 %v7671_v12, %v3932_v62  ;;  %v3597_v23 = vadd.f32 %v3526_v54, %v7511_v63  ;;  %v4218_v2 = vadd.f32 %v4217_v57, %v7728_v15  ;;  %v4295_v48 = vadd.f32 %v4294_v45, %v4260_v32  ;;  %v4126_v41 = vpop.permute.xlu0 %4125 }
 0x221   : > { %v5727_v14 = vpop.f32.mrf.mxu1  ;;  %v5783_v49 = vpop.f32.mrf.mxu0  ;;  %v7745_v12 = vmul.f32 %v4101_v25, %v3934_v3  ;;  %v3937_v47 = vadd.f32 %v7699_v18, %v3599_v38 }
 0x222   : > { %v4262_v60 = vmul.f32 %v7736_v13, %v7736_v13  ;;  %v3935_v27 = vadd.f32 %v3864_v9, %v3597_v23  ;;  %v4296_v51 = vadd.f32 %v4295_v48, %v4261_v28  ;;  %v4219_v63 = vadd.f32 %v4218_v2, %v7736_v13 }
 0x223   : > { %v3600_v46 = vadd.f32 %v5727_v14, %v7514_v56  ;;  %v3529_v19 = vpop.f32.mrf.mxu1  ;;  %v3883_v25 = vpop.f32.mrf.mxu0  ;;  %v4264_v56 = vmul.f32 %v7745_v12, %v7745_v12 }
 0x224   : > { %v3598_v24 = vadd.f32 %v3529_v19, %v7519_v21  ;;  %v4220_v42 = vadd.f32 %v4219_v63, %v7733_v29  ;;  %v4297_v40 = vadd.f32 %v4296_v51, %v4262_v60  ;;  %v7754_v36 = vmul.f32 %v4106_v55, %v3935_v27  ;;  %v4131_v21 = vpop.permute.xlu1 %4130  ;;  %v4136_v51 = vpop.permute.xlu0 %4135 }
 0x225   : > { %v5730_v9 = vpop.f32.mrf.mxu1  ;;  %v3938_v57 = vadd.f32 %v5779_v34, %v3600_v46  ;;  %v7763_v55 = vmul.f32 %v4116_v44, %v3937_v47  ;;  %v5786_v38 = vpop.f32.mrf.mxu0  ;;  %v8293_v46 = vld [vmem:[#allocation8_spill] sm:$0xff] }
 0x226   : > { %v3936_v62 = vadd.f32 %v3867_v16, %v3598_v24  ;;  %v4298_v32 = vadd.f32 %v4297_v40, %v4263_v5  ;;  %v4221_v45 = vadd.f32 %v4220_v42, %v7745_v12  ;;  %v3603_v23 = vadd.f32 %v5730_v9, %v7524_v39 }
 0x227   : > { %v3542_v3 = vpop.f32.mrf.mxu1  ;;  %v4265_v16 = vmul.f32 %v7754_v36, %v7754_v36  ;;  %v7770_v60 = vmul.f32 %v4121_v20, %v3938_v57  ;;  %v4267_v5 = vmul.f32 %v7763_v55, %v7763_v55 }
 0x228   : > { %v7759_v54 = vmul.f32 %v4111_v37, %v3936_v62  ;;  %v3601_v18 = vadd.f32 %v3542_v3, %v7527_v30  ;;  %v4222_v2 = vadd.f32 %v4221_v45, %v7754_v36  ;;  %v4299_v28 = vadd.f32 %v4298_v32, %v4264_v56  ;;  %v8292_v30 = vld [vmem:[#allocation6_spill] sm:$0xff]  ;;  %v4141_v47 = vpop.permute.xlu1 %4140 }
 0x229   : > { %v5731_v48 = vpop.f32.mrf.mxu1  ;;  %v3941_v63 = vadd.f32 %v5782_v6, %v3603_v23  ;;  %v4268_v62 = vmul.f32 %v7770_v60, %v7770_v60  ;;  %v8294_v23 = vld [vmem:[#allocation9_spill] sm:$0xff] }
 0x22a   : > { %v4266_v34 = vmul.f32 %v7759_v54, %v7759_v54  ;;  %v3939_v14 = vadd.f32 %v3880_v17, %v3601_v18  ;;  %v4300_v37 = vadd.f32 %v4299_v28, %v4265_v16  ;;  %v4223_v39 = vadd.f32 %v4222_v2, %v7759_v54  ;;  %v3896_v17 = vpop.f32.mrf.mxu0  ;;  %v8295_v16 = vld [vmem:[#allocation7_spill] sm:$0xff] }
 0x22b   : > { %v3604_v44 = vadd.f32 %v5731_v48, %v8292_v30  ;;  %v3545_v27 = vpop.f32.mrf.mxu1  ;;  %v7783_v57 = vmul.f32 %v4136_v51, %v3941_v63 }
 0x22c   : > { %v3602_v19 = vadd.f32 %v3545_v27, %v8293_v46  ;;  %v4224_v24 = vadd.f32 %v4223_v39, %v7763_v55  ;;  %v4301_v42 = vadd.f32 %v4300_v37, %v4266_v34  ;;  %v7778_v40 = vmul.f32 %v4126_v41, %v3939_v14  ;;  %v5787_v48 = vpop.f32.mrf.mxu0  ;;  %v4146_v14 = vpop.permute.xlu0 %4145 }
 0x22d   : > { %v5734_v20 = vpop.f32.mrf.mxu1  ;;  %v3942_v32 = vadd.f32 %v5783_v49, %v3604_v44  ;;  %v8296_v44 = vld [vmem:[#allocation10_spill] sm:$0xff]  ;;  %v4151_v63 = vpop.permute.xlu1 %4150  ;;  %v4271_v46 = vmul.f32 %v7783_v57, %v7783_v57 }
 0x22e   : > { %v3940_v9 = vadd.f32 %v3883_v25, %v3602_v19  ;;  %v4302_v56 = vadd.f32 %v4301_v42, %v4267_v5  ;;  %v4225_v6 = vadd.f32 %v4224_v24, %v7770_v60  ;;  %v4269_v2 = vmul.f32 %v7778_v40, %v7778_v40  ;;  %v8297_v19 = vld [vmem:[#allocation12_spill] sm:$0xff] }
 0x22f   : > { %v3558_v45 = vpop.f32.mrf.mxu1  ;;  %v3607_v28 = vadd.f32 %v5734_v20, %v8295_v16 }
 0x230   : > { %v7785_v3 = vmul.f32 %v4131_v21, %v3940_v9  ;;  %v3605_v18 = vadd.f32 %v3558_v45, %v8294_v23  ;;  %v4226_v41 = vadd.f32 %v4225_v6, %v7778_v40  ;;  %v4303_v25 = vadd.f32 %v4302_v56, %v4268_v62  ;;  %v4156_v45 = vpop.permute.xlu0 %4155 }
 0x231   : > { %v5735_v34 = vpop.f32.mrf.mxu1  ;;  %v7794_v21 = vmul.f32 %v4141_v47, %v3942_v32  ;;  %v3945_v20 = vadd.f32 %v5786_v38, %v3607_v28 }
 0x232   : > { %v4270_v49 = vmul.f32 %v7785_v3, %v7785_v3  ;;  %v3943_v37 = vadd.f32 %v3896_v17, %v3605_v18  ;;  %v4304_v39 = vadd.f32 %v4303_v25, %v4269_v2  ;;  %v4227_v30 = vadd.f32 %v4226_v41, %v7785_v3  ;;  %v3899_v17 = vpop.f32.mrf.mxu0  ;;  %v4161_v25 = vpop.permute.xlu1 %4160 }
 0x233   : > { %v3608_v27 = vadd.f32 %v5735_v34, %v8296_v44  ;;  %v3561_v51 = vpop.f32.mrf.mxu1  ;;  %v4272_v62 = vmul.f32 %v7794_v21, %v7794_v21  ;;  %v7809_v18 = vmul.f32 %v4156_v45, %v3945_v20  ;;  %v7837_v45 = vld [vmem:[%s7829_s5 + $0x8] sm:$0xff]  }
 0x234   : > { %v3606_v5 = vadd.f32 %v3561_v51, %v8297_v19  ;;  %v4228_v24 = vadd.f32 %v4227_v30, %v7783_v57  ;;  %v4305_v42 = vadd.f32 %v4304_v39, %v4270_v49  ;;  %v7802_v9 = vmul.f32 %v4146_v14, %v3943_v37 }
 0x235   : > { %v3946_v32 = vadd.f32 %v5787_v48, %v3608_v27  ;;  %v4275_v14 = vmul.f32 %v7809_v18, %v7809_v18 }
 0x236   : > { %v3944_v47 = vadd.f32 %v3899_v17, %v3606_v5  ;;  %v4306_v56 = vadd.f32 %v4305_v42, %v4271_v46  ;;  %v4229_v6 = vadd.f32 %v4228_v24, %v7794_v21  ;;  %v4273_v38 = vmul.f32 %v7802_v9, %v7802_v9 }
 0x237   : > { %v7816_v34 = vmul.f32 %v4161_v25, %v3946_v32  ;;  %v7834_v32 = vld [vmem:[%s7829_s5] sm:$0xff]   ;;  %v7845_v25 = vld [vmem:[%s7829_s5 + $0x18] sm:$0xff]  }
 0x238   : > { %v7807_v23 = vmul.f32 %v4151_v63, %v3944_v47  ;;  %v4230_v41 = vadd.f32 %v4229_v6, %v7802_v9  ;;  %v4307_v2 = vadd.f32 %v4306_v56, %v4272_v62 }
 0x239   : > { %v4276_v39 = vmul.f32 %v7816_v34, %v7816_v34 }
 0x23a   : > { %v4274_v16 = vmul.f32 %v7807_v23, %v7807_v23  ;;  %v4308_v28 = vadd.f32 %v4307_v2, %v4273_v38  ;;  %v4231_v48 = vadd.f32 %v4230_v41, %v7807_v23  ;;  %v7840_v41 = vld [vmem:[%s7829_s5 + $0x10] sm:$0xff]  }
 0x23c   : > { %v4232_v49 = vadd.f32 %v4231_v48, %v7809_v18  ;;  %v4309_v37 = vadd.f32 %v4308_v28, %v4274_v16  ;;  %v7848_v16 = vld [vmem:[%s7829_s5 + $0x20] sm:$0xff]   ;;  %v7931_v28 = vld [vmem:[%s7829_s5 + $0x68] sm:$0xff]  }
 0x23d   : > { %8302 = vst [vmem:[#allocation16_spill] sm:$0xff] %v7931_v28 }
 0x23e   : > { %v4233_v30 = vadd.f32 %v4232_v49, %v7816_v34  ;;  %v4310_v44 = vadd.f32 %v4309_v37, %v4275_v14  ;;  %v7854_v49 = vld [vmem:[%s7829_s5 + $0x28] sm:$0xff]   ;;  %v7857_v37 = vld [vmem:[%s7829_s5 + $0x30] sm:$0xff]   ;;  %v7941_v14 = vld [vmem:[%s7829_s5 + $0x78] sm:$0xff]  }
 0x23f   : > { %8304 = vst [vmem:[#allocation21_spill] sm:$0xff] %v7941_v14 }
 0x240   : > { %v4234_v27 = vrot.slane %v4233_v30, 4  ;;  %v4311_v51 = vadd.f32 %v4310_v44, %v4276_v39  ;;  %v7903_v44 = vld [vmem:[%s7829_s5 + $0x40] sm:$0xff]  }
 0x242   : > { %v4235_v63 = vadd.f32 %v4234_v27, %v4233_v30  ;;  %v4312_v46 = vrot.slane %v4311_v51, 4  ;;  %v7906_v30 = vld [vmem:[%s7829_s5 + $0x48] sm:$0xff]   ;;  %v7920_v27 = vld [vmem:[%s7829_s5 + $0x58] sm:$0xff]  }
 0x243   : > { %8298 = vst [vmem:[#allocation14_spill] sm:$0xff] %v7906_v30  ;;  %8300 = vst [vmem:[#allocation15_spill] sm:$0xff] %v7920_v27 }
 0x244   : > { %v4236_v19 = vrot.slane %v4235_v63, 2  ;;  %v4313_v5 = vadd.f32 %v4312_v46, %v4311_v51  ;;  %v7951_v51 = vld [vmem:[%s7829_s5 + $0x88] sm:$0xff]  }
 0x245   : > { %8306 = vst [vmem:[#allocation23_spill] sm:$0xff] %v7951_v51 }
 0x246   : > { %v4237_v24 = vadd.f32 %v4236_v19, %v4235_v63  ;;  %v4314_v42 = vrot.slane %v4313_v5, 2  ;;  %v7892_v19 = vld [vmem:[%s7829_s5 + $0x38] sm:$0xff]   ;;  %v7917_v63 = vld [vmem:[%s7829_s5 + $0x50] sm:$0xff]  }
 0x247   : > { %8299 = vst [vmem:[#allocation13_spill] sm:$0xff] %v7917_v63 }
 0x248   : > { %v4238_v20 = vrot.slane %v4237_v24, 1  ;;  %v4315_v17 = vadd.f32 %v4314_v42, %v4313_v5 }
 0x24a   : > { %v4239_v47 = vadd.f32 %v4238_v20, %v4237_v24  ;;  %v4316_v62 = vrot.slane %v4315_v17, 1  ;;  %v8307_v24 = vld [vmem:[#allocation11_spill] sm:$0xff] }
 0x24c   : > { %v4317_v56 = vadd.f32 %v4316_v62, %v4315_v17  ;;  %v7831_v6 = vmul.f32 0.00390625, %v4239_v47 }
 0x24e   : > { %v4356_v38 = vmul.f32 0.00390625, %v4317_v56  ;;  %v4357_v2 = vmul.f32 %v7831_v6, %v7831_v6  ;;  %v7948_v56 = vld [vmem:[%s7829_s5 + $0x80] sm:$0xff]   ;;  %v4397_v42 = vsub.f32 %v7563_v4, %v7831_v6  ;;  %v4398_v48 = vsub.f32 %v7574_v26, %v7831_v6 }
 0x24f   : > { %8305 = vst [vmem:[#allocation22_spill] sm:$0xff] %v7948_v56  ;;  %v4399_v62 = vsub.f32 %v8307_v24, %v7831_v6  ;;  %v4401_v47 = vsub.f32 %v7593_v1, %v7831_v6  ;;  %v4402_v20 = vsub.f32 %v7609_v33, %v7831_v6  ;;  %v4403_v46 = vsub.f32 %v7602_v53, %v7831_v6 }
 0x250   : > { %v4358_v39 = vsub.f32 %v4356_v38, %v4357_v2  ;;  %v4400_v38 = vsub.f32 %v7580_v7, %v7831_v6  ;;  %v4404_v4 = vsub.f32 %v7615_v52, %v7831_v6  ;;  %v4405_v26 = vsub.f32 %v7628_v22, %v7831_v6 }
 0x251   : > { %v4406_v24 = vsub.f32 %v7638_v43, %v7831_v6  ;;  %v4407_v7 = vsub.f32 %v7643_v8, %v7831_v6  ;;  %v4408_v1 = vsub.f32 %v7653_v10, %v7831_v6  ;;  %v4409_v33 = vsub.f32 %v7662_v31, %v7831_v6 }
 0x252   : > { %v4359_v5 = vadd.f32 1e-05, %v4358_v39  ;;  %v7938_v39 = vld [vmem:[%s7829_s5 + $0x70] sm:$0xff]   ;;  %v4410_v53 = vsub.f32 %v7677_v50, %v7831_v6  ;;  %v4411_v52 = vsub.f32 %v7674_v59, %v7831_v6  ;;  %v4412_v22 = vsub.f32 %v7687_v35, %v7831_v6 }
 0x253   : > { %8303 = vst [vmem:[#allocation19_spill] sm:$0xff] %v7938_v39  ;;  %v8308_v35 = vsub.f32 %v7697_v61, %v7831_v6  ;;  %v8313_v61 = vsub.f32 %v7736_v13, %v7831_v6  ;;  %v8318_v13 = vsub.f32 %v7763_v55, %v7831_v6  ;;  %v8323_v55 = vsub.f32 %v7794_v21, %v7831_v6 }
 0x254   : > { %5968 = vrsqrt.f32 %v4359_v5  ;;  %v7928_v5 = vld [vmem:[%s7829_s5 + $0x60] sm:$0xff]  }
 0x255   : > { %8301 = vst [vmem:[#allocation17_spill] sm:$0xff] %v7928_v5 }
 0x261   : > { %v5969_v17 = vpop.eup %5968 }
 0x262   : > { %v4433_v43 = vmul.f32 %v5969_v17, %v4397_v42  ;;  %v4434_v2 = vmul.f32 %v5969_v17, %v4398_v48  ;;  %v4435_v8 = vmul.f32 %v5969_v17, %v4399_v62  ;;  %v4436_v51 = vmul.f32 %v5969_v17, %v4400_v38 }
 0x263   : > { %v4437_v56 = vmul.f32 %v5969_v17, %v4401_v47  ;;  %v4438_v10 = vmul.f32 %v5969_v17, %v4402_v20  ;;  %v4439_v14 = vmul.f32 %v5969_v17, %v4403_v46  ;;  %v4440_v39 = vmul.f32 %v5969_v17, %v4404_v4 }
 0x264   : > { %v4441_v28 = vmul.f32 %v5969_v17, %v4405_v26  ;;  %v4442_v31 = vmul.f32 %v5969_v17, %v4406_v24  ;;  %v4443_v5 = vmul.f32 %v5969_v17, %v4407_v7  ;;  %v4444_v27 = vmul.f32 %v5969_v17, %v4408_v1 }
 0x265   : > { %v4445_v50 = vmul.f32 %v5969_v17, %v4409_v33  ;;  %v4446_v63 = vmul.f32 %v5969_v17, %v4410_v53  ;;  %v4447_v30 = vmul.f32 %v5969_v17, %v4411_v52  ;;  %v4448_v59 = vmul.f32 %v5969_v17, %v4412_v22 }
 0x266   : > { %v4449_v42 = vmul.f32 %v5969_v17, %v8308_v35  ;;  %v8309_v48 = vsub.f32 %v7705_v11, %v7831_v6  ;;  %v8310_v46 = vsub.f32 %v7710_v0, %v7831_v6  ;;  %v8311_v62 = vsub.f32 %v7718_v58, %v7831_v6 }
 0x267   : > { %v8312_v4 = vsub.f32 %v7728_v15, %v7831_v6  ;;  %v4454_v24 = vmul.f32 %v5969_v17, %v8313_v61  ;;  %v8314_v11 = vsub.f32 %v7733_v29, %v7831_v6  ;;  %v8315_v0 = vsub.f32 %v7745_v12, %v7831_v6 }
 0x268   : > { %v4450_v47 = vmul.f32 %v5969_v17, %v8309_v48  ;;  %v4451_v20 = vmul.f32 %v5969_v17, %v8310_v46  ;;  %v4452_v38 = vmul.f32 %v5969_v17, %v8311_v62  ;;  %v8316_v58 = vsub.f32 %v7754_v36, %v7831_v6 }
 0x269   : > { %v4453_v26 = vmul.f32 %v5969_v17, %v8312_v4  ;;  %v4455_v7 = vmul.f32 %v5969_v17, %v8314_v11  ;;  %v4456_v1 = vmul.f32 %v5969_v17, %v8315_v0  ;;  %v8317_v15 = vsub.f32 %v7759_v54, %v7831_v6 }
 0x26a   : > { %v4457_v33 = vmul.f32 %v5969_v17, %v8316_v58  ;;  %v4459_v52 = vmul.f32 %v5969_v17, %v8318_v13  ;;  %v8319_v29 = vsub.f32 %v7770_v60, %v7831_v6  ;;  %v8320_v12 = vsub.f32 %v7778_v40, %v7831_v6 }
 0x26b   : > { %v4458_v53 = vmul.f32 %v5969_v17, %v8317_v15  ;;  %v8321_v36 = vsub.f32 %v7785_v3, %v7831_v6  ;;  %v8322_v54 = vsub.f32 %v7783_v57, %v7831_v6  ;;  %v4464_v62 = vmul.f32 %v5969_v17, %v8323_v55 }
 0x26c   : > { %v4460_v22 = vmul.f32 %v5969_v17, %v8319_v29  ;;  %v4461_v35 = vmul.f32 %v5969_v17, %v8320_v12  ;;  %v8324_v60 = vsub.f32 %v7802_v9, %v7831_v6  ;;  %v8325_v3 = vsub.f32 %v7807_v23, %v7831_v6 }
 0x26d   : > { %v4462_v48 = vmul.f32 %v5969_v17, %v8321_v36  ;;  %v4463_v46 = vmul.f32 %v5969_v17, %v8322_v54  ;;  %v8326_v57 = vsub.f32 %v7809_v18, %v7831_v6  ;;  %v8327_v61 = vsub.f32 %v7816_v34, %v7831_v6 }
 0x26e   : > { %v4465_v40 = vmul.f32 %v5969_v17, %v8324_v60  ;;  %v4466_v4 = vmul.f32 %v5969_v17, %v8325_v3  ;;  %v8328_v0 = vunpack.c.l.bf16 %v7834_v32  ;;  %v8329_v58 = vunpack.c.h.bf16 %v7834_v32  ;;  %v8346_v60 = vld [vmem:[#allocation14_spill] sm:$0xff] }
 0x26f   : > { %v4467_v21 = vmul.f32 %v5969_v17, %v8326_v57  ;;  %v4468_v11 = vmul.f32 %v5969_v17, %v8327_v61  ;;  %v8330_v23 = vunpack.c.l.bf16 %v7837_v45  ;;  %v8331_v29 = vunpack.c.h.bf16 %v7837_v45  ;;  %v8349_v57 = vld [vmem:[#allocation13_spill] sm:$0xff] }
 0x270   : > { %v4541_v9 = vadd.f32 %v8328_v0, %v4433_v43  ;;  %v4542_v15 = vadd.f32 %v8329_v58, %v4434_v2  ;;  %v8332_v12 = vunpack.c.l.bf16 %v7840_v41  ;;  %v8333_v34 = vunpack.c.h.bf16 %v7840_v41  ;;  %v8352_v0 = vld [vmem:[#allocation15_spill] sm:$0xff] }
 0x271   : > { %v4543_v13 = vadd.f32 %v8330_v23, %v4435_v8  ;;  %v4544_v18 = vadd.f32 %v8331_v29, %v4436_v51  ;;  %v8334_v17 = vunpack.c.l.bf16 %v7845_v25  ;;  %v8335_v32 = vunpack.c.h.bf16 %v7845_v25  ;;  %v8358_v29 = vld [vmem:[#allocation16_spill] sm:$0xff] }
 0x272   : > { %v4545_v36 = vadd.f32 %v8332_v12, %v4437_v56  ;;  %v4546_v6 = vadd.f32 %v8333_v34, %v4438_v10  ;;  %v8336_v8 = vunpack.c.l.bf16 %v7848_v16  ;;  %v8337_v51 = vunpack.c.h.bf16 %v7848_v16  ;;  %4577 = vst [vmem:[%s8049_s8] sm:$0xff] %v4541_v9  ;;  %4578 = vst [vmem:[%s8049_s8 + $0x8] sm:$0xff] %v4542_v15  ;;  %v8355_v15 = vld [vmem:[#allocation17_spill] sm:$0xff] }
 0x273   : > { %v4547_v43 = vadd.f32 %v8334_v17, %v4439_v14  ;;  %v4548_v2 = vadd.f32 %v8335_v32, %v4440_v39  ;;  %v8338_v56 = vunpack.c.l.bf16 %v7854_v49  ;;  %v8339_v10 = vunpack.c.h.bf16 %v7854_v49  ;;  %4579 = vst [vmem:[%s8049_s8 + $0x10] sm:$0xff] %v4543_v13  ;;  %4580 = vst [vmem:[%s8049_s8 + $0x18] sm:$0xff] %v4544_v18  ;;  %v8364_v17 = vld [vmem:[#allocation21_spill] sm:$0xff] }
 0x274   : > { %v4549_v45 = vadd.f32 %v8336_v8, %v4441_v28  ;;  %v4550_v54 = vadd.f32 %v8337_v51, %v4442_v31  ;;  %v8340_v25 = vunpack.c.l.bf16 %v7857_v37  ;;  %v8341_v16 = vunpack.c.h.bf16 %v7857_v37  ;;  %4581 = vst [vmem:[%s8049_s8 + $0x20] sm:$0xff] %v4545_v36  ;;  %4582 = vst [vmem:[%s8049_s8 + $0x28] sm:$0xff] %v4546_v6  ;;  %v8361_v36 = vld [vmem:[#allocation19_spill] sm:$0xff] }
 0x275   : > { %v4551_v41 = vadd.f32 %v8338_v56, %v4443_v5  ;;  %v4552_v55 = vadd.f32 %v8339_v10, %v4444_v27  ;;  %v8342_v39 = vunpack.c.l.bf16 %v7892_v19  ;;  %v8343_v49 = vunpack.c.h.bf16 %v7892_v19  ;;  %4583 = vst [vmem:[%s8049_s8 + $0x30] sm:$0xff] %v4547_v43  ;;  %4584 = vst [vmem:[%s8049_s8 + $0x38] sm:$0xff] %v4548_v2 }
 0x276   : > { %v4553_v28 = vadd.f32 %v8340_v25, %v4445_v50  ;;  %v4554_v14 = vadd.f32 %v8341_v16, %v4446_v63  ;;  %v8344_v31 = vunpack.c.l.bf16 %v7903_v44  ;;  %v8345_v37 = vunpack.c.h.bf16 %v7903_v44  ;;  %4585 = vst [vmem:[%s8049_s8 + $0x40] sm:$0xff] %v4549_v45  ;;  %4586 = vst [vmem:[%s8049_s8 + $0x48] sm:$0xff] %v4550_v54 }
 0x277   : > { %v4555_v5 = vadd.f32 %v8342_v39, %v4447_v30  ;;  %v4556_v27 = vadd.f32 %v8343_v49, %v4448_v59  ;;  %v8347_v3 = vunpack.c.l.bf16 %v8346_v60  ;;  %v8348_v19 = vunpack.c.h.bf16 %v8346_v60  ;;  %4587 = vst [vmem:[%s8049_s8 + $0x50] sm:$0xff] %v4551_v41  ;;  %4588 = vst [vmem:[%s8049_s8 + $0x58] sm:$0xff] %v4552_v55 }
 0x278   : > { %v4557_v50 = vadd.f32 %v8344_v31, %v4449_v42  ;;  %v4558_v63 = vadd.f32 %v8345_v37, %v4450_v47  ;;  %v8350_v61 = vunpack.c.l.bf16 %v8349_v57  ;;  %v8351_v44 = vunpack.c.h.bf16 %v8349_v57  ;;  %4589 = vst [vmem:[%s8049_s8 + $0x60] sm:$0xff] %v4553_v28  ;;  %4590 = vst [vmem:[%s8049_s8 + $0x68] sm:$0xff] %v4554_v14 }
 0x279   : > { %v4559_v30 = vadd.f32 %v8347_v3, %v4451_v20  ;;  %v4560_v59 = vadd.f32 %v8348_v19, %v4452_v38  ;;  %v8353_v9 = vunpack.c.l.bf16 %v8352_v0  ;;  %v8354_v58 = vunpack.c.h.bf16 %v8352_v0  ;;  %4591 = vst [vmem:[%s8049_s8 + $0x70] sm:$0xff] %v4555_v5  ;;  %4592 = vst [vmem:[%s8049_s8 + $0x78] sm:$0xff] %v4556_v27 }
 0x27a   : > { %v4561_v42 = vadd.f32 %v8350_v61, %v4453_v26  ;;  %v4562_v47 = vadd.f32 %v8351_v44, %v4454_v24  ;;  %v8356_v23 = vunpack.c.l.bf16 %v8355_v15  ;;  %v8357_v13 = vunpack.c.h.bf16 %v8355_v15  ;;  %4593 = vst [vmem:[%s8049_s8 + $0x80] sm:$0xff] %v4557_v50  ;;  %4594 = vst [vmem:[%s8049_s8 + $0x88] sm:$0xff] %v4558_v63 }
 0x27b   : > { %v4563_v20 = vadd.f32 %v8353_v9, %v4455_v7  ;;  %v4564_v38 = vadd.f32 %v8354_v58, %v4456_v1  ;;  %v8359_v18 = vunpack.c.l.bf16 %v8358_v29  ;;  %v8360_v12 = vunpack.c.h.bf16 %v8358_v29  ;;  %4595 = vst [vmem:[%s8049_s8 + $0x90] sm:$0xff] %v4559_v30  ;;  %4596 = vst [vmem:[%s8049_s8 + $0x98] sm:$0xff] %v4560_v59 }
 0x27c   : > { %v4565_v26 = vadd.f32 %v8356_v23, %v4457_v33  ;;  %v4566_v24 = vadd.f32 %v8357_v13, %v4458_v53  ;;  %v8362_v34 = vunpack.c.l.bf16 %v8361_v36  ;;  %v8363_v6 = vunpack.c.h.bf16 %v8361_v36  ;;  %4597 = vst [vmem:[%s8049_s8 + $0xa0] sm:$0xff] %v4561_v42  ;;  %4598 = vst [vmem:[%s8049_s8 + $0xa8] sm:$0xff] %v4562_v47 }
 0x27d   : > { %v4567_v7 = vadd.f32 %v8359_v18, %v4459_v52  ;;  %v4568_v1 = vadd.f32 %v8360_v12, %v4460_v22  ;;  %v8365_v52 = vunpack.c.l.bf16 %v8364_v17  ;;  %v8366_v22 = vunpack.c.h.bf16 %v8364_v17  ;;  %4599 = vst [vmem:[%s8049_s8 + $0xb0] sm:$0xff] %v4563_v20  ;;  %4600 = vst [vmem:[%s8049_s8 + $0xb8] sm:$0xff] %v4564_v38 }
 0x27e   : > { %v4569_v33 = vadd.f32 %v8362_v34, %v4461_v35  ;;  %v4570_v53 = vadd.f32 %v8363_v6, %v4462_v48  ;;  %v8367_v35 = vld [vmem:[#allocation22_spill] sm:$0xff]  ;;  %4601 = vst [vmem:[%s8049_s8 + $0xc0] sm:$0xff] %v4565_v26  ;;  %4602 = vst [vmem:[%s8049_s8 + $0xc8] sm:$0xff] %v4566_v24 }
 0x27f   : > { %v4571_v43 = vadd.f32 %v8365_v52, %v4463_v46  ;;  %v4572_v32 = vadd.f32 %v8366_v22, %v4464_v62  ;;  %v8368_v2 = vunpack.c.l.bf16 %v8367_v35  ;;  %v8369_v8 = vunpack.c.h.bf16 %v8367_v35  ;;  %v8370_v46 = vld [vmem:[#allocation23_spill] sm:$0xff]  ;;  %4603 = vst [vmem:[%s8049_s8 + $0xd0] sm:$0xff] %v4567_v7  ;;  %4604 = vst [vmem:[%s8049_s8 + $0xd8] sm:$0xff] %v4568_v1 }
 0x280   : > { %v8371_v51 = vunpack.c.l.bf16 %v8370_v46  ;;  %v8372_v62 = vunpack.c.h.bf16 %v8370_v46  ;;  %4605 = vst [vmem:[%s8049_s8 + $0xe0] sm:$0xff] %v4569_v33  ;;  %4606 = vst [vmem:[%s8049_s8 + $0xe8] sm:$0xff] %v4570_v53 }
 0x281   : > { %v4573_v48 = vadd.f32 %v8368_v2, %v4465_v40  ;;  %v4574_v45 = vadd.f32 %v8369_v8, %v4466_v4  ;;  %4607 = vst [vmem:[%s8049_s8 + $0xf0] sm:$0xff] %v4571_v43  ;;  %4608 = vst [vmem:[%s8049_s8 + $0xf8] sm:$0xff] %v4572_v32 }
 0x282   : > { %v4575_v54 = vadd.f32 %v8371_v51, %v4467_v21  ;;  %v4576_v56 = vadd.f32 %v8372_v62, %v4468_v11 }
 0x283   : > { %4609 = vst [vmem:[%s8049_s8 + $0x100] sm:$0xff] %v4573_v48  ;;  %4610 = vst [vmem:[%s8049_s8 + $0x108] sm:$0xff] %v4574_v45 }
 0x284   : > { %4611 = vst [vmem:[%s8049_s8 + $0x110] sm:$0xff] %v4575_v54  ;;  %4612 = vst [vmem:[%s8049_s8 + $0x118] sm:$0xff] %v4576_v56 }
 0x285 PF: > { %s14_s17 = sadd.s32 1, %s5992_s17   ;;  %s8373_s15 = smov %s5988_s16 }
 0x286   : > { %p11_p5 = scmp.ge.s32.totalorder %s14_s17, 4   ;;  %s8374_s16 = smov %s8376_s18 }
 0x288   :  { %13 = sbr.rel (!%p11_p5) target bundleno = 2 (0x2), region = 80 }

// kernel: resnet_block_forward.2
= control target key start
LH: loop header
LB: loop body
LE: loop exit
PB: predicated region body
PF: predicated region fallthrough
CT: control target
= control target key end

     0   :  { %s6099_s12 = smov 0   ;;  %s6101_s13 = smov 0   ;;  %s8121_s0 = inlined_call_operand.vmem [shape: bf16[2,342,128], index: 0, kind: input, shape index: {}]   ;;  %s8122_s1 = inlined_call_operand.vmem [shape: bf16[9,128,128], index: 1, kind: input, shape index: {}]   ;;  %s8123_s2 = inlined_call_operand.vmem [shape: f32[288,1], index: 2, kind: input, shape index: {}]   ;;  %s8124_s3 = inlined_call_operand.vmem [shape: bf16[2,288,128], index: 3, kind: output, shape index: {}]  }
   0x1   :  { %s6103_s14 = smov 0  }
   0x2 LB: > { %s25_s15 = sadd.s32 1, %s6072_s13  ;;  %p4725_p0 = scmp.ge.s32.totalorder %s6076_s14, 1  ;;  %s6076_s14 = sphi %s6103_s14, %s13_s14   ;;  %s6072_s13 = sphi %s6101_s13, %s8222_s13   ;;  %s6068_s12 = sphi %s6099_s12, %s8221_s12  }
   0x3   : > { %p27_p1 = scmp.ge.s32.totalorder %s25_s15, 2  ;;  %p160_p2 = scmp.lt.s32.totalorder %s6076_s14, 3 }
   0x5   : > { %s8224_s15 = smov (%p27_p1, %s25_s15), 0  ;;  %p161_p3 = pnand %p4725_p0, %p160_p2 }
   0x7   : > { %164 = sbr.rel (%p161_p3) target bundleno = 639 (0x27f), region = 32 }
   0xc   : > { %v5918_v0 = vld [vmem:[%s8122_s1 + $0x78] sm:$0xff]   ;;  %p191_p4 = scmp.lt.s32.totalorder %s6068_s12, 1  ;;  %v5919_v1 = vld [vmem:[%s8122_s1 + $0x70] sm:$0xff]   ;;  %v5920_v2 = vld [vmem:[%s8122_s1 + $0x68] sm:$0xff]   ;;  %vm372_vm0 = vsmask.f32 7424 }
   0xd   : > { %5873 = vmatprep.subr.bf16.mxu1 %v5918_v0  ;;  %5405 = vmatprep.subr.bf16.mxu0 %v5918_v0  ;;  %v5921_v3 = vld [vmem:[%s8122_s1 + $0x60] sm:$0xff]   ;;  %v5922_v6 = vld [vmem:[%s8122_s1 + $0x58] sm:$0xff]   ;;  %v5923_v17 = vld [vmem:[%s8122_s1 + $0x50] sm:$0xff]   ;;  %vm1028_vm1 = vcmask 1046528   ;;  %vm2300_vm2 = vcmask 1045504   ;;  %vm3572_vm4 = vcmask 1044480  }
   0xe   : > { %s8226_s12 = smov (!%p191_p4, %s6068_s12), 1  ;;  %5881 = vmatpush3.bf16.msra.mxu1 %v5918_v0  ;;  %5406 = vmatpush3.bf16.msra.mxu0 %v5918_v0  ;;  %v5924_v26 = vld [vmem:[%s8122_s1 + $0x48] sm:$0xff]   ;;  %v5925_v32 = vld [vmem:[%s8122_s1 + $0x40] sm:$0xff]   ;;  %v5929_v41 = vld [vmem:[%s8122_s1 + $0x38] sm:$0xff]   ;;  %vm1829_vm3 = vsmask.f32 6400 }
   0xf   : > { %5874 = vmatprep.subr.bf16.mxu1 %v5919_v1  ;;  %5407 = vmatprep.subr.bf16.mxu0 %v5919_v1  ;;  %s5889_s22 = smul.u32 172, %s8226_s12  ;;  %v5934_v47 = vld [vmem:[%s8122_s1 + $0xb8] sm:$0xff]   ;;  %v5933_v52 = vld [vmem:[%s8122_s1 + $0x30] sm:$0xff]   ;;  %vm3101_vm5 = vsmask.f32 5376 }
  0x10   : > { %v5937_v62 = vld [vmem:[%s8122_s1 + $0xb0] sm:$0xff]  }
  0x11   : > { %s6132_s25 = scalar_lea.vmem %s8121_s0, %s5889_s22 }
  0x12   : > { %5882 = vmatpush3.bf16.msra.mxu1 %v5919_v1  ;;  %5408 = vmatpush3.bf16.msra.mxu0 %v5919_v1  ;;  %v6138_v4 = vld [vmem:[%s6132_s25 + $0x40] sm:$0xff]   ;;  %v6141_v5 = vld [vmem:[%s6132_s25 + $0x48] sm:$0xff]   ;;  %v6170_v22 = vld [vmem:[%s6132_s25 + $0x50] sm:$0xff]  }
  0x13   : > { %5875 = vmatprep.subr.bf16.mxu1 %v5920_v2  ;;  %5409 = vmatprep.subr.bf16.mxu0 %v5920_v2  ;;  %v437_v7 = vshll.u32 %v6138_v4, 16  ;;  %v441_v8 = vshrl.u32 %v6138_v4, 16  ;;  %v445_v9 = vshll.u32 %v6141_v5, 16  ;;  %v209_v10 = vld [vmem:[%s6132_s25] sm:$0xf]  ;;  %v6159_v15 = vld [vmem:[%s6132_s25 + $0x8] sm:$0xff]  }
  0x14   : > { %v6153_v13 = vld [vmem:[%s6132_s25 + $0x4] sm:$0xf]  ;;  %v381_v20 = vshll.u32 %v6159_v15, 16  ;;  %v6173_v25 = vld [vmem:[%s6132_s25 + $0x10] sm:$0xff]   ;;  %v453_v28 = vshll.u32 %v6170_v22, 16  ;;  %v6180_v29 = vld [vmem:[%s6132_s25 + $0x58] sm:$0xff]  }
  0x15   : > { %v6150_v11 = vrot.slane %v437_v7, 1  ;;  %v447_v12 = vrot.slane %v445_v9, 1  ;;  %v6156_v14 = vcombine.low %v209_v10, %v6153_v13  ;;  %v449_v30 = vshrl.u32 %v6141_v5, 16  ;;  %v6190_v35 = vld [vmem:[%s6132_s25 + $0x18] sm:$0xff]   ;;  %v6195_v39 = vld [vmem:[%s6132_s25 + $0x60] sm:$0xff]   ;;  %v6209_v50 = vld [vmem:[%s6132_s25 + $0x68] sm:$0xff]  }
  0x16   : > { %5883 = vmatpush3.bf16.msra.mxu1 %v5920_v2  ;;  %5410 = vmatpush3.bf16.msra.mxu0 %v5920_v2  ;;  %v383_v24 = vrot.slane %v381_v20, 1  ;;  %v385_v33 = vshrl.u32 %v6159_v15, 16  ;;  %v389_v34 = vshll.u32 %v6173_v25, 16  ;;  %v455_v36 = vrot.slane %v453_v28, 1  ;;  %v6203_v46 = vld [vmem:[%s6132_s25 + $0x20] sm:$0xff]   ;;  %v6221_v60 = vld [vmem:[%s6132_s25 + $0x28] sm:$0xff]  }
  0x17   : > { %5876 = vmatprep.subr.bf16.mxu1 %v5921_v3  ;;  %5411 = vmatprep.subr.bf16.mxu0 %v5921_v3  ;;  %v443_v16 = vor.u32 %v441_v8, %v6150_v11  ;;  %v374_v18 = vshrl.u32 %v6156_v14, 16  ;;  %v376_v19 = vshll.u32 %v6156_v14, 16  ;;  %v457_v37 = vshrl.u32 %v6170_v22, 16  ;;  %v6230_v1 = vld [vmem:[%s6132_s25 + $0x70] sm:$0xff]   ;;  %v5938_v2 = vld [vmem:[%s8122_s1 + $0x28] sm:$0xff]  }
  0x18   : > { %v461_v38 = vshll.u32 %v6180_v29, 16  ;;  %v451_v40 = vor.u32 %v449_v30, %v447_v12  ;;  %v393_v42 = vshrl.u32 %v6173_v25, 16  ;;  %v397_v43 = vshll.u32 %v6190_v35, 16 }
  0x19   : > { %v448_v21 = vsel %vm372_vm0, %v443_v16, %v447_v12  ;;  %v378_v23 = vrot.slane %v376_v19, 1  ;;  %v387_v44 = vor.u32 %v385_v33, %v383_v24  ;;  %v391_v45 = vrot.slane %v389_v34, 1  ;;  %v5941_v16 = vld [vmem:[%s8122_s1 + $0xa8] sm:$0xff]   ;;  %v6257_v33 = vld [vmem:[%s6132_s25 + $0x38] sm:$0xff]   ;;  %v5945_v34 = vld [vmem:[%s8122_s1 + $0xa0] sm:$0xff]  }
  0x1a   : > { %5884 = vmatpush3.bf16.msra.mxu1 %v5921_v3  ;;  %5412 = vmatpush3.bf16.msra.mxu0 %v5921_v3  ;;  %v459_v48 = vor.u32 %v457_v37, %v455_v36  ;;  %v463_v49 = vrot.slane %v461_v38, 1  ;;  %v456_v51 = vsel %vm372_vm0, %v451_v40, %v455_v36  ;;  %v465_v53 = vshrl.u32 %v6180_v29, 16  ;;  %v6266_v40 = vld [vmem:[%s6132_s25 + $0x80] sm:$0xff]  }
  0x1b   : > { %5877 = vmatprep.subr.bf16.mxu1 %v5922_v6  ;;  %5413 = vmatprep.subr.bf16.mxu0 %v5922_v6  ;;  %v379_v27 = vor.u32 %v378_v23, %v374_v18  ;;  %v395_v54 = vor.u32 %v393_v42, %v391_v45  ;;  %v399_v55 = vrot.slane %v397_v43, 1  ;;  %v392_v56 = vsel %vm372_vm0, %v387_v44, %v391_v45  ;;  %v6247_v23 = vld [vmem:[%s6132_s25 + $0x78] sm:$0xff]  }
  0x1c   : > { %5437 = vmatprep.mubr.bf16.mxu1 %v448_v21  ;;  %v469_v57 = vshll.u32 %v6195_v39, 16  ;;  %v401_v58 = vshrl.u32 %v6190_v35, 16  ;;  %v405_v59 = vshll.u32 %v6203_v46, 16  ;;  %v464_v61 = vsel %vm372_vm0, %v459_v48, %v463_v49 }
  0x1d   : > { %v384_v31 = vsel %vm372_vm0, %v379_v27, %v383_v24  ;;  %v473_v63 = vshrl.u32 %v6195_v39, 16  ;;  %v477_v0 = vshll.u32 %v6209_v50, 16  ;;  %v400_v3 = vsel %vm372_vm0, %v395_v54, %v399_v55  ;;  %v5943_v24 = vld [vmem:[%s8122_s1 + $0x20] sm:$0xff]  }
  0x1e   : > { %5885 = vmatpush3.bf16.msra.mxu1 %v5922_v6  ;;  %5414 = vmatpush3.bf16.msra.mxu0 %v5922_v6  ;;  %v409_v6 = vshrl.u32 %v6203_v46, 16  ;;  %v413_v7 = vshll.u32 %v6221_v60, 16  ;;  %v467_v8 = vor.u32 %v465_v53, %v463_v49  ;;  %v471_v9 = vrot.slane %v469_v57, 1  ;;  %v5952_v57 = vld [vmem:[%s8122_s1 + $0x10] sm:$0xff]  }
  0x1f   : > { %5878 = vmatprep.subr.bf16.mxu1 %v5923_v17  ;;  %5415 = vmatprep.subr.bf16.mxu0 %v5923_v17  ;;  %v403_v10 = vor.u32 %v401_v58, %v399_v55  ;;  %v407_v12 = vrot.slane %v405_v59, 1  ;;  %v479_v19 = vrot.slane %v477_v0, 1  ;;  %v481_v20 = vshrl.u32 %v6209_v50, 16  ;;  %v1007_v0 = vld [vmem:[%s6132_s25] sm:$0xe] }
  0x20   : > { %5421 = vmatprep.mubr.bf16.mxu0 %v384_v31  ;;  %v475_v18 = vor.u32 %v473_v63, %v471_v9  ;;  %v485_v21 = vshll.u32 %v6230_v1, 16  ;;  %v415_v27 = vrot.slane %v413_v7, 1  ;;  %v417_v28 = vshrl.u32 %v6221_v60, 16  ;;  %v5953_v7 = vld [vmem:[%s8122_s1 + $0x90] sm:$0xff]  }
  0x21   : > { %v472_v30 = vsel %vm372_vm0, %v467_v8, %v471_v9  ;;  %v408_v31 = vsel %vm372_vm0, %v403_v10, %v407_v12  ;;  %v489_v36 = vshrl.u32 %v6230_v1, 16  ;;  %v493_v38 = vshll.u32 %v6247_v23, 16  ;;  %v5958_v8 = vld [vmem:[%s6132_s25 + $0x90] ss:$0 sps:$4 sm:$0x11]  }
  0x22   : > { %5886 = vmatpush3.bf16.msra.mxu1 %v5923_v17  ;;  %5416 = vmatpush3.bf16.msra.mxu0 %v5923_v17  ;;  %v6242_v17 = vld [vmem:[%s6132_s25 + $0x30] sm:$0xff]   ;;  %v480_v37 = vsel %vm372_vm0, %v475_v18, %v479_v19  ;;  %v429_v42 = vshll.u32 %v6257_v33, 16  ;;  %v483_v44 = vor.u32 %v481_v20, %v479_v19  ;;  %v487_v45 = vrot.slane %v485_v21, 1  ;;  %v5955_v19 = vld [vmem:[%s8122_s1 + $0x88] sm:$0xff]  }
  0x23   : > { %5879 = vmatprep.subr.bf16.mxu1 %v5924_v26  ;;  %5417 = vmatprep.subr.bf16.mxu0 %v5924_v26  ;;  %v419_v48 = vor.u32 %v417_v28, %v415_v27  ;;  %v495_v54 = vrot.slane %v493_v38, 1  ;;  %v497_v55 = vshrl.u32 %v6247_v23, 16  ;;  %v5956_v20 = vld [vmem:[%s8122_s1 + $0x8] sm:$0xff]  }
  0x24   : > { %v491_v53 = vor.u32 %v489_v36, %v487_v45  ;;  %v431_v59 = vrot.slane %v429_v42, 1  ;;  %v5960_v36 = vld [vmem:[%s8122_s1] sm:$0xff]   ;;  %v5962_v42 = vld [vmem:[%s8122_s1 + $0xf8] sm:$0xff]  }
  0x26   : > { %5887 = vmatpush3.bf16.msra.mxu1 %v5924_v26  ;;  %5418 = vmatpush3.bf16.msra.mxu0 %v5924_v26  ;;  %v411_v26 = vor.u32 %v409_v6, %v407_v12  ;;  %v496_v6 = vsel %vm372_vm0, %v491_v53, %v495_v54  ;;  %v4795_v12 = vcombine.low %v1007_v0, %v6153_v13  ;;  %v5965_v53 = vld [vmem:[%s8122_s1 + $0x130] sm:$0xff]   ;;  %v1042_v0 = vrot.slane %v6257_v33, 1 }
  0x27   : > { %5880 = vmatprep.subr.bf16.mxu1 %v5925_v32  ;;  %5419 = vmatprep.subr.bf16.mxu0 %v5925_v32 }
  0x28   : > { %v416_v43 = vsel %vm372_vm0, %v411_v26, %v415_v27  ;;  %v1029_v13 = vrot.slane %v4795_v12, 1  ;;  %v1030_v26 = vrot.slane %v6159_v15, 1  ;;  %v5975_v12 = vld [vmem:[%s8122_s1 + $0x108] sm:$0xff]  }
  0x2a   : > { %5888 = vmatpush3.bf16.msra.mxu1 %v5925_v32  ;;  %5420 = vmatpush3.bf16.msra.mxu0 %v5925_v32  ;;  %v421_v32 = vshll.u32 %v6242_v17, 16 }
  0x2b   : > { %5457 = vmatprep.subr.bf16.mxu1 %v5929_v41  ;;  %5509 = vmatprep.subr.bf16.mxu0 %v5934_v47 }
  0x2c   : > { %v423_v49 = vrot.slane %v421_v32, 1 }
  0x2d   : > { %5438 = vmatmul.mubr.bf16.vlgmr.msra.gmra.mxu1 %v456_v51  ;;  %5422 = vmatmul.mubr.bf16.vlgmr.msra.gmra.mxu0 %v392_v56  ;;  %v5949_v51 = vld [vmem:[%s8122_s1 + $0x98] sm:$0xff]   ;;  %v501_v56 = vshll.u32 %v6266_v40, 16 }
  0x2e   : > { %5458 = vmatpush3.bf16.msra.mxu1 %v5929_v41  ;;  %5510 = vmatpush3.bf16.msra.mxu0 %v5934_v47  ;;  %v425_v41 = vshrl.u32 %v6242_v17, 16  ;;  %v5947_v47 = vld [vmem:[%s8122_s1 + $0x18] sm:$0xff]   ;;  %v424_v63 = vsel %vm372_vm0, %v419_v48, %v423_v49 }
  0x2f   : > { %5459 = vmatprep.subr.bf16.mxu1 %v5933_v52  ;;  %5441 = vmatprep.mubr.bf16.mxu1 %v464_v61  ;;  %v433_v61 = vshrl.u32 %v6257_v33, 16  ;;  %v503_v9 = vrot.slane %v501_v56, 1  ;;  %v5967_v56 = vld [vmem:[%s8122_s1 + $0x128] sm:$0xff]  }
  0x30   : > { %5511 = vmatprep.subr.bf16.mxu0 %v5937_v62  ;;  %5425 = vmatprep.mubr.bf16.mxu0 %v400_v3  ;;  %v427_v58 = vor.u32 %v425_v41, %v423_v49  ;;  %v1032_v41 = vrot.slane %v6173_v25, 1 }
  0x31   : > { %v435_v18 = vor.u32 %v433_v61, %v431_v59  ;;  %v5969_v61 = vld [vmem:[%s8122_s1 + $0x120] sm:$0xff]  }
  0x32   : > { %5460 = vmatpush3.bf16.msra.mxu1 %v5933_v52  ;;  %5512 = vmatpush3.bf16.msra.mxu0 %v5937_v62  ;;  %v6278_v52 = vld [vmem:[%s6132_s25 + $0x88] sm:$0xff]   ;;  %v488_v62 = vsel %vm372_vm0, %v483_v44, %v487_v45  ;;  %v432_v10 = vsel %vm372_vm0, %v427_v58, %v431_v59  ;;  %v1034_v45 = vrot.slane %v6190_v35, 1  ;;  %v1033_v49 = vsel %vm1028_vm1, %v1030_v26, %v1032_v41  ;;  %v5964_v59 = vld [vmem:[%s8122_s1 + $0xf0] sm:$0xff]  }
  0x33   : > { %5461 = vmatprep.subr.bf16.mxu1 %v5938_v2  ;;  %5513 = vmatprep.subr.bf16.mxu0 %v5941_v16  ;;  %v509_v3 = vshll.u32 %v6278_v52, 16  ;;  %v440_v28 = vsel %vm372_vm0, %v435_v18, %v6150_v11  ;;  %v1062_v44 = vrot.slane %v6278_v52, 1  ;;  %v1050_v18 = vrot.slane %v6180_v29, 1 }
  0x35   : > { %5442 = vmatmul.mubr.bf16.gmra.mxu1 %v472_v30  ;;  %5426 = vmatmul.mubr.bf16.gmra.mxu0 %v408_v31  ;;  %v513_v30 = vshrl.u32 %v6278_v52, 16  ;;  %v517_v31 = vshll.u32 %v5958_v8, 16 }
  0x36   : > { %5462 = vmatpush3.bf16.msra.mxu1 %v5938_v2  ;;  %5514 = vmatpush3.bf16.msra.mxu0 %v5941_v16  ;;  %v505_v2 = vshrl.u32 %v6266_v40, 16  ;;  %v499_v16 = vor.u32 %v497_v55, %v495_v54  ;;  %v1035_v54 = vsel %vm1028_vm1, %v1032_v41, %v1034_v45  ;;  %v1036_v55 = vrot.slane %v6203_v46, 1 }
  0x37   : > { %5445 = vmatprep.mubr.bf16.mxu1 %v480_v37  ;;  %5463 = vmatprep.subr.bf16.mxu1 %v5943_v24  ;;  %v1031_v37 = vsel %vm1028_vm1, %v1029_v13, %v1030_v26  ;;  %v519_v38 = vrot.slane %v517_v31, 1  ;;  %v1345_v13 = vld [vmem:[%s6132_s25 + $0x8] sm:$0xe]  ;;  %v1346_v26 = vld [vmem:[%s6132_s25 + $0xc] sm:$0xf]  ;;  %v1054_v31 = vrot.slane %v6209_v50, 1 }
  0x38   : > { %5515 = vmatprep.subr.bf16.mxu0 %v5945_v34  ;;  %5429 = vmatprep.mubr.bf16.mxu0 %v416_v43  ;;  %v507_v21 = vor.u32 %v505_v2, %v503_v9  ;;  %v504_v27 = vsel %vm372_vm0, %v499_v16, %v503_v9  ;;  %v5963_v43 = vld [vmem:[%s8122_s1 + $0x138] sm:$0xff]   ;;  %v1037_v58 = vsel %vm1028_vm1, %v1034_v45, %v1036_v55  ;;  %v1048_v16 = vrot.slane %v6170_v22, 1 }
  0x39   : > { %v5970_v9 = vld [vmem:[%s8122_s1 + $0xd8] sm:$0xff]   ;;  %v1058_v45 = vrot.slane %v6247_v23, 1 }
  0x3a   : > { %5464 = vmatpush3.bf16.msra.mxu1 %v5943_v24  ;;  %5516 = vmatpush3.bf16.msra.mxu0 %v5945_v34  ;;  %v511_v24 = vrot.slane %v509_v3, 1  ;;  %v5959_v34 = vld [vmem:[%s8122_s1 + $0x80] sm:$0xff]   ;;  %v5971_v3 = vld [vmem:[%s8122_s1 + $0x118] sm:$0xff]  }
  0x3b   : > { %5465 = vmatprep.subr.bf16.mxu1 %v5947_v47  ;;  %5517 = vmatprep.subr.bf16.mxu0 %v5949_v51 }
  0x3c   : > { %v512_v32 = vsel %vm372_vm0, %v507_v21, %v511_v24  ;;  %v515_v11 = vor.u32 %v513_v30, %v511_v24  ;;  %v5976_v21 = vld [vmem:[%s8122_s1 + $0xc0] sm:$0xff]   ;;  %v6402_v24 = vld [vmem:[%s8122_s1 + $0x1b8] sm:$0xff]  }
  0x3d   : > { %5446 = vmatmul.mubr.bf16.gmra.mxu1 %v488_v62  ;;  %5430 = vmatmul.mubr.bf16.gmra.mxu0 %v424_v63  ;;  %v1040_v62 = vrot.slane %v6242_v17, 1  ;;  %v5966_v63 = vld [vmem:[%s8122_s1 + $0xe8] sm:$0xff]   ;;  %v6413_v30 = vld [vmem:[%s6132_s25 + $0x18] sm:$0xff]  }
  0x3e   : > { %5466 = vmatpush3.bf16.msra.mxu1 %v5947_v47  ;;  %5518 = vmatpush3.bf16.msra.mxu0 %v5949_v51  ;;  %v1064_v47 = vrot.slane %v5958_v8, 1  ;;  %v520_v48 = vsel %vm372_vm0, %v515_v11, %v519_v38  ;;  %v1046_v8 = vrot.slane %v6141_v5, 1  ;;  %v1056_v38 = vrot.slane %v6230_v1, 1 }
  0x3f   : > { %5449 = vmatprep.mubr.bf16.mxu1 %v496_v6  ;;  %5467 = vmatprep.subr.bf16.mxu1 %v5952_v57  ;;  %v1043_v2 = vsel %vm1028_vm1, %v1040_v62, %v1042_v0  ;;  %v1044_v6 = vrot.slane %v6138_v4, 1 }
  0x40   : > { %5519 = vmatprep.subr.bf16.mxu0 %v5953_v7  ;;  %5433 = vmatprep.mubr.bf16.mxu0 %v432_v10  ;;  %v6331_v51 = vsel %vm1028_vm1, %v1062_v44, %v1064_v47  ;;  %v5972_v10 = vld [vmem:[%s8122_s1 + $0xd0] sm:$0xff]   ;;  %v1057_v47 = vsel %vm1028_vm1, %v1054_v31, %v1056_v38 }
  0x42   : > { %5468 = vmatpush3.bf16.msra.mxu1 %v5952_v57  ;;  %5520 = vmatpush3.bf16.msra.mxu0 %v5953_v7  ;;  %v1038_v57 = vrot.slane %v6221_v60, 1  ;;  %v5973_v7 = vld [vmem:[%s8122_s1 + $0x110] sm:$0xff]  }
  0x43   : > { %5521 = vmatprep.subr.bf16.mxu0 %v5955_v19  ;;  %5469 = vmatprep.subr.bf16.mxu1 %v5956_v20 }
  0x45   : > { %5450 = vmatmul.mubr.bf16.gmra.mxu1 %v504_v27  ;;  %5434 = vmatmul.mubr.bf16.gmra.mxu0 %v440_v28  ;;  %v6408_v27 = vld [vmem:[%s6132_s25 + $0x10] sm:$0xff]   ;;  %v1052_v28 = vrot.slane %v6195_v39, 1 }
  0x46   : > { %5522 = vmatpush3.bf16.msra.mxu0 %v5955_v19  ;;  %5453 = vmatprep.mubr.bf16.mxu1 %v512_v32  ;;  %v5974_v19 = vld [vmem:[%s8122_s1 + $0xc8] sm:$0xff]   ;;  %v2302_v32 = vrot.slane %v6408_v27, 2 }
  0x47   : > { %5470 = vmatpush3.bf16.msra.mxu1 %v5956_v20  ;;  %5523 = vmatprep.subr.bf16.mxu0 %v5959_v34  ;;  %v1051_v20 = vsel %vm1028_vm1, %v1048_v16, %v1050_v18 }
  0x48   : > { %5471 = vmatprep.subr.bf16.mxu1 %v5960_v36  ;;  %5525 = vmatprep.mubr.bf16.mxu0 %v1031_v37  ;;  %v1055_v37 = vsel %vm1028_vm1, %v1052_v28, %v1054_v31 }
  0x4a   : > { %5524 = vmatpush3.bf16.msra.mxu0 %v5959_v34  ;;  %v1053_v34 = vsel %vm1028_vm1, %v1050_v18, %v1052_v28 }
  0x4b   : > { %5472 = vmatpush3.bf16.msra.mxu1 %v5960_v36  ;;  %5613 = vmatprep.subr.bf16.mxu0 %v5963_v43  ;;  %v6425_v36 = vcombine.low %v1345_v13, %v1346_v26 }
  0x4c   : > { %5561 = vmatprep.subr.bf16.mxu1 %v5962_v42 }
  0x4d   : > { %5454 = vmatmul.mubr.bf16.gmra.mxu1 %v520_v48  ;;  %5526 = vmatmul.mubr.bf16.vlgmr.msra.gmra.mxu0 %v1033_v49  ;;  %v1831_v41 = vshrl.u32 %v6425_v36, 16  ;;  %v1842_v48 = vshll.u32 %v6408_v27, 16  ;;  %v1851_v49 = vshll.u32 %v6413_v30, 16 }
  0x4e   : > { %5473 = vmatprep.mubr.bf16.mxu1 %v6156_v14  ;;  %5614 = vmatpush3.bf16.msra.mxu0 %v5963_v43  ;;  %v1039_v14 = vsel %vm1028_vm1, %v1036_v55, %v1038_v57  ;;  %v1839_v43 = vshrl.u32 %v6408_v27, 16 }
  0x4f   : > { %5529 = vmatprep.mubr.bf16.mxu0 %v1035_v54  ;;  %5615 = vmatprep.subr.bf16.mxu0 %v5965_v53  ;;  %v1833_v54 = vrot.slane %v1831_v41, 1 }
  0x52   : > { %5616 = vmatpush3.bf16.msra.mxu0 %v5965_v53  ;;  %v1492_v53 = vrot.slane %v6425_v36, 1 }
  0x53   : > { %5617 = vmatprep.subr.bf16.mxu0 %v5967_v56 }
  0x55   : > { %5474 = vmatmul.mubr.bf16.vlgmr.msra.gmra.mxu1 %v6159_v15  ;;  %5530 = vmatmul.mubr.bf16.gmra.mxu0 %v1037_v58  ;;  %v1041_v15 = vsel %vm1028_vm1, %v1038_v57, %v1040_v62  ;;  %v1493_v57 = vrot.slane %v6408_v27, 1  ;;  %v1059_v58 = vsel %vm1028_vm1, %v1056_v38, %v1058_v45  ;;  %v6509_v38 = vld [vmem:[%s6132_s25 + $0x58] sm:$0xff]  }
  0x56   : > { %5562 = vmatpush3.bf16.msra.mxu1 %v5962_v42  ;;  %5477 = vmatprep.mubr.bf16.mxu1 %v6173_v25  ;;  %v5968_v25 = vld [vmem:[%s8122_s1 + $0xe0] sm:$0xff]   ;;  %v1834_v42 = vshll.u32 %v6425_v36, 16  ;;  %v5991_v36 = vld [vmem:[%s8122_s1 + $0x1a8] sm:$0xff]  }
  0x57   : > { %5563 = vmatprep.subr.bf16.mxu1 %v5964_v59  ;;  %5533 = vmatprep.mubr.bf16.mxu0 %v1039_v14  ;;  %v6448_v14 = vld [vmem:[%s6132_s25 + $0x20] sm:$0xff]  }
  0x58   : > { %5618 = vmatpush3.bf16.msra.mxu0 %v5967_v56  ;;  %v1836_v55 = vrot.slane %v1834_v42, 2  ;;  %v1841_v56 = vrot.slane %v1839_v43, 1 }
  0x59   : > { %5619 = vmatprep.subr.bf16.mxu0 %v5969_v61 }
  0x5a   : > { %5564 = vmatpush3.bf16.msra.mxu1 %v5964_v59  ;;  %v1844_v59 = vrot.slane %v1842_v48, 2  ;;  %v1837_v31 = vor.u32 %v1836_v55, %v1833_v54  ;;  %v6523_v54 = vld [vmem:[%s6132_s25 + $0x60] sm:$0xff]  }
  0x5b   : > { %5565 = vmatprep.subr.bf16.mxu1 %v5966_v63 }
  0x5c   : > { %5620 = vmatpush3.bf16.msra.mxu0 %v5969_v61  ;;  %v2279_v61 = vld [vmem:[%s6132_s25 + $0x8] sm:$0xc] }
  0x5d   : > { %5478 = vmatmul.mubr.bf16.gmra.mxu1 %v6190_v35  ;;  %5534 = vmatmul.mubr.bf16.gmra.mxu0 %v1041_v15  ;;  %v1045_v35 = vsel %vm1028_vm1, %v1042_v0, %v1044_v6  ;;  %v4888_v0 = vcombine.low %v2279_v61, %v1346_v26  ;;  %v1853_v15 = vrot.slane %v1851_v49, 2  ;;  %v6534_v61 = vld [vmem:[%s6132_s25 + $0x68] sm:$0xff]  }
  0x5e   : > { %5481 = vmatprep.mubr.bf16.mxu1 %v6203_v46  ;;  %5566 = vmatpush3.bf16.msra.mxu1 %v5966_v63  ;;  %v1047_v46 = vsel %vm1028_vm1, %v1044_v6, %v1046_v8  ;;  %v6453_v63 = vld [vmem:[%s6132_s25 + $0x28] sm:$0xff]   ;;  %v2306_v6 = vrot.slane %v6448_v14, 2 }
  0x5f   : > { %5537 = vmatprep.mubr.bf16.mxu0 %v1043_v2  ;;  %5567 = vmatprep.subr.bf16.mxu1 %v5968_v25  ;;  %v1857_v2 = vshrl.u32 %v6448_v14, 16  ;;  %v1866_v13 = vshrl.u32 %v6453_v63, 16 }
  0x60   : > { %5621 = vmatprep.subr.bf16.mxu0 %v5971_v3 }
  0x61   : > { %5622 = vmatpush3.bf16.msra.mxu0 %v5971_v3  ;;  %v6458_v3 = vld [vmem:[%s6132_s25 + $0x30] sm:$0xff]   ;;  %v1859_v18 = vrot.slane %v1857_v2, 1  ;;  %v1868_v43 = vrot.slane %v1866_v13, 1 }
  0x62   : > { %5568 = vmatpush3.bf16.msra.mxu1 %v5968_v25  ;;  %5623 = vmatprep.subr.bf16.mxu0 %v5973_v7  ;;  %v2301_v25 = vrot.slane %v4888_v0, 2  ;;  %v1878_v48 = vshll.u32 %v6458_v3, 16  ;;  %v2322_v0 = vrot.slane %v6523_v54, 2  ;;  %v6540_v2 = vld [vmem:[%s6132_s25 + $0x70] sm:$0xff]  }
  0x63   : > { %5569 = vmatprep.subr.bf16.mxu1 %v5970_v9 }
  0x65   : > { %5482 = vmatmul.mubr.bf16.gmra.mxu1 %v6221_v60  ;;  %5538 = vmatmul.mubr.bf16.gmra.mxu0 %v1045_v35  ;;  %v5977_v60 = vld [vmem:[%s8122_s1 + $0x100] sm:$0xff]   ;;  %v1860_v35 = vshll.u32 %v6448_v14, 16 }
  0x66   : > { %5485 = vmatprep.mubr.bf16.mxu1 %v6242_v17  ;;  %5541 = vmatprep.mubr.bf16.mxu0 %v1047_v46  ;;  %v1049_v17 = vsel %vm1028_vm1, %v1046_v8, %v1048_v16  ;;  %v6464_v8 = vld [vmem:[%s6132_s25 + $0x38] sm:$0xff]   ;;  %v6472_v46 = vld [vmem:[%s6132_s25 + $0x40] sm:$0xff]  }
  0x67   : > { %5570 = vmatpush3.bf16.msra.mxu1 %v5970_v9  ;;  %5624 = vmatpush3.bf16.msra.mxu0 %v5973_v7  ;;  %v1495_v7 = vrot.slane %v6413_v30, 1  ;;  %v6467_v9 = vsel %vm2300_vm2, %v2301_v25, %v2302_v32  ;;  %v1884_v55 = vshrl.u32 %v6464_v8, 16 }
  0x68   : > { %5571 = vmatprep.subr.bf16.mxu1 %v5972_v10  ;;  %5625 = vmatprep.subr.bf16.mxu0 %v5975_v12 }
  0x6b   : > { %5572 = vmatpush3.bf16.msra.mxu1 %v5972_v10  ;;  %5626 = vmatpush3.bf16.msra.mxu0 %v5975_v12 }
  0x6c   : > { %5573 = vmatprep.subr.bf16.mxu1 %v5974_v19  ;;  %5627 = vmatprep.subr.bf16.mxu0 %v5977_v60 }
  0x6d   : > { %5486 = vmatmul.mubr.bf16.gmra.mxu1 %v6257_v33  ;;  %5542 = vmatmul.mubr.bf16.gmra.mxu0 %v1049_v17  ;;  %v6420_v33 = vld [vmem:[%s8122_s1 + $0x178] sm:$0xff]   ;;  %v2312_v17 = vrot.slane %v6464_v8, 2 }
  0x6e   : > { %5489 = vmatprep.mubr.bf16.mxu1 %v6138_v4  ;;  %5545 = vmatprep.mubr.bf16.mxu0 %v1051_v20  ;;  %v2304_v4 = vrot.slane %v6413_v30, 2  ;;  %v6488_v20 = vld [vmem:[%s6132_s25 + $0x48] sm:$0xff]  }
  0x6f   : > { %5574 = vmatpush3.bf16.msra.mxu1 %v5974_v19  ;;  %5628 = vmatpush3.bf16.msra.mxu0 %v5977_v60  ;;  %v1497_v19 = vrot.slane %v6448_v14, 1  ;;  %v2310_v60 = vrot.slane %v6458_v3, 2 }
  0x70   : > { %5575 = vmatprep.subr.bf16.mxu1 %v5976_v21  ;;  %5717 = vmatprep.subr.bf16.mxu0 %v6402_v24  ;;  %v6429_v11 = vsel %vm2300_vm2, %v2302_v32, %v2304_v4  ;;  %v6475_v10 = vsel %vm2300_vm2, %v2304_v4, %v2306_v6  ;;  %v6500_v32 = vld [vmem:[%s6132_s25 + $0x50] sm:$0xff]  }
  0x71   : > { %v6497_v28 = vsel %vm2300_vm2, %v2310_v60, %v2312_v17  ;;  %v2318_v42 = vrot.slane %v6500_v32, 2 }
  0x73   : > { %5576 = vmatpush3.bf16.msra.mxu1 %v5976_v21  ;;  %v2314_v21 = vrot.slane %v6472_v46, 2 }
  0x74   : > { %5665 = vmatprep.subr.bf16.mxu1 %v6420_v33 }
  0x75   : > { %5490 = vmatmul.mubr.bf16.gmra.mxu1 %v6141_v5  ;;  %5546 = vmatmul.mubr.bf16.gmra.mxu0 %v1053_v34  ;;  %v1060_v5 = vrot.slane %v6266_v40, 1  ;;  %v6503_v4 = vsel %vm2300_vm2, %v2312_v17, %v2314_v21  ;;  %v1869_v34 = vshll.u32 %v6453_v63, 16 }
  0x76   : > { %5493 = vmatprep.mubr.bf16.mxu1 %v6170_v22  ;;  %5549 = vmatprep.mubr.bf16.mxu0 %v1055_v37  ;;  %v1848_v22 = vshrl.u32 %v6413_v30, 16  ;;  %v1499_v37 = vrot.slane %v6453_v63, 1 }
  0x77   : > { %v1063_v16 = vsel %vm1028_vm1, %v1060_v5, %v1062_v44  ;;  %v1862_v44 = vrot.slane %v1860_v35, 2  ;;  %v1871_v49 = vrot.slane %v1869_v34, 2  ;;  %v6551_v35 = vld [vmem:[%s6132_s25 + $0x78] sm:$0xff]   ;;  %v1902_v34 = vshrl.u32 %v6488_v20, 16 }
  0x78   : > { %v1850_v62 = vrot.slane %v1848_v22, 1  ;;  %v2320_v22 = vrot.slane %v6509_v38, 2 }
  0x79   : > { %v1863_v25 = vor.u32 %v1862_v44, %v1859_v18  ;;  %v2326_v18 = vrot.slane %v6540_v2, 2 }
  0x7d   : > { %5494 = vmatmul.mubr.bf16.gmra.mxu1 %v6180_v29  ;;  %5550 = vmatmul.mubr.bf16.gmra.mxu0 %v1057_v47  ;;  %v2308_v29 = vrot.slane %v6453_v63, 2 }
  0x7e   : > { %5497 = vmatprep.mubr.bf16.mxu1 %v6195_v39  ;;  %5553 = vmatprep.mubr.bf16.mxu0 %v1059_v58  ;;  %v1061_v39 = vsel %vm1028_vm1, %v1058_v45, %v1060_v5  ;;  %v1875_v45 = vshrl.u32 %v6458_v3, 16  ;;  %v6530_v58 = vsel %vm2300_vm2, %v2318_v42, %v2320_v22 }
  0x7f   : > { %v6478_v12 = vsel %vm2300_vm2, %v2306_v6, %v2308_v29  ;;  %v6494_v26 = vsel %vm2300_vm2, %v2308_v29, %v2310_v60  ;;  %v6543_v6 = vsel %vm2300_vm2, %v2320_v22, %v2322_v0  ;;  %v2324_v29 = vrot.slane %v6534_v61, 2  ;;  %v5985_v22 = vld [vmem:[%s8122_s1 + $0x170] sm:$0xff]  }
  0x80   : > { %v1494_v60 = vsel %vm1028_vm1, %v1492_v53, %v1493_v57  ;;  %v1872_v53 = vor.u32 %v1871_v49, %v1868_v43  ;;  %v1496_v49 = vsel %vm1028_vm1, %v1493_v57, %v1495_v7 }
  0x85   : > { %5498 = vmatmul.mubr.bf16.gmra.mxu1 %v6209_v50  ;;  %5554 = vmatmul.mubr.bf16.gmra.mxu0 %v1061_v39  ;;  %v1845_v50 = vor.u32 %v1844_v59, %v1841_v56  ;;  %v1887_v56 = vshll.u32 %v6464_v8, 16  ;;  %v1854_v59 = vor.u32 %v1853_v15, %v1850_v62  ;;  %v1877_v62 = vrot.slane %v1875_v45, 1 }
  0x86   : > { %5501 = vmatprep.mubr.bf16.mxu1 %v6230_v1  ;;  %5557 = vmatprep.mubr.bf16.mxu0 %v1063_v16  ;;  %v2316_v1 = vrot.slane %v6488_v20, 2  ;;  %v1880_v15 = vrot.slane %v1878_v48, 2  ;;  %v6554_v16 = vsel %vm2300_vm2, %v2322_v0, %v2324_v29  ;;  %v6581_v48 = vld [vmem:[%s6132_s25 + $0x88] sm:$0xff]   ;;  %v1498_v0 = vsel %vm1028_vm1, %v1495_v7, %v1497_v19 }
  0x87   : > { %v1846_v47 = vsel %vm1829_vm3, %v1837_v31, %v1845_v50  ;;  %v1855_v39 = vsel %vm1829_vm3, %v1845_v50, %v1854_v59  ;;  %v1864_v17 = vsel %vm1829_vm3, %v1854_v59, %v1863_v25  ;;  %v1889_v44 = vrot.slane %v1887_v56, 2 }
  0x88   : > { %v6512_v41 = vsel %vm2300_vm2, %v2314_v21, %v2316_v1  ;;  %v6519_v5 = vsel %vm2300_vm2, %v2316_v1, %v2318_v42  ;;  %v1886_v21 = vrot.slane %v1884_v55, 1  ;;  %v6564_v50 = vsel %vm2300_vm2, %v2324_v29, %v2326_v18  ;;  %v6574_v42 = vld [vmem:[%s6132_s25 + $0x80] sm:$0xff]  }
  0x89   : > { %v2328_v1 = vrot.slane %v6551_v35, 2  ;;  %v2330_v43 = vrot.slane %v6574_v42, 2  ;;  %v1873_v55 = vsel %vm1829_vm3, %v1863_v25, %v1872_v53  ;;  %v1914_v56 = vshll.u32 %v6500_v32, 16 }
  0x8a   : > { %v2332_v59 = vrot.slane %v6581_v48, 2  ;;  %v1890_v25 = vor.u32 %v1889_v44, %v1886_v21  ;;  %v8125_v29 = vrot.slane %v6472_v46, 1  ;;  %v1929_v21 = vshrl.u32 %v6523_v54, 16  ;;  %v6632_v44 = vld [vmem:[%s6132_s25 + $0x90] sm:$0xff]  }
  0x8b   : > { %v6577_v45 = vsel %vm2300_vm2, %v2326_v18, %v2328_v1  ;;  %v6604_v27 = vsel %vm2300_vm2, %v2328_v1, %v2330_v43  ;;  %v1923_v18 = vshll.u32 %v6509_v38, 16  ;;  %v2618_v1 = vld [vmem:[%s6132_s25 + $0x14] sm:$0xf] }
  0x8d   : > { %5502 = vmatmul.mubr.bf16.gmra.mxu1 %v6247_v23  ;;  %5558 = vmatmul.mubr.bf16.gmra.mxu0 %v6331_v51  ;;  %v1893_v23 = vshrl.u32 %v6472_v46, 16  ;;  %v1896_v51 = vshll.u32 %v6472_v46, 16 }
  0x8e   : > { %5505 = vmatprep.mubr.bf16.mxu1 %v6266_v40  ;;  %5629 = vmatprep.mubr.bf16.mxu0 %v1846_v47  ;;  %v5986_v40 = vld [vmem:[%s8122_s1 + $0x1b0] sm:$0xff]   ;;  %v1881_v47 = vor.u32 %v1880_v15, %v1877_v62  ;;  %v1916_v15 = vrot.slane %v1914_v56, 2  ;;  %v5993_v56 = vld [vmem:[%s8122_s1 + $0x160] sm:$0xff]  }
  0x8f   : > { %v1895_v13 = vrot.slane %v1893_v23, 1  ;;  %v1898_v31 = vrot.slane %v1896_v51, 2  ;;  %v1501_v23 = vrot.slane %v6458_v3, 1  ;;  %v1503_v51 = vrot.slane %v6464_v8, 1  ;;  %v5996_v8 = vld [vmem:[%s8122_s1 + $0x1a0] sm:$0xff]  }
  0x90   : > { %v1882_v57 = vsel %vm1829_vm3, %v1872_v53, %v1881_v47  ;;  %v1904_v3 = vrot.slane %v1902_v34, 1  ;;  %v1891_v14 = vsel %vm1829_vm3, %v1881_v47, %v1890_v25 }
  0x91   : > { %v6611_v30 = vor.u32 %v1898_v31, %v1895_v13  ;;  %v6635_v13 = vld [vmem:[%s6132_s25 + $0x98] ss:$0 sps:$4 sm:$0x33]   ;;  %v6644_v63 = vsel %vm1028_vm1, %v1503_v51, %v8125_v29  ;;  %v2617_v31 = vld [vmem:[%s6132_s25 + $0x10] sm:$0xc] }
  0x93   : > { %v1900_v53 = vsel %vm1829_vm3, %v1890_v25, %v6611_v30 }
  0x95   : > { %5506 = vmatmul.mubr.bf16.gmra.mxu1 %v6278_v52  ;;  %5630 = vmatmul.mubr.bf16.vlgmr.msra.gmra.mxu0 %v1855_v39  ;;  %v1905_v52 = vshll.u32 %v6488_v20, 16  ;;  %v1920_v39 = vshrl.u32 %v6509_v38, 16 }
  0x96   : > { %5577 = vmatprep.mubr.bf16.mxu1 %v1494_v60  ;;  %5718 = vmatpush3.bf16.msra.mxu0 %v6402_v24  ;;  %v1911_v24 = vshrl.u32 %v6500_v32, 16  ;;  %v1500_v60 = vsel %vm1028_vm1, %v1497_v19, %v1499_v37  ;;  %v6639_v19 = vsel %vm1028_vm1, %v1501_v23, %v1503_v51  ;;  %v6663_v51 = vld [vmem:[%s6132_s25 + $0x18] sm:$0xff]  }
  0x97   : > { %5633 = vmatprep.mubr.bf16.mxu0 %v1864_v17  ;;  %5719 = vmatprep.subr.bf16.mxu0 %v5986_v40  ;;  %v1907_v7 = vrot.slane %v1905_v52, 2  ;;  %v5989_v17 = vld [vmem:[%s8122_s1 + $0x168] sm:$0xff]   ;;  %v2334_v52 = vrot.slane %v6632_v44, 2 }
  0x98   : > { %v1913_v62 = vrot.slane %v1911_v24, 1  ;;  %v1922_v24 = vrot.slane %v1920_v39, 1 }
  0x99   : > { %v1908_v34 = vor.u32 %v1907_v7, %v1904_v3  ;;  %v1938_v3 = vshrl.u32 %v6534_v61, 16  ;;  %v1941_v7 = vshll.u32 %v6534_v61, 16 }
  0x9a   : > { %5720 = vmatpush3.bf16.msra.mxu0 %v5986_v40  ;;  %v6609_v40 = vsel %vm2300_vm2, %v2330_v43, %v2332_v59  ;;  %v1925_v43 = vrot.slane %v1923_v18, 2  ;;  %v3574_v18 = vrot.slane %v6663_v51, 3 }
  0x9b   : > { %5721 = vmatprep.subr.bf16.mxu0 %v5991_v36  ;;  %v1909_v47 = vsel %vm1829_vm3, %v6611_v30, %v1908_v34  ;;  %v1947_v30 = vshrl.u32 %v6540_v2, 16 }
  0x9d   : > { %5578 = vmatmul.mubr.bf16.vlgmr.msra.gmra.mxu1 %v1496_v49  ;;  %5634 = vmatmul.mubr.bf16.gmra.mxu0 %v1873_v55  ;;  %v2336_v49 = vrot.slane %v6635_v13, 2  ;;  %v3551_v55 = vld [vmem:[%s6132_s25 + $0x10] sm:$0x8] }
  0x9e   : > { %5666 = vmatpush3.bf16.msra.mxu1 %v6420_v33  ;;  %5581 = vmatprep.mubr.bf16.mxu1 %v1498_v0  ;;  %v1502_v33 = vsel %vm1028_vm1, %v1499_v37, %v1501_v23  ;;  %v1932_v37 = vshll.u32 %v6523_v54, 16  ;;  %v1931_v0 = vrot.slane %v1929_v21, 1  ;;  %v6660_v23 = vcombine.low %v2617_v31, %v2618_v1 }
  0x9f   : > { %5667 = vmatprep.subr.bf16.mxu1 %v5985_v22  ;;  %5637 = vmatprep.mubr.bf16.mxu0 %v1882_v57  ;;  %v4981_v57 = vcombine.low %v3551_v55, %v2618_v1  ;;  %v6677_v39 = vsel %vm2300_vm2, %v2334_v52, %v2336_v49  ;;  %v3111_v1 = vshrl.u32 %v6663_v51, 16 }
  0xa0   : > { %5722 = vmatpush3.bf16.msra.mxu0 %v5991_v36  ;;  %v6653_v36 = vor.u32 %v1916_v15, %v1913_v62  ;;  %v1934_v25 = vrot.slane %v1932_v37, 2  ;;  %v6000_v62 = vld [vmem:[%s8122_s1 + $0x198] sm:$0xff]   ;;  %v6674_v15 = vld [vmem:[%s6132_s25 + $0x20] sm:$0xff]   ;;  %8136 = vst [vmem:[#allocation4_spill] sm:$0xff] %v6677_v39  ;;  %v3106_v21 = vshll.u32 %v6660_v23, 16  ;;  %v6004_v37 = vld [vmem:[%s8122_s1 + $0x190] sm:$0xff]  }
  0xa1   : > { %5723 = vmatprep.subr.bf16.mxu0 %v5996_v8  ;;  %v3576_v31 = vrot.slane %v6674_v15, 3  ;;  %v3120_v49 = vshrl.u32 %v6674_v15, 16 }
  0xa2   : > { %5668 = vmatpush3.bf16.msra.mxu1 %v5985_v22  ;;  %v6666_v22 = vsel %vm2300_vm2, %v2332_v59, %v2334_v52  ;;  %v3573_v59 = vrot.slane %v4981_v57, 3  ;;  %v3108_v52 = vrot.slane %v3106_v21, 3  ;;  %v3113_v57 = vrot.slane %v3111_v1, 2 }
  0xa3   : > { %5669 = vmatprep.subr.bf16.mxu1 %v5989_v17  ;;  %8135 = vst [vmem:[#allocation3_spill] sm:$0xff] %v6666_v22  ;;  %v6696_v55 = vsel %vm3572_vm4, %v3574_v18, %v3576_v31  ;;  %v1926_v21 = vor.u32 %v1925_v43, %v1922_v24  ;;  %v1918_v1 = vsel %vm1829_vm3, %v1908_v34, %v6653_v36  ;;  %v6706_v22 = vld [vmem:[%s6132_s25 + $0x28] sm:$0xff]   ;;  %v6003_v24 = vld [vmem:[%s8122_s1 + $0x150] sm:$0xff]  }
  0xa4   : > { %5724 = vmatpush3.bf16.msra.mxu0 %v5996_v8  ;;  %v3103_v8 = vshrl.u32 %v6660_v23, 16  ;;  %8138 = vst [vmem:[#allocation6_spill] sm:$0xff] %v6696_v55  ;;  %v6718_v34 = vld [vmem:[%s6132_s25 + $0x30] sm:$0xff]  }
  0xa5   : > { %5582 = vmatmul.mubr.bf16.gmra.mxu1 %v1500_v60  ;;  %5638 = vmatmul.mubr.bf16.gmra.mxu0 %v1891_v14  ;;  %v3114_v60 = vshll.u32 %v6663_v51, 16  ;;  %v5998_v14 = vld [vmem:[%s8122_s1 + $0x158] sm:$0xff]   ;;  %v1927_v39 = vsel %vm1829_vm3, %v6653_v36, %v1926_v21 }
  0xa6   : > { %5585 = vmatprep.mubr.bf16.mxu1 %v1502_v33  ;;  %5670 = vmatpush3.bf16.msra.mxu1 %v5989_v17  ;;  %v6692_v33 = vsel %vm3572_vm4, %v3573_v59, %v3574_v18  ;;  %v3105_v17 = vrot.slane %v3103_v8, 2  ;;  %v3122_v8 = vrot.slane %v3120_v49, 2  ;;  %v3580_v49 = vrot.slane %v6718_v34, 3 }
  0xa7   : > { %5641 = vmatprep.mubr.bf16.mxu0 %v1900_v53  ;;  %5671 = vmatprep.subr.bf16.mxu1 %v5993_v56  ;;  %8137 = vst [vmem:[#allocation5_spill] sm:$0xff] %v6692_v33  ;;  %v3116_v29 = vrot.slane %v3114_v60, 3  ;;  %v3123_v53 = vshll.u32 %v6674_v15, 16  ;;  %v1940_v60 = vrot.slane %v1938_v3, 1  ;;  %v1943_v33 = vrot.slane %v1941_v7, 2 }
  0xa8   : > { %5725 = vmatprep.subr.bf16.mxu0 %v6000_v62  ;;  %v3109_v59 = vor.u32 %v3108_v52, %v3105_v17  ;;  %v3129_v7 = vshrl.u32 %v6706_v22, 16  ;;  %v3132_v17 = vshll.u32 %v6706_v22, 16 }
  0xa9   : > { %5726 = vmatpush3.bf16.msra.mxu0 %v6000_v62  ;;  %v3117_v18 = vor.u32 %v3116_v29, %v3113_v57  ;;  %v3125_v55 = vrot.slane %v3123_v53, 3  ;;  %v6708_v62 = vor.u32 %v1934_v25, %v1931_v0  ;;  %v6008_v29 = vld [vmem:[%s8122_s1 + $0x188] sm:$0xff]   ;;  %v1956_v0 = vshrl.u32 %v6551_v35, 16 }
  0xaa   : > { %5672 = vmatpush3.bf16.msra.mxu1 %v5993_v56  ;;  %5727 = vmatprep.subr.bf16.mxu0 %v6004_v37  ;;  %v1950_v56 = vshll.u32 %v6540_v2, 16  ;;  %v3578_v25 = vrot.slane %v6706_v22, 3  ;;  %v3131_v53 = vrot.slane %v3129_v7, 2  ;;  %v1511_v7 = vrot.slane %v6509_v38, 1 }
  0xab   : > { %5673 = vmatprep.subr.bf16.mxu1 %v5998_v14  ;;  %v6721_v43 = vsel %vm3101_vm5, %v3109_v59, %v3117_v18  ;;  %v3126_v3 = vor.u32 %v3125_v55, %v3122_v8  ;;  %v3138_v55 = vshrl.u32 %v6718_v34, 16  ;;  %v3134_v59 = vrot.slane %v3132_v17, 3 }
  0xac   : > { %v6736_v57 = vsel %vm3572_vm4, %v3576_v31, %v3578_v25  ;;  %v1952_v8 = vrot.slane %v1950_v56, 2  ;;  %v1959_v38 = vshll.u32 %v6551_v35, 16 }
  0xad   : > { %5586 = vmatmul.mubr.bf16.gmra.mxu1 %v6639_v19  ;;  %5642 = vmatmul.mubr.bf16.gmra.mxu0 %v1909_v47  ;;  %v6730_v52 = vsel %vm3101_vm5, %v3117_v18, %v3126_v3  ;;  %v3141_v19 = vshll.u32 %v6718_v34, 16  ;;  %v1949_v47 = vrot.slane %v1947_v30, 1  ;;  %8140 = vst [vmem:[#allocation8_spill] sm:$0xff] %v6736_v57  ;;  %v6013_v18 = vld [vmem:[%s8122_s1 + $0x180] sm:$0xff]   ;;  %v8143_v30 = vrot.slane %v6472_v46, 1 }
  0xae   : > { %5589 = vmatprep.mubr.bf16.mxu1 %v6644_v63  ;;  %5645 = vmatprep.mubr.bf16.mxu0 %v1918_v1  ;;  %8139 = vst [vmem:[#allocation7_spill] sm:$0xff] %v6730_v52  ;;  %v6007_v63 = vld [vmem:[%s8122_s1 + $0x148] sm:$0xff]   ;;  %v8142_v1 = vrot.slane %v6488_v20, 1  ;;  %v3135_v17 = vor.u32 %v3134_v59, %v3131_v53  ;;  %v8144_v52 = vrot.slane %v6500_v32, 1  ;;  %v1936_v46 = vsel %vm1829_vm3, %v1926_v21, %v6708_v62  ;;  %v6765_v53 = vld [vmem:[%s6132_s25 + $0x38] sm:$0xff]   ;;  %v6011_v21 = vld [vmem:[%s8122_s1 + $0x140] sm:$0xff]  }
  0xaf   : > { %5674 = vmatpush3.bf16.msra.mxu1 %v5998_v14  ;;  %5728 = vmatpush3.bf16.msra.mxu0 %v6004_v37  ;;  %v6745_v14 = vsel %vm3572_vm4, %v3578_v25, %v3580_v49  ;;  %v3140_v37 = vrot.slane %v3138_v55, 2  ;;  %v3143_v31 = vrot.slane %v3141_v19, 3  ;;  %v6770_v20 = vor.u32 %v1952_v8, %v1949_v47 }
  0xb0   : > { %5675 = vmatprep.subr.bf16.mxu1 %v6003_v24  ;;  %5729 = vmatprep.subr.bf16.mxu0 %v6008_v29  ;;  %8141 = vst [vmem:[#allocation9_spill] sm:$0xff] %v6745_v14  ;;  %v1508_v56 = vsel %vm1028_vm1, %v8143_v30, %v8142_v1  ;;  %v8145_v57 = vmov %v8142_v1  ;;  %v1944_v1 = vor.u32 %v1943_v33, %v1940_v60  ;;  %v6779_v33 = vld [vmem:[%s8122_s1 + $0x238] sm:$0xff]   ;;  %v6782_v60 = vld [vmem:[%s6132_s25 + $0x40] sm:$0xff]   ;;  %v3150_v47 = vshll.u32 %v6765_v53, 16  ;;  %v3891_v30 = vld [vmem:[%s8123_s2 + $0x10] sm:$0xff] }
  0xb1   : > { %v1510_v25 = vsel %vm1028_vm1, %v8145_v57, %v8144_v52  ;;  %v3144_v19 = vor.u32 %v3143_v31, %v3140_v37  ;;  %v6768_v36 = vsel %vm3101_vm5, %v3126_v3, %v3135_v17  ;;  %v1958_v52 = vrot.slane %v1956_v0, 1 }
  0xb2   : > { %8146 = vst [vmem:[#allocation10_spill] sm:$0xff] %v6768_v36  ;;  %v1965_v57 = vshrl.u32 %v6574_v42, 16  ;;  %v3582_v3 = vrot.slane %v6765_v53, 3  ;;  %v3147_v0 = vshrl.u32 %v6765_v53, 16  ;;  %v3584_v59 = vrot.slane %v6782_v60, 3 }
  0xb3   : > { %5676 = vmatpush3.bf16.msra.mxu1 %v6003_v24  ;;  %5730 = vmatpush3.bf16.msra.mxu0 %v6008_v29  ;;  %v6785_v24 = vsel %vm3101_vm5, %v3135_v17, %v3144_v19  ;;  %v1968_v29 = vshll.u32 %v6574_v42, 16  ;;  %v3156_v8 = vshrl.u32 %v6782_v60, 16  ;;  %v3159_v37 = vshll.u32 %v6782_v60, 16 }
  0xb4   : > { %5677 = vmatprep.subr.bf16.mxu1 %v6007_v63  ;;  %5731 = vmatprep.subr.bf16.mxu0 %v6013_v18  ;;  %8147 = vst [vmem:[#allocation11_spill] sm:$0xff] %v6785_v24  ;;  %v1961_v31 = vrot.slane %v1959_v38, 2  ;;  %v3149_v17 = vrot.slane %v3147_v0, 2  ;;  %v1967_v24 = vrot.slane %v1965_v57, 1  ;;  %v6078_v0 = vmov 0  }
  0xb5   : > { %5590 = vmatmul.mubr.bf16.gmra.mxu1 %v1508_v56  ;;  %5646 = vmatmul.mubr.bf16.gmra.mxu0 %v1927_v39  ;;  %v3889_v39 = vld [vmem:[%s8123_s2] sm:$0xff]  ;;  %v6801_v56 = vsel %vm3572_vm4, %v3580_v49, %v3582_v3  ;;  %v3158_v38 = vrot.slane %v3156_v8, 2  ;;  %v3161_v55 = vrot.slane %v3159_v37, 3  ;;  %v1970_v49 = vrot.slane %v1968_v29, 2 }
  0xb6   : > { %5593 = vmatprep.mubr.bf16.mxu1 %v1510_v25  ;;  %5649 = vmatprep.mubr.bf16.mxu0 %v1936_v46  ;;  %8148 = vst [vmem:[#allocation12_spill] sm:$0xff] %v6801_v56  ;;  %v3152_v25 = vrot.slane %v3150_v47, 3  ;;  %v1974_v46 = vshrl.u32 %v6581_v48, 16  ;;  %v8149_v56 = vrot.slane %v6500_v32, 1  ;;  %v1945_v14 = vsel %vm1829_vm3, %v6708_v62, %v1944_v1 }
  0xb7   : > { %5678 = vmatpush3.bf16.msra.mxu1 %v6007_v63  ;;  %5732 = vmatpush3.bf16.msra.mxu0 %v6013_v18  ;;  %v6807_v63 = vld [vmem:[%s8122_s1 + $0x1f8] sm:$0xff]   ;;  %v6811_v18 = vsel %vm3572_vm4, %v3582_v3, %v3584_v59  ;;  %v1515_v3 = vrot.slane %v6534_v61, 1  ;;  %v3162_v8 = vor.u32 %v3161_v55, %v3158_v38  ;;  %v8150_v57 = vrot.slane %v6523_v54, 1  ;;  %v6834_v55 = vld [vmem:[%s6132_s25 + $0x50] sm:$0xff]  }
  0xb8   : > { %5679 = vmatprep.subr.bf16.mxu1 %v6011_v21  ;;  %5821 = vmatprep.subr.bf16.mxu0 %v6779_v33  ;;  %v3153_v47 = vor.u32 %v3152_v25, %v3149_v17  ;;  %v1512_v36 = vsel %vm1028_vm1, %v8149_v56, %v1511_v7  ;;  %v1954_v37 = vsel %vm1829_vm3, %v1944_v1, %v6770_v20  ;;  %v1517_v32 = vrot.slane %v6540_v2, 1  ;;  %v6826_v56 = vld [vmem:[%s6132_s25 + $0x48] sm:$0xff]   ;;  %v3892_v1 = vld [vmem:[%s8123_s2 + $0x18] sm:$0xff] }
  0xb9   : > { %5916 = vset.pattern.permute.xlu0 %v6078_v0  ;;  %5917 = vset.pattern.permute.xlu1 %v6078_v0  ;;  %v1514_v29 = vsel %vm1028_vm1, %v1511_v7, %v8150_v57  ;;  %v1962_v62 = vor.u32 %v1961_v31, %v1958_v52  ;;  %v1976_v61 = vrot.slane %v1974_v46, 1  ;;  %v3890_v7 = vld [vmem:[%s8123_s2 + $0x8] sm:$0xff]  ;;  %v3586_v52 = vrot.slane %v6826_v56, 3  ;;  %v3893_v57 = vld [vmem:[%s8123_s2 + $0x20] sm:$0xff] }
  0xba   : > { %3927 = vperm.xlu0 %5916, %v3889_v39   ;;  %3937 = vperm.xlu1 %5917, %v3891_v30   ;;  %v6829_v17 = vsel %vm3101_vm5, %v3144_v19, %v3153_v47  ;;  %v1977_v39 = vshll.u32 %v6581_v48, 16  ;;  %v6845_v19 = vor.u32 %v1970_v49, %v1967_v24  ;;  %v3165_v31 = vshrl.u32 %v6826_v56, 16 }
  0xbb   : > { %5680 = vmatpush3.bf16.msra.mxu1 %v6011_v21  ;;  %v6843_v21 = vsel %vm3101_vm5, %v3153_v47, %v3162_v8  ;;  %v3168_v30 = vshll.u32 %v6826_v56, 16  ;;  %v1983_v25 = vshrl.u32 %v6632_v44, 16  ;;  %v3588_v46 = vrot.slane %v6834_v55, 3 }
  0xbc   : > { %5769 = vmatprep.subr.bf16.mxu1 %v6807_v63  ;;  %8151 = vst [vmem:[#allocation13_spill] sm:$0xff] %v6843_v21  ;;  %v3174_v38 = vshrl.u32 %v6834_v55, 16  ;;  %v3177_v0 = vshll.u32 %v6834_v55, 16  ;;  %v3167_v24 = vrot.slane %v3165_v31, 2  ;;  %v1979_v47 = vrot.slane %v1977_v39, 2 }
  0xbd   : > { %5594 = vmatmul.mubr.bf16.gmra.mxu1 %v1512_v36  ;;  %5650 = vmatmul.mubr.bf16.gmra.mxu0 %v1945_v14  ;;  %v1986_v14 = vshll.u32 %v6632_v44, 16  ;;  %v6856_v36 = vsel %vm3572_vm4, %v3584_v59, %v3586_v52  ;;  %v3170_v49 = vrot.slane %v3168_v30, 3  ;;  %v8154_v31 = vrot.slane %v6523_v54, 1 }
  0xbe   : > { %5597 = vmatprep.mubr.bf16.mxu1 %v1514_v29  ;;  %5653 = vmatprep.mubr.bf16.mxu0 %v1954_v37  ;;  %8152 = vst [vmem:[#allocation14_spill] sm:$0xff] %v6856_v36  ;;  %v3894_v29 = vld [vmem:[%s8123_s2 + $0x28] sm:$0xff]  ;;  %v6865_v37 = vsel %vm3572_vm4, %v3586_v52, %v3588_v46  ;;  %v1963_v39 = vsel %vm1829_vm3, %v6770_v20, %v1962_v62 }
  0xbf   : > { %3932 = vperm.xlu0 %5916, %v3890_v7   ;;  %3942 = vperm.xlu1 %5917, %v3892_v1   ;;  %8153 = vst [vmem:[#allocation15_spill] sm:$0xff] %v6865_v37  ;;  %v3176_v7 = vrot.slane %v3174_v38, 2  ;;  %v3179_v1 = vrot.slane %v3177_v0, 3  ;;  %v3171_v59 = vor.u32 %v3170_v49, %v3167_v24  ;;  %v1516_v30 = vsel %vm1028_vm1, %v8154_v31, %v1515_v3  ;;  %v6878_v0 = vld [vmem:[%s6132_s25 + $0x58] sm:$0xff]   ;;  %v6886_v31 = vld [vmem:[%s6132_s25 + $0x60] sm:$0xff]  }
  0xc0   : > { %v1518_v21 = vsel %vm1028_vm1, %v1515_v3, %v1517_v32  ;;  %v1972_v52 = vsel %vm1829_vm3, %v1962_v62, %v6845_v19  ;;  %v1985_v37 = vrot.slane %v1983_v25, 1  ;;  %v1988_v38 = vrot.slane %v1986_v14, 2  ;;  %v3895_v3 = vld [vmem:[%s8123_s2 + $0x30] sm:$0xff]  ;;  %v3896_v62 = vld [vmem:[%s8123_s2 + $0x38] sm:$0xff] }
  0xc1   : > { %v3180_v36 = vor.u32 %v3179_v1, %v3176_v7  ;;  %v6881_v54 = vsel %vm3101_vm5, %v3162_v8, %v3171_v59  ;;  %v1519_v24 = vrot.slane %v6551_v35, 1  ;;  %v1980_v20 = vor.u32 %v1979_v47, %v1976_v61 }
  0xc2   : > { %v1992_v35 = vshrl.u32 %v6635_v13, 16  ;;  %v3590_v8 = vrot.slane %v6878_v0, 3  ;;  %v3183_v61 = vshrl.u32 %v6878_v0, 16  ;;  %v3186_v14 = vshll.u32 %v6878_v0, 16 }
  0xc3   : > { %3947 = vperm.xlu0 %5916, %v3893_v57   ;;  %3952 = vperm.xlu1 %5917, %v3894_v29   ;;  %v6895_v25 = vsel %vm3101_vm5, %v3171_v59, %v3180_v36  ;;  %v1995_v47 = vshll.u32 %v6635_v13, 16  ;;  %v3592_v57 = vrot.slane %v6886_v31, 3  ;;  %v3192_v29 = vshrl.u32 %v6886_v31, 16  ;;  %v3898_v13 = vld [vmem:[%s8123_s2 + $0x48] sm:$0xff] }
  0xc4   : > { %8155 = vst [vmem:[#allocation16_spill] sm:$0xff] %v6895_v25  ;;  %v3195_v7 = vshll.u32 %v6886_v31, 16  ;;  %v1989_v1 = vor.u32 %v1988_v38, %v1985_v37  ;;  %v6906_v59 = vsel %vm3572_vm4, %v3588_v46, %v3590_v8  ;;  %v1520_v46 = vsel %vm1028_vm1, %v1517_v32, %v1519_v24 }
  0xc5   : > { %5598 = vmatmul.mubr.bf16.gmra.mxu1 %v1516_v30  ;;  %5654 = vmatmul.mubr.bf16.gmra.mxu0 %v1963_v39  ;;  %8156 = vst [vmem:[#allocation17_spill] sm:$0xff] %v6906_v59  ;;  %v3185_v30 = vrot.slane %v3183_v61, 2  ;;  %v3188_v39 = vrot.slane %v3186_v14, 3  ;;  %v3194_v37 = vrot.slane %v3192_v29, 2  ;;  %v1994_v61 = vrot.slane %v1992_v35, 1  ;;  %v6927_v29 = vld [vmem:[%s6132_s25 + $0x68] sm:$0xff]  }
  0xc6   : > { %5601 = vmatprep.mubr.bf16.mxu1 %v1518_v21  ;;  %5657 = vmatprep.mubr.bf16.mxu0 %v1972_v52  ;;  %v3897_v21 = vld [vmem:[%s8123_s2 + $0x40] sm:$0xff]  ;;  %v6915_v52 = vsel %vm3572_vm4, %v3590_v8, %v3592_v57  ;;  %v3197_v38 = vrot.slane %v3195_v7, 3  ;;  %v1997_v14 = vrot.slane %v1995_v47, 2  ;;  %v8157_v25 = vrot.slane %v6574_v42, 1  ;;  %v6935_v35 = vld [vmem:[%s6132_s25 + $0x70] sm:$0xff]  }
  0xc7   : > { %3957 = vperm.xlu0 %5916, %v3895_v3   ;;  %3962 = vperm.xlu1 %5917, %v3896_v62   ;;  %v3189_v3 = vor.u32 %v3188_v39, %v3185_v30  ;;  %v1981_v62 = vsel %vm1829_vm3, %v6845_v19, %v1980_v20  ;;  %v1990_v8 = vsel %vm1829_vm3, %v1980_v20, %v1989_v1  ;;  %v1523_v32 = vrot.slane %v6581_v48, 1  ;;  %v3899_v47 = vld [vmem:[%s8123_s2 + $0x50] sm:$0xff] }
  0xc8   : > { %v3198_v49 = vor.u32 %v3197_v38, %v3194_v37  ;;  %v1522_v59 = vsel %vm1028_vm1, %v1519_v24, %v8157_v25  ;;  %v1525_v19 = vrot.slane %v6632_v44, 1  ;;  %v3900_v24 = vld [vmem:[%s8123_s2 + $0x58] sm:$0xff]  ;;  %v3594_v48 = vrot.slane %v6927_v29, 3 }
  0xc9   : > { %v6930_v2 = vsel %vm3101_vm5, %v3180_v36, %v3189_v3  ;;  %v2765_v36 = vrot.slane %v6663_v51, 2  ;;  %v3201_v44 = vshrl.u32 %v6927_v29, 16  ;;  %v3204_v25 = vshll.u32 %v6927_v29, 16 }
  0xca   : > { %v6944_v20 = vsel %vm3101_vm5, %v3189_v3, %v3198_v49  ;;  %v1998_v7 = vor.u32 %v1997_v14, %v1994_v61  ;;  %v8126_v30 = vrot.slane %v6935_v35, 3  ;;  %v3210_v39 = vshrl.u32 %v6935_v35, 16 }
  0xcb   : > { %3967 = vperm.xlu0 %5916, %v3897_v21   ;;  %3972 = vperm.xlu1 %5917, %v3898_v13   ;;  %v3213_v21 = vshll.u32 %v6935_v35, 16  ;;  %v2764_v13 = vrot.slane %v6660_v23, 2  ;;  %v6955_v51 = vsel %vm3572_vm4, %v3592_v57, %v3594_v48  ;;  %v3203_v37 = vrot.slane %v3201_v44, 2 }
  0xcc   : > { %v3206_v38 = vrot.slane %v3204_v25, 3  ;;  %v6966_v3 = vsel %vm3572_vm4, %v3594_v48, %v8126_v30  ;;  %v3212_v23 = vrot.slane %v3210_v39, 2  ;;  %v8158_v57 = vrot.slane %v6574_v42, 1  ;;  %v3903_v42 = vld [vmem:[%s8123_s2 + $0x70] sm:$0xff] }
  0xcd   : > { %5602 = vmatmul.mubr.bf16.gmra.mxu1 %v1520_v46  ;;  %5658 = vmatmul.mubr.bf16.gmra.mxu0 %v1981_v62  ;;  %v3902_v46 = vld [vmem:[%s8123_s2 + $0x68] sm:$0xff]  ;;  %v3215_v62 = vrot.slane %v3213_v21, 3  ;;  %v1526_v44 = vsel %vm1028_vm1, %v1523_v32, %v1525_v19  ;;  %v2766_v25 = vsel %vm2300_vm2, %v2764_v13, %v2765_v36  ;;  %v2769_v39 = vrot.slane %v6706_v22, 2  ;;  %v3905_v21 = vld [vmem:[%s8123_s2 + $0x80] sm:$0xff] }
  0xce   : > { %5605 = vmatprep.mubr.bf16.mxu1 %v1522_v59  ;;  %5661 = vmatprep.mubr.bf16.mxu0 %v1990_v8  ;;  %v3901_v59 = vld [vmem:[%s8123_s2 + $0x60] sm:$0xff]  ;;  %v3207_v61 = vor.u32 %v3206_v38, %v3203_v37  ;;  %v1524_v14 = vsel %vm1028_vm1, %v8158_v57, %v1523_v32  ;;  %v1999_v8 = vsel %vm1829_vm3, %v1989_v1, %v1998_v7  ;;  %v3904_v1 = vld [vmem:[%s8123_s2 + $0x78] sm:$0xff]  ;;  %v3906_v13 = vld [vmem:[%s8123_s2 + $0x88] sm:$0xff] }
  0xcf   : > { %3977 = vperm.xlu0 %5916, %v3899_v47   ;;  %3982 = vperm.xlu1 %5917, %v3900_v24   ;;  %v6012_v47 = vld [vmem:[%s6132_s25 + $0x98] ss:$0 sps:$4 sm:$0x11]   ;;  %v6973_v24 = vor.u32 %v3215_v62, %v3212_v23  ;;  %v2773_v23 = vrot.slane %v6765_v53, 2  ;;  %v3909_v62 = vld [vmem:[%s8123_s2 + $0xa0] sm:$0xff]  ;;  %v3911_v57 = vld [vmem:[%s8123_s2 + $0xb0] sm:$0xff] }
  0xd0   : > { %v6978_v48 = vsel %vm3101_vm5, %v3198_v49, %v3207_v61  ;;  %v1527_v32 = vrot.slane %v6012_v47, 1  ;;  %v2767_v49 = vrot.slane %v6674_v15, 2  ;;  %v6023_v15 = vld [vmem:[%s8122_s1 + $0x230] sm:$0xff]   ;;  %v2777_v47 = vrot.slane %v6826_v56, 2  ;;  %v6037_v56 = vld [vmem:[%s8122_s1 + $0x218] sm:$0xff]  }
  0xd1   : > { %8159 = vst [vmem:[#allocation18_spill] sm:$0xff] %v6973_v24  ;;  %8160 = vst [vmem:[#allocation19_spill] sm:$0xff] %v6978_v48  ;;  %v6988_v7 = vsel %vm3101_vm5, %v3207_v61, %v6973_v24  ;;  %v6033_v61 = vld [vmem:[%s8122_s1 + $0x220] sm:$0xff]  }
  0xd2   : > { %8161 = vst [vmem:[#allocation20_spill] sm:$0xff] %v6988_v7  ;;  %v1528_v37 = vsel %vm1028_vm1, %v1525_v19, %v1527_v32  ;;  %v2768_v38 = vsel %vm2300_vm2, %v2765_v36, %v2767_v49  ;;  %v2770_v22 = vsel %vm2300_vm2, %v2767_v49, %v2769_v39  ;;  %v3908_v19 = vld [vmem:[%s8123_s2 + $0x98] sm:$0xff]  ;;  %v2771_v36 = vrot.slane %v6718_v34, 2  ;;  %v6041_v49 = vld [vmem:[%s8122_s1 + $0x210] sm:$0xff]  }
  0xd3   : > { %3987 = vperm.xlu0 %5916, %v3901_v59   ;;  %3992 = vperm.xlu1 %5917, %v3902_v46   ;;  %v3907_v59 = vld [vmem:[%s8123_s2 + $0x90] sm:$0xff]  ;;  %v6028_v46 = vld [vmem:[%s8122_s1 + $0x228] sm:$0xff]   ;;  %v2779_v32 = vrot.slane %v6834_v55, 2 }
  0xd4   : > { %v2772_v34 = vsel %vm2300_vm2, %v2769_v39, %v2771_v36  ;;  %v2774_v53 = vsel %vm2300_vm2, %v2771_v36, %v2773_v23  ;;  %v6045_v36 = vld [vmem:[%s8122_s1 + $0x208] sm:$0xff]  }
  0xd5   : > { %5606 = vmatmul.mubr.bf16.gmra.mxu1 %v1524_v14  ;;  %5662 = vmatmul.mubr.bf16.gmra.mxu0 %v1999_v8  ;;  %v2775_v14 = vrot.slane %v6782_v60, 2  ;;  %v3912_v8 = vld [vmem:[%s8123_s2 + $0xb8] sm:$0xff] }
  0xd6   : > { %5609 = vmatprep.mubr.bf16.mxu1 %v1526_v44  ;;  %5733 = vmatprep.mubr.bf16.mxu0 %v2766_v25 }
  0xd7   : > { %3997 = vperm.xlu0 %5916, %v3903_v42   ;;  %4002 = vperm.xlu1 %5917, %v3904_v1   ;;  %v2776_v60 = vsel %vm2300_vm2, %v2773_v23, %v2775_v14  ;;  %v2778_v44 = vsel %vm2300_vm2, %v2775_v14, %v2777_v47  ;;  %v3914_v1 = vld [vmem:[%s8123_s2 + $0xc8] sm:$0xff] }
  0xdb   : > { %4007 = vperm.xlu0 %5916, %v3905_v21   ;;  %4012 = vperm.xlu1 %5917, %v3906_v13   ;;  %v2781_v13 = vrot.slane %v6878_v0, 2 }
  0xdd   : > { %5610 = vmatmul.mubr.bf16.gmra.mxu1 %v1528_v37  ;;  %5734 = vmatmul.mubr.bf16.vlgmr.msra.gmra.mxu0 %v2768_v38  ;;  %v3916_v38 = vld [vmem:[%s8123_s2 + $0xd8] sm:$0xff] }
  0xde   : > { %5681 = vmatprep.mubr.bf16.mxu1 %v6467_v9  ;;  %5822 = vmatpush3.bf16.msra.mxu0 %v6779_v33  ;;  %v3910_v9 = vld [vmem:[%s8123_s2 + $0xa8] sm:$0xff]  ;;  %v6022_v33 = vld [vmem:[%s8122_s1 + $0x1f0] sm:$0xff]  }
  0xdf   : > { %5737 = vmatprep.mubr.bf16.mxu0 %v2770_v22  ;;  %5823 = vmatprep.subr.bf16.mxu0 %v6023_v15 }
  0xe0   : > { %4017 = vperm.xlu0 %5916, %v3907_v59   ;;  %4022 = vperm.xlu1 %5917, %v3908_v19   ;;  %v2782_v59 = vsel %vm2300_vm2, %v2779_v32, %v2781_v13  ;;  %v6040_v19 = vld [vmem:[%s8122_s1 + $0x1d0] sm:$0xff]  }
  0xe2   : > { %5824 = vmatpush3.bf16.msra.mxu0 %v6023_v15  ;;  %v2780_v15 = vsel %vm2300_vm2, %v2777_v47, %v2779_v32  ;;  %v7134_v47 = vld [vmem:[%s6132_s25 + $0x78] sm:$0xff]  }
  0xe3   : > { %5825 = vmatprep.subr.bf16.mxu0 %v6028_v46 }
  0xe4   : > { %4027 = vperm.xlu0 %5916, %v3909_v62   ;;  %4032 = vperm.xlu1 %5917, %v3910_v9   ;;  %v2783_v62 = vrot.slane %v6886_v31, 2  ;;  %v3917_v9 = vld [vmem:[%s8123_s2 + $0xe0] sm:$0xff] }
  0xe5   : > { %5682 = vmatmul.mubr.bf16.vlgmr.msra.gmra.mxu1 %v6429_v11  ;;  %5738 = vmatmul.mubr.bf16.gmra.mxu0 %v2772_v34  ;;  %v6026_v11 = vld [vmem:[%s8122_s1 + $0x1e8] sm:$0xff]   ;;  %v6049_v31 = vld [vmem:[%s8122_s1 + $0x200] sm:$0xff]  }
  0xe6   : > { %5770 = vmatpush3.bf16.msra.mxu1 %v6807_v63  ;;  %5685 = vmatprep.mubr.bf16.mxu1 %v6475_v10  ;;  %v3913_v10 = vld [vmem:[%s8123_s2 + $0xc0] sm:$0xff]  ;;  %v3918_v34 = vld [vmem:[%s8123_s2 + $0xe8] sm:$0xff] }
  0xe7   : > { %5771 = vmatprep.subr.bf16.mxu1 %v6022_v33  ;;  %5741 = vmatprep.mubr.bf16.mxu0 %v2774_v53  ;;  %v6030_v63 = vld [vmem:[%s8122_s1 + $0x1e0] sm:$0xff]  }
  0xe8   : > { %5826 = vmatpush3.bf16.msra.mxu0 %v6028_v46  ;;  %4037 = vperm.xlu0 %5916, %v3911_v57  }
  0xe9   : > { %5827 = vmatprep.subr.bf16.mxu0 %v6033_v61  ;;  %4042 = vperm.xlu1 %5917, %v3912_v8  }
  0xea   : > { %5772 = vmatpush3.bf16.msra.mxu1 %v6022_v33 }
  0xeb   : > { %5773 = vmatprep.subr.bf16.mxu1 %v6026_v11 }
  0xec   : > { %5828 = vmatpush3.bf16.msra.mxu0 %v6033_v61  ;;  %4047 = vperm.xlu0 %5916, %v3913_v10   ;;  %v6048_v10 = vld [vmem:[%s8122_s1 + $0x1c0] sm:$0xff]  }
  0xed   : > { %v7056_v25 = vpop.f32.mrf.mxu1  ;;  %5686 = vmatmul.mubr.bf16.gmra.mxu1 %v6478_v12  ;;  %v7059_v42 = vpop.f32.mrf.mxu0  ;;  %5742 = vmatmul.mubr.bf16.gmra.mxu0 %v2776_v60  ;;  %v3915_v12 = vld [vmem:[%s8123_s2 + $0xd0] sm:$0xff] }
  0xee   : > { %5689 = vmatprep.mubr.bf16.mxu1 %v6494_v26  ;;  %5774 = vmatpush3.bf16.msra.mxu1 %v6026_v11  ;;  %v6035_v26 = vld [vmem:[%s8122_s1 + $0x1d8] sm:$0xff]  }
  0xef   : > { %v7072_v39 = vpop.f32.mrf.mxu1  ;;  %v7074_v21 = vpop.f32.mrf.mxu0  ;;  %5745 = vmatprep.mubr.bf16.mxu0 %v2778_v44  ;;  %5775 = vmatprep.subr.bf16.mxu1 %v6030_v63  ;;  %v3919_v44 = vld [vmem:[%s8123_s2 + $0xf0] sm:$0xff] }
  0xf0   : > { %5829 = vmatprep.subr.bf16.mxu0 %v6037_v56  ;;  %4052 = vperm.xlu1 %5917, %v3914_v1   ;;  %v3920_v1 = vld [vmem:[%s8123_s2 + $0xf8] sm:$0xff] }
  0xf1   : > { %v7080_v55 = vpop.f32.mrf.mxu1  ;;  %v7082_v37 = vpop.f32.mrf.mxu0  ;;  %5830 = vmatpush3.bf16.msra.mxu0 %v6037_v56  ;;  %4057 = vperm.xlu0 %5916, %v3915_v12   ;;  %v2787_v56 = vrot.slane %v6935_v35, 2 }
  0xf2   : > { %5776 = vmatpush3.bf16.msra.mxu1 %v6030_v63  ;;  %5831 = vmatprep.subr.bf16.mxu0 %v6041_v49 }
  0xf3   : > { %v7088_v0 = vpop.f32.mrf.mxu1  ;;  %v7090_v22 = vpop.f32.mrf.mxu0  ;;  %5777 = vmatprep.subr.bf16.mxu1 %v6035_v26 }
  0xf4   : > { %4062 = vperm.xlu1 %5917, %v3916_v38   ;;  %v7166_v38 = vld [vmem:[%s6132_s25 + $0x80] sm:$0xff]  }
  0xf5   : > { %v7099_v46 = vpop.f32.mrf.mxu1  ;;  %5690 = vmatmul.mubr.bf16.gmra.mxu1 %v6497_v28  ;;  %v7102_v23 = vpop.f32.mrf.mxu0  ;;  %5746 = vmatmul.mubr.bf16.gmra.mxu0 %v2780_v15  ;;  %v2785_v28 = vrot.slane %v6927_v29, 2  ;;  %v2784_v29 = vsel %vm2300_vm2, %v2781_v13, %v2783_v62  ;;  %v3921_v13 = vld [vmem:[%s8123_s2 + $0x100] sm:$0xff] }
  0xf6   : > { %5693 = vmatprep.mubr.bf16.mxu1 %v6503_v4  ;;  %5749 = vmatprep.mubr.bf16.mxu0 %v2782_v59  ;;  %v6044_v4 = vld [vmem:[%s8122_s1 + $0x1c8] sm:$0xff]  }
  0xf7   : > { %v7112_v33 = vpop.f32.mrf.mxu1  ;;  %v7114_v53 = vpop.f32.mrf.mxu0  ;;  %5778 = vmatpush3.bf16.msra.mxu1 %v6035_v26  ;;  %5832 = vmatpush3.bf16.msra.mxu0 %v6041_v49  ;;  %v2786_v11 = vsel %vm2300_vm2, %v2783_v62, %v2785_v28  ;;  %v2789_v49 = vrot.slane %v7134_v47, 2  ;;  %v2788_v26 = vsel %vm2300_vm2, %v2785_v28, %v2787_v56  ;;  %v3922_v62 = vld [vmem:[%s8123_s2 + $0x108] sm:$0xff]  ;;  %v3923_v28 = vld [vmem:[%s8123_s2 + $0x110] sm:$0xff] }
  0xf8   : > { %5779 = vmatprep.subr.bf16.mxu1 %v6040_v19  ;;  %5833 = vmatprep.subr.bf16.mxu0 %v6045_v36 }
  0xf9   : > { %v7123_v61 = vpop.f32.mrf.mxu1  ;;  %v7125_v57 = vpop.f32.mrf.mxu0  ;;  %4067 = vperm.xlu0 %5916, %v3917_v9   ;;  %4072 = vperm.xlu1 %5917, %v3918_v34  }
  0xfb   : > { %v7128_v14 = vpop.f32.mrf.mxu1  ;;  %v7130_v8 = vpop.f32.mrf.mxu0  ;;  %5780 = vmatpush3.bf16.msra.mxu1 %v6040_v19  ;;  %5834 = vmatpush3.bf16.msra.mxu0 %v6045_v36  ;;  %v2790_v19 = vsel %vm2300_vm2, %v2787_v56, %v2789_v49  ;;  %v7174_v36 = vld [vmem:[%s6132_s25 + $0x88] sm:$0xff]   ;;  %v7203_v56 = vld [vmem:[%s6132_s25 + $0x90] sm:$0xff]  }
  0xfc   : > { %5781 = vmatprep.subr.bf16.mxu1 %v6044_v4  ;;  %5835 = vmatprep.subr.bf16.mxu0 %v6049_v31  ;;  %8162 = vst [vmem:[#allocation21_spill] sm:$0xff] %v7174_v36  ;;  %8165 = vst [vmem:[#allocation24_spill] sm:$0xff] %v7203_v56 }
  0xfd   : > { %v7139_v60 = vpop.f32.mrf.mxu1  ;;  %5694 = vmatmul.mubr.bf16.gmra.mxu1 %v6512_v41  ;;  %v7142_v63 = vpop.f32.mrf.mxu0  ;;  %5750 = vmatmul.mubr.bf16.gmra.mxu0 %v2784_v29 }
  0xfe   : > { %5697 = vmatprep.mubr.bf16.mxu1 %v6519_v5  ;;  %5753 = vmatprep.mubr.bf16.mxu0 %v2786_v11  ;;  %v3924_v11 = vld [vmem:[%s8123_s2 + $0x118] sm:$0xff] }
  0xff   : > { %v7152_v32 = vpop.f32.mrf.mxu1  ;;  %v7154_v41 = vpop.f32.mrf.mxu0  ;;  %5782 = vmatpush3.bf16.msra.mxu1 %v6044_v4  ;;  %5836 = vmatpush3.bf16.msra.mxu0 %v6049_v31  ;;  %v2791_v4 = vrot.slane %v7166_v38, 2 }
 0x100   : > { %5783 = vmatprep.subr.bf16.mxu1 %v6048_v10  ;;  %4077 = vperm.xlu0 %5916, %v3919_v44  }
 0x101   : > { %v7157_v5 = vpop.f32.mrf.mxu1  ;;  %v7159_v12 = vpop.f32.mrf.mxu0  ;;  %4082 = vperm.xlu1 %5917, %v3920_v1  }
 0x103   : > { %v7168_v15 = vpop.f32.mrf.mxu1  ;;  %v7170_v59 = vpop.f32.mrf.mxu0  ;;  %5784 = vmatpush3.bf16.msra.mxu1 %v6048_v10 }
 0x104   : > { %4087 = vperm.xlu0 %5916, %v3921_v13  }
 0x105   : > { %v7179_v9 = vpop.f32.mrf.mxu1  ;;  %5698 = vmatmul.mubr.bf16.gmra.mxu1 %v6530_v58  ;;  %v7182_v34 = vpop.f32.mrf.mxu0  ;;  %5754 = vmatmul.mubr.bf16.gmra.mxu0 %v2788_v26  ;;  %v2793_v58 = vrot.slane %v7174_v36, 2 }
 0x106   : > { %5701 = vmatprep.mubr.bf16.mxu1 %v6543_v6  ;;  %5757 = vmatprep.mubr.bf16.mxu0 %v2790_v19  ;;  %v2792_v6 = vsel %vm2300_vm2, %v2789_v49, %v2791_v4  ;;  %v7211_v19 = vld [vmem:[%s6132_s25 + $0x98] sm:$0xff]   ;;  %v2795_v49 = vrot.slane %v7203_v56, 2 }
 0x107   : > { %v7189_v31 = vpop.f32.mrf.mxu1  ;;  %v7191_v29 = vpop.f32.mrf.mxu0  ;;  %4092 = vperm.xlu1 %5917, %v3922_v62   ;;  %v2794_v26 = vsel %vm2300_vm2, %v2791_v4, %v2793_v58  ;;  %8167 = vst [vmem:[#allocation26_spill] sm:$0xff] %v7211_v19  ;;  %v2797_v4 = vrot.slane %v7211_v19, 2 }
 0x108   : > { %8163 = vst [vmem:[#allocation22_spill] sm:$0xff] %v7189_v31  ;;  %4097 = vperm.xlu0 %5916, %v3923_v28  }
 0x109   : > { %v7197_v10 = vpop.f32.mrf.mxu1  ;;  %v7199_v44 = vpop.f32.mrf.mxu0 }
 0x10a   : > { %8164 = vst [vmem:[#allocation23_spill] sm:$0xff] %v7197_v10 }
 0x10b   : > { %v7205_v1 = vpop.f32.mrf.mxu1  ;;  %v7207_v13 = vpop.f32.mrf.mxu0  ;;  %4102 = vperm.xlu1 %5917, %v3924_v11   ;;  %v2796_v11 = vsel %vm2300_vm2, %v2793_v58, %v2795_v49 }
 0x10c   : > { %8166 = vst [vmem:[#allocation25_spill] sm:$0xff] %v7205_v1 }
 0x10d   : > { %v7213_v62 = vpop.f32.mrf.mxu1  ;;  %5702 = vmatmul.mubr.bf16.gmra.mxu1 %v6554_v16  ;;  %v5527_v28 = vpop.f32.mrf.mxu0  ;;  %5758 = vmatmul.mubr.bf16.gmra.mxu0 %v2792_v6  ;;  %v2798_v6 = vsel %vm2300_vm2, %v2795_v49, %v2797_v4 }
 0x10e   : > { %8168 = vst [vmem:[#allocation27_spill] sm:$0xff] %v7213_v62  ;;  %5705 = vmatprep.mubr.bf16.mxu1 %v6564_v50  ;;  %5761 = vmatprep.mubr.bf16.mxu0 %v2794_v26  ;;  %v6047_v62 = vld [vmem:[%s6132_s25 + $0xa0] ss:$0 sps:$4 sm:$0x33]  }
 0x10f   : > { %v7218_v30 = vpop.f32.mrf.mxu1  ;;  %v1166_v7 = vpop.f32.mrf.mxu0 }
 0x110   : > { %8169 = vst [vmem:[#allocation28_spill] sm:$0xff] %v7218_v30 }
 0x111   : > { %v7221_v1 = vpop.f32.mrf.mxu1  ;;  %v5528_v24 = vpop.f32.mrf.mxu0 }
 0x112   : > { %8170 = vst [vmem:[#allocation29_spill] sm:$0xff] %v7221_v1  ;;  %v2799_v1 = vrot.slane %v6047_v62, 2 }
 0x113   : > { %v7225_v10 = vpop.f32.mrf.mxu1  ;;  %v1169_v16 = vpop.f32.mrf.mxu0 }
 0x114   : > { %8171 = vst [vmem:[#allocation30_spill] sm:$0xff] %v7225_v10 }
 0x115   : > { %v5475_v50 = vpop.f32.mrf.mxu1  ;;  %5706 = vmatmul.mubr.bf16.gmra.mxu1 %v6577_v45  ;;  %v5531_v26 = vpop.f32.mrf.mxu0  ;;  %5762 = vmatmul.mubr.bf16.gmra.mxu0 %v2796_v11  ;;  %v2800_v45 = vsel %vm2300_vm2, %v2797_v4, %v2799_v1 }
 0x116   : > { %v873_v30 = vadd.f32 %v5475_v50, %v7059_v42  ;;  %5709 = vmatprep.mubr.bf16.mxu1 %v6604_v27  ;;  %5765 = vmatprep.mubr.bf16.mxu0 %v2798_v6 }
 0x117   : > { %v864_v19 = vpop.f32.mrf.mxu1  ;;  %v1182_v56 = vpop.f32.mrf.mxu0 }
 0x118   : > { %v865_v58 = vadd.f32 %v864_v19, %v7074_v21  ;;  %v7232_v31 = vadd.f32 %v5527_v28, %v873_v30  ;;  %v8172_v19 = vld [vmem:[#allocation3_spill] sm:$0xff] }
 0x119   : > { %v5476_v10 = vpop.f32.mrf.mxu1  ;;  %v5532_v36 = vpop.f32.mrf.mxu0 }
 0x11a   : > { %v876_v49 = vadd.f32 %v5476_v10, %v7082_v37  ;;  %v7236_v48 = vadd.f32 %v1166_v7, %v865_v58  ;;  %v8173_v37 = vld [vmem:[#allocation5_spill] sm:$0xff] }
 0x11b   : > { %v867_v11 = vpop.f32.mrf.mxu1  ;;  %v1185_v42 = vpop.f32.mrf.mxu0 }
 0x11c   : > { %v868_v27 = vadd.f32 %v867_v11, %v7090_v22  ;;  %v7239_v6 = vadd.f32 %v5528_v24, %v876_v49  ;;  %v8174_v11 = vld [vmem:[#allocation4_spill] sm:$0xff] }
 0x11d   : > { %v5479_v62 = vpop.f32.mrf.mxu1  ;;  %5710 = vmatmul.mubr.bf16.gmra.mxu1 %v6609_v40  ;;  %v5535_v21 = vpop.f32.mrf.mxu0  ;;  %5766 = vmatmul.mubr.bf16.gmra.mxu0 %v2800_v45 }
 0x11e   : > { %v889_v30 = vadd.f32 %v5479_v62, %v7102_v23  ;;  %5713 = vmatprep.mubr.bf16.mxu1 %v8172_v19  ;;  %5837 = vmatprep.mubr.bf16.mxu0 %v8173_v37  ;;  %v7245_v10 = vadd.f32 %v1169_v16, %v868_v27  ;;  %v8175_v62 = vld [vmem:[#allocation6_spill] sm:$0xff] }
 0x11f   : > { %v880_v7 = vpop.f32.mrf.mxu1  ;;  %v1198_v1 = vpop.f32.mrf.mxu0 }
 0x120   : > { %v881_v28 = vadd.f32 %v880_v7, %v7114_v53  ;;  %v7248_v22 = vadd.f32 %v5531_v26, %v889_v30  ;;  %v8176_v26 = vld [vmem:[#allocation8_spill] sm:$0xff] }
 0x121   : > { %v5480_v24 = vpop.f32.mrf.mxu1  ;;  %v5536_v4 = vpop.f32.mrf.mxu0 }
 0x122   : > { %v892_v40 = vadd.f32 %v5480_v24, %v7125_v57  ;;  %v7251_v50 = vadd.f32 %v1182_v56, %v881_v28 }
 0x123   : > { %v883_v58 = vpop.f32.mrf.mxu1  ;;  %v1201_v23 = vpop.f32.mrf.mxu0 }
 0x124   : > { %v884_v49 = vadd.f32 %v883_v58, %v7130_v8  ;;  %v7254_v45 = vadd.f32 %v5532_v36, %v892_v40  ;;  %v8177_v58 = vld [vmem:[#allocation7_spill] sm:$0xff] }
 0x125   : > { %v5483_v16 = vpop.f32.mrf.mxu1  ;;  %5714 = vmatmul.mubr.bf16.gmra.mxu1 %v8174_v11  ;;  %v5539_v27 = vpop.f32.mrf.mxu0  ;;  %5838 = vmatmul.mubr.bf16.vlgmr.msra.gmra.mxu0 %v8175_v62  ;;  %v8180_v11 = vld [vmem:[#allocation12_spill] sm:$0xff] }
 0x126   : > { %v905_v53 = vadd.f32 %v5483_v16, %v7142_v63  ;;  %5785 = vmatprep.mubr.bf16.mxu1 %v6721_v43  ;;  %5841 = vmatprep.mubr.bf16.mxu0 %v8176_v26  ;;  %v7261_v57 = vadd.f32 %v1185_v42, %v884_v49  ;;  %v8178_v16 = vld [vmem:[#allocation9_spill] sm:$0xff] }
 0x127   : > { %v896_v56 = vpop.f32.mrf.mxu1  ;;  %v1214_v30 = vpop.f32.mrf.mxu0 }
 0x128   : > { %v897_v8 = vadd.f32 %v896_v56, %v7154_v41  ;;  %v7264_v36 = vadd.f32 %v5535_v21, %v905_v53  ;;  %v8179_v21 = vld [vmem:[#allocation10_spill] sm:$0xff] }
 0x129   : > { %v5484_v19 = vpop.f32.mrf.mxu1  ;;  %v5540_v37 = vpop.f32.mrf.mxu0 }
 0x12a   : > { %v908_v7 = vadd.f32 %v5484_v19, %v7159_v12  ;;  %v7267_v28 = vadd.f32 %v1198_v1, %v897_v8 }
 0x12b   : > { %v899_v24 = vpop.f32.mrf.mxu1  ;;  %v1217_v63 = vpop.f32.mrf.mxu0 }
 0x12c   : > { %v900_v43 = vadd.f32 %v899_v24, %v7170_v59  ;;  %v7270_v40 = vadd.f32 %v5536_v4, %v908_v7 }
 0x12d   : > { %v5487_v42 = vpop.f32.mrf.mxu1  ;;  %5786 = vmatmul.mubr.bf16.vlgmr.msra.gmra.mxu1 %v8177_v58  ;;  %v5543_v49 = vpop.f32.mrf.mxu0  ;;  %5842 = vmatmul.mubr.bf16.gmra.mxu0 %v8178_v16 }
 0x12e   : > { %v921_v41 = vadd.f32 %v5487_v42, %v7182_v34  ;;  %5789 = vmatprep.mubr.bf16.mxu1 %v8179_v21  ;;  %5845 = vmatprep.mubr.bf16.mxu0 %v8180_v11  ;;  %v7277_v12 = vadd.f32 %v1201_v23, %v900_v43  ;;  %v8181_v43 = vld [vmem:[#allocation11_spill] sm:$0xff] }
 0x12f   : > { %v912_v1 = vpop.f32.mrf.mxu1  ;;  %v1230_v62 = vpop.f32.mrf.mxu0 }
 0x130   : > { %v913_v59 = vadd.f32 %v912_v1, %v7191_v29  ;;  %v7280_v4 = vadd.f32 %v5539_v27, %v921_v41  ;;  %v8182_v27 = vld [vmem:[#allocation14_spill] sm:$0xff] }
 0x131   : > { %v5488_v53 = vpop.f32.mrf.mxu1  ;;  %v5544_v26 = vpop.f32.mrf.mxu0 }
 0x132   : > { %v924_v56 = vadd.f32 %v5488_v53, %v7199_v44  ;;  %v7283_v8 = vadd.f32 %v1214_v30, %v913_v59  ;;  %v8183_v59 = vld [vmem:[#allocation13_spill] sm:$0xff] }
 0x133   : > { %v915_v19 = vpop.f32.mrf.mxu1  ;;  %v1233_v34 = vpop.f32.mrf.mxu0 }
 0x134   : > { %v916_v7 = vadd.f32 %v915_v19, %v7207_v13  ;;  %v7286_v24 = vadd.f32 %v5540_v37, %v924_v56  ;;  %v8184_v56 = vld [vmem:[#allocation15_spill] sm:$0xff] }
 0x135   : > { %v5491_v23 = vpop.f32.mrf.mxu1  ;;  %5790 = vmatmul.mubr.bf16.gmra.mxu1 %v8181_v43  ;;  %v5547_v42 = vpop.f32.mrf.mxu0  ;;  %5846 = vmatmul.mubr.bf16.gmra.mxu0 %v6811_v18 }
 0x136   : > { %v937_v29 = vadd.f32 %v5491_v23, %v7056_v25  ;;  %5793 = vmatprep.mubr.bf16.mxu1 %v6829_v17  ;;  %5849 = vmatprep.mubr.bf16.mxu0 %v8182_v27  ;;  %v7293_v44 = vadd.f32 %v1217_v63, %v916_v7 }
 0x137   : > { %v928_v30 = vpop.f32.mrf.mxu1  ;;  %v1246_v58 = vpop.f32.mrf.mxu0 }
 0x138   : > { %v929_v13 = vadd.f32 %v928_v30, %v7072_v39  ;;  %v7296_v37 = vadd.f32 %v5543_v49, %v937_v29  ;;  %v8185_v49 = vld [vmem:[#allocation17_spill] sm:$0xff] }
 0x139   : > { %v5492_v16 = vpop.f32.mrf.mxu1  ;;  %v5548_v41 = vpop.f32.mrf.mxu0 }
 0x13a   : > { %v940_v21 = vadd.f32 %v5492_v16, %v7080_v55  ;;  %v7299_v11 = vadd.f32 %v1230_v62, %v929_v13  ;;  %v8186_v13 = vld [vmem:[#allocation16_spill] sm:$0xff] }
 0x13b   : > { %v931_v18 = vpop.f32.mrf.mxu1  ;;  %v1249_v25 = vpop.f32.mrf.mxu0 }
 0x13c   : > { %v932_v17 = vadd.f32 %v931_v18, %v7088_v0  ;;  %v7302_v1 = vadd.f32 %v5544_v26, %v940_v21  ;;  %v3222_v21 = vshll.u32 %v7134_v47, 16 }
 0x13d   : > { %v5495_v63 = vpop.f32.mrf.mxu1  ;;  %5794 = vmatmul.mubr.bf16.gmra.mxu1 %v8183_v59  ;;  %v5551_v53 = vpop.f32.mrf.mxu0  ;;  %5850 = vmatmul.mubr.bf16.gmra.mxu0 %v8184_v56  ;;  %v8187_v59 = vrot.slane %v6935_v35, 3  ;;  %v3228_v35 = vshrl.u32 %v7166_v38, 16 }
 0x13e   : > { %v953_v39 = vadd.f32 %v5495_v63, %v7099_v46  ;;  %5797 = vmatprep.mubr.bf16.mxu1 %v6881_v54  ;;  %5853 = vmatprep.mubr.bf16.mxu0 %v8185_v49  ;;  %v7309_v55 = vadd.f32 %v1233_v34, %v932_v17  ;;  %v3224_v49 = vrot.slane %v3222_v21, 3 }
 0x13f   : > { %v944_v62 = vpop.f32.mrf.mxu1  ;;  %v1262_v19 = vpop.f32.mrf.mxu0 }
 0x140   : > { %v945_v0 = vadd.f32 %v944_v62, %v7112_v33  ;;  %v7312_v26 = vadd.f32 %v5547_v42, %v953_v39 }
 0x141   : > { %v5496_v7 = vpop.f32.mrf.mxu1  ;;  %v5552_v23 = vpop.f32.mrf.mxu0 }
 0x142   : > { %v956_v43 = vadd.f32 %v5496_v7, %v7123_v61  ;;  %v7315_v29 = vadd.f32 %v1246_v58, %v945_v0  ;;  %v8188_v0 = vld [vmem:[#allocation19_spill] sm:$0xff]  ;;  %v3231_v7 = vshll.u32 %v7166_v38, 16 }
 0x143   : > { %v947_v27 = vpop.f32.mrf.mxu1  ;;  %v1265_v46 = vpop.f32.mrf.mxu0 }
 0x144   : > { %v948_v54 = vadd.f32 %v947_v27, %v7128_v14  ;;  %v7318_v30 = vadd.f32 %v5548_v41, %v956_v43  ;;  %v3598_v14 = vrot.slane %v7134_v47, 3  ;;  %v3219_v41 = vshrl.u32 %v7134_v47, 16 }
 0x145   : > { %v5499_v34 = vpop.f32.mrf.mxu1  ;;  %5798 = vmatmul.mubr.bf16.gmra.mxu1 %v8186_v13  ;;  %v5555_v16 = vpop.f32.mrf.mxu0  ;;  %5854 = vmatmul.mubr.bf16.gmra.mxu0 %v6915_v52  ;;  %v8190_v13 = vld [vmem:[#allocation22_spill] sm:$0xff] }
 0x146   : > { %v969_v33 = vadd.f32 %v5499_v34, %v7139_v60  ;;  %5801 = vmatprep.mubr.bf16.mxu1 %v6930_v2  ;;  %5857 = vmatprep.mubr.bf16.mxu0 %v6955_v51  ;;  %v7325_v61 = vadd.f32 %v1249_v25, %v948_v54  ;;  %v3599_v56 = vsel %vm3572_vm4, %v8187_v59, %v3598_v14  ;;  %v3221_v39 = vrot.slane %v3219_v41, 2 }
 0x147   : > { %v960_v42 = vpop.f32.mrf.mxu1  ;;  %v1278_v58 = vpop.f32.mrf.mxu0 }
 0x148   : > { %v961_v18 = vadd.f32 %v960_v42, %v7152_v32  ;;  %v7331_v17 = vadd.f32 %v5551_v53, %v969_v33  ;;  %v3225_v27 = vor.u32 %v3224_v49, %v3221_v39 }
 0x149   : > { %v5500_v52 = vpop.f32.mrf.mxu1  ;;  %v5556_v60 = vpop.f32.mrf.mxu0 }
 0x14a   : > { %v972_v2 = vadd.f32 %v5500_v52, %v7157_v5  ;;  %v7334_v63 = vadd.f32 %v1262_v19, %v961_v18  ;;  %v3600_v5 = vrot.slane %v7166_v38, 3  ;;  %v8191_v38 = vld [vmem:[#allocation23_spill] sm:$0xff]  ;;  %v3230_v18 = vrot.slane %v3228_v35, 2 }
 0x14b   : > { %v963_v51 = vpop.f32.mrf.mxu1  ;;  %v1281_v25 = vpop.f32.mrf.mxu0  ;;  %v3233_v52 = vrot.slane %v3231_v7, 3 }
 0x14c   : > { %v964_v47 = vadd.f32 %v963_v51, %v7168_v15  ;;  %v7340_v62 = vadd.f32 %v5552_v23, %v972_v2  ;;  %v3601_v21 = vsel %vm3572_vm4, %v3598_v14, %v3600_v5 }
 0x14d   : > { %v5503_v32 = vpop.f32.mrf.mxu1  ;;  %5802 = vmatmul.mubr.bf16.gmra.mxu1 %v6944_v20  ;;  %v5559_v53 = vpop.f32.mrf.mxu0  ;;  %5858 = vmatmul.mubr.bf16.gmra.mxu0 %v6966_v3  ;;  %v8189_v20 = vld [vmem:[#allocation21_spill] sm:$0xff] }
 0x14e   : > { %v985_v19 = vadd.f32 %v5503_v32, %v7179_v9  ;;  %5805 = vmatprep.mubr.bf16.mxu1 %v8188_v0  ;;  %5861 = vmatprep.mubr.bf16.mxu0 %v3599_v56  ;;  %v7349_v15 = vadd.f32 %v1265_v46, %v964_v47  ;;  %v3602_v54 = vrot.slane %v8189_v20, 3  ;;  %v3237_v3 = vshrl.u32 %v8189_v20, 16  ;;  %v8192_v56 = vld [vmem:[#allocation18_spill] sm:$0xff]  ;;  %v8193_v32 = vld [vmem:[#allocation25_spill] sm:$0xff] }
 0x14f   : > { %v976_v23 = vpop.f32.mrf.mxu1  ;;  %v1294_v43 = vpop.f32.mrf.mxu0  ;;  %v3240_v34 = vshll.u32 %v8189_v20, 16  ;;  %v3226_v39 = vsel %vm3101_vm5, %v8192_v56, %v3225_v27 }
 0x150   : > { %v977_v9 = vadd.f32 %v976_v23, %v8190_v13  ;;  %v7355_v33 = vadd.f32 %v5555_v16, %v985_v19  ;;  %v3603_v49 = vsel %vm3572_vm4, %v3600_v5, %v3602_v54  ;;  %v3239_v47 = vrot.slane %v3237_v3, 2  ;;  %v8195_v23 = vld [vmem:[#allocation20_spill] sm:$0xff]  ;;  %v8197_v13 = vld [vmem:[#allocation27_spill] sm:$0xff] }
 0x151   : > { %v5504_v42 = vpop.f32.mrf.mxu1  ;;  %v5560_v41 = vpop.f32.mrf.mxu0  ;;  %v3242_v16 = vrot.slane %v3240_v34, 3 }
 0x152   : > { %v988_v46 = vadd.f32 %v5504_v42, %v8191_v38  ;;  %v7359_v2 = vadd.f32 %v1278_v58, %v977_v9  ;;  %v8196_v58 = vld [vmem:[#allocation24_spill] sm:$0xff]  ;;  %v3234_v42 = vor.u32 %v3233_v52, %v3230_v18 }
 0x153   : > { %v979_v51 = vpop.f32.mrf.mxu1  ;;  %v1297_v59 = vpop.f32.mrf.mxu0  ;;  %v3246_v7 = vshrl.u32 %v8196_v58, 16  ;;  %v3249_v20 = vshll.u32 %v8196_v58, 16  ;;  %v3604_v5 = vrot.slane %v8196_v58, 3  ;;  %v3243_v38 = vor.u32 %v3242_v16, %v3239_v47  ;;  %v6051_v58 = vld [vmem:[%s6132_s25 + $0xa0] ss:$0 sps:$4 sm:$0x77]  }
 0x154   : > { %v980_v19 = vadd.f32 %v979_v51, %v8193_v32  ;;  %v7365_v0 = vadd.f32 %v5556_v60, %v988_v46  ;;  %v8199_v46 = vld [vmem:[#allocation26_spill] sm:$0xff]  ;;  %v8200_v32 = vld [vmem:[#allocation28_spill] sm:$0xff]  ;;  %s5890_s25 = smul.u32 144, %s8226_s12 }
 0x155   : > { %v5507_v14 = vpop.f32.mrf.mxu1  ;;  %5806 = vmatmul.mubr.bf16.gmra.mxu1 %v8195_v23  ;;  %v5631_v35 = vpop.f32.mrf.mxu0  ;;  %5862 = vmatmul.mubr.bf16.gmra.mxu0 %v3601_v21  ;;  %v3606_v51 = vrot.slane %v8199_v46, 3  ;;  %v3255_v21 = vshrl.u32 %v8199_v46, 16  ;;  %v3258_v56 = vshll.u32 %v8199_v46, 16  ;;  %v3605_v47 = vsel %vm3572_vm4, %v3602_v54, %v3604_v5 }
 0x156   : > { %8194 = vst [vmem:[#allocation3_spill] sm:$0xff] %v7365_v0  ;;  %v1001_v9 = vadd.f32 %v5507_v14, %v8197_v13  ;;  %5809 = vmatprep.mubr.bf16.mxu1 %v3226_v39  ;;  %5865 = vmatprep.mubr.bf16.mxu0 %v3603_v49  ;;  %v7372_v3 = vadd.f32 %v1281_v25, %v980_v19  ;;  %v3248_v39 = vrot.slane %v3246_v7, 2  ;;  %v3251_v49 = vrot.slane %v3249_v20, 3  ;;  %v8202_v25 = vld [vmem:[#allocation29_spill] sm:$0xff]  ;;  %s8088_s16 = scalar_lea.vmem %s8124_s3, %s5890_s25 }
 0x157   : > { %v992_v60 = vpop.f32.mrf.mxu1  ;;  %v2100_v34 = vpop.f32.mrf.mxu0  ;;  %v3235_v13 = vsel %vm3101_vm5, %v3225_v27, %v3234_v42  ;;  %v3244_v46 = vsel %vm3101_vm5, %v3234_v42, %v3243_v38  ;;  %v3608_v54 = vrot.slane %v6051_v58, 3  ;;  %v3267_v42 = vshll.u32 %v6051_v58, 16 }
 0x158   : > { %8198 = vst [vmem:[#allocation5_spill] sm:$0xff] %v7372_v3  ;;  %v993_v23 = vadd.f32 %v992_v60, %v8200_v32  ;;  %v7378_v14 = vadd.f32 %v5559_v53, %v1001_v9  ;;  %v3607_v53 = vsel %vm3572_vm4, %v3604_v5, %v3606_v51  ;;  %v3257_v9 = vrot.slane %v3255_v21, 2  ;;  %v8203_v32 = vld [vmem:[#allocation30_spill] sm:$0xff] }
 0x159   : > { %v5508_v18 = vpop.f32.mrf.mxu1  ;;  %v5632_v52 = vpop.f32.mrf.mxu0  ;;  %v3260_v60 = vrot.slane %v3258_v56, 3  ;;  %v3252_v27 = vor.u32 %v3251_v49, %v3248_v39  ;;  %v3609_v49 = vsel %vm3572_vm4, %v3606_v51, %v3608_v54 }
 0x15a   : > { %8201 = vst [vmem:[#allocation4_spill] sm:$0xff] %v7378_v14  ;;  %v1004_v19 = vadd.f32 %v5508_v18, %v8202_v25  ;;  %v7384_v16 = vadd.f32 %v1294_v43, %v993_v23  ;;  %v3264_v23 = vshrl.u32 %v6051_v58, 16 }
 0x15b   : > { %v995_v3 = vpop.f32.mrf.mxu1  ;;  %v2103_v0 = vpop.f32.mrf.mxu0  ;;  %v3261_v56 = vor.u32 %v3260_v60, %v3257_v9 }
 0x15c   : > { %v996_v7 = vadd.f32 %v995_v3, %v8203_v32  ;;  %v7389_v20 = vadd.f32 %v5560_v41, %v1004_v19 }
 0x15d   : > { %v5579_v14 = vpop.f32.mrf.mxu1  ;;  %5810 = vmatmul.mubr.bf16.gmra.mxu1 %v3235_v13  ;;  %v5635_v18 = vpop.f32.mrf.mxu0  ;;  %5866 = vmatmul.mubr.bf16.gmra.mxu0 %v3605_v47  ;;  %v3253_v13 = vsel %vm3101_vm5, %v3243_v38, %v3252_v27  ;;  %v3269_v47 = vrot.slane %v3267_v42, 3 }
 0x15e   : > { %v1774_v43 = vadd.f32 %v5579_v14, %v7232_v31  ;;  %5813 = vmatprep.mubr.bf16.mxu1 %v3244_v46  ;;  %5869 = vmatprep.mubr.bf16.mxu0 %v3607_v53  ;;  %v7392_v25 = vadd.f32 %v1297_v59, %v996_v7  ;;  %v3266_v14 = vrot.slane %v3264_v23, 2  ;;  %v3262_v53 = vsel %vm3101_vm5, %v3252_v27, %v3261_v56 }
 0x15f   : > { %v1629_v5 = vpop.f32.mrf.mxu1  ;;  %v2116_v21 = vpop.f32.mrf.mxu0 }
 0x160   : > { %v1772_v41 = vadd.f32 %v1629_v5, %v7236_v48  ;;  %v7395_v3 = vadd.f32 %v5631_v35, %v1774_v43 }
 0x161   : > { %v5580_v19 = vpop.f32.mrf.mxu1  ;;  %v5636_v39 = vpop.f32.mrf.mxu0 }
 0x162   : > { %v1775_v31 = vadd.f32 %v5580_v19, %v7239_v6  ;;  %v7400_v58 = vadd.f32 %v2100_v34, %v1772_v41  ;;  %v3270_v6 = vor.u32 %v3269_v47, %v3266_v14 }
 0x163   : > { %v1632_v59 = vpop.f32.mrf.mxu1  ;;  %v2119_v46 = vpop.f32.mrf.mxu0 }
 0x164   : > { %v1773_v48 = vadd.f32 %v1632_v59, %v7245_v10  ;;  %v7404_v35 = vadd.f32 %v5632_v52, %v1775_v31  ;;  %v3271_v43 = vsel %vm3101_vm5, %v3261_v56, %v3270_v6 }
 0x165   : > { %v5583_v9 = vpop.f32.mrf.mxu1  ;;  %5814 = vmatmul.mubr.bf16.gmra.mxu1 %v3253_v13  ;;  %v5639_v38 = vpop.f32.mrf.mxu0  ;;  %5870 = vmatmul.mubr.bf16.gmra.mxu0 %v3609_v49 }
 0x166   : > { %v1778_v51 = vadd.f32 %v5583_v9, %v7248_v22  ;;  %5817 = vmatprep.mubr.bf16.mxu1 %v3262_v53  ;;  %v7407_v60 = vadd.f32 %v2103_v0, %v1773_v48 }
 0x167   : > { %v1645_v34 = vpop.f32.mrf.mxu1  ;;  %v2132_v32 = vpop.f32.mrf.mxu0 }
 0x168   : > { %v1776_v7 = vadd.f32 %v1645_v34, %v7251_v50  ;;  %v7410_v54 = vadd.f32 %v5635_v18, %v1778_v51 }
 0x169   : > { %v5584_v27 = vpop.f32.mrf.mxu1  ;;  %v5640_v10 = vpop.f32.mrf.mxu0 }
 0x16a   : > { %v1779_v52 = vadd.f32 %v5584_v27, %v7254_v45  ;;  %v7414_v23 = vadd.f32 %v2116_v21, %v1776_v7 }
 0x16b   : > { %v1648_v42 = vpop.f32.mrf.mxu1  ;;  %v2135_v22 = vpop.f32.mrf.mxu0 }
 0x16c   : > { %v1777_v5 = vadd.f32 %v1648_v42, %v7261_v57  ;;  %v7417_v0 = vadd.f32 %v5636_v39, %v1779_v52 }
 0x16d   : > { %v5587_v41 = vpop.f32.mrf.mxu1  ;;  %5818 = vmatmul.mubr.bf16.gmra.mxu1 %v3271_v43  ;;  %v5643_v19 = vpop.f32.mrf.mxu0 }
 0x16e   : > { %v1782_v50 = vadd.f32 %v5587_v41, %v7264_v36  ;;  %v7420_v18 = vadd.f32 %v2119_v46, %v1777_v5 }
 0x16f   : > { %v1661_v13 = vpop.f32.mrf.mxu1  ;;  %v2148_v49 = vpop.f32.mrf.mxu0 }
 0x170   : > { %v1780_v45 = vadd.f32 %v1661_v13, %v7267_v28  ;;  %v7423_v56 = vadd.f32 %v5639_v38, %v1782_v50 }
 0x171   : > { %v5588_v21 = vpop.f32.mrf.mxu1  ;;  %v5644_v31 = vpop.f32.mrf.mxu0 }
 0x172   : > { %v1783_v14 = vadd.f32 %v5588_v21, %v7270_v40  ;;  %v7426_v57 = vadd.f32 %v2132_v32, %v1780_v45 }
 0x173   : > { %v1664_v39 = vpop.f32.mrf.mxu1  ;;  %v2151_v47 = vpop.f32.mrf.mxu0 }
 0x174   : > { %v1781_v59 = vadd.f32 %v1664_v39, %v7277_v12  ;;  %v7429_v53 = vadd.f32 %v5640_v10, %v1783_v14 }
 0x175   : > { %v5591_v36 = vpop.f32.mrf.mxu1  ;;  %v5647_v46 = vpop.f32.mrf.mxu0 }
 0x176   : > { %v1786_v48 = vadd.f32 %v5591_v36, %v7280_v4  ;;  %v7432_v9 = vadd.f32 %v2135_v22, %v1781_v59 }
 0x177   : > { %v1677_v28 = vpop.f32.mrf.mxu1  ;;  %v2164_v38 = vpop.f32.mrf.mxu0 }
 0x178   : > { %v1784_v51 = vadd.f32 %v1677_v28, %v7283_v8  ;;  %v7435_v6 = vadd.f32 %v5643_v19, %v1786_v48 }
 0x179   : > { %v5592_v40 = vpop.f32.mrf.mxu1  ;;  %v5648_v34 = vpop.f32.mrf.mxu0 }
 0x17a   : > { %v1787_v32 = vadd.f32 %v5592_v40, %v7286_v24  ;;  %v7438_v7 = vadd.f32 %v2148_v49, %v1784_v51 }
 0x17b   : > { %v1680_v12 = vpop.f32.mrf.mxu1  ;;  %v2167_v27 = vpop.f32.mrf.mxu0 }
 0x17c   : > { %v1785_v10 = vadd.f32 %v1680_v12, %v7293_v44  ;;  %v7441_v52 = vadd.f32 %v5644_v31, %v1787_v32 }
 0x17d   : > { %v5595_v4 = vpop.f32.mrf.mxu1  ;;  %v5651_v43 = vpop.f32.mrf.mxu0 }
 0x17e   : > { %v1790_v42 = vadd.f32 %v5595_v4, %v7296_v37  ;;  %v7444_v22 = vadd.f32 %v2151_v47, %v1785_v10 }
 0x17f   : > { %v1693_v8 = vpop.f32.mrf.mxu1  ;;  %v2180_v5 = vpop.f32.mrf.mxu0 }
 0x180   : > { %v1788_v41 = vadd.f32 %v1693_v8, %v7299_v11  ;;  %v7447_v19 = vadd.f32 %v5647_v46, %v1790_v42 }
 0x181   : > { %v5596_v24 = vpop.f32.mrf.mxu1  ;;  %v5652_v50 = vpop.f32.mrf.mxu0 }
 0x182   : > { %v1791_v13 = vadd.f32 %v5596_v24, %v7302_v1  ;;  %v7450_v49 = vadd.f32 %v2164_v38, %v1788_v41 }
 0x183   : > { %v1696_v44 = vpop.f32.mrf.mxu1  ;;  %v2183_v45 = vpop.f32.mrf.mxu0 }
 0x184   : > { %v1789_v21 = vadd.f32 %v1696_v44, %v7309_v55  ;;  %v7453_v31 = vadd.f32 %v5648_v34, %v1791_v13 }
 0x185   : > { %v5599_v37 = vpop.f32.mrf.mxu1  ;;  %v5655_v14 = vpop.f32.mrf.mxu0 }
 0x186   : > { %v1794_v39 = vadd.f32 %v5599_v37, %v7312_v26  ;;  %v7456_v47 = vadd.f32 %v2167_v27, %v1789_v21 }
 0x187   : > { %v1709_v11 = vpop.f32.mrf.mxu1  ;;  %v2196_v59 = vpop.f32.mrf.mxu0 }
 0x188   : > { %v1792_v36 = vadd.f32 %v1709_v11, %v7315_v29  ;;  %v7459_v46 = vadd.f32 %v5651_v43, %v1794_v39  ;;  %v8204_v11 = vld [vmem:[#allocation3_spill] sm:$0xff] }
 0x189   : > { %v5600_v1 = vpop.f32.mrf.mxu1  ;;  %v5656_v48 = vpop.f32.mrf.mxu0 }
 0x18a   : > { %v1795_v28 = vadd.f32 %v5600_v1, %v7318_v30  ;;  %v7462_v38 = vadd.f32 %v2180_v5, %v1792_v36 }
 0x18b   : > { %v1712_v55 = vpop.f32.mrf.mxu1  ;;  %v2199_v51 = vpop.f32.mrf.mxu0 }
 0x18c   : > { %v1793_v40 = vadd.f32 %v1712_v55, %v7325_v61  ;;  %v7465_v34 = vadd.f32 %v5652_v50, %v1795_v28 }
 0x18d   : > { %v5603_v26 = vpop.f32.mrf.mxu1  ;;  %v5659_v32 = vpop.f32.mrf.mxu0 }
 0x18e   : > { %v1798_v12 = vadd.f32 %v5603_v26, %v7331_v17  ;;  %v7468_v27 = vadd.f32 %v2183_v45, %v1793_v40  ;;  %v8206_v40 = vld [vmem:[#allocation4_spill] sm:$0xff] }
 0x18f   : > { %v1725_v29 = vpop.f32.mrf.mxu1  ;;  %v2212_v10 = vpop.f32.mrf.mxu0 }
 0x190   : > { %v1796_v4 = vadd.f32 %v1725_v29, %v7334_v63  ;;  %v7471_v43 = vadd.f32 %v5655_v14, %v1798_v12 }
 0x191   : > { %v5604_v30 = vpop.f32.mrf.mxu1  ;;  %v5660_v42 = vpop.f32.mrf.mxu0 }
 0x192   : > { %v1799_v8 = vadd.f32 %v5604_v30, %v7340_v62  ;;  %v7474_v5 = vadd.f32 %v2196_v59, %v1796_v4 }
 0x193   : > { %v1728_v61 = vpop.f32.mrf.mxu1  ;;  %v2215_v41 = vpop.f32.mrf.mxu0 }
 0x194   : > { %v1797_v24 = vadd.f32 %v1728_v61, %v7349_v15  ;;  %v7477_v50 = vadd.f32 %v5656_v48, %v1799_v8  ;;  %v8205_v48 = vld [vmem:[#allocation5_spill] sm:$0xff] }
 0x195   : > { %v5607_v17 = vpop.f32.mrf.mxu1  ;;  %v5663_v13 = vpop.f32.mrf.mxu0 }
 0x196   : > { %v1802_v44 = vadd.f32 %v5607_v17, %v7355_v33  ;;  %v7480_v45 = vadd.f32 %v2199_v51, %v1797_v24 }
 0x197   : > { %v1741_v63 = vpop.f32.mrf.mxu1  ;;  %v2228_v21 = vpop.f32.mrf.mxu0 }
 0x198   : > { %v1800_v37 = vadd.f32 %v1741_v63, %v7359_v2  ;;  %v7483_v14 = vadd.f32 %v5659_v32, %v1802_v44 }
 0x199   : > { %v5608_v62 = vpop.f32.mrf.mxu1  ;;  %v5664_v39 = vpop.f32.mrf.mxu0 }
 0x19a   : > { %v1803_v59 = vadd.f32 %v5608_v62, %v8204_v11  ;;  %v7486_v36 = vadd.f32 %v2212_v10, %v1800_v37 }
 0x19b   : > { %v1744_v15 = vpop.f32.mrf.mxu1  ;;  %v2231_v1 = vpop.f32.mrf.mxu0 }
 0x19c   : > { %v1801_v28 = vadd.f32 %v1744_v15, %v8205_v48  ;;  %v7489_v55 = vadd.f32 %v5660_v42, %v1803_v59 }
 0x19d   : > { %v5611_v33 = vpop.f32.mrf.mxu1  ;;  %v5735_v51 = vpop.f32.mrf.mxu0 }
 0x19e   : > { %v1806_v26 = vadd.f32 %v5611_v33, %v8206_v40  ;;  %v7492_v12 = vadd.f32 %v2215_v41, %v1801_v28 }
 0x19f   : > { %v1757_v2 = vpop.f32.mrf.mxu1  ;;  %v2901_v32 = vpop.f32.mrf.mxu0 }
 0x1a0   : > { %v1804_v29 = vadd.f32 %v1757_v2, %v7384_v16  ;;  %v7495_v4 = vadd.f32 %v5663_v13, %v1806_v26 }
 0x1a1   : > { %v5612_v10 = vpop.f32.mrf.mxu1  ;;  %v5736_v30 = vpop.f32.mrf.mxu0 }
 0x1a2   : > { %v1807_v8 = vadd.f32 %v5612_v10, %v7389_v20  ;;  %v7498_v61 = vadd.f32 %v2228_v21, %v1804_v29 }
 0x1a3   : > { %v1760_v42 = vpop.f32.mrf.mxu1  ;;  %v2904_v24 = vpop.f32.mrf.mxu0 }
 0x1a4   : > { %v1805_v17 = vadd.f32 %v1760_v42, %v7392_v25  ;;  %v7501_v44 = vadd.f32 %v5664_v39, %v1807_v8 }
 0x1a5   : > { %v5683_v41 = vpop.f32.mrf.mxu1  ;;  %v5739_v63 = vpop.f32.mrf.mxu0 }
 0x1a6   : > { %v2583_v37 = vadd.f32 %v5683_v41, %v7395_v3  ;;  %v7504_v62 = vadd.f32 %v2231_v1, %v1805_v17 }
 0x1a7   : > { %v2438_v16 = vpop.f32.mrf.mxu1  ;;  %v2917_v13 = vpop.f32.mrf.mxu0 }
 0x1a8   : > { %v2581_v11 = vadd.f32 %v2438_v16, %v7400_v58  ;;  %v7507_v59 = vadd.f32 %v5735_v51, %v2583_v37 }
 0x1a9   : > { %v5684_v20 = vpop.f32.mrf.mxu1  ;;  %v5740_v21 = vpop.f32.mrf.mxu0 }
 0x1aa   : > { %v2584_v15 = vadd.f32 %v5684_v20, %v7404_v35  ;;  %v7510_v48 = vadd.f32 %v2901_v32, %v2581_v11 }
 0x1ab   : > { %v2441_v25 = vpop.f32.mrf.mxu1  ;;  %v2920_v39 = vpop.f32.mrf.mxu0 }
 0x1ac   : > { %v2582_v28 = vadd.f32 %v2441_v25, %v7407_v60  ;;  %v7513_v33 = vadd.f32 %v5736_v30, %v2584_v15 }
 0x1ad   : > { %v5687_v3 = vpop.f32.mrf.mxu1  ;;  %v5743_v1 = vpop.f32.mrf.mxu0 }
 0x1ae   : > { %v2587_v40 = vadd.f32 %v5687_v3, %v7410_v54  ;;  %v7516_v26 = vadd.f32 %v2904_v24, %v2582_v28 }
 0x1af   : > { %v2454_v58 = vpop.f32.mrf.mxu1  ;;  %v2933_v51 = vpop.f32.mrf.mxu0 }
 0x1b0   : > { %v2585_v2 = vadd.f32 %v2454_v58, %v7414_v23  ;;  %v7519_v29 = vadd.f32 %v5739_v63, %v2587_v40 }
 0x1b1   : > { %v5688_v35 = vpop.f32.mrf.mxu1  ;;  %v5744_v32 = vpop.f32.mrf.mxu0 }
 0x1b2   : > { %v2588_v10 = vadd.f32 %v5688_v35, %v7417_v0  ;;  %v7522_v8 = vadd.f32 %v2917_v13, %v2585_v2 }
 0x1b3   : > { %v2457_v60 = vpop.f32.mrf.mxu1  ;;  %v2936_v30 = vpop.f32.mrf.mxu0 }
 0x1b4   : > { %v2586_v42 = vadd.f32 %v2457_v60, %v7420_v18  ;;  %v7525_v17 = vadd.f32 %v5740_v21, %v2588_v10 }
 0x1b5   : > { %v5691_v54 = vpop.f32.mrf.mxu1  ;;  %v5747_v24 = vpop.f32.mrf.mxu0 }
 0x1b6   : > { %v2591_v41 = vadd.f32 %v5691_v54, %v7423_v56  ;;  %v7528_v37 = vadd.f32 %v2920_v39, %v2586_v42 }
 0x1b7   : > { %v2470_v23 = vpop.f32.mrf.mxu1  ;;  %v2949_v63 = vpop.f32.mrf.mxu0 }
 0x1b8   : > { %v2589_v16 = vadd.f32 %v2470_v23, %v7426_v57  ;;  %v7531_v11 = vadd.f32 %v5743_v1, %v2591_v41 }
 0x1b9   : > { %v5692_v0 = vpop.f32.mrf.mxu1  ;;  %v5748_v13 = vpop.f32.mrf.mxu0 }
 0x1ba   : > { %v2592_v20 = vadd.f32 %v5692_v0, %v7429_v53  ;;  %v7534_v15 = vadd.f32 %v2933_v51, %v2589_v16 }
 0x1bb   : > { %v2473_v18 = vpop.f32.mrf.mxu1  ;;  %v2952_v21 = vpop.f32.mrf.mxu0 }
 0x1bc   : > { %v2590_v25 = vadd.f32 %v2473_v18, %v7432_v9  ;;  %v7537_v28 = vadd.f32 %v5744_v32, %v2592_v20 }
 0x1bd   : > { %v5695_v56 = vpop.f32.mrf.mxu1  ;;  %v5751_v39 = vpop.f32.mrf.mxu0 }
 0x1be   : > { %v2595_v3 = vadd.f32 %v5695_v56, %v7435_v6  ;;  %v7540_v40 = vadd.f32 %v2936_v30, %v2590_v25 }
 0x1bf   : > { %v2486_v57 = vpop.f32.mrf.mxu1  ;;  %v2965_v1 = vpop.f32.mrf.mxu0 }
 0x1c0   : > { %v2593_v58 = vadd.f32 %v2486_v57, %v7438_v7  ;;  %v7543_v2 = vadd.f32 %v5747_v24, %v2595_v3 }
 0x1c1   : > { %v5696_v53 = vpop.f32.mrf.mxu1  ;;  %v5752_v51 = vpop.f32.mrf.mxu0 }
 0x1c2   : > { %v2596_v35 = vadd.f32 %v5696_v53, %v7441_v52  ;;  %v7546_v10 = vadd.f32 %v2949_v63, %v2593_v58  ;;  %v7569_v53 = vpop.permute.xlu0 %3927 }
 0x1c3   : > { %v2489_v9 = vpop.f32.mrf.mxu1  ;;  %v2968_v32 = vpop.f32.mrf.mxu0 }
 0x1c4   : > { %v2594_v60 = vadd.f32 %v2489_v9, %v7444_v22  ;;  %v7549_v42 = vadd.f32 %v5748_v13, %v2596_v35 }
 0x1c5   : > { %v5699_v6 = vpop.f32.mrf.mxu1  ;;  %v5755_v30 = vpop.f32.mrf.mxu0 }
 0x1c6   : > { %v2599_v54 = vadd.f32 %v5699_v6, %v7447_v19  ;;  %v7552_v41 = vadd.f32 %v2952_v21, %v2594_v60  ;;  %v7574_v60 = vpop.permute.xlu1 %3937 }
 0x1c7   : > { %v2502_v7 = vpop.f32.mrf.mxu1  ;;  %v2981_v24 = vpop.f32.mrf.mxu0 }
 0x1c8   : > { %v2597_v23 = vadd.f32 %v2502_v7, %v7450_v49  ;;  %v7555_v16 = vadd.f32 %v5751_v39, %v2599_v54 }
 0x1c9   : > { %v5700_v52 = vpop.f32.mrf.mxu1  ;;  %v5756_v63 = vpop.f32.mrf.mxu0 }
 0x1ca   : > { %v2600_v0 = vadd.f32 %v5700_v52, %v7453_v31  ;;  %v7558_v20 = vadd.f32 %v2965_v1, %v2597_v23  ;;  %v7582_v52 = vpop.permute.xlu0 %3932 }
 0x1cb   : > { %v2505_v22 = vpop.f32.mrf.mxu1  ;;  %v2984_v13 = vpop.f32.mrf.mxu0 }
 0x1cc   : > { %v2598_v18 = vadd.f32 %v2505_v22, %v7456_v47  ;;  %v7561_v25 = vadd.f32 %v5752_v51, %v2600_v0 }
 0x1cd   : > { %v5703_v19 = vpop.f32.mrf.mxu1  ;;  %v5759_v21 = vpop.f32.mrf.mxu0 }
 0x1ce   : > { %v2603_v56 = vadd.f32 %v5703_v19, %v7459_v46  ;;  %v7564_v3 = vadd.f32 %v2968_v32, %v2598_v18  ;;  %v7587_v18 = vpop.permute.xlu1 %3942 }
 0x1cf   : > { %v2518_v49 = vpop.f32.mrf.mxu1  ;;  %v2997_v39 = vpop.f32.mrf.mxu0 }
 0x1d0   : > { %v2601_v57 = vadd.f32 %v2518_v49, %v7462_v38  ;;  %v7567_v58 = vadd.f32 %v5755_v30, %v2603_v56 }
 0x1d1   : > { %v5704_v31 = vpop.f32.mrf.mxu1  ;;  %v5760_v1 = vpop.f32.mrf.mxu0 }
 0x1d2   : > { %v2604_v47 = vadd.f32 %v5704_v31, %v7465_v34  ;;  %v7572_v51 = vadd.f32 %v2981_v24, %v2601_v57  ;;  %v7595_v31 = vpop.permute.xlu0 %3947 }
 0x1d3   : > { %v2521_v35 = vpop.f32.mrf.mxu1  ;;  %v3000_v9 = vpop.f32.mrf.mxu0 }
 0x1d4   : > { %v2602_v46 = vadd.f32 %v2521_v35, %v7468_v27  ;;  %v7577_v32 = vadd.f32 %v5756_v63, %v2604_v47 }
 0x1d5   : > { %v5707_v6 = vpop.f32.mrf.mxu1  ;;  %v5763_v38 = vpop.f32.mrf.mxu0 }
 0x1d6   : > { %v2607_v30 = vadd.f32 %v5707_v6, %v7471_v43  ;;  %v7580_v54 = vadd.f32 %v2984_v13, %v2602_v46  ;;  %v7600_v46 = vpop.permute.xlu1 %3952 }
 0x1d7   : > { %v2534_v7 = vpop.f32.mrf.mxu1  ;;  %v3013_v23 = vpop.f32.mrf.mxu0 }
 0x1d8   : > { %v2605_v34 = vadd.f32 %v2534_v7, %v7474_v5  ;;  %v7585_v24 = vadd.f32 %v5759_v21, %v2607_v30 }
 0x1d9   : > { %v5708_v0 = vpop.f32.mrf.mxu1  ;;  %v5764_v22 = vpop.f32.mrf.mxu0 }
 0x1da   : > { %v2608_v27 = vadd.f32 %v5708_v0, %v7477_v50  ;;  %v7590_v63 = vadd.f32 %v2997_v39, %v2605_v34  ;;  %v7608_v0 = vpop.permute.xlu0 %3957 }
 0x1db   : > { %v2537_v19 = vpop.f32.mrf.mxu1  ;;  %v3016_v43 = vpop.f32.mrf.mxu0 }
 0x1dc   : > { %v2606_v13 = vadd.f32 %v2537_v19, %v7480_v45  ;;  %v7593_v56 = vadd.f32 %v5760_v1, %v2608_v27 }
 0x1dd   : > { %v5711_v49 = vpop.f32.mrf.mxu1  ;;  %v5767_v57 = vpop.f32.mrf.mxu0 }
 0x1de   : > { %v2611_v5 = vadd.f32 %v5711_v49, %v7483_v14  ;;  %v7598_v21 = vadd.f32 %v3000_v9, %v2606_v13  ;;  %v7613_v13 = vpop.permute.xlu1 %3962 }
 0x1df   : > { %v2550_v47 = vpop.f32.mrf.mxu1  ;;  %v3029_v35 = vpop.f32.mrf.mxu0 }
 0x1e0   : > { %v2609_v50 = vadd.f32 %v2550_v47, %v7486_v36  ;;  %v7603_v39 = vadd.f32 %v5763_v38, %v2611_v5 }
 0x1e1   : > { %v5712_v6 = vpop.f32.mrf.mxu1  ;;  %v5768_v45 = vpop.f32.mrf.mxu0 }
 0x1e2   : > { %v2612_v1 = vadd.f32 %v5712_v6, %v7489_v55  ;;  %v7606_v30 = vadd.f32 %v3013_v23, %v2609_v50  ;;  %v7621_v6 = vpop.permute.xlu0 %3967 }
 0x1e3   : > { %v2553_v7 = vpop.f32.mrf.mxu1  ;;  %v3032_v34 = vpop.f32.mrf.mxu0 }
 0x1e4   : > { %v2610_v14 = vadd.f32 %v2553_v7, %v7492_v12  ;;  %v7611_v9 = vadd.f32 %v5764_v22, %v2612_v1 }
 0x1e5   : > { %v5715_v27 = vpop.f32.mrf.mxu1  ;;  %v5839_v19 = vpop.f32.mrf.mxu0 }
 0x1e6   : > { %8207 = vst [vmem:[#allocation6_spill] sm:$0xff] %v7611_v9  ;;  %v2615_v36 = vadd.f32 %v5715_v27, %v7495_v4  ;;  %v7616_v38 = vadd.f32 %v3016_v43, %v2610_v14  ;;  %v7626_v9 = vpop.permute.xlu1 %3972 }
 0x1e7   : > { %v2566_v49 = vpop.f32.mrf.mxu1  ;;  %v3710_v55 = vpop.f32.mrf.mxu0 }
 0x1e8   : > { %8208 = vst [vmem:[#allocation8_spill] sm:$0xff] %v7616_v38  ;;  %v2613_v23 = vadd.f32 %v2566_v49, %v7498_v61  ;;  %v7619_v5 = vadd.f32 %v5767_v57, %v2615_v36  ;;  %v7633_v49 = vpop.permute.xlu0 %3977 }
 0x1e9   : > { %v5716_v47 = vpop.f32.mrf.mxu1  ;;  %v5840_v50 = vpop.f32.mrf.mxu0 }
 0x1ea   : > { %8209 = vst [vmem:[#allocation7_spill] sm:$0xff] %v7619_v5  ;;  %v2616_v12 = vadd.f32 %v5716_v47, %v7501_v44  ;;  %v7624_v22 = vadd.f32 %v3029_v35, %v2613_v23  ;;  %v7637_v5 = vpop.permute.xlu1 %3982 }
 0x1eb   : > { %v2569_v1 = vpop.f32.mrf.mxu1  ;;  %v3713_v7 = vpop.f32.mrf.mxu0 }
 0x1ec   : > { %8210 = vst [vmem:[#allocation9_spill] sm:$0xff] %v7624_v22  ;;  %v2614_v4 = vadd.f32 %v2569_v1, %v7504_v62  ;;  %v7629_v43 = vadd.f32 %v5768_v45, %v2616_v12 }
 0x1ed   : > { %v5787_v14 = vpop.f32.mrf.mxu1  ;;  %v5843_v61 = vpop.f32.mrf.mxu0 }
 0x1ee   : > { %8211 = vst [vmem:[#allocation10_spill] sm:$0xff] %v7629_v43  ;;  %v7631_v57 = vadd.f32 %v3032_v34, %v2614_v4  ;;  %v3517_v44 = vadd.f32 %v5787_v14, %v7507_v59  ;;  %v7644_v59 = vpop.permute.xlu0 %3987 }
 0x1ef   : > { %v3372_v27 = vpop.f32.mrf.mxu1  ;;  %v3726_v36 = vpop.f32.mrf.mxu0 }
 0x1f0   : > { %8212 = vst [vmem:[#allocation12_spill] sm:$0xff] %v7631_v57  ;;  %v3515_v35 = vadd.f32 %v3372_v27, %v7510_v48  ;;  %v3855_v1 = vadd.f32 %v5839_v19, %v3517_v44 }
 0x1f1   : > { %v5788_v23 = vpop.f32.mrf.mxu1  ;;  %v5844_v47 = vpop.f32.mrf.mxu0 }
 0x1f2   : > { %v3853_v22 = vadd.f32 %v3710_v55, %v3515_v35  ;;  %v3518_v62 = vadd.f32 %v5788_v23, %v7513_v33  ;;  %v7647_v35 = vpop.permute.xlu1 %3992  ;;  %v7650_v33 = vmul.f32 %v7574_v60, %v3855_v1 }
 0x1f3   : > { %v3375_v45 = vpop.f32.mrf.mxu1  ;;  %v3729_v12 = vpop.f32.mrf.mxu0 }
 0x1f4   : > { %v3516_v34 = vadd.f32 %v3375_v45, %v7516_v26  ;;  %v7642_v4 = vmul.f32 %v7569_v53, %v3853_v22  ;;  %v3856_v48 = vadd.f32 %v5840_v50, %v3518_v62  ;;  %8213 = vst [vmem:[#allocation11_spill] sm:$0xff] %v7650_v33  ;;  %v4185_v62 = vmul.f32 %v7650_v33, %v7650_v33 }
 0x1f5   : > { %v5791_v57 = vpop.f32.mrf.mxu1  ;;  %v5847_v43 = vpop.f32.mrf.mxu0 }
 0x1f6   : > { %v3854_v14 = vadd.f32 %v3713_v7, %v3516_v34  ;;  %v3521_v27 = vadd.f32 %v5791_v57, %v7519_v29  ;;  %v4183_v19 = vmul.f32 %v7642_v4, %v7642_v4  ;;  %v7659_v7 = vmul.f32 %v7587_v18, %v3856_v48 }
 0x1f7   : > { %v3388_v38 = vpop.f32.mrf.mxu1  ;;  %v3742_v55 = vpop.f32.mrf.mxu0 }
 0x1f8   : > { %v7653_v26 = vmul.f32 %v7582_v52, %v3854_v14  ;;  %v3519_v53 = vadd.f32 %v3388_v38, %v7522_v8  ;;  %v3859_v44 = vadd.f32 %v5843_v61, %v3521_v27  ;;  %v7666_v38 = vpop.permute.xlu0 %3997  ;;  %v7675_v61 = vpop.permute.xlu1 %4002 }
 0x1f9   : > { %v5792_v22 = vpop.f32.mrf.mxu1  ;;  %v5848_v50 = vpop.f32.mrf.mxu0 }
 0x1fa   : > { %v4141_v29 = vadd.f32 %v7653_v26, %v7642_v4  ;;  %v4184_v60 = vmul.f32 %v7653_v26, %v7653_v26  ;;  %v3857_v57 = vadd.f32 %v3726_v36, %v3519_v53  ;;  %v3522_v52 = vadd.f32 %v5792_v22, %v7525_v17 }
 0x1fb   : > { %v3391_v23 = vpop.f32.mrf.mxu1  ;;  %v3745_v8 = vpop.f32.mrf.mxu0  ;;  %v4186_v17 = vmul.f32 %v7659_v7, %v7659_v7  ;;  %v7681_v53 = vmul.f32 %v7608_v0, %v3859_v44 }
 0x1fc   : > { %v4142_v18 = vadd.f32 %v4141_v29, %v7650_v33  ;;  %v4219_v45 = vadd.f32 %v4184_v60, %v4183_v19  ;;  %v7672_v1 = vmul.f32 %v7595_v31, %v3857_v57  ;;  %v3520_v34 = vadd.f32 %v3391_v23, %v7528_v37  ;;  %v7691_v44 = vpop.permute.xlu0 %4007 }
 0x1fd   : > { %v5795_v48 = vpop.f32.mrf.mxu1  ;;  %v5851_v36 = vpop.f32.mrf.mxu0  ;;  %v3860_v22 = vadd.f32 %v5844_v47, %v3522_v52 }
 0x1fe   : > { %v4220_v14 = vadd.f32 %v4219_v45, %v4185_v62  ;;  %v4143_v27 = vadd.f32 %v4142_v18, %v7659_v7  ;;  %v3858_v19 = vadd.f32 %v3729_v12, %v3520_v34  ;;  %v4187_v37 = vmul.f32 %v7672_v1, %v7672_v1 }
 0x1ff   : > { %v3404_v29 = vpop.f32.mrf.mxu1  ;;  %v3758_v31 = vpop.f32.mrf.mxu0  ;;  %v3525_v62 = vadd.f32 %v5795_v48, %v7531_v11  ;;  %v7694_v52 = vmul.f32 %v7613_v13, %v3860_v22  ;;  %v4189_v11 = vmul.f32 %v7681_v53, %v7681_v53 }
 0x200   : > { %v4144_v60 = vadd.f32 %v4143_v27, %v7672_v1  ;;  %v4221_v57 = vadd.f32 %v4220_v14, %v4186_v17  ;;  %v3523_v23 = vadd.f32 %v3404_v29, %v7534_v15  ;;  %v7688_v33 = vmul.f32 %v7600_v46, %v3858_v19  ;;  %v7700_v14 = vpop.permute.xlu1 %4012 }
 0x201   : > { %v5796_v18 = vpop.f32.mrf.mxu1  ;;  %v5852_v0 = vpop.f32.mrf.mxu0  ;;  %v3863_v27 = vadd.f32 %v5847_v43, %v3525_v62 }
 0x202   : > { %v4222_v47 = vadd.f32 %v4221_v57, %v4187_v37  ;;  %v3861_v12 = vadd.f32 %v3742_v55, %v3523_v23  ;;  %v4145_v45 = vadd.f32 %v4144_v60, %v7688_v33  ;;  %v4188_v34 = vmul.f32 %v7688_v33, %v7688_v33 }
 0x203   : > { %v3526_v15 = vadd.f32 %v5796_v18, %v7537_v28  ;;  %v3407_v46 = vpop.f32.mrf.mxu1  ;;  %v3761_v17 = vpop.f32.mrf.mxu0  ;;  %v4190_v60 = vmul.f32 %v7694_v52, %v7694_v52 }
 0x204   : > { %v3524_v48 = vadd.f32 %v3407_v46, %v7540_v40  ;;  %v4146_v55 = vadd.f32 %v4145_v45, %v7681_v53  ;;  %v4223_v13 = vadd.f32 %v4222_v47, %v4188_v34  ;;  %v7707_v22 = vmul.f32 %v7621_v6, %v3861_v12  ;;  %v7714_v46 = vpop.permute.xlu0 %4017 }
 0x205   : > { %v5799_v19 = vpop.f32.mrf.mxu1  ;;  %v7709_v29 = vpop.f32.mrf.mxu0  ;;  %v3864_v23 = vadd.f32 %v5848_v50, %v3526_v15 }
 0x206   : > { %v3862_v28 = vadd.f32 %v3745_v8, %v3524_v48  ;;  %v4224_v37 = vadd.f32 %v4223_v13, %v4189_v11  ;;  %v4147_v57 = vadd.f32 %v4146_v55, %v7694_v52  ;;  %v3529_v6 = vadd.f32 %v5799_v19, %v7543_v2  ;;  %v7727_v15 = vpop.permute.xlu1 %4022 }
 0x207   : > { %v3420_v18 = vpop.f32.mrf.mxu1  ;;  %v3774_v40 = vpop.f32.mrf.mxu0  ;;  %v7722_v8 = vmul.f32 %v7633_v49, %v3863_v27  ;;  %v4191_v12 = vmul.f32 %v7707_v22, %v7707_v22 }
 0x208   : > { %v7717_v43 = vmul.f32 %v7626_v9, %v3862_v28  ;;  %v3527_v62 = vadd.f32 %v3420_v18, %v7546_v10  ;;  %v4148_v47 = vadd.f32 %v4147_v57, %v7707_v22  ;;  %v4225_v50 = vadd.f32 %v4224_v37, %v4190_v60 }
 0x209   : > { %v5800_v45 = vpop.f32.mrf.mxu1  ;;  %v5856_v34 = vpop.f32.mrf.mxu0  ;;  %v7732_v10 = vmul.f32 %v7637_v5, %v3864_v23  ;;  %v3867_v27 = vadd.f32 %v5851_v36, %v3529_v6  ;;  %v4193_v28 = vmul.f32 %v7722_v8, %v7722_v8 }
 0x20a   : > { %v4192_v9 = vmul.f32 %v7717_v43, %v7717_v43  ;;  %v3865_v11 = vadd.f32 %v3758_v31, %v3527_v62  ;;  %v4226_v2 = vadd.f32 %v4225_v50, %v4191_v12  ;;  %v4149_v49 = vadd.f32 %v4148_v47, %v7717_v43  ;;  %v7745_v23 = vpop.permute.xlu0 %4027  ;;  %v7750_v12 = vpop.permute.xlu1 %4032 }
 0x20b   : > { %v3530_v48 = vadd.f32 %v5800_v45, %v7549_v42  ;;  %v3423_v55 = vpop.f32.mrf.mxu1  ;;  %v3777_v13 = vpop.f32.mrf.mxu0  ;;  %v4194_v36 = vmul.f32 %v7732_v10, %v7732_v10 }
 0x20c   : > { %v3528_v19 = vadd.f32 %v3423_v55, %v7552_v41  ;;  %v4150_v60 = vadd.f32 %v4149_v49, %v7722_v8  ;;  %v4227_v37 = vadd.f32 %v4226_v2, %v4192_v9  ;;  %v7741_v31 = vmul.f32 %v7644_v59, %v3865_v11 }
 0x20d   : > { %v5803_v5 = vpop.f32.mrf.mxu1  ;;  %v7743_v57 = vpop.f32.mrf.mxu0  ;;  %v3868_v6 = vadd.f32 %v5852_v0, %v3530_v48  ;;  %v7753_v59 = vmul.f32 %v7666_v38, %v3867_v27 }
 0x20e   : > { %v3866_v42 = vadd.f32 %v3761_v17, %v3528_v19  ;;  %v4228_v18 = vadd.f32 %v4227_v37, %v4193_v28  ;;  %v4151_v41 = vadd.f32 %v4150_v60, %v7732_v10  ;;  %v4195_v9 = vmul.f32 %v7741_v31, %v7741_v31  ;;  %v4038_v60 = vpop.permute.xlu0 %4037 }
 0x20f   : > { %v3436_v62 = vpop.f32.mrf.mxu1  ;;  %v3790_v47 = vpop.f32.mrf.mxu0  ;;  %v3533_v0 = vadd.f32 %v5803_v5, %v7555_v16  ;;  %v4197_v16 = vmul.f32 %v7753_v59, %v7753_v59 }
 0x210   : > { %v7756_v50 = vmul.f32 %v7647_v35, %v3866_v42  ;;  %v3531_v45 = vadd.f32 %v3436_v62, %v7558_v20  ;;  %v4152_v17 = vadd.f32 %v4151_v41, %v7741_v31  ;;  %v4229_v11 = vadd.f32 %v4228_v18, %v4194_v36 }
 0x211   : > { %v5804_v2 = vpop.f32.mrf.mxu1  ;;  %v5860_v49 = vpop.f32.mrf.mxu0  ;;  %v7766_v35 = vmul.f32 %v7675_v61, %v3868_v6 }
 0x212   : > { %v4196_v48 = vmul.f32 %v7756_v50, %v7756_v50  ;;  %v3869_v38 = vadd.f32 %v3774_v40, %v3531_v45  ;;  %v4230_v55 = vadd.f32 %v4229_v11, %v4195_v9  ;;  %v4153_v20 = vadd.f32 %v4152_v17, %v7756_v50 }
 0x213   : > { %v3534_v27 = vadd.f32 %v5804_v2, %v7561_v25  ;;  %v3439_v19 = vpop.f32.mrf.mxu1  ;;  %v3793_v28 = vpop.f32.mrf.mxu0  ;;  %v3871_v40 = vadd.f32 %v7709_v29, %v3533_v0  ;;  %v4198_v6 = vmul.f32 %v7766_v35, %v7766_v35 }
 0x214   : > { %v3532_v37 = vadd.f32 %v3439_v19, %v7564_v3  ;;  %v4154_v5 = vadd.f32 %v4153_v20, %v7753_v59  ;;  %v4231_v42 = vadd.f32 %v4230_v55, %v4196_v48  ;;  %v7776_v61 = vmul.f32 %v7691_v44, %v3869_v38  ;;  %v4043_v25 = vpop.permute.xlu1 %4042  ;;  %v4048_v55 = vpop.permute.xlu0 %4047 }
 0x215   : > { %v5807_v36 = vpop.f32.mrf.mxu1  ;;  %v7778_v18 = vpop.f32.mrf.mxu0  ;;  %v3872_v3 = vadd.f32 %v5856_v34, %v3534_v27  ;;  %v7789_v0 = vmul.f32 %v7714_v46, %v3871_v40 }
 0x216   : > { %v3870_v41 = vadd.f32 %v3777_v13, %v3532_v37  ;;  %v4232_v62 = vadd.f32 %v4231_v42, %v4197_v16  ;;  %v4155_v45 = vadd.f32 %v4154_v5, %v7766_v35  ;;  %v3537_v44 = vadd.f32 %v5807_v36, %v7567_v58 }
 0x217   : > { %v3452_v17 = vpop.f32.mrf.mxu1  ;;  %v3806_v9 = vpop.f32.mrf.mxu0  ;;  %v4199_v2 = vmul.f32 %v7776_v61, %v7776_v61  ;;  %v7797_v58 = vmul.f32 %v7727_v15, %v3872_v3  ;;  %v4201_v40 = vmul.f32 %v7789_v0, %v7789_v0 }
 0x218   : > { %v7784_v11 = vmul.f32 %v7700_v14, %v3870_v41  ;;  %v3535_v29 = vadd.f32 %v3452_v17, %v7572_v51  ;;  %v4156_v13 = vadd.f32 %v4155_v45, %v7776_v61  ;;  %v4233_v48 = vadd.f32 %v4232_v62, %v4198_v6  ;;  %v4053_v37 = vpop.permute.xlu1 %4052 }
 0x219   : > { %v5808_v38 = vpop.f32.mrf.mxu1  ;;  %v5864_v34 = vpop.f32.mrf.mxu0  ;;  %v3875_v5 = vadd.f32 %v7743_v57, %v3537_v44 }
 0x21a   : > { %v4200_v14 = vmul.f32 %v7784_v11, %v7784_v11  ;;  %v3873_v20 = vadd.f32 %v3790_v47, %v3535_v29  ;;  %v4234_v27 = vadd.f32 %v4233_v48, %v4199_v2  ;;  %v4157_v51 = vadd.f32 %v4156_v13, %v7784_v11  ;;  %v4058_v44 = vpop.permute.xlu0 %4057 }
 0x21b   : > { %v3538_v46 = vadd.f32 %v5808_v38, %v7577_v32  ;;  %v3455_v19 = vpop.f32.mrf.mxu1  ;;  %v3809_v16 = vpop.f32.mrf.mxu0  ;;  %v4202_v32 = vmul.f32 %v7797_v58, %v7797_v58  ;;  %v7812_v29 = vmul.f32 %v4038_v60, %v3875_v5 }
 0x21c   : > { %v3536_v42 = vadd.f32 %v3455_v19, %v7580_v54  ;;  %v4158_v47 = vadd.f32 %v4157_v51, %v7789_v0  ;;  %v4235_v36 = vadd.f32 %v4234_v27, %v4200_v14  ;;  %v7807_v15 = vmul.f32 %v7745_v23, %v3873_v20  ;;  %v4063_v20 = vpop.permute.xlu1 %4062 }
 0x21d   : > { %v5811_v41 = vpop.f32.mrf.mxu1  ;;  %v5867_v6 = vpop.f32.mrf.mxu0  ;;  %v3876_v3 = vadd.f32 %v5860_v49, %v3538_v46  ;;  %v4205_v5 = vmul.f32 %v7812_v29, %v7812_v29 }
 0x21e   : > { %v3874_v62 = vadd.f32 %v3793_v28, %v3536_v42  ;;  %v4236_v45 = vadd.f32 %v4235_v36, %v4201_v40  ;;  %v4159_v57 = vadd.f32 %v4158_v47, %v7797_v58  ;;  %v4203_v28 = vmul.f32 %v7807_v15, %v7807_v15 }
 0x21f   : > { %v3468_v54 = vpop.f32.mrf.mxu1  ;;  %v3822_v17 = vpop.f32.mrf.mxu0  ;;  %v3541_v38 = vadd.f32 %v5811_v41, %v7585_v24 }
 0x220   : > { %v7815_v13 = vmul.f32 %v7750_v12, %v3874_v62  ;;  %v3539_v23 = vadd.f32 %v3468_v54, %v7590_v63  ;;  %v4160_v2 = vadd.f32 %v4159_v57, %v7807_v15  ;;  %v4237_v48 = vadd.f32 %v4236_v45, %v4202_v32  ;;  %v4068_v41 = vpop.permute.xlu0 %4067 }
 0x221   : > { %v5812_v14 = vpop.f32.mrf.mxu1  ;;  %v5868_v49 = vpop.f32.mrf.mxu0  ;;  %v7824_v12 = vmul.f32 %v4043_v25, %v3876_v3  ;;  %v3879_v47 = vadd.f32 %v7778_v18, %v3541_v38 }
 0x222   : > { %v4204_v60 = vmul.f32 %v7815_v13, %v7815_v13  ;;  %v3877_v27 = vadd.f32 %v3806_v9, %v3539_v23  ;;  %v4238_v51 = vadd.f32 %v4237_v48, %v4203_v28  ;;  %v4161_v63 = vadd.f32 %v4160_v2, %v7815_v13 }
 0x223   : > { %v3542_v46 = vadd.f32 %v5812_v14, %v7593_v56  ;;  %v3471_v19 = vpop.f32.mrf.mxu1  ;;  %v3825_v25 = vpop.f32.mrf.mxu0  ;;  %v4206_v56 = vmul.f32 %v7824_v12, %v7824_v12 }
 0x224   : > { %v3540_v24 = vadd.f32 %v3471_v19, %v7598_v21  ;;  %v4162_v42 = vadd.f32 %v4161_v63, %v7812_v29  ;;  %v4239_v40 = vadd.f32 %v4238_v51, %v4204_v60  ;;  %v7833_v36 = vmul.f32 %v4048_v55, %v3877_v27  ;;  %v4073_v21 = vpop.permute.xlu1 %4072  ;;  %v4078_v51 = vpop.permute.xlu0 %4077 }
 0x225   : > { %v5815_v9 = vpop.f32.mrf.mxu1  ;;  %v3880_v57 = vadd.f32 %v5864_v34, %v3542_v46  ;;  %v7842_v55 = vmul.f32 %v4058_v44, %v3879_v47  ;;  %v5871_v38 = vpop.f32.mrf.mxu0  ;;  %v8215_v46 = vld [vmem:[#allocation8_spill] sm:$0xff] }
 0x226   : > { %v3878_v62 = vadd.f32 %v3809_v16, %v3540_v24  ;;  %v4240_v32 = vadd.f32 %v4239_v40, %v4205_v5  ;;  %v4163_v45 = vadd.f32 %v4162_v42, %v7824_v12  ;;  %v3545_v23 = vadd.f32 %v5815_v9, %v7603_v39 }
 0x227   : > { %v3484_v3 = vpop.f32.mrf.mxu1  ;;  %v4207_v16 = vmul.f32 %v7833_v36, %v7833_v36  ;;  %v7849_v60 = vmul.f32 %v4063_v20, %v3880_v57  ;;  %v4209_v5 = vmul.f32 %v7842_v55, %v7842_v55 }
 0x228   : > { %v7838_v54 = vmul.f32 %v4053_v37, %v3878_v62  ;;  %v3543_v18 = vadd.f32 %v3484_v3, %v7606_v30  ;;  %v4164_v2 = vadd.f32 %v4163_v45, %v7833_v36  ;;  %v4241_v28 = vadd.f32 %v4240_v32, %v4206_v56  ;;  %v8214_v30 = vld [vmem:[#allocation6_spill] sm:$0xff]  ;;  %v4083_v47 = vpop.permute.xlu1 %4082 }
 0x229   : > { %v5816_v48 = vpop.f32.mrf.mxu1  ;;  %v3883_v63 = vadd.f32 %v5867_v6, %v3545_v23  ;;  %v4210_v62 = vmul.f32 %v7849_v60, %v7849_v60  ;;  %v8216_v23 = vld [vmem:[#allocation9_spill] sm:$0xff] }
 0x22a   : > { %v4208_v34 = vmul.f32 %v7838_v54, %v7838_v54  ;;  %v3881_v14 = vadd.f32 %v3822_v17, %v3543_v18  ;;  %v4242_v37 = vadd.f32 %v4241_v28, %v4207_v16  ;;  %v4165_v39 = vadd.f32 %v4164_v2, %v7838_v54  ;;  %v3838_v17 = vpop.f32.mrf.mxu0  ;;  %v8217_v16 = vld [vmem:[#allocation7_spill] sm:$0xff] }
 0x22b   : > { %v3546_v44 = vadd.f32 %v5816_v48, %v8214_v30  ;;  %v3487_v27 = vpop.f32.mrf.mxu1  ;;  %v7862_v57 = vmul.f32 %v4078_v51, %v3883_v63 }
 0x22c   : > { %v3544_v19 = vadd.f32 %v3487_v27, %v8215_v46  ;;  %v4166_v24 = vadd.f32 %v4165_v39, %v7842_v55  ;;  %v4243_v42 = vadd.f32 %v4242_v37, %v4208_v34  ;;  %v7857_v40 = vmul.f32 %v4068_v41, %v3881_v14  ;;  %v5872_v48 = vpop.f32.mrf.mxu0  ;;  %v4088_v14 = vpop.permute.xlu0 %4087 }
 0x22d   : > { %v5819_v20 = vpop.f32.mrf.mxu1  ;;  %v3884_v32 = vadd.f32 %v5868_v49, %v3546_v44  ;;  %v8218_v44 = vld [vmem:[#allocation10_spill] sm:$0xff]  ;;  %v4093_v63 = vpop.permute.xlu1 %4092  ;;  %v4213_v46 = vmul.f32 %v7862_v57, %v7862_v57 }
 0x22e   : > { %v3882_v9 = vadd.f32 %v3825_v25, %v3544_v19  ;;  %v4244_v56 = vadd.f32 %v4243_v42, %v4209_v5  ;;  %v4167_v6 = vadd.f32 %v4166_v24, %v7849_v60  ;;  %v4211_v2 = vmul.f32 %v7857_v40, %v7857_v40  ;;  %v8219_v19 = vld [vmem:[#allocation12_spill] sm:$0xff] }
 0x22f   : > { %v3500_v45 = vpop.f32.mrf.mxu1  ;;  %v3549_v28 = vadd.f32 %v5819_v20, %v8217_v16 }
 0x230   : > { %v7864_v3 = vmul.f32 %v4073_v21, %v3882_v9  ;;  %v3547_v18 = vadd.f32 %v3500_v45, %v8216_v23  ;;  %v4168_v41 = vadd.f32 %v4167_v6, %v7857_v40  ;;  %v4245_v25 = vadd.f32 %v4244_v56, %v4210_v62  ;;  %v4098_v45 = vpop.permute.xlu0 %4097 }
 0x231   : > { %v5820_v34 = vpop.f32.mrf.mxu1  ;;  %v7873_v21 = vmul.f32 %v4083_v47, %v3884_v32  ;;  %v3887_v20 = vadd.f32 %v5871_v38, %v3549_v28 }
 0x232   : > { %v4212_v49 = vmul.f32 %v7864_v3, %v7864_v3  ;;  %v3885_v37 = vadd.f32 %v3838_v17, %v3547_v18  ;;  %v4246_v39 = vadd.f32 %v4245_v25, %v4211_v2  ;;  %v4169_v30 = vadd.f32 %v4168_v41, %v7864_v3  ;;  %v3841_v17 = vpop.f32.mrf.mxu0  ;;  %v4103_v25 = vpop.permute.xlu1 %4102 }
 0x233   : > { %v3550_v27 = vadd.f32 %v5820_v34, %v8218_v44  ;;  %v3503_v51 = vpop.f32.mrf.mxu1  ;;  %v4214_v62 = vmul.f32 %v7873_v21, %v7873_v21  ;;  %v7888_v18 = vmul.f32 %v4098_v45, %v3887_v20 }
 0x234   : > { %v3548_v5 = vadd.f32 %v3503_v51, %v8219_v19  ;;  %v4170_v24 = vadd.f32 %v4169_v30, %v7862_v57  ;;  %v4247_v42 = vadd.f32 %v4246_v39, %v4212_v49  ;;  %v7881_v9 = vmul.f32 %v4088_v14, %v3885_v37 }
 0x235   : > { %v3888_v32 = vadd.f32 %v5872_v48, %v3550_v27  ;;  %v4217_v14 = vmul.f32 %v7888_v18, %v7888_v18 }
 0x236   : > { %v3886_v47 = vadd.f32 %v3841_v17, %v3548_v5  ;;  %v4248_v56 = vadd.f32 %v4247_v42, %v4213_v46  ;;  %v4171_v6 = vadd.f32 %v4170_v24, %v7873_v21  ;;  %v4215_v38 = vmul.f32 %v7881_v9, %v7881_v9 }
 0x237   : > { %v7895_v34 = vmul.f32 %v4103_v25, %v3888_v32 }
 0x238   : > { %v7886_v23 = vmul.f32 %v4093_v63, %v3886_v47  ;;  %v4172_v41 = vadd.f32 %v4171_v6, %v7881_v9  ;;  %v4249_v2 = vadd.f32 %v4248_v56, %v4214_v62 }
 0x239   : > { %v4218_v39 = vmul.f32 %v7895_v34, %v7895_v34 }
 0x23a   : > { %v4216_v16 = vmul.f32 %v7886_v23, %v7886_v23  ;;  %v4250_v28 = vadd.f32 %v4249_v2, %v4215_v38  ;;  %v4173_v48 = vadd.f32 %v4172_v41, %v7886_v23 }
 0x23c   : > { %v4174_v49 = vadd.f32 %v4173_v48, %v7888_v18  ;;  %v4251_v37 = vadd.f32 %v4250_v28, %v4216_v16 }
 0x23e   : > { %v4175_v30 = vadd.f32 %v4174_v49, %v7895_v34  ;;  %v4252_v44 = vadd.f32 %v4251_v37, %v4217_v14 }
 0x240   : > { %v4176_v27 = vrot.slane %v4175_v30, 4  ;;  %v4253_v51 = vadd.f32 %v4252_v44, %v4218_v39 }
 0x242   : > { %v4177_v63 = vadd.f32 %v4176_v27, %v4175_v30  ;;  %v4254_v46 = vrot.slane %v4253_v51, 4 }
 0x244   : > { %v4178_v19 = vrot.slane %v4177_v63, 2  ;;  %v4255_v5 = vadd.f32 %v4254_v46, %v4253_v51 }
 0x246   : > { %v4179_v24 = vadd.f32 %v4178_v19, %v4177_v63  ;;  %v4256_v42 = vrot.slane %v4255_v5, 2 }
 0x248   : > { %v4180_v20 = vrot.slane %v4179_v24, 1  ;;  %v4257_v17 = vadd.f32 %v4256_v42, %v4255_v5 }
 0x24a   : > { %v4181_v47 = vadd.f32 %v4180_v20, %v4179_v24  ;;  %v4258_v62 = vrot.slane %v4257_v17, 1 }
 0x24c   : > { %v4259_v56 = vadd.f32 %v4258_v62, %v4257_v17  ;;  %v7904_v6 = vmul.f32 0.00390625, %v4181_v47 }
 0x24e   : > { %v4298_v32 = vmul.f32 0.00390625, %v4259_v56  ;;  %v4299_v45 = vmul.f32 %v7904_v6, %v7904_v6  ;;  %v4355_v2 = vsub.f32 %v7776_v61, %v7904_v6  ;;  %v4356_v25 = vsub.f32 %v7784_v11, %v7904_v6 }
 0x24f   : > { %v4357_v16 = vsub.f32 %v7789_v0, %v7904_v6  ;;  %v4358_v28 = vsub.f32 %v7797_v58, %v7904_v6  ;;  %v4359_v48 = vsub.f32 %v7807_v15, %v7904_v6  ;;  %v4360_v14 = vsub.f32 %v7815_v13, %v7904_v6 }
 0x250   : > { %v4300_v41 = vsub.f32 %v4298_v32, %v4299_v45  ;;  %v4361_v49 = vsub.f32 %v7812_v29, %v7904_v6  ;;  %v4362_v61 = vsub.f32 %v7824_v12, %v7904_v6  ;;  %v4363_v11 = vsub.f32 %v7833_v36, %v7904_v6 }
 0x251   : > { %v4364_v0 = vsub.f32 %v7838_v54, %v7904_v6  ;;  %v4365_v58 = vsub.f32 %v7842_v55, %v7904_v6  ;;  %v4366_v15 = vsub.f32 %v7849_v60, %v7904_v6  ;;  %v4367_v13 = vsub.f32 %v7857_v40, %v7904_v6 }
 0x252   : > { %v4301_v38 = vadd.f32 1e-05, %v4300_v41  ;;  %v4368_v29 = vsub.f32 %v7864_v3, %v7904_v6  ;;  %v4369_v12 = vsub.f32 %v7862_v57, %v7904_v6  ;;  %v4370_v36 = vsub.f32 %v7873_v21, %v7904_v6  ;;  %v8220_v21 = vld [vmem:[#allocation11_spill] sm:$0xff] }
 0x253   : > { %v4371_v54 = vsub.f32 %v7881_v9, %v7904_v6  ;;  %v4372_v55 = vsub.f32 %v7886_v23, %v7904_v6  ;;  %v4373_v60 = vsub.f32 %v7888_v18, %v7904_v6  ;;  %v4374_v40 = vsub.f32 %v7895_v34, %v7904_v6 }
 0x254   : > { %6052 = vrsqrt.f32 %v4301_v38  ;;  %v4339_v3 = vsub.f32 %v7642_v4, %v7904_v6  ;;  %v4340_v57 = vsub.f32 %v7653_v26, %v7904_v6  ;;  %v4341_v37 = vsub.f32 %v8220_v21, %v7904_v6 }
 0x255   : > { %v4342_v9 = vsub.f32 %v7659_v7, %v7904_v6  ;;  %v4343_v23 = vsub.f32 %v7672_v1, %v7904_v6  ;;  %v4344_v18 = vsub.f32 %v7688_v33, %v7904_v6  ;;  %v4345_v34 = vsub.f32 %v7681_v53, %v7904_v6 }
 0x256   : > { %v4346_v4 = vsub.f32 %v7694_v52, %v7904_v6  ;;  %v4347_v26 = vsub.f32 %v7707_v22, %v7904_v6  ;;  %v4348_v39 = vsub.f32 %v7717_v43, %v7904_v6  ;;  %v4349_v7 = vsub.f32 %v7722_v8, %v7904_v6 }
 0x257   : > { %v4350_v1 = vsub.f32 %v7732_v10, %v7904_v6  ;;  %v4351_v33 = vsub.f32 %v7741_v31, %v7904_v6  ;;  %v4352_v53 = vsub.f32 %v7756_v50, %v7904_v6  ;;  %v4353_v52 = vsub.f32 %v7753_v59, %v7904_v6 }
 0x258   : > { %v4354_v22 = vsub.f32 %v7766_v35, %v7904_v6 }
 0x261   : > { %v6053_v30 = vpop.eup %6052 }
 0x262   : > { %v7980_v43 = vmul.f32 %v6053_v30, %v4339_v3  ;;  %v7982_v44 = vmul.f32 %v6053_v30, %v4340_v57  ;;  %v7984_v8 = vmul.f32 %v6053_v30, %v4341_v37  ;;  %v7986_v10 = vmul.f32 %v6053_v30, %v4342_v9 }
 0x263   : > { %v7988_v27 = vmul.f32 %v6053_v30, %v4343_v23  ;;  %v7990_v31 = vmul.f32 %v6053_v30, %v4344_v18  ;;  %v7992_v51 = vmul.f32 %v6053_v30, %v4345_v34  ;;  %v7994_v50 = vmul.f32 %v6053_v30, %v4346_v4 }
 0x264   : > { %v7996_v59 = vmul.f32 %v6053_v30, %v4347_v26  ;;  %v7998_v63 = vmul.f32 %v6053_v30, %v4348_v39  ;;  %v8000_v35 = vmul.f32 %v6053_v30, %v4349_v7  ;;  %v8002_v46 = vmul.f32 %v6053_v30, %v4350_v1 }
 0x265   : > { %v8004_v19 = vmul.f32 %v6053_v30, %v4351_v33  ;;  %v8006_v5 = vmul.f32 %v6053_v30, %v4352_v53  ;;  %v8008_v24 = vmul.f32 %v6053_v30, %v4353_v52  ;;  %v8010_v42 = vmul.f32 %v6053_v30, %v4354_v22 }
 0x266   : > { %v8012_v20 = vmul.f32 %v6053_v30, %v4355_v2  ;;  %v8014_v17 = vmul.f32 %v6053_v30, %v4356_v25  ;;  %v8016_v47 = vmul.f32 %v6053_v30, %v4357_v16  ;;  %v8018_v62 = vmul.f32 %v6053_v30, %v4358_v28 }
 0x267   : > { %v8020_v56 = vmul.f32 %v6053_v30, %v4359_v48  ;;  %v8022_v6 = vmul.f32 %v6053_v30, %v4360_v14  ;;  %v8024_v32 = vmul.f32 %v6053_v30, %v4361_v49  ;;  %v8026_v45 = vmul.f32 %v6053_v30, %v4362_v61 }
 0x268   : > { %v8028_v41 = vmul.f32 %v6053_v30, %v4363_v11  ;;  %v8030_v38 = vmul.f32 %v6053_v30, %v4364_v0  ;;  %v8032_v2 = vmul.f32 %v6053_v30, %v4365_v58  ;;  %v8034_v25 = vmul.f32 %v6053_v30, %v4366_v15 }
 0x269   : > { %v8036_v16 = vmul.f32 %v6053_v30, %v4367_v13  ;;  %v8038_v28 = vmul.f32 %v6053_v30, %v4368_v29  ;;  %v8040_v48 = vmul.f32 %v6053_v30, %v4369_v12  ;;  %v8042_v14 = vmul.f32 %v6053_v30, %v4370_v36 }
 0x26a   : > { %v8044_v49 = vmul.f32 %v6053_v30, %v4371_v54  ;;  %v8046_v61 = vmul.f32 %v6053_v30, %v4372_v55  ;;  %v8048_v11 = vmul.f32 %v6053_v30, %v4373_v60  ;;  %v8050_v0 = vmul.f32 %v6053_v30, %v4374_v40 }
 0x26b   : > { %v4411_v58 = vmax.f32 %v7980_v43, 0.0  ;;  %v4412_v15 = vmax.f32 %v7982_v44, 0.0  ;;  %v4413_v13 = vmax.f32 %v7984_v8, 0.0  ;;  %v4414_v29 = vmax.f32 %v7986_v10, 0.0 }
 0x26c   : > { %v4415_v12 = vmax.f32 %v7988_v27, 0.0  ;;  %v4416_v36 = vmax.f32 %v7990_v31, 0.0  ;;  %v4417_v54 = vmax.f32 %v7992_v51, 0.0  ;;  %v4418_v55 = vmax.f32 %v7994_v50, 0.0 }
 0x26d   : > { %v4419_v60 = vmax.f32 %v7996_v59, 0.0  ;;  %v4420_v40 = vmax.f32 %v7998_v63, 0.0  ;;  %v4421_v3 = vmax.f32 %v8000_v35, 0.0  ;;  %v4422_v57 = vmax.f32 %v8002_v46, 0.0 }
 0x26e   : > { %v4423_v21 = vmax.f32 %v8004_v19, 0.0  ;;  %v4424_v37 = vmax.f32 %v8006_v5, 0.0  ;;  %v4425_v9 = vmax.f32 %v8008_v24, 0.0  ;;  %v4426_v23 = vmax.f32 %v8010_v42, 0.0 }
 0x26f   : > { %v4427_v18 = vmax.f32 %v8012_v20, 0.0  ;;  %v4428_v34 = vmax.f32 %v8014_v17, 0.0  ;;  %v4429_v4 = vmax.f32 %v8016_v47, 0.0  ;;  %v4430_v26 = vmax.f32 %v8018_v62, 0.0 }
 0x270   : > { %v4431_v39 = vmax.f32 %v8020_v56, 0.0  ;;  %v4432_v7 = vmax.f32 %v8022_v6, 0.0  ;;  %v4433_v1 = vmax.f32 %v8024_v32, 0.0  ;;  %v4434_v30 = vmax.f32 %v8026_v45, 0.0 }
 0x271   : > { %v4435_v33 = vmax.f32 %v8028_v41, 0.0  ;;  %v4436_v53 = vmax.f32 %v8030_v38, 0.0  ;;  %v4437_v52 = vmax.f32 %v8032_v2, 0.0  ;;  %v4438_v22 = vmax.f32 %v8034_v25, 0.0 }
 0x272   : > { %v4439_v43 = vmax.f32 %v8036_v16, 0.0  ;;  %v4440_v44 = vmax.f32 %v8038_v28, 0.0  ;;  %v4441_v8 = vmax.f32 %v8040_v48, 0.0  ;;  %v4442_v10 = vmax.f32 %v8042_v14, 0.0 }
 0x273   : > { %v4443_v27 = vmax.f32 %v8044_v49, 0.0  ;;  %v4444_v31 = vmax.f32 %v8046_v61, 0.0  ;;  %v4445_v51 = vmax.f32 %v8048_v11, 0.0  ;;  %v4446_v50 = vmax.f32 %v8050_v0, 0.0 }
 0x274   : > { %v5067_v59 = vpack.c.bf16 %v4412_v15, %v4411_v58  ;;  %v5072_v63 = vpack.c.bf16 %v4414_v29, %v4413_v13  ;;  %v5077_v35 = vpack.c.bf16 %v4416_v36, %v4415_v12  ;;  %v5082_v46 = vpack.c.bf16 %v4418_v55, %v4417_v54 }
 0x275   : > { %v5087_v19 = vpack.c.bf16 %v4420_v40, %v4419_v60  ;;  %v5092_v5 = vpack.c.bf16 %v4422_v57, %v4421_v3  ;;  %v5097_v24 = vpack.c.bf16 %v4424_v37, %v4423_v21  ;;  %v5102_v42 = vpack.c.bf16 %v4426_v23, %v4425_v9 }
 0x276   : > { %5068 = vst [vmem:[%s8088_s16] sm:$0xff] %v5067_v59   ;;  %5154 = vst [vmem:[%s8088_s16 + $0x8] sm:$0xff] %v5072_v63   ;;  %v5107_v20 = vpack.c.bf16 %v4428_v34, %v4427_v18  ;;  %v5112_v17 = vpack.c.bf16 %v4430_v26, %v4429_v4  ;;  %v5117_v47 = vpack.c.bf16 %v4432_v7, %v4431_v39 }
 0x277   : > { %5155 = vst [vmem:[%s8088_s16 + $0x10] sm:$0xff] %v5077_v35   ;;  %5156 = vst [vmem:[%s8088_s16 + $0x18] sm:$0xff] %v5082_v46   ;;  %v5122_v62 = vpack.c.bf16 %v4434_v30, %v4433_v1  ;;  %v5127_v56 = vpack.c.bf16 %v4436_v53, %v4435_v33  ;;  %v5132_v6 = vpack.c.bf16 %v4438_v22, %v4437_v52 }
 0x278   : > { %5157 = vst [vmem:[%s8088_s16 + $0x20] sm:$0xff] %v5087_v19   ;;  %5158 = vst [vmem:[%s8088_s16 + $0x28] sm:$0xff] %v5092_v5   ;;  %v5137_v32 = vpack.c.bf16 %v4440_v44, %v4439_v43  ;;  %v5142_v45 = vpack.c.bf16 %v4442_v10, %v4441_v8  ;;  %v5147_v41 = vpack.c.bf16 %v4444_v31, %v4443_v27 }
 0x279   : > { %5159 = vst [vmem:[%s8088_s16 + $0x30] sm:$0xff] %v5097_v24   ;;  %5160 = vst [vmem:[%s8088_s16 + $0x38] sm:$0xff] %v5102_v42   ;;  %v5152_v38 = vpack.c.bf16 %v4446_v50, %v4445_v51 }
 0x27a   : > { %5161 = vst [vmem:[%s8088_s16 + $0x40] sm:$0xff] %v5107_v20   ;;  %5162 = vst [vmem:[%s8088_s16 + $0x48] sm:$0xff] %v5112_v17  }
 0x27b   : > { %5163 = vst [vmem:[%s8088_s16 + $0x50] sm:$0xff] %v5117_v47   ;;  %5164 = vst [vmem:[%s8088_s16 + $0x58] sm:$0xff] %v5122_v62  }
 0x27c   : > { %5165 = vst [vmem:[%s8088_s16 + $0x60] sm:$0xff] %v5127_v56   ;;  %5166 = vst [vmem:[%s8088_s16 + $0x68] sm:$0xff] %v5132_v6  }
 0x27d   : > { %5167 = vst [vmem:[%s8088_s16 + $0x70] sm:$0xff] %v5137_v32   ;;  %5168 = vst [vmem:[%s8088_s16 + $0x78] sm:$0xff] %v5142_v45  }
 0x27e   : > { %5169 = vst [vmem:[%s8088_s16 + $0x80] sm:$0xff] %v5147_v41   ;;  %5170 = vst [vmem:[%s8088_s16 + $0x88] sm:$0xff] %v5152_v38  }
 0x27f PF: > { %s13_s14 = sadd.s32 1, %s6076_s14   ;;  %s8221_s12 = smov %s6072_s13 }
 0x280   : > { %p10_p5 = scmp.ge.s32.totalorder %s13_s14, 4   ;;  %s8222_s13 = smov %s8224_s15 }
 0x282   :  { %12 = sbr.rel (!%p10_p5) target bundleno = 2 (0x2), region = 73 }

</bundles_post_ra>
